<compile_context>
chip_gen: v7x
topology: tpu7x:2x2x1
jax: 0.10.0
libtpu: 0.0.40
codegen_flags: <defaults>
</compile_context>

<pallas_src>
import functools

import jax
import jax.numpy as jnp
from jax.experimental import pallas as pl
from jax.experimental.pallas import tpu as pltpu


# ---------------------------------------------------------------------------
# Pallas kernel: build sampling matrices from taps, one matmul per path,
# plus the elementwise color transform (the hot path)
# ---------------------------------------------------------------------------
def _repeatable_transform_kernel(jit_ref,       # SMEM (B, 3) f32: brightness, contrast, saturation
                                 x_ref,         # VMEM (1, C, HW) f32
                                 m_ref,         # VMEM (1, 1, HW) f32 mask
                                 idxi_ref,      # VMEM (1, T, HW) i32 composed bilinear tap indices
                                 wgti_ref,      # VMEM (1, T, HW) f32 composed bilinear tap weights
                                 idxm_ref,      # VMEM (1, 1, HW) i32 composed nearest tap index
                                 wgtm_ref,      # VMEM (1, 1, HW) f32 composed nearest tap weight
                                 mean_ref,      # VMEM (C, 1)
                                 std_ref,       # VMEM (C, 1)
                                 inv_std_ref,   # VMEM (C, 1)
                                 lum_ref,       # VMEM (C, 1) luma weights
                                 out_ref,       # VMEM (1, C+1, HW) f32 (last row = warped mask)
                                 *, color_transform):
    b = pl.program_id(0)

    x = x_ref[0]                                   # (C, HW)
    m = m_ref[0]                                   # (1, HW)
    idx_i = idxi_ref[0]                            # (T, HW)
    wgt_i = wgti_ref[0]                            # (T, HW)
    idx_m = idxm_ref[0]                            # (1, HW)
    wgt_m = wgtm_ref[0]                            # (1, HW)

    C = x.shape[0]
    HW = x.shape[1]
    n_taps = idx_i.shape[0]

    # input-pixel id along the sublane (row) axis of the sampling matrix
    in_pix = jax.lax.broadcasted_iota(jnp.int32, (HW, HW), 0)

    # image path: rebuild composed bilinear matrix W[in, out] and apply once
    w_img = jnp.where(in_pix == idx_i[0:1, :], wgt_i[0:1, :], 0.0)
    for t in range(1, n_taps):                     # static unroll; duplicate taps sum
        w_img = w_img + jnp.where(in_pix == idx_i[t:t + 1, :],
                                  wgt_i[t:t + 1, :], 0.0)
    warped = jnp.dot(x, w_img, preferred_element_type=jnp.float32)   # (C, HW)

    # mask path: single composed nearest tap (weights are exactly 0/1)
    w_msk = jnp.where(in_pix == idx_m[0:1, :], wgt_m[0:1, :], 0.0)
    m_warp = jnp.dot(m, w_msk, preferred_element_type=jnp.float32)   # (1, HW)

    if color_transform:
        mean3 = mean_ref[...][:3]                  # (3, 1)
        std3 = std_ref[...][:3]
        inv_std3 = inv_std_ref[...][:3]
        lum3 = lum_ref[...][:3]
        bf = jit_ref[b, 0]
        cf = jit_ref[b, 1]
        sf = jit_ref[b, 2]

        w_rgb = warped[:3]                         # only RGB is jittered
        # out.mul_(std).add_(mean).div_(255)
        y = (w_rgb * std3 + mean3) * (1.0 / 255.0)
        # brightness
        yj = jnp.clip(y * bf, 0.0, 1.0)
        # contrast: blend with spatial mean of grayscale
        gray = jnp.sum(yj * lum3, axis=0, keepdims=True)       # (1, HW)
        gmean = jnp.mean(gray, axis=1, keepdims=True)          # (1, 1)
        yj = jnp.clip(cf * yj + (1.0 - cf) * gmean, 0.0, 1.0)
        # saturation: blend with per-pixel grayscale
        gray2 = jnp.sum(yj * lum3, axis=0, keepdims=True)
        yj = jnp.clip(sf * yj + (1.0 - sf) * gray2, 0.0, 1.0)
        # out.mul_(255).sub_(mean).div_(std)  (divide replaced by *inv_std)
        out_rgb = (yj * 255.0 - mean3) * inv_std3

        pieces = [out_rgb]
        if C > 3:
            pieces.append(warped[3:])              # non-RGB channels: warp only
        pieces.append(m_warp)
        out_ref[0] = jnp.concatenate(pieces, axis=0)
    else:
        out_ref[0] = jnp.concatenate([warped, m_warp], axis=0)


def repeatable_transform(x, mask, idx_img, wgt_img, idx_msk, wgt_msk, jit,
                         mean, std, lum, *, color_transform=True):
    B, C, H, W = x.shape
    HW = H * W
    T = idx_img.shape[1]

    xf = x.reshape(B, C, HW).astype(jnp.float32)
    mf = mask.reshape(B, 1, HW).astype(jnp.float32)
    idx_img = idx_img.astype(jnp.int32)
    wgt_img = wgt_img.astype(jnp.float32)
    idx_msk = idx_msk.astype(jnp.int32)
    wgt_msk = wgt_msk.astype(jnp.float32)
    inv_std = (1.0 / std).astype(jnp.float32)

    kern = functools.partial(_repeatable_transform_kernel,
                             color_transform=color_transform)

    combined = pl.pallas_call(
        kern,
        out_shape=jax.ShapeDtypeStruct((B, C + 1, HW), jnp.float32),
        grid=(B,),
        in_specs=[
            pl.BlockSpec(memory_space=pltpu.MemorySpace.SMEM),       # jitter factors
            pl.BlockSpec((1, C, HW), lambda b: (b, 0, 0)),           # x
            pl.BlockSpec((1, 1, HW), lambda b: (b, 0, 0)),           # mask (float)
            pl.BlockSpec((1, T, HW), lambda b: (b, 0, 0)),           # image tap indices
            pl.BlockSpec((1, T, HW), lambda b: (b, 0, 0)),           # image tap weights
            pl.BlockSpec((1, 1, HW), lambda b: (b, 0, 0)),           # mask tap index
            pl.BlockSpec((1, 1, HW), lambda b: (b, 0, 0)),           # mask tap weight
            pl.BlockSpec((C, 1), lambda b: (0, 0)),                  # mean
            pl.BlockSpec((C, 1), lambda b: (0, 0)),                  # std
            pl.BlockSpec((C, 1), lambda b: (0, 0)),                  # inv_std
            pl.BlockSpec((C, 1), lambda b: (0, 0)),                  # luma weights
        ],
        out_specs=pl.BlockSpec((1, C + 1, HW), lambda b: (b, 0, 0)),
        compiler_params=pltpu.CompilerParams(dimension_semantics=("parallel",)),
    )(jit, xf, mf, idx_img, wgt_img, idx_msk, wgt_msk, mean, std, inv_std, lum)

    out = combined[:, :C].reshape(B, C, H, W)
    mask_out = jnp.round(combined[:, C:]).astype(jnp.int32).reshape(B, 1, H, W)
    return out, mask_out


# ---------------------------------------------------------------------------
# Glue (plain JAX): build composed per-pixel sampling taps from aug params
# ---------------------------------------------------------------------------
def _bilinear_taps(sx, sy, H, W, all_valid=False):
    """Returns (idx (4, HW) i32, wgt (4, HW) f32) with out[p]=sum_t wgt[t,p]*x[idx[t,p]]."""
    x0 = jnp.floor(sx)
    y0 = jnp.floor(sy)
    x1 = x0 + 1.0
    y1 = y0 + 1.0
    wx1 = sx - x0
    wx0 = 1.0 - wx1
    wy1 = sy - y0
    wy0 = 1.0 - wy1

    def tap(xc, yc, wgt):
        if all_valid:
            w = wgt
        else:
            valid = (xc >= 0.0) & (xc <= W - 1.0) & (yc >= 0.0) & (yc <= H - 1.0)
            w = jnp.where(valid, wgt, 0.0)
        xi = jnp.clip(xc, 0.0, W - 1.0).astype(jnp.int32)
        yi = jnp.clip(yc, 0.0, H - 1.0).astype(jnp.int32)
        return yi * W + xi, w

    i0, w0 = tap(x0, y0, wx0 * wy0)
    i1, w1 = tap(x1, y0, wx1 * wy0)
    i2, w2 = tap(x0, y1, wx0 * wy1)
    i3, w3 = tap(x1, y1, wx1 * wy1)
    return (jnp.stack([i0, i1, i2, i3], axis=0),
            jnp.stack([w0, w1, w2, w3], axis=0))


def _nearest_taps(sx, sy, H, W, all_valid=False):
    xc = jnp.floor(sx + 0.5)
    yc = jnp.floor(sy + 0.5)
    if all_valid:
        w = jnp.ones_like(sx)
    else:
        valid = (xc >= 0.0) & (xc <= W - 1.0) & (yc >= 0.0) & (yc <= H - 1.0)
        w = jnp.where(valid, 1.0, 0.0)
    xi = jnp.clip(xc, 0.0, W - 1.0).astype(jnp.int32)
    yi = jnp.clip(yc, 0.0, H - 1.0).astype(jnp.int32)
    return (yi * W + xi)[None, :], w[None, :]


def _reflect_coord(c, size):
    if size <= 1:
        return jnp.zeros_like(c)
    m = 2.0 * (size - 1)
    c = jnp.mod(c, m)
    return jnp.where(c > (size - 1.0), m - c, c)


def _solve_homography(dst_pts, src_pts):
    """Return 3x3 H with src ~ H @ [dst, 1] (maps output coords -> source coords)."""
    x, y = dst_pts[:, 0], dst_pts[:, 1]
    u, v = src_pts[:, 0], src_pts[:, 1]
    zeros = jnp.zeros_like(x)
    ones = jnp.ones_like(x)
    A1 = jnp.stack([x, y, ones, zeros, zeros, zeros, -u * x, -u * y], axis=1)
    A2 = jnp.stack([zeros, zeros, zeros, x, y, ones, -v * x, -v * y], axis=1)
    A = jnp.concatenate([A1, A2], axis=0)
    rhs = jnp.concatenate([u, v], axis=0)
    p = jnp.linalg.solve(A, rhs)
    return jnp.concatenate([p, jnp.ones((1,), p.dtype)]).reshape(3, 3)


def _make_warp_taps(angle_deg, hflip, vflip, h_inv, apply_persp, *, H, W):
    """Per-sample composed sampling taps (perspective o rotation o flips)."""
    yy, xx = jnp.meshgrid(jnp.arange(H, dtype=jnp.float32),
                          jnp.arange(W, dtype=jnp.float32), indexing='ij')
    xx = xx.reshape(-1)
    yy = yy.reshape(-1)

    # rotation (align_corners=True, about image center); flips folded into the
    # source coordinates (flip is an exact grid permutation)
    cx = (W - 1) / 2.0
    cy = (H - 1) / 2.0
    th = jnp.deg2rad(angle_deg)
    c, s = jnp.cos(th), jnp.sin(th)
    sx = c * (xx - cx) + s * (yy - cy) + cx
    sy = -s * (xx - cx) + c * (yy - cy) + cy
    sx = jnp.where(hflip, (W - 1.0) - sx, sx)
    sy = jnp.where(vflip, (H - 1.0) - sy, sy)
    idx_r, wgt_r = _bilinear_taps(sx, sy, H, W, all_valid=False)     # zeros padding
    idx_rn, wgt_rn = _nearest_taps(sx, sy, H, W, all_valid=False)

    # perspective: src = H_inv @ [x, y, 1], reflection padding
    denom = h_inv[2, 0] * xx + h_inv[2, 1] * yy + h_inv[2, 2]
    px = (h_inv[0, 0] * xx + h_inv[0, 1] * yy + h_inv[0, 2]) / denom
    py = (h_inv[1, 0] * xx + h_inv[1, 1] * yy + h_inv[1, 2]) / denom
    px = jnp.where(apply_persp, px, xx)
    py = jnp.where(apply_persp, py, yy)
    px = _reflect_coord(px, W)
    py = _reflect_coord(py, H)
    idx_p, wgt_p = _bilinear_taps(px, py, H, W, all_valid=True)
    idx_pn, wgt_pn = _nearest_taps(px, py, H, W, all_valid=True)

    # compose the two linear warps offline (exact: sequential bilinear warps
    # compose into <=16 taps; sequential nearest warps into exactly 1 tap)
    idx_rg = jnp.take(idx_r, idx_p, axis=1)                          # (4, 4, HW)
    wgt_rg = jnp.take(wgt_r, idx_p, axis=1)                          # (4, 4, HW)
    idx_img = idx_rg.reshape(16, -1)
    wgt_img = (wgt_p[None, :, :] * wgt_rg).reshape(16, -1)

    idx_msk = jnp.take(idx_rn[0], idx_pn[0])[None, :]
    wgt_msk = (wgt_pn[0] * jnp.take(wgt_rn[0], idx_pn[0]))[None, :]

    return (idx_img.astype(jnp.int32), wgt_img.astype(jnp.float32),
            idx_msk.astype(jnp.int32), wgt_msk.astype(jnp.float32))


def sample_aug_params(key, B, H, W, *, degree_step=90.0, jitter_strength=0.15,
                      hflip_prob=0.5, vflip_prob=0.5, perspective_prob=0.5,
                      perspective_dist=0.1):
    ks = jax.random.split(key, 8)
    hflip = jax.random.bernoulli(ks[0], hflip_prob, (B,))
    vflip = jax.random.bernoulli(ks[1], vflip_prob, (B,))
    deg = jax.random.uniform(ks[2], (B,), minval=-360.0, maxval=360.0)
    # rotation = (degrees / step).int() * step  (truncation toward zero)
    deg = (deg / degree_step).astype(jnp.int32).astype(jnp.float32) * degree_step

    apply_p = jax.random.bernoulli(ks[3], perspective_prob, (B,))
    start = jnp.array([[0.0, 0.0], [W - 1.0, 0.0],
                       [W - 1.0, H - 1.0], [0.0, H - 1.0]], jnp.float32)
    signs = jnp.array([[1.0, 1.0], [-1.0, 1.0], [-1.0, -1.0], [1.0, -1.0]],
                      jnp.float32)
    half = jnp.array([(W - 1.0) / 2.0, (H - 1.0) / 2.0], jnp.float32)
    offs = jax.random.uniform(ks[4], (B, 4, 2)) * perspective_dist * half
    end = start[None] + signs[None] * offs                           # (B, 4, 2)
    # inverse homography: maps output (end) coords -> source (start) coords
    h_inv = jax.vmap(lambda e: _solve_homography(e, start))(end)     # (B, 3, 3)

    jit = jax.random.uniform(ks[5], (B, 3),
                             minval=1.0 - jitter_strength,
                             maxval=1.0 + jitter_strength).astype(jnp.float32)
    return deg, hflip, vflip, h_inv, apply_p, jit


# ---------------------------------------------------------------------------
# main
# ---------------------------------------------------------------------------
if __name__ == "__main__":
    B, C, H, W = 2, 4, 16, 16

    key = jax.random.PRNGKey(0)
    kx, km, kp = jax.random.split(key, 3)

    # normalized input image (as the module expects) + integer mask
    x = jax.random.normal(kx, (B, C, H, W), dtype=jnp.float32)
    mask = jax.random.randint(km, (B, 1, H, W), 0, 6, dtype=jnp.int32)

    # set_stats(mean, std): per-channel (RGB stats; extra channel passthrough)
    mean = jnp.array([123.675, 116.28, 103.53, 0.0], jnp.float32).reshape(C, 1)
    std = jnp.array([58.395, 57.12, 57.375, 1.0], jnp.float32).reshape(C, 1)
    lum = jnp.array([0.299, 0.587, 0.114, 0.0], jnp.float32).reshape(C, 1)

    deg, hflip, vflip, h_inv, apply_p, jit = sample_aug_params(kp, B, H, W)

    make = functools.partial(_make_warp_taps, H=H, W=W)
    idx_img, wgt_img, idx_msk, wgt_msk = jax.vmap(make)(deg, hflip, vflip,
                                                        h_inv, apply_p)

    out, mask_out = repeatable_transform(x, mask, idx_img, wgt_img, idx_msk,
                                         wgt_msk, jit, mean, std, lum,
                                         color_transform=True)
    jax.block_until_ready((out, mask_out))

    assert out.shape == (B, C, H, W) and out.dtype == jnp.float32
    assert mask_out.shape == (B, 1, H, W) and mask_out.dtype == jnp.int32
    print("KERNEL_OK")
</pallas_src>

<mosaic_0001>
module attributes {stable_mosaic.version = 11 : i64} {
  func.func @_repeatable_transform_kernel(%arg0: i32, %arg1: memref<2x3xf32, #tpu.memory_space<smem>>, %arg2: memref<1x4x256xf32, #tpu.memory_space<vmem>>, %arg3: memref<1x1x256xf32, #tpu.memory_space<vmem>>, %arg4: memref<1x16x256xi32, #tpu.memory_space<vmem>>, %arg5: memref<1x16x256xf32, #tpu.memory_space<vmem>>, %arg6: memref<1x1x256xi32, #tpu.memory_space<vmem>>, %arg7: memref<1x1x256xf32, #tpu.memory_space<vmem>>, %arg8: memref<4x1xf32, #tpu.memory_space<vmem>>, %arg9: memref<4x1xf32, #tpu.memory_space<vmem>>, %arg10: memref<4x1xf32, #tpu.memory_space<vmem>>, %arg11: memref<4x1xf32, #tpu.memory_space<vmem>>, %arg12: memref<1x5x256xf32, #tpu.memory_space<vmem>>) attributes {dimension_semantics = [#tpu.dimension_semantics<parallel>], iteration_bounds = array<i64: 2>, scalar_prefetch = 0 : i64, scratch_operands = 0 : i64, tpu.core_type = #tpu.core_type<tc>, window_params = [{transform_indices = @transform_0, window_bounds = array<i64: 2, 3>}, {transform_indices = @transform_1, window_bounds = array<i64: 1, 4, 256>}, {transform_indices = @transform_2, window_bounds = array<i64: 1, 1, 256>}, {transform_indices = @transform_3, window_bounds = array<i64: 1, 16, 256>}, {transform_indices = @transform_4, window_bounds = array<i64: 1, 16, 256>}, {transform_indices = @transform_5, window_bounds = array<i64: 1, 1, 256>}, {transform_indices = @transform_6, window_bounds = array<i64: 1, 1, 256>}, {pipeline_mode = #tpu.pipeline_mode<synchronous>, transform_indices = @transform_7, window_bounds = array<i64: 4, 1>}, {pipeline_mode = #tpu.pipeline_mode<synchronous>, transform_indices = @transform_8, window_bounds = array<i64: 4, 1>}, {pipeline_mode = #tpu.pipeline_mode<synchronous>, transform_indices = @transform_9, window_bounds = array<i64: 4, 1>}, {pipeline_mode = #tpu.pipeline_mode<synchronous>, transform_indices = @transform_10, window_bounds = array<i64: 4, 1>}, {transform_indices = @transform_11, window_bounds = array<i64: 1, 5, 256>}]} {
    %c0 = arith.constant 0 : index
    %c0_0 = arith.constant 0 : index
    %c0_1 = arith.constant 0 : index
    %0 = vector.load %arg2[%c0, %c0_0, %c0_1] : memref<1x4x256xf32, #tpu.memory_space<vmem>>, vector<1x4x256xf32>
    %1 = vector.shape_cast %0 : vector<1x4x256xf32> to vector<4x256xf32>
    %c0_2 = arith.constant 0 : index
    %c0_3 = arith.constant 0 : index
    %c0_4 = arith.constant 0 : index
    %2 = vector.load %arg3[%c0_2, %c0_3, %c0_4] : memref<1x1x256xf32, #tpu.memory_space<vmem>>, vector<1x1x256xf32>
    %3 = vector.shape_cast %2 : vector<1x1x256xf32> to vector<1x256xf32>
    %c0_5 = arith.constant 0 : index
    %c0_6 = arith.constant 0 : index
    %c0_7 = arith.constant 0 : index
    %4 = vector.load %arg4[%c0_5, %c0_6, %c0_7] : memref<1x16x256xi32, #tpu.memory_space<vmem>>, vector<1x16x256xi32>
    %5 = vector.shape_cast %4 : vector<1x16x256xi32> to vector<16x256xi32>
    %c0_8 = arith.constant 0 : index
    %c0_9 = arith.constant 0 : index
    %c0_10 = arith.constant 0 : index
    %6 = vector.load %arg5[%c0_8, %c0_9, %c0_10] : memref<1x16x256xf32, #tpu.memory_space<vmem>>, vector<1x16x256xf32>
    %7 = vector.shape_cast %6 : vector<1x16x256xf32> to vector<16x256xf32>
    %c0_11 = arith.constant 0 : index
    %c0_12 = arith.constant 0 : index
    %c0_13 = arith.constant 0 : index
    %8 = vector.load %arg6[%c0_11, %c0_12, %c0_13] : memref<1x1x256xi32, #tpu.memory_space<vmem>>, vector<1x1x256xi32>
    %9 = vector.shape_cast %8 : vector<1x1x256xi32> to vector<1x256xi32>
    %c0_14 = arith.constant 0 : index
    %c0_15 = arith.constant 0 : index
    %c0_16 = arith.constant 0 : index
    %10 = vector.load %arg7[%c0_14, %c0_15, %c0_16] : memref<1x1x256xf32, #tpu.memory_space<vmem>>, vector<1x1x256xf32>
    %11 = vector.shape_cast %10 : vector<1x1x256xf32> to vector<1x256xf32>
    %12 = tpu.iota {dimensions = array<i32: 0>} : vector<256x256xi32>
    %13 = vector.extract_strided_slice %5 {offsets = [0, 0], sizes = [1, 256], strides = [1, 1]} : vector<16x256xi32> to vector<1x256xi32>
    %14 = vector.broadcast %13 : vector<1x256xi32> to vector<256x256xi32>
    %15 = arith.cmpi eq, %12, %14 : vector<256x256xi32>
    %16 = vector.extract_strided_slice %7 {offsets = [0, 0], sizes = [1, 256], strides = [1, 1]} : vector<16x256xf32> to vector<1x256xf32>
    %cst = arith.constant 0.000000e+00 : f32
    %17 = vector.shape_cast %16 : vector<1x256xf32> to vector<1x256xf32>
    %18 = vector.broadcast %17 : vector<1x256xf32> to vector<256x256xf32>
    %19 = vector.broadcast %cst : f32 to vector<256x256xf32>
    %20 = arith.select %15, %18, %19 : vector<256x256xi1>, vector<256x256xf32>
    %21 = vector.extract_strided_slice %5 {offsets = [1, 0], sizes = [1, 256], strides = [1, 1]} : vector<16x256xi32> to vector<1x256xi32>
    %22 = vector.broadcast %21 : vector<1x256xi32> to vector<256x256xi32>
    %23 = arith.cmpi eq, %12, %22 : vector<256x256xi32>
    %24 = vector.extract_strided_slice %7 {offsets = [1, 0], sizes = [1, 256], strides = [1, 1]} : vector<16x256xf32> to vector<1x256xf32>
    %cst_17 = arith.constant 0.000000e+00 : f32
    %25 = vector.shape_cast %24 : vector<1x256xf32> to vector<1x256xf32>
    %26 = vector.broadcast %25 : vector<1x256xf32> to vector<256x256xf32>
    %27 = vector.broadcast %cst_17 : f32 to vector<256x256xf32>
    %28 = arith.select %23, %26, %27 : vector<256x256xi1>, vector<256x256xf32>
    %29 = arith.addf %20, %28 : vector<256x256xf32>
    %30 = vector.extract_strided_slice %5 {offsets = [2, 0], sizes = [1, 256], strides = [1, 1]} : vector<16x256xi32> to vector<1x256xi32>
    %31 = vector.broadcast %30 : vector<1x256xi32> to vector<256x256xi32>
    %32 = arith.cmpi eq, %12, %31 : vector<256x256xi32>
    %33 = vector.extract_strided_slice %7 {offsets = [2, 0], sizes = [1, 256], strides = [1, 1]} : vector<16x256xf32> to vector<1x256xf32>
    %cst_18 = arith.constant 0.000000e+00 : f32
    %34 = vector.shape_cast %33 : vector<1x256xf32> to vector<1x256xf32>
    %35 = vector.broadcast %34 : vector<1x256xf32> to vector<256x256xf32>
    %36 = vector.broadcast %cst_18 : f32 to vector<256x256xf32>
    %37 = arith.select %32, %35, %36 : vector<256x256xi1>, vector<256x256xf32>
    %38 = arith.addf %29, %37 : vector<256x256xf32>
    %39 = vector.extract_strided_slice %5 {offsets = [3, 0], sizes = [1, 256], strides = [1, 1]} : vector<16x256xi32> to vector<1x256xi32>
    %40 = vector.broadcast %39 : vector<1x256xi32> to vector<256x256xi32>
    %41 = arith.cmpi eq, %12, %40 : vector<256x256xi32>
    %42 = vector.extract_strided_slice %7 {offsets = [3, 0], sizes = [1, 256], strides = [1, 1]} : vector<16x256xf32> to vector<1x256xf32>
    %cst_19 = arith.constant 0.000000e+00 : f32
    %43 = vector.shape_cast %42 : vector<1x256xf32> to vector<1x256xf32>
    %44 = vector.broadcast %43 : vector<1x256xf32> to vector<256x256xf32>
    %45 = vector.broadcast %cst_19 : f32 to vector<256x256xf32>
    %46 = arith.select %41, %44, %45 : vector<256x256xi1>, vector<256x256xf32>
    %47 = arith.addf %38, %46 : vector<256x256xf32>
    %48 = vector.extract_strided_slice %5 {offsets = [4, 0], sizes = [1, 256], strides = [1, 1]} : vector<16x256xi32> to vector<1x256xi32>
    %49 = vector.broadcast %48 : vector<1x256xi32> to vector<256x256xi32>
    %50 = arith.cmpi eq, %12, %49 : vector<256x256xi32>
    %51 = vector.extract_strided_slice %7 {offsets = [4, 0], sizes = [1, 256], strides = [1, 1]} : vector<16x256xf32> to vector<1x256xf32>
    %cst_20 = arith.constant 0.000000e+00 : f32
    %52 = vector.shape_cast %51 : vector<1x256xf32> to vector<1x256xf32>
    %53 = vector.broadcast %52 : vector<1x256xf32> to vector<256x256xf32>
    %54 = vector.broadcast %cst_20 : f32 to vector<256x256xf32>
    %55 = arith.select %50, %53, %54 : vector<256x256xi1>, vector<256x256xf32>
    %56 = arith.addf %47, %55 : vector<256x256xf32>
    %57 = vector.extract_strided_slice %5 {offsets = [5, 0], sizes = [1, 256], strides = [1, 1]} : vector<16x256xi32> to vector<1x256xi32>
    %58 = vector.broadcast %57 : vector<1x256xi32> to vector<256x256xi32>
    %59 = arith.cmpi eq, %12, %58 : vector<256x256xi32>
    %60 = vector.extract_strided_slice %7 {offsets = [5, 0], sizes = [1, 256], strides = [1, 1]} : vector<16x256xf32> to vector<1x256xf32>
    %cst_21 = arith.constant 0.000000e+00 : f32
    %61 = vector.shape_cast %60 : vector<1x256xf32> to vector<1x256xf32>
    %62 = vector.broadcast %61 : vector<1x256xf32> to vector<256x256xf32>
    %63 = vector.broadcast %cst_21 : f32 to vector<256x256xf32>
    %64 = arith.select %59, %62, %63 : vector<256x256xi1>, vector<256x256xf32>
    %65 = arith.addf %56, %64 : vector<256x256xf32>
    %66 = vector.extract_strided_slice %5 {offsets = [6, 0], sizes = [1, 256], strides = [1, 1]} : vector<16x256xi32> to vector<1x256xi32>
    %67 = vector.broadcast %66 : vector<1x256xi32> to vector<256x256xi32>
    %68 = arith.cmpi eq, %12, %67 : vector<256x256xi32>
    %69 = vector.extract_strided_slice %7 {offsets = [6, 0], sizes = [1, 256], strides = [1, 1]} : vector<16x256xf32> to vector<1x256xf32>
    %cst_22 = arith.constant 0.000000e+00 : f32
    %70 = vector.shape_cast %69 : vector<1x256xf32> to vector<1x256xf32>
    %71 = vector.broadcast %70 : vector<1x256xf32> to vector<256x256xf32>
    %72 = vector.broadcast %cst_22 : f32 to vector<256x256xf32>
    %73 = arith.select %68, %71, %72 : vector<256x256xi1>, vector<256x256xf32>
    %74 = arith.addf %65, %73 : vector<256x256xf32>
    %75 = vector.extract_strided_slice %5 {offsets = [7, 0], sizes = [1, 256], strides = [1, 1]} : vector<16x256xi32> to vector<1x256xi32>
    %76 = vector.broadcast %75 : vector<1x256xi32> to vector<256x256xi32>
    %77 = arith.cmpi eq, %12, %76 : vector<256x256xi32>
    %78 = vector.extract_strided_slice %7 {offsets = [7, 0], sizes = [1, 256], strides = [1, 1]} : vector<16x256xf32> to vector<1x256xf32>
    %cst_23 = arith.constant 0.000000e+00 : f32
    %79 = vector.shape_cast %78 : vector<1x256xf32> to vector<1x256xf32>
    %80 = vector.broadcast %79 : vector<1x256xf32> to vector<256x256xf32>
    %81 = vector.broadcast %cst_23 : f32 to vector<256x256xf32>
    %82 = arith.select %77, %80, %81 : vector<256x256xi1>, vector<256x256xf32>
    %83 = arith.addf %74, %82 : vector<256x256xf32>
    %84 = vector.extract_strided_slice %5 {offsets = [8, 0], sizes = [1, 256], strides = [1, 1]} : vector<16x256xi32> to vector<1x256xi32>
    %85 = vector.broadcast %84 : vector<1x256xi32> to vector<256x256xi32>
    %86 = arith.cmpi eq, %12, %85 : vector<256x256xi32>
    %87 = vector.extract_strided_slice %7 {offsets = [8, 0], sizes = [1, 256], strides = [1, 1]} : vector<16x256xf32> to vector<1x256xf32>
    %cst_24 = arith.constant 0.000000e+00 : f32
    %88 = vector.shape_cast %87 : vector<1x256xf32> to vector<1x256xf32>
    %89 = vector.broadcast %88 : vector<1x256xf32> to vector<256x256xf32>
    %90 = vector.broadcast %cst_24 : f32 to vector<256x256xf32>
    %91 = arith.select %86, %89, %90 : vector<256x256xi1>, vector<256x256xf32>
    %92 = arith.addf %83, %91 : vector<256x256xf32>
    %93 = vector.extract_strided_slice %5 {offsets = [9, 0], sizes = [1, 256], strides = [1, 1]} : vector<16x256xi32> to vector<1x256xi32>
    %94 = vector.broadcast %93 : vector<1x256xi32> to vector<256x256xi32>
    %95 = arith.cmpi eq, %12, %94 : vector<256x256xi32>
    %96 = vector.extract_strided_slice %7 {offsets = [9, 0], sizes = [1, 256], strides = [1, 1]} : vector<16x256xf32> to vector<1x256xf32>
    %cst_25 = arith.constant 0.000000e+00 : f32
    %97 = vector.shape_cast %96 : vector<1x256xf32> to vector<1x256xf32>
    %98 = vector.broadcast %97 : vector<1x256xf32> to vector<256x256xf32>
    %99 = vector.broadcast %cst_25 : f32 to vector<256x256xf32>
    %100 = arith.select %95, %98, %99 : vector<256x256xi1>, vector<256x256xf32>
    %101 = arith.addf %92, %100 : vector<256x256xf32>
    %102 = vector.extract_strided_slice %5 {offsets = [10, 0], sizes = [1, 256], strides = [1, 1]} : vector<16x256xi32> to vector<1x256xi32>
    %103 = vector.broadcast %102 : vector<1x256xi32> to vector<256x256xi32>
    %104 = arith.cmpi eq, %12, %103 : vector<256x256xi32>
    %105 = vector.extract_strided_slice %7 {offsets = [10, 0], sizes = [1, 256], strides = [1, 1]} : vector<16x256xf32> to vector<1x256xf32>
    %cst_26 = arith.constant 0.000000e+00 : f32
    %106 = vector.shape_cast %105 : vector<1x256xf32> to vector<1x256xf32>
    %107 = vector.broadcast %106 : vector<1x256xf32> to vector<256x256xf32>
    %108 = vector.broadcast %cst_26 : f32 to vector<256x256xf32>
    %109 = arith.select %104, %107, %108 : vector<256x256xi1>, vector<256x256xf32>
    %110 = arith.addf %101, %109 : vector<256x256xf32>
    %111 = vector.extract_strided_slice %5 {offsets = [11, 0], sizes = [1, 256], strides = [1, 1]} : vector<16x256xi32> to vector<1x256xi32>
    %112 = vector.broadcast %111 : vector<1x256xi32> to vector<256x256xi32>
    %113 = arith.cmpi eq, %12, %112 : vector<256x256xi32>
    %114 = vector.extract_strided_slice %7 {offsets = [11, 0], sizes = [1, 256], strides = [1, 1]} : vector<16x256xf32> to vector<1x256xf32>
    %cst_27 = arith.constant 0.000000e+00 : f32
    %115 = vector.shape_cast %114 : vector<1x256xf32> to vector<1x256xf32>
    %116 = vector.broadcast %115 : vector<1x256xf32> to vector<256x256xf32>
    %117 = vector.broadcast %cst_27 : f32 to vector<256x256xf32>
    %118 = arith.select %113, %116, %117 : vector<256x256xi1>, vector<256x256xf32>
    %119 = arith.addf %110, %118 : vector<256x256xf32>
    %120 = vector.extract_strided_slice %5 {offsets = [12, 0], sizes = [1, 256], strides = [1, 1]} : vector<16x256xi32> to vector<1x256xi32>
    %121 = vector.broadcast %120 : vector<1x256xi32> to vector<256x256xi32>
    %122 = arith.cmpi eq, %12, %121 : vector<256x256xi32>
    %123 = vector.extract_strided_slice %7 {offsets = [12, 0], sizes = [1, 256], strides = [1, 1]} : vector<16x256xf32> to vector<1x256xf32>
    %cst_28 = arith.constant 0.000000e+00 : f32
    %124 = vector.shape_cast %123 : vector<1x256xf32> to vector<1x256xf32>
    %125 = vector.broadcast %124 : vector<1x256xf32> to vector<256x256xf32>
    %126 = vector.broadcast %cst_28 : f32 to vector<256x256xf32>
    %127 = arith.select %122, %125, %126 : vector<256x256xi1>, vector<256x256xf32>
    %128 = arith.addf %119, %127 : vector<256x256xf32>
    %129 = vector.extract_strided_slice %5 {offsets = [13, 0], sizes = [1, 256], strides = [1, 1]} : vector<16x256xi32> to vector<1x256xi32>
    %130 = vector.broadcast %129 : vector<1x256xi32> to vector<256x256xi32>
    %131 = arith.cmpi eq, %12, %130 : vector<256x256xi32>
    %132 = vector.extract_strided_slice %7 {offsets = [13, 0], sizes = [1, 256], strides = [1, 1]} : vector<16x256xf32> to vector<1x256xf32>
    %cst_29 = arith.constant 0.000000e+00 : f32
    %133 = vector.shape_cast %132 : vector<1x256xf32> to vector<1x256xf32>
    %134 = vector.broadcast %133 : vector<1x256xf32> to vector<256x256xf32>
    %135 = vector.broadcast %cst_29 : f32 to vector<256x256xf32>
    %136 = arith.select %131, %134, %135 : vector<256x256xi1>, vector<256x256xf32>
    %137 = arith.addf %128, %136 : vector<256x256xf32>
    %138 = vector.extract_strided_slice %5 {offsets = [14, 0], sizes = [1, 256], strides = [1, 1]} : vector<16x256xi32> to vector<1x256xi32>
    %139 = vector.broadcast %138 : vector<1x256xi32> to vector<256x256xi32>
    %140 = arith.cmpi eq, %12, %139 : vector<256x256xi32>
    %141 = vector.extract_strided_slice %7 {offsets = [14, 0], sizes = [1, 256], strides = [1, 1]} : vector<16x256xf32> to vector<1x256xf32>
    %cst_30 = arith.constant 0.000000e+00 : f32
    %142 = vector.shape_cast %141 : vector<1x256xf32> to vector<1x256xf32>
    %143 = vector.broadcast %142 : vector<1x256xf32> to vector<256x256xf32>
    %144 = vector.broadcast %cst_30 : f32 to vector<256x256xf32>
    %145 = arith.select %140, %143, %144 : vector<256x256xi1>, vector<256x256xf32>
    %146 = arith.addf %137, %145 : vector<256x256xf32>
    %147 = vector.extract_strided_slice %5 {offsets = [15, 0], sizes = [1, 256], strides = [1, 1]} : vector<16x256xi32> to vector<1x256xi32>
    %148 = vector.broadcast %147 : vector<1x256xi32> to vector<256x256xi32>
    %149 = arith.cmpi eq, %12, %148 : vector<256x256xi32>
    %150 = vector.extract_strided_slice %7 {offsets = [15, 0], sizes = [1, 256], strides = [1, 1]} : vector<16x256xf32> to vector<1x256xf32>
    %cst_31 = arith.constant 0.000000e+00 : f32
    %151 = vector.shape_cast %150 : vector<1x256xf32> to vector<1x256xf32>
    %152 = vector.broadcast %151 : vector<1x256xf32> to vector<256x256xf32>
    %153 = vector.broadcast %cst_31 : f32 to vector<256x256xf32>
    %154 = arith.select %149, %152, %153 : vector<256x256xi1>, vector<256x256xf32>
    %155 = arith.addf %146, %154 : vector<256x256xf32>
    %cst_32 = arith.constant dense<0.000000e+00> : vector<4x256xf32>
    %156 = tpu.matmul %1, %155, %cst_32 {dimension_numbers = #tpu.dot_dimension_numbers<[1], [0], [0], [1], [0, 0, 1, 1], [], []>} : vector<4x256xf32>, vector<256x256xf32>, vector<4x256xf32> -> vector<4x256xf32>
    %157 = vector.broadcast %9 : vector<1x256xi32> to vector<256x256xi32>
    %158 = arith.cmpi eq, %12, %157 : vector<256x256xi32>
    %cst_33 = arith.constant 0.000000e+00 : f32
    %159 = vector.shape_cast %11 : vector<1x256xf32> to vector<1x256xf32>
    %160 = vector.broadcast %159 : vector<1x256xf32> to vector<256x256xf32>
    %161 = vector.broadcast %cst_33 : f32 to vector<256x256xf32>
    %162 = arith.select %158, %160, %161 : vector<256x256xi1>, vector<256x256xf32>
    %cst_34 = arith.constant dense<0.000000e+00> : vector<1x256xf32>
    %163 = tpu.matmul %3, %162, %cst_34 {dimension_numbers = #tpu.dot_dimension_numbers<[1], [0], [0], [1], [0, 0, 1, 1], [], []>} : vector<1x256xf32>, vector<256x256xf32>, vector<1x256xf32> -> vector<1x256xf32>
    %c0_35 = arith.constant 0 : index
    %c0_36 = arith.constant 0 : index
    %164 = vector.load %arg8[%c0_35, %c0_36] : memref<4x1xf32, #tpu.memory_space<vmem>>, vector<4x1xf32>
    %165 = vector.extract_strided_slice %164 {offsets = [0, 0], sizes = [3, 1], strides = [1, 1]} : vector<4x1xf32> to vector<3x1xf32>
    %c0_37 = arith.constant 0 : index
    %c0_38 = arith.constant 0 : index
    %166 = vector.load %arg9[%c0_37, %c0_38] : memref<4x1xf32, #tpu.memory_space<vmem>>, vector<4x1xf32>
    %167 = vector.extract_strided_slice %166 {offsets = [0, 0], sizes = [3, 1], strides = [1, 1]} : vector<4x1xf32> to vector<3x1xf32>
    %c0_39 = arith.constant 0 : index
    %c0_40 = arith.constant 0 : index
    %168 = vector.load %arg10[%c0_39, %c0_40] : memref<4x1xf32, #tpu.memory_space<vmem>>, vector<4x1xf32>
    %169 = vector.extract_strided_slice %168 {offsets = [0, 0], sizes = [3, 1], strides = [1, 1]} : vector<4x1xf32> to vector<3x1xf32>
    %c0_41 = arith.constant 0 : index
    %c0_42 = arith.constant 0 : index
    %170 = vector.load %arg11[%c0_41, %c0_42] : memref<4x1xf32, #tpu.memory_space<vmem>>, vector<4x1xf32>
    %171 = vector.extract_strided_slice %170 {offsets = [0, 0], sizes = [3, 1], strides = [1, 1]} : vector<4x1xf32> to vector<3x1xf32>
    %172 = arith.index_cast %arg0 : i32 to index
    %c0_43 = arith.constant 0 : index
    %173 = memref.load %arg1[%172, %c0_43] : memref<2x3xf32, #tpu.memory_space<smem>>
    %174 = arith.index_cast %arg0 : i32 to index
    %c1 = arith.constant 1 : index
    %175 = memref.load %arg1[%174, %c1] : memref<2x3xf32, #tpu.memory_space<smem>>
    %176 = arith.index_cast %arg0 : i32 to index
    %c2 = arith.constant 2 : index
    %177 = memref.load %arg1[%176, %c2] : memref<2x3xf32, #tpu.memory_space<smem>>
    %178 = vector.extract_strided_slice %156 {offsets = [0, 0], sizes = [3, 256], strides = [1, 1]} : vector<4x256xf32> to vector<3x256xf32>
    %179 = vector.broadcast %167 : vector<3x1xf32> to vector<3x256xf32>
    %180 = arith.mulf %178, %179 : vector<3x256xf32>
    %181 = vector.broadcast %165 : vector<3x1xf32> to vector<3x256xf32>
    %182 = arith.addf %180, %181 : vector<3x256xf32>
    %cst_44 = arith.constant 0.00392156886 : f32
    %183 = vector.broadcast %cst_44 : f32 to vector<3x256xf32>
    %184 = arith.mulf %182, %183 : vector<3x256xf32>
    %185 = vector.broadcast %173 : f32 to vector<3x256xf32>
    %186 = arith.mulf %184, %185 : vector<3x256xf32>
    %cst_45 = arith.constant 0.000000e+00 : f32
    %cst_46 = arith.constant 1.000000e+00 : f32
    %187 = vector.broadcast %cst_45 : f32 to vector<3x256xf32>
    %188 = arith.maximumf %187, %186 : vector<3x256xf32>
    %189 = vector.broadcast %cst_46 : f32 to vector<3x256xf32>
    %190 = arith.minimumf %189, %188 : vector<3x256xf32>
    %191 = vector.broadcast %171 : vector<3x1xf32> to vector<3x256xf32>
    %192 = arith.mulf %190, %191 : vector<3x256xf32>
    %cst_47 = arith.constant dense<0.000000e+00> : vector<256xf32>
    %193 = vector.multi_reduction <add>, %192, %cst_47 [0] : vector<3x256xf32> to vector<256xf32>
    %194 = vector.shape_cast %193 : vector<256xf32> to vector<1x256xf32>
    %cst_48 = arith.constant dense<0.000000e+00> : vector<1xf32>
    %195 = vector.multi_reduction <add>, %194, %cst_48 [1] : vector<1x256xf32> to vector<1xf32>
    %196 = vector.shape_cast %195 : vector<1xf32> to vector<1x1xf32>
    %cst_49 = arith.constant 2.560000e+02 : f32
    %197 = vector.broadcast %cst_49 : f32 to vector<1x1xf32>
    %198 = arith.divf %196, %197 : vector<1x1xf32>
    %199 = vector.broadcast %175 : f32 to vector<3x256xf32>
    %200 = arith.mulf %199, %190 : vector<3x256xf32>
    %cst_50 = arith.constant 1.000000e+00 : f32
    %201 = arith.subf %cst_50, %175 : f32
    %202 = vector.broadcast %201 : f32 to vector<1x1xf32>
    %203 = arith.mulf %202, %198 : vector<1x1xf32>
    %204 = vector.broadcast %203 : vector<1x1xf32> to vector<3x256xf32>
    %205 = arith.addf %200, %204 : vector<3x256xf32>
    %cst_51 = arith.constant 0.000000e+00 : f32
    %cst_52 = arith.constant 1.000000e+00 : f32
    %206 = vector.broadcast %cst_51 : f32 to vector<3x256xf32>
    %207 = arith.maximumf %206, %205 : vector<3x256xf32>
    %208 = vector.broadcast %cst_52 : f32 to vector<3x256xf32>
    %209 = arith.minimumf %208, %207 : vector<3x256xf32>
    %210 = vector.broadcast %171 : vector<3x1xf32> to vector<3x256xf32>
    %211 = arith.mulf %209, %210 : vector<3x256xf32>
    %cst_53 = arith.constant dense<0.000000e+00> : vector<256xf32>
    %212 = vector.multi_reduction <add>, %211, %cst_53 [0] : vector<3x256xf32> to vector<256xf32>
    %213 = vector.shape_cast %212 : vector<256xf32> to vector<1x256xf32>
    %214 = vector.broadcast %177 : f32 to vector<3x256xf32>
    %215 = arith.mulf %214, %209 : vector<3x256xf32>
    %cst_54 = arith.constant 1.000000e+00 : f32
    %216 = arith.subf %cst_54, %177 : f32
    %217 = vector.broadcast %216 : f32 to vector<1x256xf32>
    %218 = arith.mulf %217, %213 : vector<1x256xf32>
    %219 = vector.broadcast %218 : vector<1x256xf32> to vector<3x256xf32>
    %220 = arith.addf %215, %219 : vector<3x256xf32>
    %cst_55 = arith.constant 0.000000e+00 : f32
    %cst_56 = arith.constant 1.000000e+00 : f32
    %221 = vector.broadcast %cst_55 : f32 to vector<3x256xf32>
    %222 = arith.maximumf %221, %220 : vector<3x256xf32>
    %223 = vector.broadcast %cst_56 : f32 to vector<3x256xf32>
    %224 = arith.minimumf %223, %222 : vector<3x256xf32>
    %cst_57 = arith.constant 2.550000e+02 : f32
    %225 = vector.broadcast %cst_57 : f32 to vector<3x256xf32>
    %226 = arith.mulf %224, %225 : vector<3x256xf32>
    %227 = vector.broadcast %165 : vector<3x1xf32> to vector<3x256xf32>
    %228 = arith.subf %226, %227 : vector<3x256xf32>
    %229 = vector.broadcast %169 : vector<3x1xf32> to vector<3x256xf32>
    %230 = arith.mulf %228, %229 : vector<3x256xf32>
    %231 = vector.extract_strided_slice %156 {offsets = [3, 0], sizes = [1, 256], strides = [1, 1]} : vector<4x256xf32> to vector<1x256xf32>
    %232 = tpu.concatenate %230, %231, %163 in 0 : vector<3x256xf32>, vector<1x256xf32>, vector<1x256xf32> -> vector<5x256xf32>
    %c0_58 = arith.constant 0 : index
    %c0_59 = arith.constant 0 : index
    %c0_60 = arith.constant 0 : index
    %233 = vector.load %arg12[%c0_58, %c0_59, %c0_60] : memref<1x5x256xf32, #tpu.memory_space<vmem>>, vector<1x5x256xf32>
    %234 = vector.shape_cast %233 : vector<1x5x256xf32> to vector<5x256xf32>
    %235 = vector.shape_cast %232 : vector<5x256xf32> to vector<1x5x256xf32>
    tpu.vector_store %arg12[%c0_58, %c0_59, %c0_60], %235 {strides = array<i32>} : memref<1x5x256xf32, #tpu.memory_space<vmem>>, vector<1x5x256xf32>,
    return
  }
  func.func @transform_0(%arg0: i32) -> (i32, i32) {
    %c0_i32 = arith.constant 0 : i32
    %c0_i32_0 = arith.constant 0 : i32
    %c0_i32_1 = arith.constant 0 : i32
    return %c0_i32, %c0_i32_0 : i32, i32
  }
  func.func @transform_1(%arg0: i32) -> (i32, i32, i32) {
    %c0_i32 = arith.constant 0 : i32
    %c0_i32_0 = arith.constant 0 : i32
    %c0_i32_1 = arith.constant 0 : i32
    return %arg0, %c0_i32, %c0_i32_0 : i32, i32, i32
  }
  func.func @transform_2(%arg0: i32) -> (i32, i32, i32) {
    %c0_i32 = arith.constant 0 : i32
    %c0_i32_0 = arith.constant 0 : i32
    %c0_i32_1 = arith.constant 0 : i32
    return %arg0, %c0_i32, %c0_i32_0 : i32, i32, i32
  }
  func.func @transform_3(%arg0: i32) -> (i32, i32, i32) {
    %c0_i32 = arith.constant 0 : i32
    %c0_i32_0 = arith.constant 0 : i32
    %c0_i32_1 = arith.constant 0 : i32
    return %arg0, %c0_i32, %c0_i32_0 : i32, i32, i32
  }
  func.func @transform_4(%arg0: i32) -> (i32, i32, i32) {
    %c0_i32 = arith.constant 0 : i32
    %c0_i32_0 = arith.constant 0 : i32
    %c0_i32_1 = arith.constant 0 : i32
    return %arg0, %c0_i32, %c0_i32_0 : i32, i32, i32
  }
  func.func @transform_5(%arg0: i32) -> (i32, i32, i32) {
    %c0_i32 = arith.constant 0 : i32
    %c0_i32_0 = arith.constant 0 : i32
    %c0_i32_1 = arith.constant 0 : i32
    return %arg0, %c0_i32, %c0_i32_0 : i32, i32, i32
  }
  func.func @transform_6(%arg0: i32) -> (i32, i32, i32) {
    %c0_i32 = arith.constant 0 : i32
    %c0_i32_0 = arith.constant 0 : i32
    %c0_i32_1 = arith.constant 0 : i32
    return %arg0, %c0_i32, %c0_i32_0 : i32, i32, i32
  }
  func.func @transform_7(%arg0: i32) -> (i32, i32) {
    %c0_i32 = arith.constant 0 : i32
    %c0_i32_0 = arith.constant 0 : i32
    %c0_i32_1 = arith.constant 0 : i32
    return %c0_i32, %c0_i32_0 : i32, i32
  }
  func.func @transform_8(%arg0: i32) -> (i32, i32) {
    %c0_i32 = arith.constant 0 : i32
    %c0_i32_0 = arith.constant 0 : i32
    %c0_i32_1 = arith.constant 0 : i32
    return %c0_i32, %c0_i32_0 : i32, i32
  }
  func.func @transform_9(%arg0: i32) -> (i32, i32) {
    %c0_i32 = arith.constant 0 : i32
    %c0_i32_0 = arith.constant 0 : i32
    %c0_i32_1 = arith.constant 0 : i32
    return %c0_i32, %c0_i32_0 : i32, i32
  }
  func.func @transform_10(%arg0: i32) -> (i32, i32) {
    %c0_i32 = arith.constant 0 : i32
    %c0_i32_0 = arith.constant 0 : i32
    %c0_i32_1 = arith.constant 0 : i32
    return %c0_i32, %c0_i32_0 : i32, i32
  }
  func.func @transform_11(%arg0: i32) -> (i32, i32, i32) {
    %c0_i32 = arith.constant 0 : i32
    %c0_i32_0 = arith.constant 0 : i32
    %c0_i32_1 = arith.constant 0 : i32
    return %arg0, %c0_i32, %c0_i32_0 : i32, i32, i32
  }
}

</mosaic_0001>

<bundles_post_ra>
// kernel: tpu_custom_call.1
= control target key start
LH: loop header
LB: loop body
LE: loop exit
PB: predicated region body
PF: predicated region fallthrough
CT: control target
= control target key end

     0   :  { %s8832_s0 = inlined_call_operand.vmem [shape: f32[2,3], index: 0, kind: input, shape index: {}]   ;;  %s8833_s1 = inlined_call_operand.vmem [shape: f32[2,4,256], index: 1, kind: input, shape index: {}]   ;;  %s8834_s2 = inlined_call_operand.vmem [shape: f32[2,1,256], index: 2, kind: input, shape index: {}]   ;;  %s8835_s3 = inlined_call_operand.hbm [shape: s32[2,16,256], index: 3, kind: input, shape index: {}]   ;;  %s8836_s4 = inlined_call_operand.hbm [shape: f32[2,16,256], index: 4, kind: input, shape index: {}]   ;;  %s8837_s5 = inlined_call_operand.vmem [shape: s32[2,1,256], index: 5, kind: input, shape index: {}]   ;;  %s8838_s6 = inlined_call_operand.vmem [shape: f32[2,1,256], index: 6, kind: input, shape index: {}]   ;;  %s8839_s7 = inlined_call_operand.vmem [shape: f32[4,1], index: 7, kind: input, shape index: {}]   ;;  %s8840_s8 = inlined_call_operand.vmem [shape: f32[4,1], index: 8, kind: input, shape index: {}]   ;;  %s8841_s9 = inlined_call_operand.vmem [shape: f32[4,1], index: 9, kind: input, shape index: {}]   ;;  %s8842_s10 = inlined_call_operand.vmem [shape: f32[4,1], index: 10, kind: input, shape index: {}]   ;;  %s8843_s11 = inlined_call_operand.vmem [shape: f32[2,5,256], index: 11, kind: output, shape index: {}]  }
   0x1   :  { %9309 = sst [smem:[#allocation78_spill]] %s8832_s0 }
   0x2   :  { %9310 = sst [smem:[#allocation79_spill]] %s8835_s3 }
   0x3   :  { %16 = vsyncpa [#allocation4], 0 }
   0x4   :  { %17 = vsyncpa [#allocation3], 0 }
   0x5   :  { %19 = vsyncpa [#allocation3 + $0x1], 0 }
   0x6   :  { %20 = vsyncpa [#allocation7], 0 }
   0x7   :  { %22 = vsyncpa [#allocation7 + $0x1], 0  ;;  %s4917_s17 = smov 0   ;;  %s4919_s18 = smov 0  }
   0x8   :  { %s4921_s19 = smov 0   ;;  %s4923_s20 = smov 0  }
   0x9 LB: > { %9311 = sst [smem:[#allocation11_spill]] %s4845_s19  ;;  %s4936_s21 = sadd.s32 4294967295, %s4849_s20   ;;  %s4849_s20 = sphi %s4923_s20, %s9793_s20   ;;  %s4845_s19 = sphi %s4921_s19, %s9795_s19   ;;  %s4841_s18 = sphi %s4919_s18, %s9797_s18   ;;  %s4837_s17 = sphi %s4917_s17, %s9796_s17  }
   0xa   : > { %s4939_s22 = sadd.s32 1, %s4849_s20   ;;  %s108_s24 = sadd.s32 1, %s4845_s19 }
   0xb   : > { %9312 = sst [smem:[#allocation12_spill]] %s4939_s22  ;;  %s105_s23 = ssub.s32 %s4849_s20, %s4939_s22 }
   0xc   : > { %p106_p0 = scmp.eq.s32.totalorder %s105_s23, 0  ;;  %p115_p1 = scmp.ne.s32.totalorder %s4845_s19, %s4841_s18 }
   0xd   : > { %p116_p2 = scmp.eq.s32.totalorder %s4849_s20, 0  ;;  %p121_p3 = scmp.ne.s32.totalorder %s4841_s18, %s4837_s17 }
   0xe   : > { %s4949_s25 = scalar_select %p106_p0, %s4845_s19, %s108_s24  }
   0xf   : > { %p117_p4 = por %p116_p2, %p115_p1  ;;  %p122_p5 = scmp.eq.s32.totalorder %s4936_s21, 0 }
  0x10   : > { %9313 = sst [smem:[#allocation13_spill]] %s4949_s25  ;;  %p4420_p6 = scmp.ge.s32.totalorder %s4849_s20, 1 }
  0x11   : > { %p320_p7 = scmp.lt.s32.totalorder %s4849_s20, 3  ;;  %p4956_p8 = por %p122_p5, %p121_p3 }
  0x12   : > { %s9316_s0 = sld [smem:[#allocation78_spill]]  ;;  %p4691_p11 = scmp.lt.s32.totalorder %s4849_s20, 2 }
  0x13   : > { %s9314_s26 = scalar_select %p4956_p8, 1, 0 }
  0x14   : > { %p4960_p9 = pnand %p4420_p6, %p320_p7  ;;  %s4971_s12 = sand.u32 1, %s4845_s19  }
  0x15   : > { %p4979_p13 = pnand %p4691_p11, %p117_p4  ;;  %s4423_s15 = sshll.u32 %s4971_s12, 5 }
  0x16   : > { %s9315_s27 = scalar_select %p4960_p9, 1, 0 }
  0x17   : > { %p4679_p10 = pneg %p4960_p9 }
  0x18   : > { %s333_s30 = sshll.u32 %s9316_s0, 4  ;;  %s334_s30 = int_to_ptr.vmem [resolvable:$true] %s333_s30 }
  0x19   : > { %p4975_p12 = pnand %p4679_p10, %p122_p5  ;;  %s4732_s16 = scalar_lea.vmem %s334_s30, 32 }
  0x1a   : > { %p4733_p0 = scmp.ne.s32.totalorder %s334_s30, %s4732_s16  ;;  %p4740_p6 = scmp.lt.s32.totalorder %s334_s30, %s334_s30 }
  0x1b   : > { %p4734_p1 = pneg %p4975_p12  ;;  %p4741_p7 = scmp.lt.s32.totalorder %s4732_s16, %s4732_s16 }
  0x1d   : > { %p4735_p2 = pnand %p4734_p1, %p4733_p0  ;;  %p4742_p8 = por %p4741_p7, %p4740_p6 }
  0x1f   : > { %p4736_p3 = pneg %p4735_p2 }
  0x21   : > { %p4743_p9 = pnand %p4742_p8, %p4736_p3 }
  0x23   : > { %4746 = shalt.err (!%p4743_p9)
}
  0x24   : > { %s4851_s17 = smov [#allocation2]   ;;  %s8846_s23 = sshll.u32 %s4849_s20, 9 }
  0x25   : > { %4682 = dma.vmem_to_smem (!%p4975_p12), %s334_s30, 32, %s4851_s17, [#allocation4]  }
  0x26   : > { %s9319_s3 = sld [smem:[#allocation79_spill]]  ;;  %s375_s13 = scalar_lea.vmem [#allocation5], %s4423_s15 }
  0x27   : > { %s382_s16 = sshll.u32 %s375_s13, 4  ;;  %s372_s0 = scalar_lea.sflag [#allocation3], %s4971_s12  ;;  %s4998_s16 = int_to_ptr.vmem [resolvable:$true] %s382_s16 }
  0x28   : > { %p4749_p8 = pneg %p4979_p13 }
  0x2c   : > { %s4994_s29 = scalar_lea.hbm %s9319_s3, %s8846_s23  ;;  %s4752_s24 = scalar_lea.hbm %s9319_s3, 1024 }
  0x2d   : > { %s4747_s25 = scalar_lea.hbm %s4994_s29, 512  ;;  %p4753_p11 = scmp.lt.u32.totalorder %s4994_s29, %s9319_s3 }
  0x2e   : > { %p4748_p4 = scmp.ne.s32.totalorder %s4994_s29, %s4747_s25  ;;  %p4754_p12 = scmp.lt.u32.totalorder %s4752_s24, %s4747_s25 }
  0x2f   : > { %p4756_p1 = scmp.lt.u32.totalorder %s4747_s25, %s4994_s29 }
  0x30   : > { %p4750_p9 = pnand %p4749_p8, %p4748_p4  ;;  %p4755_p0 = por %p4754_p12, %p4753_p11 }
  0x32   : > { %p4751_p10 = pneg %p4750_p9  ;;  %p4757_p2 = por %p4756_p1, %p4755_p0 }
  0x34   : > { %p4758_p3 = pnand %p4757_p2, %p4751_p10 }
  0x36   : > { %4761 = shalt.err (!%p4758_p3)
}
  0x37   : > { %s4762_s13 = scalar_lea.vmem %s4998_s16, 512  ;;  %s4852_s30 = smov [#allocation5]  }
  0x38   : > { %p4763_p6 = scmp.ne.s32.totalorder %s4998_s16, %s4762_s13  ;;  %s4767_s17 = sshll.u32 %s4852_s30, 4  ;;  %s4768_s17 = int_to_ptr.vmem [resolvable:$false] %s4767_s17 }
  0x39   : > { %s4769_s23 = scalar_lea.vmem %s4768_s17, 1024  ;;  %p4770_p9 = scmp.lt.s32.totalorder %s4998_s16, %s4768_s17 }
  0x3a   : > { %p4765_p7 = pnand %p4763_p6, %p4749_p8  ;;  %p4771_p11 = scmp.lt.s32.totalorder %s4769_s23, %s4762_s13 }
  0x3c   : > { %p4766_p4 = pneg %p4765_p7  ;;  %p4772_p12 = por %p4771_p11, %p4770_p9 }
  0x3e   : > { %p4773_p0 = pnand %p4772_p12, %p4766_p4 }
  0x40   : > { %4776 = shalt.err (!%p4773_p0)
}
  0x41   : > { %s4853_s25 = smov 256   ;;  %s4854_s24 = smov 16  }
  0x42   : > { %4686 = dma.hbm_to_vmem [thread:$0]  (!%p4979_p13), %s4994_s29, 512, %s4998_s16, %s372_s0, %s4853_s25, %s4853_s25, %s4854_s24  }
  0x43   : > { %s9320_s28 = sshll.u32 %s4849_s20, 9  ;;  %s396_s23 = scalar_lea.vmem [#allocation6], %s4423_s15 }
  0x44   : > { %s5036_s17 = scalar_lea.hbm %s8836_s4, %s9320_s28  ;;  %s403_s3 = sshll.u32 %s396_s23, 4  ;;  %s5040_s3 = int_to_ptr.vmem [resolvable:$true] %s403_s3 }
  0x45   : > { %s393_s19 = scalar_lea.sflag [#allocation7], %s4971_s12  ;;  %s4777_s22 = scalar_lea.hbm %s5036_s17, 512 }
  0x46   : > { %p4778_p10 = scmp.ne.s32.totalorder %s5036_s17, %s4777_s22  ;;  %s4782_s29 = scalar_lea.hbm %s8836_s4, 1024 }
  0x47   : > { %p4783_p3 = scmp.lt.u32.totalorder %s5036_s17, %s8836_s4  ;;  %p4784_p6 = scmp.lt.u32.totalorder %s4782_s29, %s4777_s22 }
  0x48   : > { %p4780_p1 = pnand %p4778_p10, %p4749_p8  ;;  %p4786_p4 = scmp.lt.u32.totalorder %s4777_s22, %s5036_s17 }
  0x49   : > { %p4785_p7 = por %p4784_p6, %p4783_p3 }
  0x4a   : > { %p4781_p2 = pneg %p4780_p1 }
  0x4b   : > { %p4787_p9 = por %p4786_p4, %p4785_p7 }
  0x4d   : > { %p4788_p11 = pnand %p4787_p9, %p4781_p2 }
  0x4f   : > { %4791 = shalt.err (!%p4788_p11)
}
  0x50   : > { %s4792_s15 = scalar_lea.vmem %s5040_s3, 512  ;;  %s4855_s13 = smov [#allocation6]  }
  0x51   : > { %p4793_p12 = scmp.ne.s32.totalorder %s5040_s3, %s4792_s15  ;;  %s4797_s30 = sshll.u32 %s4855_s13, 4  ;;  %s4798_s30 = int_to_ptr.vmem [resolvable:$false] %s4797_s30 }
  0x52   : > { %s4799_s23 = scalar_lea.vmem %s4798_s30, 1024  ;;  %p4800_p1 = scmp.lt.s32.totalorder %s5040_s3, %s4798_s30 }
  0x53   : > { %p4795_p0 = pnand %p4793_p12, %p4749_p8  ;;  %p4801_p3 = scmp.lt.s32.totalorder %s4799_s23, %s4792_s15 }
  0x55   : > { %p4796_p10 = pneg %p4795_p0  ;;  %p4802_p6 = por %p4801_p3, %p4800_p1 }
  0x57   : > { %p4803_p7 = pnand %p4802_p6, %p4796_p10 }
  0x59   : > { %4806 = shalt.err (!%p4803_p7)
}
  0x5a   : > { %4689 = dma.hbm_to_vmem [thread:$0]  (!%p4979_p13), %s5036_s17, 512, %s5040_s3, %s393_s19, %s4853_s25, %s4853_s25, %s4854_s24  }
  0x5b   : > { %p9321_p8 = scmp.ne.s32.totalorder %s9315_s27, 0 }
  0x5d   : > { %429 = sbr.rel (%p9321_p8) target bundleno = 1340 (0x53c), region = 64 }
  0x64   : > { %4824 = dma.done.wait (%p122_p5), [#allocation4], 32  }
  0x65   : > { %4826 = vsyncadd (%p122_p5), [#allocation4], 4294967264  ;;  %s435_s22 = sand.u32 1, %s4841_s18   ;;  %p9322_p2 = scmp.ne.s32.totalorder %s9314_s26, 0 }
  0x66   : > { %s4431_s14 = sshll.u32 %s435_s22, 5  ;;  %s436_s0 = scalar_lea.sflag [#allocation3], %s435_s22 }
  0x67   : > { %s5078_s20 = scalar_lea.vmem [#allocation5], %s4431_s14 }
  0x68   : > { %4828 = dma.done.wait (%p9322_p2), %s436_s0, 512  }
  0x69   : > { %4830 = vsyncadd (%p9322_p2), %s436_s0, 4294966784  ;;  %s445_s3 = scalar_lea.sflag [#allocation7], %s435_s22  ;;  %s5084_s19 = scalar_lea.vmem [#allocation6], %s4431_s14 }
  0x6a   : > { %4832 = dma.done.wait (%p9322_p2), %s445_s3, 512  }
  0x6b   : > { %4834 = vsyncadd (%p9322_p2), %s445_s3, 4294966784 }
  0x6c   : > { %453 = sfence }
  0x6d   : > { %v544_v0 = vlaneseq  ;;  %v5093_v2 = vld [vmem:[%s5078_s20 + $0x8] sm:$0xff]  ;;  %v5203_v40 = vld [vmem:[%s5078_s20 + $0x18] sm:$0xff]  ;;  %p510_p5 = scmp.lt.s32.totalorder %s4936_s21, 1 }
  0x6e   : > { %v5096_v3 = vld [vmem:[%s5084_s19 + $0x8] sm:$0xff]  ;;  %v5214_v41 = vld [vmem:[%s5084_s19 + $0x18] sm:$0xff] }
  0x6f   : > { %v5090_v1 = vshrl.u32 %v544_v0, 7  ;;  %s8317_s26 = scalar_select %p510_p5, %s4936_s21, 1 }
  0x71   : > { %9323 = vst [vmem:[#allocation14_spill] sm:$0xff] %v5090_v1  ;;  %v5099_v4 = vadd.s32 8, %v5090_v1  ;;  %v5102_v5 = vsub.s32 0, %v5090_v1  ;;  %v5105_v6 = vsub.s32 1, %v5090_v1  ;;  %v5108_v7 = vsub.s32 2, %v5090_v1  ;;  %s4509_s27 = sshll.u32 %s8317_s26, 3 }
  0x72   : > { %v5111_v8 = vsub.s32 3, %v5090_v1  ;;  %v5114_v9 = vsub.s32 4, %v5090_v1  ;;  %v5117_v10 = vsub.s32 5, %v5090_v1  ;;  %v5120_v11 = vsub.s32 6, %v5090_v1  ;;  %s514_s24 = scalar_lea.vmem %s8833_s1, %s4509_s27  ;;  %s8510_s17 = sshll.u32 %s8317_s26, 1 }
  0x73   : > { %9324 = vst [vmem:[#allocation15_spill] sm:$0xff] %v5099_v4  ;;  %9325 = vst [vmem:[#allocation16_spill] sm:$0xff] %v5102_v5  ;;  %v5124_v12 = vrot.slane %v5093_v2, %v5102_v5  ;;  %v5128_v13 = vrot.slane %v5096_v3, %v5102_v5  ;;  %v5132_v14 = vrot.slane %v5093_v2, %v5105_v6  ;;  %v5227_v50 = vsub.s32 7, %v5090_v1  ;;  %s522_s28 = scalar_lea.vmem %s8837_s5, %s8510_s17  ;;  %s526_s30 = scalar_lea.vmem %s8838_s6, %s8510_s17 }
  0x74   : > { %9326 = vst [vmem:[#allocation17_spill] sm:$0xff] %v5105_v6  ;;  %v5136_v15 = vrot.slane %v5096_v3, %v5105_v6  ;;  %v5140_v16 = vrot.slane %v5093_v2, %v5108_v7  ;;  %v5144_v17 = vrot.slane %v5096_v3, %v5108_v7  ;;  %v5148_v18 = vrot.slane %v5093_v2, %v5111_v8  ;;  %s4510_s23 = sshll.u32 %s8317_s26, 4 }
  0x75   : > { %9327 = vst [vmem:[#allocation18_spill] sm:$0xff] %v5124_v12  ;;  %9328 = vst [vmem:[#allocation19_spill] sm:$0xff] %v5128_v13  ;;  %v5152_v19 = vrot.slane %v5096_v3, %v5111_v8  ;;  %vm586_vm0 = vcmp.eq.s32.totalorder %v5090_v1, %v5124_v12  ;;  %vm588_vm1 = vcmp.eq.s32.totalorder %v5099_v4, %v5124_v12  ;;  %s531_s0 = scalar_lea.vmem %s8843_s11, %s4510_s23 }
  0x76   : > { %9329 = vst [vmem:[#allocation20_spill] sm:$0xff] %v5132_v14  ;;  %9330 = vst [vmem:[#allocation21_spill] sm:$0xff] %v5136_v15  ;;  %vm730_vm2 = vcmp.eq.s32.totalorder %v5090_v1, %v5132_v14  ;;  %vm732_vm3 = vcmp.eq.s32.totalorder %v5099_v4, %v5132_v14  ;;  %v658_v20 = vsel %vm586_vm0, %v5128_v13, 0.0  ;;  %v660_v21 = vsel %vm588_vm1, %v5128_v13, 0.0 }
  0x77   : > { %9331 = vst [vmem:[#allocation22_spill] sm:$0xff] %v5140_v16  ;;  %v802_v22 = vsel %vm730_vm2, %v5136_v15, 0.0  ;;  %v804_v23 = vsel %vm732_vm3, %v5136_v15, 0.0  ;;  %vm938_vm4 = vcmp.eq.s32.totalorder %v5090_v1, %v5140_v16  ;;  %vm940_vm5 = vcmp.eq.s32.totalorder %v5099_v4, %v5140_v16 }
  0x78   : > { %v866_v24 = vadd.f32 %v802_v22, %v658_v20  ;;  %v868_v25 = vadd.f32 %v804_v23, %v660_v21  ;;  %v1010_v26 = vsel %vm938_vm4, %v5144_v17, 0.0  ;;  %v1012_v27 = vsel %vm940_vm5, %v5144_v17, 0.0 }
  0x79   : > { %vm1146_vm6 = vcmp.eq.s32.totalorder %v5090_v1, %v5148_v18  ;;  %vm1148_vm7 = vcmp.eq.s32.totalorder %v5099_v4, %v5148_v18  ;;  %v5180_v32 = vrot.slane %v5093_v2, %v5114_v9  ;;  %v5184_v33 = vrot.slane %v5096_v3, %v5114_v9 }
  0x7a   : > { %v1074_v28 = vadd.f32 %v1010_v26, %v866_v24  ;;  %v1076_v29 = vadd.f32 %v1012_v27, %v868_v25  ;;  %v1218_v30 = vsel %vm1146_vm6, %v5152_v19, 0.0  ;;  %v1220_v31 = vsel %vm1148_vm7, %v5152_v19, 0.0 }
  0x7b   : > { %9332 = vst [vmem:[#allocation23_spill] sm:$0xff] %v5184_v33  ;;  %v5188_v34 = vrot.slane %v5093_v2, %v5117_v10  ;;  %v5192_v35 = vrot.slane %v5096_v3, %v5117_v10  ;;  %v5196_v38 = vrot.slane %v5093_v2, %v5120_v11  ;;  %v5200_v39 = vrot.slane %v5096_v3, %v5120_v11 }
  0x7c   : > { %v1282_v36 = vadd.f32 %v1218_v30, %v1074_v28  ;;  %v1284_v37 = vadd.f32 %v1220_v31, %v1076_v29  ;;  %vm1354_vm8 = vcmp.eq.s32.totalorder %v5090_v1, %v5180_v32  ;;  %vm1356_vm9 = vcmp.eq.s32.totalorder %v5099_v4, %v5180_v32 }
  0x7d   : > { %9333 = vst [vmem:[#allocation24_spill] sm:$0xff] %v5188_v34  ;;  %9334 = vst [vmem:[#allocation25_spill] sm:$0xff] %v5192_v35  ;;  %vm1562_vm10 = vcmp.eq.s32.totalorder %v5090_v1, %v5188_v34  ;;  %vm1564_vm11 = vcmp.eq.s32.totalorder %v5099_v4, %v5188_v34  ;;  %v1426_v42 = vsel %vm1354_vm8, %v5184_v33, 0.0  ;;  %v1428_v43 = vsel %vm1356_vm9, %v5184_v33, 0.0 }
  0x7e   : > { %9335 = vst [vmem:[#allocation26_spill] sm:$0xff] %v5196_v38  ;;  %9336 = vst [vmem:[#allocation27_spill] sm:$0xff] %v5200_v39  ;;  %v1634_v44 = vsel %vm1562_vm10, %v5192_v35, 0.0  ;;  %v1636_v45 = vsel %vm1564_vm11, %v5192_v35, 0.0  ;;  %v1490_v46 = vadd.f32 %v1426_v42, %v1282_v36  ;;  %v1492_v47 = vadd.f32 %v1428_v43, %v1284_v37 }
  0x7f   : > { %vm1770_vm12 = vcmp.eq.s32.totalorder %v5090_v1, %v5196_v38  ;;  %vm1772_vm13 = vcmp.eq.s32.totalorder %v5099_v4, %v5196_v38  ;;  %v5231_v51 = vrot.slane %v5203_v40, %v5102_v5  ;;  %v5235_v54 = vrot.slane %v5214_v41, %v5102_v5 }
  0x80   : > { %v1842_v48 = vsel %vm1770_vm12, %v5200_v39, 0.0  ;;  %v1844_v49 = vsel %vm1772_vm13, %v5200_v39, 0.0  ;;  %v1698_v52 = vadd.f32 %v1634_v44, %v1490_v46  ;;  %v1700_v53 = vadd.f32 %v1636_v45, %v1492_v47 }
  0x81   : > { %9337 = vst [vmem:[#allocation28_spill] sm:$0xff] %v5231_v51  ;;  %9338 = vst [vmem:[#allocation29_spill] sm:$0xff] %v5235_v54  ;;  %v5239_v55 = vrot.slane %v5203_v40, %v5105_v6  ;;  %v5243_v56 = vrot.slane %v5093_v2, %v5227_v50  ;;  %v5247_v57 = vrot.slane %v5096_v3, %v5227_v50 }
  0x82   : > { %vm2186_vm14 = vcmp.eq.s32.totalorder %v5090_v1, %v5231_v51  ;;  %vm2188_vm15 = vcmp.eq.s32.totalorder %v5099_v4, %v5231_v51  ;;  %v1906_v58 = vadd.f32 %v1842_v48, %v1698_v52  ;;  %v1908_v59 = vadd.f32 %v1844_v49, %v1700_v53 }
  0x83   : > { %9339 = vst [vmem:[#allocation30_spill] sm:$0xff] %v5239_v55  ;;  %9340 = vst [vmem:[#allocation31_spill] sm:$0xff] %v5243_v56  ;;  %v2258_v60 = vsel %vm2186_vm14, %v5235_v54, 0.0  ;;  %v2260_v61 = vsel %vm2188_vm15, %v5235_v54, 0.0  ;;  %vm1978_vm0 = vcmp.eq.s32.totalorder %v5090_v1, %v5243_v56  ;;  %vm1980_vm1 = vcmp.eq.s32.totalorder %v5099_v4, %v5243_v56 }
  0x84   : > { %9341 = vst [vmem:[#allocation32_spill] sm:$0xff] %v5247_v57  ;;  %vm2394_vm2 = vcmp.eq.s32.totalorder %v5090_v1, %v5239_v55  ;;  %vm2396_vm3 = vcmp.eq.s32.totalorder %v5099_v4, %v5239_v55  ;;  %v2050_v62 = vsel %vm1978_vm0, %v5247_v57, 0.0  ;;  %v2052_v63 = vsel %vm1980_vm1, %v5247_v57, 0.0 }
  0x85   : > { %v5267_v0 = vrot.slane %v5214_v41, %v5105_v6  ;;  %v5271_v2 = vrot.slane %v5203_v40, %v5108_v7  ;;  %v2114_v3 = vadd.f32 %v2050_v62, %v1906_v58  ;;  %v2116_v20 = vadd.f32 %v2052_v63, %v1908_v59 }
  0x86   : > { %v5275_v21 = vrot.slane %v5214_v41, %v5108_v7  ;;  %v5279_v22 = vrot.slane %v5203_v40, %v5111_v8  ;;  %v5295_v29 = vrot.slane %v5214_v41, %v5111_v8  ;;  %v5299_v30 = vrot.slane %v5203_v40, %v5114_v9 }
  0x87   : > { %9342 = vst [vmem:[#allocation33_spill] sm:$0xff] %v5267_v0  ;;  %9343 = vst [vmem:[#allocation34_spill] sm:$0xff] %v5271_v2  ;;  %v2466_v23 = vsel %vm2394_vm2, %v5267_v0, 0.0  ;;  %v2468_v24 = vsel %vm2396_vm3, %v5267_v0, 0.0  ;;  %vm2602_vm4 = vcmp.eq.s32.totalorder %v5090_v1, %v5271_v2  ;;  %vm2604_vm5 = vcmp.eq.s32.totalorder %v5099_v4, %v5271_v2 }
  0x88   : > { %9344 = vst [vmem:[#allocation35_spill] sm:$0xff] %v5275_v21  ;;  %9345 = vst [vmem:[#allocation36_spill] sm:$0xff] %v5279_v22  ;;  %v2322_v25 = vadd.f32 %v2258_v60, %v2114_v3  ;;  %v2324_v26 = vadd.f32 %v2260_v61, %v2116_v20  ;;  %v2674_v27 = vsel %vm2602_vm4, %v5275_v21, 0.0  ;;  %v2676_v28 = vsel %vm2604_vm5, %v5275_v21, 0.0  ;;  %v5338_v61 = vld [vmem:[%s5078_s20] sm:$0xff] }
  0x89   : > { %vm2810_vm6 = vcmp.eq.s32.totalorder %v5090_v1, %v5279_v22  ;;  %vm2812_vm7 = vcmp.eq.s32.totalorder %v5099_v4, %v5279_v22  ;;  %9346 = vst [vmem:[#allocation37_spill] sm:$0xff] %v5295_v29  ;;  %9347 = vst [vmem:[#allocation38_spill] sm:$0xff] %v5299_v30  ;;  %v5303_v37 = vrot.slane %v5214_v41, %v5114_v9  ;;  %v5347_v3 = vld [vmem:[%s5084_s19] sm:$0xff] }
  0x8a   : > { %v2530_v31 = vadd.f32 %v2466_v23, %v2322_v25  ;;  %v2532_v36 = vadd.f32 %v2468_v24, %v2324_v26  ;;  %v5307_v42 = vrot.slane %v5203_v40, %v5117_v10  ;;  %v2882_v43 = vsel %vm2810_vm6, %v5295_v29, 0.0 }
  0x8b   : > { %9348 = vst [vmem:[#allocation39_spill] sm:$0xff] %v5303_v37  ;;  %v2884_v44 = vsel %vm2812_vm7, %v5295_v29, 0.0  ;;  %vm3018_vm8 = vcmp.eq.s32.totalorder %v5090_v1, %v5299_v30  ;;  %vm3020_vm9 = vcmp.eq.s32.totalorder %v5099_v4, %v5299_v30  ;;  %v5323_v49 = vrot.slane %v5214_v41, %v5117_v10 }
  0x8c   : > { %9349 = vst [vmem:[#allocation40_spill] sm:$0xff] %v5307_v42  ;;  %v2738_v45 = vadd.f32 %v2674_v27, %v2530_v31  ;;  %v2740_v46 = vadd.f32 %v2676_v28, %v2532_v36  ;;  %v3090_v47 = vsel %vm3018_vm8, %v5303_v37, 0.0  ;;  %v3092_v48 = vsel %vm3020_vm9, %v5303_v37, 0.0 }
  0x8d   : > { %vm3226_vm10 = vcmp.eq.s32.totalorder %v5090_v1, %v5307_v42  ;;  %vm3228_vm11 = vcmp.eq.s32.totalorder %v5099_v4, %v5307_v42  ;;  %9350 = vst [vmem:[#allocation41_spill] sm:$0xff] %v5323_v49  ;;  %v5327_v52 = vrot.slane %v5203_v40, %v5120_v11  ;;  %v5331_v59 = vrot.slane %v5214_v41, %v5120_v11 }
  0x8e   : > { %v2946_v53 = vadd.f32 %v2882_v43, %v2738_v45  ;;  %v2948_v58 = vadd.f32 %v2884_v44, %v2740_v46  ;;  %v5335_v60 = vrot.slane %v5203_v40, %v5227_v50  ;;  %v3298_v62 = vsel %vm3226_vm10, %v5323_v49, 0.0 }
  0x8f   : > { %9351 = vst [vmem:[#allocation42_spill] sm:$0xff] %v5327_v52  ;;  %9352 = vst [vmem:[#allocation43_spill] sm:$0xff] %v5331_v59  ;;  %v3300_v63 = vsel %vm3228_vm11, %v5323_v49, 0.0  ;;  %vm3434_vm12 = vcmp.eq.s32.totalorder %v5090_v1, %v5327_v52  ;;  %vm3436_vm13 = vcmp.eq.s32.totalorder %v5099_v4, %v5327_v52  ;;  %v5357_v25 = vrot.slane %v5214_v41, %v5227_v50 }
  0x90   : > { %9353 = vst [vmem:[#allocation44_spill] sm:$0xff] %v5335_v60  ;;  %v3154_v20 = vadd.f32 %v3090_v47, %v2946_v53  ;;  %v3156_v23 = vadd.f32 %v3092_v48, %v2948_v58  ;;  %v3506_v24 = vsel %vm3434_vm12, %v5331_v59, 0.0  ;;  %v3508_v40 = vsel %vm3436_vm13, %v5331_v59, 0.0 }
  0x91   : > { %vm3642_vm14 = vcmp.eq.s32.totalorder %v5090_v1, %v5335_v60  ;;  %vm3644_vm15 = vcmp.eq.s32.totalorder %v5099_v4, %v5335_v60  ;;  %9354 = vst [vmem:[#allocation45_spill] sm:$0xff] %v5357_v25  ;;  %v5361_v26 = vrot.slane %v5338_v61, %v5102_v5  ;;  %v5365_v31 = vrot.slane %v5347_v3, %v5102_v5 }
  0x92   : > { %v3362_v27 = vadd.f32 %v3298_v62, %v3154_v20  ;;  %v3364_v28 = vadd.f32 %v3300_v63, %v3156_v23  ;;  %v5369_v36 = vrot.slane %v5338_v61, %v5105_v6  ;;  %v3714_v43 = vsel %vm3642_vm14, %v5357_v25, 0.0 }
  0x93   : > { %9355 = vst [vmem:[#allocation46_spill] sm:$0xff] %v5361_v26  ;;  %9356 = vst [vmem:[#allocation47_spill] sm:$0xff] %v5365_v31  ;;  %v3716_v44 = vsel %vm3644_vm15, %v5357_v25, 0.0  ;;  %vm585_vm0 = vcmp.eq.s32.totalorder %v5090_v1, %v5361_v26  ;;  %vm587_vm1 = vcmp.eq.s32.totalorder %v5099_v4, %v5361_v26  ;;  %v5385_v48 = vrot.slane %v5347_v3, %v5105_v6 }
  0x94   : > { %9357 = vst [vmem:[#allocation48_spill] sm:$0xff] %v5369_v36  ;;  %v3570_v41 = vadd.f32 %v3506_v24, %v3362_v27  ;;  %v3572_v45 = vadd.f32 %v3508_v40, %v3364_v28  ;;  %v657_v46 = vsel %vm585_vm0, %v5365_v31, 0.0  ;;  %v659_v47 = vsel %vm587_vm1, %v5365_v31, 0.0 }
  0x95   : > { %vm729_vm2 = vcmp.eq.s32.totalorder %v5090_v1, %v5369_v36  ;;  %vm731_vm3 = vcmp.eq.s32.totalorder %v5099_v4, %v5369_v36  ;;  %9358 = vst [vmem:[#allocation49_spill] sm:$0xff] %v5385_v48  ;;  %v5389_v53 = vrot.slane %v5338_v61, %v5108_v7  ;;  %v5393_v63 = vrot.slane %v5347_v3, %v5108_v7 }
  0x96   : > { %v3778_v58 = vadd.f32 %v3714_v43, %v3570_v41  ;;  %v3780_v62 = vadd.f32 %v3716_v44, %v3572_v45  ;;  %v5397_v20 = vrot.slane %v5338_v61, %v5111_v8  ;;  %v801_v23 = vsel %vm729_vm2, %v5385_v48, 0.0 }
  0x97   : > { %9359 = vst [vmem:[#allocation50_spill] sm:$0xff] %v5393_v63  ;;  %v803_v24 = vsel %vm731_vm3, %v5385_v48, 0.0  ;;  %vm937_vm4 = vcmp.eq.s32.totalorder %v5090_v1, %v5389_v53  ;;  %vm939_vm5 = vcmp.eq.s32.totalorder %v5099_v4, %v5389_v53  ;;  %v865_v27 = vadd.f32 %v801_v23, %v657_v46 }
  0x98   : > { %9360 = vst [vmem:[#allocation51_spill] sm:$0xff] %v5397_v20  ;;  %v4511_v40 = vpack.c.bf16 %v3780_v62, %v3778_v58  ;;  %v867_v28 = vadd.f32 %v803_v24, %v659_v47  ;;  %v1009_v43 = vsel %vm937_vm4, %v5393_v63, 0.0  ;;  %v1011_v44 = vsel %vm939_vm5, %v5393_v63, 0.0 }
  0x99   : > { %vm1145_vm6 = vcmp.eq.s32.totalorder %v5090_v1, %v5397_v20  ;;  %vm1147_vm7 = vcmp.eq.s32.totalorder %v5099_v4, %v5397_v20  ;;  %v5413_v41 = vrot.slane %v5347_v3, %v5111_v8  ;;  %v1073_v45 = vadd.f32 %v1009_v43, %v865_v27  ;;  %v5438_v43 = vld [vmem:[%s5078_s20 + $0x10] sm:$0xff] }
  0x9a   : > { %4512 = vmatprep.subr.bf16.mxu0 %v4511_v40  ;;  %v1075_v46 = vadd.f32 %v1011_v44, %v867_v28  ;;  %v5417_v47 = vrot.slane %v5338_v61, %v5114_v9  ;;  %v5421_v58 = vrot.slane %v5347_v3, %v5114_v9  ;;  %v5427_v24 = vrot.slane %v5338_v61, %v5117_v10  ;;  %v5441_v44 = vld [vmem:[%s5084_s19 + $0x10] sm:$0xff] }
  0x9b   : > { %9361 = vst [vmem:[#allocation52_spill] sm:$0xff] %v5413_v41  ;;  %v1217_v62 = vsel %vm1145_vm6, %v5413_v41, 0.0  ;;  %v1219_v23 = vsel %vm1147_vm7, %v5413_v41, 0.0  ;;  %v5431_v40 = vrot.slane %v5347_v3, %v5117_v10  ;;  %v5457_v63 = vrot.slane %v5347_v3, %v5120_v11 }
  0x9c   : > { %9362 = vst [vmem:[#allocation53_spill] sm:$0xff] %v5417_v47  ;;  %9363 = vst [vmem:[#allocation54_spill] sm:$0xff] %v5421_v58  ;;  %v1281_v27 = vadd.f32 %v1217_v62, %v1073_v45  ;;  %v1283_v28 = vadd.f32 %v1219_v23, %v1075_v46  ;;  %vm1353_vm8 = vcmp.eq.s32.totalorder %v5090_v1, %v5417_v47 }
  0x9d   : > { %9364 = vst [vmem:[#allocation55_spill] sm:$0xff] %v5431_v40  ;;  %vm1355_vm9 = vcmp.eq.s32.totalorder %v5099_v4, %v5417_v47  ;;  %v1425_v41 = vsel %vm1353_vm8, %v5421_v58, 0.0  ;;  %vm1561_vm10 = vcmp.eq.s32.totalorder %v5090_v1, %v5427_v24  ;;  %vm1563_vm11 = vcmp.eq.s32.totalorder %v5099_v4, %v5427_v24  ;;  %9366 = vst [vmem:[#allocation57_spill] sm:$0xff] %v5457_v63 }
  0x9e   : > { %v1427_v20 = vsel %vm1355_vm9, %v5421_v58, 0.0  ;;  %v1489_v45 = vadd.f32 %v1425_v41, %v1281_v27  ;;  %v1633_v62 = vsel %vm1561_vm10, %v5431_v40, 0.0  ;;  %v1635_v23 = vsel %vm1563_vm11, %v5431_v40, 0.0 }
  0x9f   : > { %v1491_v46 = vadd.f32 %v1427_v20, %v1283_v28  ;;  %v5453_v47 = vrot.slane %v5338_v61, %v5120_v11  ;;  %v5461_v58 = vrot.slane %v5338_v61, %v5227_v50  ;;  %v5465_v41 = vrot.slane %v5347_v3, %v5227_v50 }
  0xa0   : > { %v1697_v20 = vadd.f32 %v1633_v62, %v1489_v45  ;;  %v5469_v28 = vrot.slane %v5438_v43, %v5102_v5  ;;  %v5473_v40 = vrot.slane %v5441_v44, %v5102_v5 }
  0xa1   : > { %9365 = vst [vmem:[#allocation56_spill] sm:$0xff] %v5453_v47  ;;  %9367 = vst [vmem:[#allocation58_spill] sm:$0xff] %v5461_v58  ;;  %v1699_v27 = vadd.f32 %v1635_v23, %v1491_v46  ;;  %vm1769_vm12 = vcmp.eq.s32.totalorder %v5090_v1, %v5453_v47  ;;  %vm1771_vm13 = vcmp.eq.s32.totalorder %v5099_v4, %v5453_v47 }
  0xa2   : > { %9368 = vst [vmem:[#allocation59_spill] sm:$0xff] %v5473_v40  ;;  %vm1977_vm14 = vcmp.eq.s32.totalorder %v5090_v1, %v5461_v58  ;;  %vm1979_vm15 = vcmp.eq.s32.totalorder %v5099_v4, %v5461_v58  ;;  %v1841_v61 = vsel %vm1769_vm12, %v5457_v63, 0.0  ;;  %v1843_v3 = vsel %vm1771_vm13, %v5457_v63, 0.0 }
  0xa3   : > { %v2049_v45 = vsel %vm1977_vm14, %v5465_v41, 0.0  ;;  %v2051_v46 = vsel %vm1979_vm15, %v5465_v41, 0.0  ;;  %v1905_v62 = vadd.f32 %v1841_v61, %v1697_v20  ;;  %v1907_v23 = vadd.f32 %v1843_v3, %v1699_v27 }
  0xa4   : > { %vm2185_vm0 = vcmp.eq.s32.totalorder %v5090_v1, %v5469_v28  ;;  %vm2187_vm1 = vcmp.eq.s32.totalorder %v5099_v4, %v5469_v28  ;;  %v5495_v47 = vrot.slane %v5438_v43, %v5105_v6  ;;  %v5499_v63 = vrot.slane %v5441_v44, %v5105_v6 }
  0xa5   : > { %v2257_v5 = vsel %vm2185_vm0, %v5473_v40, 0.0  ;;  %v2259_v58 = vsel %vm2187_vm1, %v5473_v40, 0.0  ;;  %v2113_v20 = vadd.f32 %v2049_v45, %v1905_v62  ;;  %v2115_v27 = vadd.f32 %v2051_v46, %v1907_v23 }
  0xa6   : > { %9369 = vst [vmem:[#allocation60_spill] sm:$0xff] %v5495_v47  ;;  %9370 = vst [vmem:[#allocation61_spill] sm:$0xff] %v5499_v63  ;;  %v5503_v61 = vrot.slane %v5438_v43, %v5108_v7  ;;  %v5507_v3 = vrot.slane %v5441_v44, %v5108_v7  ;;  %vm2393_vm2 = vcmp.eq.s32.totalorder %v5090_v1, %v5495_v47 }
  0xa7   : > { %vm2395_vm3 = vcmp.eq.s32.totalorder %v5099_v4, %v5495_v47  ;;  %v5515_v6 = vrot.slane %v5438_v43, %v5111_v8  ;;  %v5519_v45 = vrot.slane %v5441_v44, %v5111_v8  ;;  %v2321_v46 = vadd.f32 %v2257_v5, %v2113_v20 }
  0xa8   : > { %9371 = vst [vmem:[#allocation62_spill] sm:$0xff] %v5503_v61  ;;  %9372 = vst [vmem:[#allocation63_spill] sm:$0xff] %v5507_v3  ;;  %v2323_v62 = vadd.f32 %v2259_v58, %v2115_v27  ;;  %v2465_v23 = vsel %vm2393_vm2, %v5499_v63, 0.0  ;;  %v2467_v7 = vsel %vm2395_vm3, %v5499_v63, 0.0  ;;  %vm2601_vm4 = vcmp.eq.s32.totalorder %v5090_v1, %v5503_v61 }
  0xa9   : > { %9373 = vst [vmem:[#allocation64_spill] sm:$0xff] %v5515_v6  ;;  %9374 = vst [vmem:[#allocation65_spill] sm:$0xff] %v5519_v45  ;;  %vm2603_vm5 = vcmp.eq.s32.totalorder %v5099_v4, %v5503_v61  ;;  %vm2809_vm6 = vcmp.eq.s32.totalorder %v5090_v1, %v5515_v6  ;;  %vm2811_vm7 = vcmp.eq.s32.totalorder %v5099_v4, %v5515_v6  ;;  %v2673_v5 = vsel %vm2601_vm4, %v5507_v3, 0.0 }
  0xaa   : > { %v2529_v8 = vadd.f32 %v2465_v23, %v2321_v46  ;;  %v2531_v47 = vadd.f32 %v2467_v7, %v2323_v62  ;;  %v2675_v58 = vsel %vm2603_vm5, %v5507_v3, 0.0  ;;  %v2881_v20 = vsel %vm2809_vm6, %v5519_v45, 0.0 }
  0xab   : > { %v2883_v27 = vsel %vm2811_vm7, %v5519_v45, 0.0  ;;  %v5537_v63 = vrot.slane %v5438_v43, %v5114_v9  ;;  %v5541_v61 = vrot.slane %v5441_v44, %v5114_v9  ;;  %v5545_v46 = vrot.slane %v5438_v43, %v5117_v10 }
  0xac   : > { %v2737_v40 = vadd.f32 %v2673_v5, %v2529_v8  ;;  %v2739_v6 = vadd.f32 %v2675_v58, %v2531_v47  ;;  %v5549_v62 = vrot.slane %v5441_v44, %v5117_v10  ;;  %v5557_v9 = vrot.slane %v5438_v43, %v5120_v11 }
  0xad   : > { %9375 = vst [vmem:[#allocation66_spill] sm:$0xff] %v5537_v63  ;;  %9376 = vst [vmem:[#allocation67_spill] sm:$0xff] %v5541_v61  ;;  %vm3017_vm8 = vcmp.eq.s32.totalorder %v5090_v1, %v5537_v63  ;;  %vm3019_vm9 = vcmp.eq.s32.totalorder %v5099_v4, %v5537_v63  ;;  %v5561_v47 = vrot.slane %v5441_v44, %v5120_v11 }
  0xae   : > { %9377 = vst [vmem:[#allocation68_spill] sm:$0xff] %v5545_v46  ;;  %9378 = vst [vmem:[#allocation69_spill] sm:$0xff] %v5549_v62  ;;  %v2945_v23 = vadd.f32 %v2881_v20, %v2737_v40  ;;  %v2947_v7 = vadd.f32 %v2883_v27, %v2739_v6  ;;  %v3089_v8 = vsel %vm3017_vm8, %v5541_v61, 0.0  ;;  %v3091_v10 = vsel %vm3019_vm9, %v5541_v61, 0.0 }
  0xaf   : > { %9379 = vst [vmem:[#allocation70_spill] sm:$0xff] %v5557_v9  ;;  %9380 = vst [vmem:[#allocation71_spill] sm:$0xff] %v5561_v47  ;;  %vm3225_vm10 = vcmp.eq.s32.totalorder %v5090_v1, %v5545_v46  ;;  %vm3227_vm11 = vcmp.eq.s32.totalorder %v5099_v4, %v5545_v46  ;;  %vm3433_vm12 = vcmp.eq.s32.totalorder %v5090_v1, %v5557_v9 }
  0xb0   : > { %vm3435_vm13 = vcmp.eq.s32.totalorder %v5099_v4, %v5557_v9  ;;  %v3153_v11 = vadd.f32 %v3089_v8, %v2945_v23  ;;  %v3155_v5 = vadd.f32 %v3091_v10, %v2947_v7  ;;  %v3297_v6 = vsel %vm3225_vm10, %v5549_v62, 0.0 }
  0xb1   : > { %v3299_v40 = vsel %vm3227_vm11, %v5549_v62, 0.0  ;;  %v3505_v58 = vsel %vm3433_vm12, %v5561_v47, 0.0  ;;  %v3507_v20 = vsel %vm3435_vm13, %v5561_v47, 0.0  ;;  %v5579_v27 = vrot.slane %v5438_v43, %v5227_v50 }
  0xb2   : > { %v5583_v46 = vrot.slane %v5441_v44, %v5227_v50  ;;  %v3361_v61 = vadd.f32 %v3297_v6, %v3153_v11  ;;  %v3363_v9 = vadd.f32 %v3299_v40, %v3155_v5  ;;  %v5586_v23 = vadd.s32 16, %v5090_v1 }
  0xb3   : > { %9381 = vst [vmem:[#allocation72_spill] sm:$0xff] %v5579_v27  ;;  %v5589_v7 = vadd.s32 24, %v5090_v1  ;;  %vm3641_vm14 = vcmp.eq.s32.totalorder %v5090_v1, %v5579_v27  ;;  %vm3643_vm15 = vcmp.eq.s32.totalorder %v5099_v4, %v5579_v27  ;;  %v5596_v43 = vadd.s32 32, %v5090_v1 }
  0xb4   : > { %9382 = vst [vmem:[#allocation73_spill] sm:$0xff] %v5583_v46  ;;  %9383 = vst [vmem:[#allocation74_spill] sm:$0xff] %v5586_v23  ;;  %v5599_v50 = vadd.s32 40, %v5090_v1  ;;  %v3569_v44 = vadd.f32 %v3505_v58, %v3361_v61  ;;  %v3571_v8 = vadd.f32 %v3507_v20, %v3363_v9  ;;  %v3713_v10 = vsel %vm3641_vm14, %v5583_v46, 0.0 }
  0xb5   : > { %9384 = vst [vmem:[#allocation75_spill] sm:$0xff] %v5589_v7  ;;  %9385 = vst [vmem:[#allocation76_spill] sm:$0xff] %v5596_v43  ;;  %v3715_v11 = vsel %vm3643_vm15, %v5583_v46, 0.0  ;;  %vm590_vm0 = vcmp.eq.s32.totalorder %v5586_v23, %v5124_v12  ;;  %vm592_vm1 = vcmp.eq.s32.totalorder %v5589_v7, %v5124_v12  ;;  %vm734_vm2 = vcmp.eq.s32.totalorder %v5586_v23, %v5132_v14 }
  0xb6   : > { %9386 = vst [vmem:[#allocation77_spill] sm:$0xff] %v5599_v50  ;;  %vm736_vm3 = vcmp.eq.s32.totalorder %v5589_v7, %v5132_v14  ;;  %v3777_v5 = vadd.f32 %v3713_v10, %v3569_v44  ;;  %v3779_v6 = vadd.f32 %v3715_v11, %v3571_v8  ;;  %v662_v61 = vsel %vm590_vm0, %v5128_v13, 0.0 }
  0xb7   : > { %v664_v9 = vsel %vm592_vm1, %v5128_v13, 0.0  ;;  %v806_v40 = vsel %vm734_vm2, %v5136_v15, 0.0  ;;  %v808_v58 = vsel %vm736_vm3, %v5136_v15, 0.0  ;;  %vm942_vm4 = vcmp.eq.s32.totalorder %v5586_v23, %v5140_v16 }
  0xb8   : > { %vm944_vm5 = vcmp.eq.s32.totalorder %v5589_v7, %v5140_v16  ;;  %v4513_v20 = vpack.c.bf16 %v3779_v6, %v3777_v5  ;;  %v870_v4 = vadd.f32 %v806_v40, %v662_v61  ;;  %v872_v1 = vadd.f32 %v808_v58, %v664_v9 }
  0xb9   : > { %v1014_v44 = vsel %vm942_vm4, %v5144_v17, 0.0  ;;  %v1016_v8 = vsel %vm944_vm5, %v5144_v17, 0.0  ;;  %vm1150_vm6 = vcmp.eq.s32.totalorder %v5586_v23, %v5148_v18  ;;  %vm1152_vm7 = vcmp.eq.s32.totalorder %v5589_v7, %v5148_v18 }
  0xba   : > { %vm1358_vm8 = vcmp.eq.s32.totalorder %v5586_v23, %v5180_v32  ;;  %4514 = vmatpush1.bf16.msra.mxu0 %v4513_v20  ;;  %v1078_v10 = vadd.f32 %v1014_v44, %v870_v4  ;;  %v1080_v11 = vadd.f32 %v1016_v8, %v872_v1  ;;  %v1222_v5 = vsel %vm1150_vm6, %v5152_v19, 0.0 }
  0xbb   : > { %v1224_v6 = vsel %vm1152_vm7, %v5152_v19, 0.0  ;;  %vm1360_vm9 = vcmp.eq.s32.totalorder %v5589_v7, %v5180_v32  ;;  %v1430_v61 = vsel %vm1358_vm8, %v5184_v33, 0.0  ;;  %vm1566_vm10 = vcmp.eq.s32.totalorder %v5586_v23, %v5188_v34 }
  0xbc   : > { %vm1568_vm11 = vcmp.eq.s32.totalorder %v5589_v7, %v5188_v34  ;;  %v1286_v9 = vadd.f32 %v1222_v5, %v1078_v10  ;;  %v1288_v40 = vadd.f32 %v1224_v6, %v1080_v11  ;;  %v1432_v4 = vsel %vm1360_vm9, %v5184_v33, 0.0 }
  0xbd   : > { %v1638_v1 = vsel %vm1566_vm10, %v5192_v35, 0.0  ;;  %v1640_v58 = vsel %vm1568_vm11, %v5192_v35, 0.0  ;;  %vm1774_vm12 = vcmp.eq.s32.totalorder %v5586_v23, %v5196_v38  ;;  %vm1776_vm13 = vcmp.eq.s32.totalorder %v5589_v7, %v5196_v38 }
  0xbe   : > { %vm1982_vm14 = vcmp.eq.s32.totalorder %v5586_v23, %v5243_v56  ;;  %v1494_v20 = vadd.f32 %v1430_v61, %v1286_v9  ;;  %v1496_v44 = vadd.f32 %v1432_v4, %v1288_v40  ;;  %v1846_v8 = vsel %vm1774_vm12, %v5200_v39, 0.0 }
  0xbf   : > { %v1848_v10 = vsel %vm1776_vm13, %v5200_v39, 0.0  ;;  %vm1984_vm15 = vcmp.eq.s32.totalorder %v5589_v7, %v5243_v56  ;;  %v2054_v11 = vsel %vm1982_vm14, %v5247_v57, 0.0  ;;  %vm2190_vm0 = vcmp.eq.s32.totalorder %v5586_v23, %v5231_v51 }
  0xc0   : > { %vm2192_vm1 = vcmp.eq.s32.totalorder %v5589_v7, %v5231_v51  ;;  %v1702_v5 = vadd.f32 %v1638_v1, %v1494_v20  ;;  %v1704_v6 = vadd.f32 %v1640_v58, %v1496_v44  ;;  %v2056_v61 = vsel %vm1984_vm15, %v5247_v57, 0.0 }
  0xc1   : > { %v2262_v9 = vsel %vm2190_vm0, %v5235_v54, 0.0  ;;  %v2264_v40 = vsel %vm2192_vm1, %v5235_v54, 0.0  ;;  %vm2398_vm2 = vcmp.eq.s32.totalorder %v5586_v23, %v5239_v55  ;;  %vm2400_vm3 = vcmp.eq.s32.totalorder %v5589_v7, %v5239_v55 }
  0xc2   : > { %vm2606_vm4 = vcmp.eq.s32.totalorder %v5586_v23, %v5271_v2  ;;  %v1910_v4 = vadd.f32 %v1846_v8, %v1702_v5  ;;  %v1912_v39 = vadd.f32 %v1848_v10, %v1704_v6  ;;  %v2470_v1 = vsel %vm2398_vm2, %v5267_v0, 0.0 }
  0xc3   : > { %v2472_v58 = vsel %vm2400_vm3, %v5267_v0, 0.0  ;;  %vm2608_vm5 = vcmp.eq.s32.totalorder %v5589_v7, %v5271_v2  ;;  %v2678_v20 = vsel %vm2606_vm4, %v5275_v21, 0.0  ;;  %vm2814_vm6 = vcmp.eq.s32.totalorder %v5586_v23, %v5279_v22 }
  0xc4   : > { %vm2816_vm7 = vcmp.eq.s32.totalorder %v5589_v7, %v5279_v22  ;;  %v2118_v44 = vadd.f32 %v2054_v11, %v1910_v4  ;;  %v2120_v55 = vadd.f32 %v2056_v61, %v1912_v39  ;;  %v2680_v8 = vsel %vm2608_vm5, %v5275_v21, 0.0 }
  0xc5   : > { %v2886_v10 = vsel %vm2814_vm6, %v5295_v29, 0.0  ;;  %v2888_v5 = vsel %vm2816_vm7, %v5295_v29, 0.0  ;;  %vm3022_vm8 = vcmp.eq.s32.totalorder %v5586_v23, %v5299_v30  ;;  %vm3024_vm9 = vcmp.eq.s32.totalorder %v5589_v7, %v5299_v30 }
  0xc6   : > { %vm3230_vm10 = vcmp.eq.s32.totalorder %v5586_v23, %v5307_v42  ;;  %v2326_v6 = vadd.f32 %v2262_v9, %v2118_v44  ;;  %v2328_v0 = vadd.f32 %v2264_v40, %v2120_v55  ;;  %v3094_v11 = vsel %vm3022_vm8, %v5303_v37, 0.0 }
  0xc7   : > { %v3096_v39 = vsel %vm3024_vm9, %v5303_v37, 0.0  ;;  %vm3232_vm11 = vcmp.eq.s32.totalorder %v5589_v7, %v5307_v42  ;;  %v3302_v61 = vsel %vm3230_vm10, %v5323_v49, 0.0  ;;  %vm3438_vm12 = vcmp.eq.s32.totalorder %v5586_v23, %v5327_v52 }
  0xc8   : > { %vm3440_vm13 = vcmp.eq.s32.totalorder %v5589_v7, %v5327_v52  ;;  %v2534_v4 = vadd.f32 %v2470_v1, %v2326_v6  ;;  %v2536_v30 = vadd.f32 %v2472_v58, %v2328_v0  ;;  %v3304_v9 = vsel %vm3232_vm11, %v5323_v49, 0.0  ;;  %v9387_v52 = vld [vmem:[#allocation50_spill] sm:$0xff] }
  0xc9   : > { %v3510_v55 = vsel %vm3438_vm12, %v5331_v59, 0.0  ;;  %v3512_v40 = vsel %vm3440_vm13, %v5331_v59, 0.0  ;;  %vm3646_vm14 = vcmp.eq.s32.totalorder %v5586_v23, %v5335_v60  ;;  %vm3648_vm15 = vcmp.eq.s32.totalorder %v5589_v7, %v5335_v60 }
  0xca   : > { %vm589_vm0 = vcmp.eq.s32.totalorder %v5586_v23, %v5361_v26  ;;  %v2742_v44 = vadd.f32 %v2678_v20, %v2534_v4  ;;  %v2744_v37 = vadd.f32 %v2680_v8, %v2536_v30  ;;  %v3718_v1 = vsel %vm3646_vm14, %v5357_v25, 0.0 }
  0xcb   : > { %v3720_v0 = vsel %vm3648_vm15, %v5357_v25, 0.0  ;;  %vm591_vm1 = vcmp.eq.s32.totalorder %v5589_v7, %v5361_v26  ;;  %v661_v58 = vsel %vm589_vm0, %v5365_v31, 0.0  ;;  %vm733_vm2 = vcmp.eq.s32.totalorder %v5586_v23, %v5369_v36 }
  0xcc   : > { %vm735_vm3 = vcmp.eq.s32.totalorder %v5589_v7, %v5369_v36  ;;  %v2950_v6 = vadd.f32 %v2886_v10, %v2742_v44  ;;  %v2952_v60 = vadd.f32 %v2888_v5, %v2744_v37  ;;  %v663_v20 = vsel %vm591_vm1, %v5365_v31, 0.0  ;;  %v9388_v5 = vld [vmem:[#allocation51_spill] sm:$0xff] }
  0xcd   : > { %v805_v30 = vsel %vm733_vm2, %v5385_v48, 0.0  ;;  %v807_v8 = vsel %vm735_vm3, %v5385_v48, 0.0  ;;  %vm941_vm4 = vcmp.eq.s32.totalorder %v5586_v23, %v5389_v53  ;;  %vm943_vm5 = vcmp.eq.s32.totalorder %v5589_v7, %v5389_v53  ;;  %v9389_v48 = vld [vmem:[#allocation52_spill] sm:$0xff] }
  0xce   : > { %v869_v4 = vadd.f32 %v805_v30, %v661_v58  ;;  %v3158_v25 = vadd.f32 %v3094_v11, %v2950_v6  ;;  %v3160_v26 = vadd.f32 %v3096_v39, %v2952_v60  ;;  %v871_v59 = vadd.f32 %v807_v8, %v663_v20  ;;  %v9390_v39 = vld [vmem:[#allocation53_spill] sm:$0xff]  ;;  %v9391_v8 = vld [vmem:[#allocation54_spill] sm:$0xff] }
  0xcf   : > { %v1013_v36 = vsel %vm941_vm4, %v9387_v52, 0.0  ;;  %v1015_v37 = vsel %vm943_vm5, %v9387_v52, 0.0  ;;  %vm1149_vm6 = vcmp.eq.s32.totalorder %v5586_v23, %v9388_v5  ;;  %vm1151_vm7 = vcmp.eq.s32.totalorder %v5589_v7, %v9388_v5 }
  0xd0   : > { %v1077_v10 = vadd.f32 %v1013_v36, %v869_v4  ;;  %v3366_v44 = vadd.f32 %v3302_v61, %v3158_v25  ;;  %v3368_v58 = vadd.f32 %v3304_v9, %v3160_v26  ;;  %v1079_v30 = vadd.f32 %v1015_v37, %v871_v59  ;;  %v9392_v9 = vld [vmem:[#allocation55_spill] sm:$0xff] }
  0xd1   : > { %v1221_v31 = vsel %vm1149_vm6, %v9389_v48, 0.0  ;;  %v1223_v11 = vsel %vm1151_vm7, %v9389_v48, 0.0  ;;  %vm1357_vm8 = vcmp.eq.s32.totalorder %v5586_v23, %v9390_v39  ;;  %vm1359_vm9 = vcmp.eq.s32.totalorder %v5589_v7, %v9390_v39 }
  0xd2   : > { %v1285_v60 = vadd.f32 %v1221_v31, %v1077_v10  ;;  %v3574_v36 = vadd.f32 %v3510_v55, %v3366_v44  ;;  %v3576_v6 = vadd.f32 %v3512_v40, %v3368_v58  ;;  %v1287_v20 = vadd.f32 %v1223_v11, %v1079_v30  ;;  %v9393_v10 = vld [vmem:[#allocation56_spill] sm:$0xff]  ;;  %v9394_v30 = vld [vmem:[#allocation57_spill] sm:$0xff] }
  0xd3   : > { %v1429_v4 = vsel %vm1357_vm8, %v9391_v8, 0.0  ;;  %v1431_v25 = vsel %vm1359_vm9, %v9391_v8, 0.0  ;;  %vm1565_vm10 = vcmp.eq.s32.totalorder %v5586_v23, %v5427_v24  ;;  %vm1567_vm11 = vcmp.eq.s32.totalorder %v5589_v7, %v5427_v24 }
  0xd4   : > { %v1493_v26 = vadd.f32 %v1429_v4, %v1285_v60  ;;  %v3782_v59 = vadd.f32 %v3718_v1, %v3574_v36  ;;  %v3784_v31 = vadd.f32 %v3720_v0, %v3576_v6  ;;  %v1495_v61 = vadd.f32 %v1431_v25, %v1287_v20  ;;  %v9395_v0 = vld [vmem:[#allocation58_spill] sm:$0xff]  ;;  %v9396_v25 = vld [vmem:[#allocation59_spill] sm:$0xff] }
  0xd5   : > { %v1637_v37 = vsel %vm1565_vm10, %v9392_v9, 0.0  ;;  %v1639_v55 = vsel %vm1567_vm11, %v9392_v9, 0.0  ;;  %vm1773_vm12 = vcmp.eq.s32.totalorder %v5586_v23, %v9393_v10  ;;  %vm1775_vm13 = vcmp.eq.s32.totalorder %v5589_v7, %v9393_v10 }
  0xd6   : > { %v1701_v40 = vadd.f32 %v1637_v37, %v1493_v26  ;;  %v4515_v44 = vpack.c.bf16 %v3784_v31, %v3782_v59  ;;  %v1703_v58 = vadd.f32 %v1639_v55, %v1495_v61  ;;  %v1845_v11 = vsel %vm1773_vm12, %v9394_v30, 0.0  ;;  %v9397_v31 = vld [vmem:[#allocation60_spill] sm:$0xff]  ;;  %v9398_v37 = vld [vmem:[#allocation61_spill] sm:$0xff] }
  0xd7   : > { %v1847_v60 = vsel %vm1775_vm13, %v9394_v30, 0.0  ;;  %vm1981_vm14 = vcmp.eq.s32.totalorder %v5586_v23, %v9395_v0  ;;  %vm1983_vm15 = vcmp.eq.s32.totalorder %v5589_v7, %v9395_v0  ;;  %vm2189_vm0 = vcmp.eq.s32.totalorder %v5586_v23, %v5469_v28 }
  0xd8   : > { %v1909_v1 = vadd.f32 %v1845_v11, %v1701_v40  ;;  %4516 = vmatprep.subr.bf16.mxu0 %v4515_v44  ;;  %v1911_v36 = vadd.f32 %v1847_v60, %v1703_v58  ;;  %v2053_v6 = vsel %vm1981_vm14, %v5465_v41, 0.0  ;;  %v2055_v20 = vsel %vm1983_vm15, %v5465_v41, 0.0  ;;  %v9399_v40 = vld [vmem:[#allocation62_spill] sm:$0xff] }
  0xd9   : > { %vm2191_vm1 = vcmp.eq.s32.totalorder %v5589_v7, %v5469_v28  ;;  %v2261_v26 = vsel %vm2189_vm0, %v9396_v25, 0.0  ;;  %vm2397_vm2 = vcmp.eq.s32.totalorder %v5586_v23, %v9397_v31  ;;  %vm2399_vm3 = vcmp.eq.s32.totalorder %v5589_v7, %v9397_v31 }
  0xda   : > { %v2117_v4 = vadd.f32 %v2053_v6, %v1909_v1  ;;  %v2263_v59 = vsel %vm2191_vm1, %v9396_v25, 0.0  ;;  %v2119_v61 = vadd.f32 %v2055_v20, %v1911_v36  ;;  %v2469_v55 = vsel %vm2397_vm2, %v9398_v37, 0.0  ;;  %v9400_v36 = vld [vmem:[#allocation64_spill] sm:$0xff] }
  0xdb   : > { %vm2605_vm4 = vcmp.eq.s32.totalorder %v5586_v23, %v9399_v40  ;;  %v2471_v58 = vsel %vm2399_vm3, %v9398_v37, 0.0  ;;  %vm2607_vm5 = vcmp.eq.s32.totalorder %v5589_v7, %v9399_v40  ;;  %vm2813_vm6 = vcmp.eq.s32.totalorder %v5586_v23, %v9400_v36 }
  0xdc   : > { %v2325_v44 = vadd.f32 %v2261_v26, %v2117_v4  ;;  %v2677_v11 = vsel %vm2605_vm4, %v5507_v3, 0.0  ;;  %v2327_v60 = vadd.f32 %v2263_v59, %v2119_v61  ;;  %v2679_v1 = vsel %vm2607_vm5, %v5507_v3, 0.0  ;;  %v9401_v59 = vld [vmem:[#allocation67_spill] sm:$0xff]  ;;  %v9402_v3 = vld [vmem:[#allocation68_spill] sm:$0xff] }
  0xdd   : > { %vm2815_vm7 = vcmp.eq.s32.totalorder %v5589_v7, %v9400_v36  ;;  %v2885_v20 = vsel %vm2813_vm6, %v5519_v45, 0.0  ;;  %vm3021_vm8 = vcmp.eq.s32.totalorder %v5586_v23, %v5537_v63  ;;  %vm3023_vm9 = vcmp.eq.s32.totalorder %v5589_v7, %v5537_v63 }
  0xde   : > { %v2533_v6 = vadd.f32 %v2469_v55, %v2325_v44  ;;  %v2887_v4 = vsel %vm2815_vm7, %v5519_v45, 0.0  ;;  %v2535_v26 = vadd.f32 %v2471_v58, %v2327_v60  ;;  %v3093_v61 = vsel %vm3021_vm8, %v9401_v59, 0.0  ;;  %v9403_v58 = vld [vmem:[#allocation70_spill] sm:$0xff] }
  0xdf   : > { %vm3229_vm10 = vcmp.eq.s32.totalorder %v5586_v23, %v9402_v3  ;;  %v3095_v36 = vsel %vm3023_vm9, %v9401_v59, 0.0  ;;  %vm3231_vm11 = vcmp.eq.s32.totalorder %v5589_v7, %v9402_v3  ;;  %vm3437_vm12 = vcmp.eq.s32.totalorder %v5586_v23, %v9403_v58 }
  0xe0   : > { %v2741_v40 = vadd.f32 %v2677_v11, %v2533_v6  ;;  %v3301_v55 = vsel %vm3229_vm10, %v5549_v62, 0.0  ;;  %v2743_v44 = vadd.f32 %v2679_v1, %v2535_v26  ;;  %v3303_v45 = vsel %vm3231_vm11, %v5549_v62, 0.0 }
  0xe1   : > { %vm3439_vm13 = vcmp.eq.s32.totalorder %v5589_v7, %v9403_v58  ;;  %v3509_v63 = vsel %vm3437_vm12, %v5561_v47, 0.0  ;;  %vm3645_vm14 = vcmp.eq.s32.totalorder %v5586_v23, %v5579_v27  ;;  %vm3647_vm15 = vcmp.eq.s32.totalorder %v5589_v7, %v5579_v27 }
  0xe2   : > { %v2949_v60 = vadd.f32 %v2885_v20, %v2741_v40  ;;  %v3511_v11 = vsel %vm3439_vm13, %v5561_v47, 0.0  ;;  %v2951_v6 = vadd.f32 %v2887_v4, %v2743_v44  ;;  %v3717_v1 = vsel %vm3645_vm14, %v5583_v46, 0.0 }
  0xe3   : > { %vm594_vm0 = vcmp.eq.s32.totalorder %v5596_v43, %v5124_v12  ;;  %v3719_v58 = vsel %vm3647_vm15, %v5583_v46, 0.0  ;;  %vm596_vm1 = vcmp.eq.s32.totalorder %v5599_v50, %v5124_v12  ;;  %vm738_vm2 = vcmp.eq.s32.totalorder %v5596_v43, %v5132_v14 }
  0xe4   : > { %v3157_v26 = vadd.f32 %v3093_v61, %v2949_v60  ;;  %v666_v40 = vsel %vm594_vm0, %v5128_v13, 0.0  ;;  %v3159_v20 = vadd.f32 %v3095_v36, %v2951_v6  ;;  %v668_v23 = vsel %vm596_vm1, %v5128_v13, 0.0 }
  0xe5   : > { %vm740_vm3 = vcmp.eq.s32.totalorder %v5599_v50, %v5132_v14  ;;  %v810_v44 = vsel %vm738_vm2, %v5136_v15, 0.0  ;;  %vm946_vm4 = vcmp.eq.s32.totalorder %v5596_v43, %v5140_v16  ;;  %vm948_vm5 = vcmp.eq.s32.totalorder %v5599_v50, %v5140_v16 }
  0xe6   : > { %v3365_v4 = vadd.f32 %v3301_v55, %v3157_v26  ;;  %v812_v61 = vsel %vm740_vm3, %v5136_v15, 0.0  ;;  %v3367_v60 = vadd.f32 %v3303_v45, %v3159_v20  ;;  %v874_v7 = vadd.f32 %v810_v44, %v666_v40 }
  0xe7   : > { %v876_v12 = vadd.f32 %v812_v61, %v668_v23  ;;  %v1018_v6 = vsel %vm946_vm4, %v5144_v17, 0.0  ;;  %v1020_v13 = vsel %vm948_vm5, %v5144_v17, 0.0  ;;  %vm1154_vm6 = vcmp.eq.s32.totalorder %v5596_v43, %v5148_v18 }
  0xe8   : > { %v3573_v36 = vadd.f32 %v3509_v63, %v3365_v4  ;;  %v3575_v55 = vadd.f32 %v3511_v11, %v3367_v60  ;;  %v1082_v26 = vadd.f32 %v1018_v6, %v874_v7  ;;  %vm1156_vm7 = vcmp.eq.s32.totalorder %v5599_v50, %v5148_v18  ;;  %v9404_v60 = vld [vmem:[#allocation27_spill] sm:$0xff] }
  0xe9   : > { %v1084_v15 = vadd.f32 %v1020_v13, %v876_v12  ;;  %v1226_v23 = vsel %vm1154_vm6, %v5152_v19, 0.0  ;;  %v1228_v40 = vsel %vm1156_vm7, %v5152_v19, 0.0  ;;  %vm1362_vm8 = vcmp.eq.s32.totalorder %v5596_v43, %v5180_v32 }
  0xea   : > { %v3781_v45 = vadd.f32 %v3717_v1, %v3573_v36  ;;  %v3783_v63 = vadd.f32 %v3719_v58, %v3575_v55  ;;  %v1290_v20 = vadd.f32 %v1226_v23, %v1082_v26  ;;  %vm1364_vm9 = vcmp.eq.s32.totalorder %v5599_v50, %v5180_v32 }
  0xeb   : > { %v1292_v4 = vadd.f32 %v1228_v40, %v1084_v15  ;;  %v1434_v7 = vsel %vm1362_vm8, %v5184_v33, 0.0  ;;  %v1436_v12 = vsel %vm1364_vm9, %v5184_v33, 0.0  ;;  %vm1570_vm10 = vcmp.eq.s32.totalorder %v5596_v43, %v5188_v34 }
  0xec   : > { %vm1572_vm11 = vcmp.eq.s32.totalorder %v5599_v50, %v5188_v34  ;;  %v4517_v13 = vpack.c.bf16 %v3783_v63, %v3781_v45  ;;  %v1498_v11 = vadd.f32 %v1434_v7, %v1290_v20  ;;  %v1642_v58 = vsel %vm1570_vm10, %v5192_v35, 0.0  ;;  %v9405_v20 = vld [vmem:[#allocation30_spill] sm:$0xff] }
  0xed   : > { %v1500_v1 = vadd.f32 %v1436_v12, %v1292_v4  ;;  %v1644_v15 = vsel %vm1572_vm11, %v5192_v35, 0.0  ;;  %vm1778_vm12 = vcmp.eq.s32.totalorder %v5596_v43, %v5196_v38  ;;  %vm1780_vm13 = vcmp.eq.s32.totalorder %v5599_v50, %v5196_v38  ;;  %v9406_v12 = vld [vmem:[#allocation33_spill] sm:$0xff] }
  0xee   : > { %vm1986_vm14 = vcmp.eq.s32.totalorder %v5596_v43, %v5243_v56  ;;  %4518 = vmatpush1.bf16.msra.mxu0 %v4517_v13  ;;  %v1706_v44 = vadd.f32 %v1642_v58, %v1498_v11  ;;  %v1850_v36 = vsel %vm1778_vm12, %v9404_v60, 0.0  ;;  %v1852_v6 = vsel %vm1780_vm13, %v9404_v60, 0.0 }
  0xef   : > { %v1708_v61 = vadd.f32 %v1644_v15, %v1500_v1  ;;  %vm1988_vm15 = vcmp.eq.s32.totalorder %v5599_v50, %v5243_v56  ;;  %v2058_v55 = vsel %vm1986_vm14, %v5247_v57, 0.0  ;;  %vm2194_vm0 = vcmp.eq.s32.totalorder %v5596_v43, %v5231_v51 }
  0xf0   : > { %vm2196_vm1 = vcmp.eq.s32.totalorder %v5599_v50, %v5231_v51  ;;  %v1914_v26 = vadd.f32 %v1850_v36, %v1706_v44  ;;  %v2060_v23 = vsel %vm1988_vm15, %v5247_v57, 0.0  ;;  %v2266_v40 = vsel %vm2194_vm0, %v5235_v54, 0.0 }
  0xf1   : > { %v1916_v45 = vadd.f32 %v1852_v6, %v1708_v61  ;;  %v2268_v63 = vsel %vm2196_vm1, %v5235_v54, 0.0  ;;  %vm2402_vm2 = vcmp.eq.s32.totalorder %v5596_v43, %v9405_v20  ;;  %vm2404_vm3 = vcmp.eq.s32.totalorder %v5599_v50, %v9405_v20  ;;  %v9407_v6 = vld [vmem:[#allocation38_spill] sm:$0xff] }
  0xf2   : > { %vm2610_vm4 = vcmp.eq.s32.totalorder %v5596_v43, %v5271_v2  ;;  %v2122_v4 = vadd.f32 %v2058_v55, %v1914_v26  ;;  %v2474_v13 = vsel %vm2402_vm2, %v9406_v12, 0.0  ;;  %v2476_v11 = vsel %vm2404_vm3, %v9406_v12, 0.0 }
  0xf3   : > { %v2124_v7 = vadd.f32 %v2060_v23, %v1916_v45  ;;  %vm2612_vm5 = vcmp.eq.s32.totalorder %v5599_v50, %v5271_v2  ;;  %v2682_v1 = vsel %vm2610_vm4, %v5275_v21, 0.0  ;;  %vm2818_vm6 = vcmp.eq.s32.totalorder %v5596_v43, %v5279_v22  ;;  %v9408_v45 = vld [vmem:[#allocation39_spill] sm:$0xff] }
  0xf4   : > { %vm2820_vm7 = vcmp.eq.s32.totalorder %v5599_v50, %v5279_v22  ;;  %v2330_v58 = vadd.f32 %v2266_v40, %v2122_v4  ;;  %v2684_v44 = vsel %vm2612_vm5, %v5275_v21, 0.0  ;;  %v2890_v61 = vsel %vm2818_vm6, %v5295_v29, 0.0  ;;  %v9409_v4 = vld [vmem:[#allocation42_spill] sm:$0xff] }
  0xf5   : > { %v2332_v15 = vadd.f32 %v2268_v63, %v2124_v7  ;;  %v2892_v36 = vsel %vm2820_vm7, %v5295_v29, 0.0  ;;  %vm3026_vm8 = vcmp.eq.s32.totalorder %v5596_v43, %v9407_v6  ;;  %vm3028_vm9 = vcmp.eq.s32.totalorder %v5599_v50, %v9407_v6 }
  0xf6   : > { %vm3234_vm10 = vcmp.eq.s32.totalorder %v5596_v43, %v5307_v42  ;;  %v2538_v55 = vadd.f32 %v2474_v13, %v2330_v58  ;;  %v3098_v23 = vsel %vm3026_vm8, %v9408_v45, 0.0  ;;  %v3100_v40 = vsel %vm3028_vm9, %v9408_v45, 0.0  ;;  %v9411_v45 = vld [vmem:[#allocation44_spill] sm:$0xff] }
  0xf7   : > { %v2540_v26 = vadd.f32 %v2476_v11, %v2332_v15  ;;  %vm3236_vm11 = vcmp.eq.s32.totalorder %v5599_v50, %v5307_v42  ;;  %v3306_v63 = vsel %vm3234_vm10, %v5323_v49, 0.0  ;;  %vm3442_vm12 = vcmp.eq.s32.totalorder %v5596_v43, %v9409_v4  ;;  %v9410_v11 = vld [vmem:[#allocation43_spill] sm:$0xff]  ;;  %v9412_v42 = vld [vmem:[#allocation46_spill] sm:$0xff] }
  0xf8   : > { %vm3444_vm13 = vcmp.eq.s32.totalorder %v5599_v50, %v9409_v4  ;;  %v2746_v7 = vadd.f32 %v2682_v1, %v2538_v55  ;;  %v3308_v13 = vsel %vm3236_vm11, %v5323_v49, 0.0  ;;  %v3514_v58 = vsel %vm3442_vm12, %v9410_v11, 0.0  ;;  %v9413_v4 = vld [vmem:[#allocation45_spill] sm:$0xff]  ;;  %v9414_v55 = vld [vmem:[#allocation47_spill] sm:$0xff] }
  0xf9   : > { %v2748_v6 = vadd.f32 %v2684_v44, %v2540_v26  ;;  %v3516_v15 = vsel %vm3444_vm13, %v9410_v11, 0.0  ;;  %vm3650_vm14 = vcmp.eq.s32.totalorder %v5596_v43, %v9411_v45  ;;  %vm3652_vm15 = vcmp.eq.s32.totalorder %v5599_v50, %v9411_v45  ;;  %v9415_v11 = vld [vmem:[#allocation48_spill] sm:$0xff] }
  0xfa   : > { %vm593_vm0 = vcmp.eq.s32.totalorder %v5596_v43, %v9412_v42  ;;  %v2954_v29 = vadd.f32 %v2890_v61, %v2746_v7  ;;  %v3722_v1 = vsel %vm3650_vm14, %v9413_v4, 0.0  ;;  %v3724_v44 = vsel %vm3652_vm15, %v9413_v4, 0.0 }
  0xfb   : > { %v2956_v22 = vadd.f32 %v2892_v36, %v2748_v6  ;;  %vm595_vm1 = vcmp.eq.s32.totalorder %v5599_v50, %v9412_v42  ;;  %v665_v26 = vsel %vm593_vm0, %v9414_v55, 0.0  ;;  %vm737_vm2 = vcmp.eq.s32.totalorder %v5596_v43, %v9415_v11  ;;  %v9416_v36 = vld [vmem:[#allocation49_spill] sm:$0xff] }
  0xfc   : > { %vm739_vm3 = vcmp.eq.s32.totalorder %v5599_v50, %v9415_v11  ;;  %v3162_v45 = vadd.f32 %v3098_v23, %v2954_v29  ;;  %v667_v61 = vsel %vm595_vm1, %v9414_v55, 0.0  ;;  %v809_v6 = vsel %vm737_vm2, %v9416_v36, 0.0 }
  0xfd   : > { %v3164_v49 = vadd.f32 %v3100_v40, %v2956_v22  ;;  %v811_v7 = vsel %vm739_vm3, %v9416_v36, 0.0  ;;  %v873_v4 = vadd.f32 %v809_v6, %v665_v26  ;;  %vm945_vm4 = vcmp.eq.s32.totalorder %v5596_v43, %v5389_v53 }
  0xfe   : > { %vm947_vm5 = vcmp.eq.s32.totalorder %v5599_v50, %v5389_v53  ;;  %v3370_v42 = vadd.f32 %v3306_v63, %v3162_v45  ;;  %v875_v12 = vadd.f32 %v811_v7, %v667_v61  ;;  %v1017_v11 = vsel %vm945_vm4, %v9387_v52, 0.0 }
  0xff   : > { %v3372_v21 = vadd.f32 %v3308_v13, %v3164_v49  ;;  %v1019_v22 = vsel %vm947_vm5, %v9387_v52, 0.0  ;;  %v1081_v29 = vadd.f32 %v1017_v11, %v873_v4  ;;  %vm1153_vm6 = vcmp.eq.s32.totalorder %v5596_v43, %v9388_v5 }
 0x100   : > { %vm1155_vm7 = vcmp.eq.s32.totalorder %v5599_v50, %v9388_v5  ;;  %v3578_v23 = vadd.f32 %v3514_v58, %v3370_v42  ;;  %v1083_v26 = vadd.f32 %v1019_v22, %v875_v12  ;;  %v1225_v6 = vsel %vm1153_vm6, %v9389_v48, 0.0 }
 0x101   : > { %v3580_v40 = vadd.f32 %v3516_v15, %v3372_v21  ;;  %v1227_v45 = vsel %vm1155_vm7, %v9389_v48, 0.0  ;;  %v1289_v49 = vadd.f32 %v1225_v6, %v1081_v29  ;;  %vm1361_vm8 = vcmp.eq.s32.totalorder %v5596_v43, %v9390_v39 }
 0x102   : > { %vm1363_vm9 = vcmp.eq.s32.totalorder %v5599_v50, %v9390_v39  ;;  %v3786_v63 = vadd.f32 %v3722_v1, %v3578_v23  ;;  %v1291_v13 = vadd.f32 %v1227_v45, %v1083_v26  ;;  %v1433_v11 = vsel %vm1361_vm8, %v9391_v8, 0.0 }
 0x103   : > { %v3788_v4 = vadd.f32 %v3724_v44, %v3580_v40  ;;  %v1435_v42 = vsel %vm1363_vm9, %v9391_v8, 0.0  ;;  %v1497_v21 = vadd.f32 %v1433_v11, %v1289_v49  ;;  %vm1569_vm10 = vcmp.eq.s32.totalorder %v5596_v43, %v5427_v24  ;;  %v9417_v11 = vld [vmem:[#allocation62_spill] sm:$0xff] }
 0x104   : > { %vm1571_vm11 = vcmp.eq.s32.totalorder %v5599_v50, %v5427_v24  ;;  %v1499_v58 = vadd.f32 %v1435_v42, %v1291_v13  ;;  %v1641_v15 = vsel %vm1569_vm10, %v9392_v9, 0.0  ;;  %vm1777_vm12 = vcmp.eq.s32.totalorder %v5596_v43, %v9393_v10 }
 0x105   : > { %v4519_v12 = vpack.c.bf16 %v3788_v4, %v3786_v63  ;;  %v1643_v61 = vsel %vm1571_vm11, %v9392_v9, 0.0  ;;  %v1705_v1 = vadd.f32 %v1641_v15, %v1497_v21  ;;  %vm1779_vm13 = vcmp.eq.s32.totalorder %v5599_v50, %v9393_v10  ;;  %v9418_v21 = vld [vmem:[#allocation63_spill] sm:$0xff]  ;;  %v9419_v15 = vld [vmem:[#allocation64_spill] sm:$0xff] }
 0x106   : > { %vm1985_vm14 = vcmp.eq.s32.totalorder %v5596_v43, %v9395_v0  ;;  %v1707_v44 = vadd.f32 %v1643_v61, %v1499_v58  ;;  %v1849_v7 = vsel %vm1777_vm12, %v9394_v30, 0.0  ;;  %v1851_v22 = vsel %vm1779_vm13, %v9394_v30, 0.0 }
 0x107   : > { %4520 = vmatprep.subr.bf16.mxu0 %v4519_v12  ;;  %vm1987_vm15 = vcmp.eq.s32.totalorder %v5599_v50, %v9395_v0  ;;  %v1913_v29 = vadd.f32 %v1849_v7, %v1705_v1  ;;  %v2057_v23 = vsel %vm1985_vm14, %v5465_v41, 0.0  ;;  %vm2193_vm0 = vcmp.eq.s32.totalorder %v5596_v43, %v5469_v28  ;;  %v9420_v1 = vld [vmem:[#allocation65_spill] sm:$0xff]  ;;  %v9421_v7 = vld [vmem:[#allocation66_spill] sm:$0xff] }
 0x108   : > { %v2059_v40 = vsel %vm1987_vm15, %v5465_v41, 0.0  ;;  %v1915_v26 = vadd.f32 %v1851_v22, %v1707_v44  ;;  %vm2195_vm1 = vcmp.eq.s32.totalorder %v5599_v50, %v5469_v28  ;;  %v2265_v6 = vsel %vm2193_vm0, %v9396_v25, 0.0 }
 0x109   : > { %vm2401_vm2 = vcmp.eq.s32.totalorder %v5596_v43, %v9397_v31  ;;  %v2121_v45 = vadd.f32 %v2057_v23, %v1913_v29  ;;  %v2267_v49 = vsel %vm2195_vm1, %v9396_v25, 0.0  ;;  %vm2403_vm3 = vcmp.eq.s32.totalorder %v5599_v50, %v9397_v31 }
 0x10a   : > { %v2473_v63 = vsel %vm2401_vm2, %v9398_v37, 0.0  ;;  %v2123_v4 = vadd.f32 %v2059_v40, %v1915_v26  ;;  %v2475_v13 = vsel %vm2403_vm3, %v9398_v37, 0.0  ;;  %vm2609_vm4 = vcmp.eq.s32.totalorder %v5596_v43, %v9417_v11 }
 0x10b   : > { %vm2611_vm5 = vcmp.eq.s32.totalorder %v5599_v50, %v9417_v11  ;;  %v2329_v42 = vadd.f32 %v2265_v6, %v2121_v45  ;;  %v2681_v12 = vsel %vm2609_vm4, %v9418_v21, 0.0  ;;  %vm2817_vm6 = vcmp.eq.s32.totalorder %v5596_v43, %v9419_v15 }
 0x10c   : > { %v2683_v58 = vsel %vm2611_vm5, %v9418_v21, 0.0  ;;  %v2331_v61 = vadd.f32 %v2267_v49, %v2123_v4  ;;  %vm2819_vm7 = vcmp.eq.s32.totalorder %v5599_v50, %v9419_v15  ;;  %v2889_v44 = vsel %vm2817_vm6, %v9420_v1, 0.0 }
 0x10d   : > { %vm3025_vm8 = vcmp.eq.s32.totalorder %v5596_v43, %v9421_v7  ;;  %v2537_v22 = vadd.f32 %v2473_v63, %v2329_v42  ;;  %v2891_v29 = vsel %vm2819_vm7, %v9420_v1, 0.0  ;;  %vm3027_vm9 = vcmp.eq.s32.totalorder %v5599_v50, %v9421_v7  ;;  %v9422_v63 = vld [vmem:[#allocation70_spill] sm:$0xff] }
 0x10e   : > { %v3097_v23 = vsel %vm3025_vm8, %v9401_v59, 0.0  ;;  %v2539_v40 = vadd.f32 %v2475_v13, %v2331_v61  ;;  %v3099_v26 = vsel %vm3027_vm9, %v9401_v59, 0.0  ;;  %vm3233_vm10 = vcmp.eq.s32.totalorder %v5596_v43, %v9402_v3 }
 0x10f   : > { %vm3235_vm11 = vcmp.eq.s32.totalorder %v5599_v50, %v9402_v3  ;;  %v2745_v6 = vadd.f32 %v2681_v12, %v2537_v22  ;;  %v3305_v45 = vsel %vm3233_vm10, %v5549_v62, 0.0  ;;  %vm3441_vm12 = vcmp.eq.s32.totalorder %v5596_v43, %v9422_v63 }
 0x110   : > { %v3307_v49 = vsel %vm3235_vm11, %v5549_v62, 0.0  ;;  %v2747_v4 = vadd.f32 %v2683_v58, %v2539_v40  ;;  %vm3443_vm13 = vcmp.eq.s32.totalorder %v5599_v50, %v9422_v63  ;;  %v3513_v13 = vsel %vm3441_vm12, %v5561_v47, 0.0  ;;  %v9423_v58 = vld [vmem:[#allocation14_spill] sm:$0xff] }
 0x111   : > { %vm3649_vm14 = vcmp.eq.s32.totalorder %v5596_v43, %v5579_v27  ;;  %v2953_v42 = vadd.f32 %v2889_v44, %v2745_v6  ;;  %v3515_v61 = vsel %vm3443_vm13, %v5561_v47, 0.0  ;;  %vm3651_vm15 = vcmp.eq.s32.totalorder %v5599_v50, %v5579_v27 }
 0x112   : > { %v3721_v12 = vsel %vm3649_vm14, %v5583_v46, 0.0  ;;  %v2955_v22 = vadd.f32 %v2891_v29, %v2747_v4  ;;  %v3723_v62 = vsel %vm3651_vm15, %v5583_v46, 0.0  ;;  %v5988_v40 = vadd.s32 48, %v9423_v58  ;;  %v9429_v29 = vld [vmem:[#allocation18_spill] sm:$0xff]  ;;  %v9430_v4 = vld [vmem:[#allocation19_spill] sm:$0xff] }
 0x113   : > { %v5991_v63 = vadd.s32 56, %v9423_v58  ;;  %v3161_v3 = vadd.f32 %v3097_v23, %v2953_v42  ;;  %v5994_v43 = vadd.s32 64, %v9423_v58  ;;  %v5997_v44 = vadd.s32 72, %v9423_v58 }
 0x114   : > { %9424 = vst [vmem:[#allocation50_spill] sm:$0xff] %v5988_v40  ;;  %v6000_v6 = vadd.s32 80, %v9423_v58  ;;  %v3163_v50 = vadd.f32 %v3099_v26, %v2955_v22  ;;  %vm598_vm0 = vcmp.eq.s32.totalorder %v5988_v40, %v9429_v29  ;;  %vm742_vm2 = vcmp.eq.s32.totalorder %v5988_v40, %v5132_v14 }
 0x115   : > { %9425 = vst [vmem:[#allocation51_spill] sm:$0xff] %v5991_v63  ;;  %9426 = vst [vmem:[#allocation52_spill] sm:$0xff] %v5994_v43  ;;  %vm600_vm1 = vcmp.eq.s32.totalorder %v5991_v63, %v9429_v29  ;;  %v3369_v23 = vadd.f32 %v3305_v45, %v3161_v3  ;;  %v670_v42 = vsel %vm598_vm0, %v9430_v4, 0.0  ;;  %vm744_vm3 = vcmp.eq.s32.totalorder %v5991_v63, %v5132_v14 }
 0x116   : > { %9427 = vst [vmem:[#allocation53_spill] sm:$0xff] %v5997_v44  ;;  %9428 = vst [vmem:[#allocation54_spill] sm:$0xff] %v6000_v6  ;;  %v672_v43 = vsel %vm600_vm1, %v9430_v4, 0.0  ;;  %v3371_v58 = vadd.f32 %v3307_v49, %v3163_v50  ;;  %v9431_v6 = vld [vmem:[#allocation21_spill] sm:$0xff]  ;;  %vm950_vm4 = vcmp.eq.s32.totalorder %v5988_v40, %v5140_v16  ;;  %vm952_vm5 = vcmp.eq.s32.totalorder %v5991_v63, %v5140_v16 }
 0x117   : > { %v814_v26 = vsel %vm742_vm2, %v9431_v6, 0.0  ;;  %v816_v22 = vsel %vm744_vm3, %v9431_v6, 0.0  ;;  %v3577_v44 = vadd.f32 %v3513_v13, %v3369_v23  ;;  %v1022_v45 = vsel %vm950_vm4, %v5144_v17, 0.0 }
 0x118   : > { %v878_v29 = vadd.f32 %v814_v26, %v670_v42  ;;  %v880_v46 = vadd.f32 %v816_v22, %v672_v43  ;;  %v3579_v3 = vadd.f32 %v3515_v61, %v3371_v58  ;;  %v1024_v4 = vsel %vm952_vm5, %v5144_v17, 0.0 }
 0x119   : > { %vm1158_vm6 = vcmp.eq.s32.totalorder %v5988_v40, %v5148_v18  ;;  %v3785_v50 = vadd.f32 %v3721_v12, %v3577_v44  ;;  %vm1160_vm7 = vcmp.eq.s32.totalorder %v5991_v63, %v5148_v18  ;;  %vm1366_vm8 = vcmp.eq.s32.totalorder %v5988_v40, %v5180_v32 }
 0x11a   : > { %v1086_v49 = vadd.f32 %v1022_v45, %v878_v29  ;;  %v1088_v6 = vadd.f32 %v1024_v4, %v880_v46  ;;  %v3787_v13 = vadd.f32 %v3723_v62, %v3579_v3  ;;  %v1230_v43 = vsel %vm1158_vm6, %v5152_v19, 0.0 }
 0x11b   : > { %v1232_v23 = vsel %vm1160_vm7, %v5152_v19, 0.0  ;;  %vm1368_vm9 = vcmp.eq.s32.totalorder %v5991_v63, %v5180_v32  ;;  %v1438_v12 = vsel %vm1366_vm8, %v5184_v33, 0.0  ;;  %vm1574_vm10 = vcmp.eq.s32.totalorder %v5988_v40, %v5188_v34 }
 0x11c   : > { %v1294_v61 = vadd.f32 %v1230_v43, %v1086_v49  ;;  %v1296_v58 = vadd.f32 %v1232_v23, %v1088_v6  ;;  %v4521_v44 = vpack.c.bf16 %v3787_v13, %v3785_v50  ;;  %v1440_v46 = vsel %vm1368_vm9, %v5184_v33, 0.0 }
 0x11d   : > { %vm1576_vm11 = vcmp.eq.s32.totalorder %v5991_v63, %v5188_v34  ;;  %v1646_v4 = vsel %vm1574_vm10, %v5192_v35, 0.0  ;;  %vm1782_vm12 = vcmp.eq.s32.totalorder %v5988_v40, %v5196_v38  ;;  %vm1784_vm13 = vcmp.eq.s32.totalorder %v5991_v63, %v5196_v38 }
 0x11e   : > { %v1502_v62 = vadd.f32 %v1438_v12, %v1294_v61  ;;  %v1504_v29 = vadd.f32 %v1440_v46, %v1296_v58  ;;  %v1648_v6 = vsel %vm1576_vm11, %v5192_v35, 0.0  ;;  %4522 = vmatpush1.bf16.msra.mxu0 %v4521_v44  ;;  %vm1990_vm14 = vcmp.eq.s32.totalorder %v5988_v40, %v5243_v56  ;;  %v9432_v12 = vld [vmem:[#allocation33_spill] sm:$0xff] }
 0x11f   : > { %vm1992_vm15 = vcmp.eq.s32.totalorder %v5991_v63, %v5243_v56  ;;  %v1854_v22 = vsel %vm1782_vm12, %v9404_v60, 0.0  ;;  %v1856_v3 = vsel %vm1784_vm13, %v9404_v60, 0.0  ;;  %v2062_v45 = vsel %vm1990_vm14, %v5247_v57, 0.0 }
 0x120   : > { %v1710_v42 = vadd.f32 %v1646_v4, %v1502_v62  ;;  %v1712_v26 = vadd.f32 %v1648_v6, %v1504_v29  ;;  %v2064_v50 = vsel %vm1992_vm15, %v5247_v57, 0.0  ;;  %vm2198_vm0 = vcmp.eq.s32.totalorder %v5988_v40, %v5231_v51  ;;  %v9433_v62 = vld [vmem:[#allocation35_spill] sm:$0xff]  ;;  %v9434_v6 = vld [vmem:[#allocation36_spill] sm:$0xff] }
 0x121   : > { %vm2200_vm1 = vcmp.eq.s32.totalorder %v5991_v63, %v5231_v51  ;;  %v2270_v43 = vsel %vm2198_vm0, %v5235_v54, 0.0  ;;  %vm2406_vm2 = vcmp.eq.s32.totalorder %v5988_v40, %v9405_v20  ;;  %vm2408_vm3 = vcmp.eq.s32.totalorder %v5991_v63, %v9405_v20  ;;  %v9441_v20 = vld [vmem:[#allocation43_spill] sm:$0xff] }
 0x122   : > { %v1918_v49 = vadd.f32 %v1854_v22, %v1710_v42  ;;  %v1920_v13 = vadd.f32 %v1856_v3, %v1712_v26  ;;  %v2272_v23 = vsel %vm2200_vm1, %v5235_v54, 0.0  ;;  %vm2614_vm4 = vcmp.eq.s32.totalorder %v5988_v40, %v5271_v2  ;;  %v9435_v22 = vld [vmem:[#allocation37_spill] sm:$0xff] }
 0x123   : > { %vm2616_vm5 = vcmp.eq.s32.totalorder %v5991_v63, %v5271_v2  ;;  %v2478_v44 = vsel %vm2406_vm2, %v9432_v12, 0.0  ;;  %v2480_v46 = vsel %vm2408_vm3, %v9432_v12, 0.0  ;;  %v2686_v29 = vsel %vm2614_vm4, %v9433_v62, 0.0  ;;  %v9440_v2 = vld [vmem:[#allocation42_spill] sm:$0xff] }
 0x124   : > { %v2126_v61 = vadd.f32 %v2062_v45, %v1918_v49  ;;  %v2128_v58 = vadd.f32 %v2064_v50, %v1920_v13  ;;  %v2688_v4 = vsel %vm2616_vm5, %v9433_v62, 0.0  ;;  %vm2822_vm6 = vcmp.eq.s32.totalorder %v5988_v40, %v9434_v6  ;;  %v9436_v50 = vld [vmem:[#allocation38_spill] sm:$0xff]  ;;  %v9437_v49 = vld [vmem:[#allocation40_spill] sm:$0xff] }
 0x125   : > { %vm2824_vm7 = vcmp.eq.s32.totalorder %v5991_v63, %v9434_v6  ;;  %v2894_v3 = vsel %vm2822_vm6, %v9435_v22, 0.0  ;;  %vm3030_vm8 = vcmp.eq.s32.totalorder %v5988_v40, %v9436_v50  ;;  %vm3032_vm9 = vcmp.eq.s32.totalorder %v5991_v63, %v9436_v50 }
 0x126   : > { %v2334_v42 = vadd.f32 %v2270_v43, %v2126_v61  ;;  %v2336_v26 = vadd.f32 %v2272_v23, %v2128_v58  ;;  %v2896_v45 = vsel %vm2824_vm7, %v9435_v22, 0.0  ;;  %vm3238_vm10 = vcmp.eq.s32.totalorder %v5988_v40, %v9437_v49  ;;  %v9438_v43 = vld [vmem:[#allocation39_spill] sm:$0xff]  ;;  %v9439_v58 = vld [vmem:[#allocation41_spill] sm:$0xff] }
 0x127   : > { %vm3240_vm11 = vcmp.eq.s32.totalorder %v5991_v63, %v9437_v49  ;;  %v3102_v23 = vsel %vm3030_vm8, %v9438_v43, 0.0  ;;  %v3104_v61 = vsel %vm3032_vm9, %v9438_v43, 0.0  ;;  %v3310_v22 = vsel %vm3238_vm10, %v9439_v58, 0.0 }
 0x128   : > { %v2542_v13 = vadd.f32 %v2478_v44, %v2334_v42  ;;  %v2544_v6 = vadd.f32 %v2480_v46, %v2336_v26  ;;  %v3312_v62 = vsel %vm3240_vm11, %v9439_v58, 0.0  ;;  %vm3446_vm12 = vcmp.eq.s32.totalorder %v5988_v40, %v9440_v2  ;;  %v9442_v46 = vld [vmem:[#allocation44_spill] sm:$0xff]  ;;  %v9443_v42 = vld [vmem:[#allocation46_spill] sm:$0xff] }
 0x129   : > { %vm3448_vm13 = vcmp.eq.s32.totalorder %v5991_v63, %v9440_v2  ;;  %v3518_v49 = vsel %vm3446_vm12, %v9441_v20, 0.0  ;;  %vm3654_vm14 = vcmp.eq.s32.totalorder %v5988_v40, %v9442_v46  ;;  %vm3656_vm15 = vcmp.eq.s32.totalorder %v5991_v63, %v9442_v46  ;;  %v9445_v58 = vld [vmem:[#allocation48_spill] sm:$0xff] }
 0x12a   : > { %v2750_v50 = vadd.f32 %v2686_v29, %v2542_v13  ;;  %v2752_v12 = vadd.f32 %v2688_v4, %v2544_v6  ;;  %v3520_v44 = vsel %vm3448_vm13, %v9441_v20, 0.0  ;;  %vm597_vm0 = vcmp.eq.s32.totalorder %v5988_v40, %v9443_v42  ;;  %v9444_v29 = vld [vmem:[#allocation45_spill] sm:$0xff] }
 0x12b   : > { %vm599_vm1 = vcmp.eq.s32.totalorder %v5991_v63, %v9443_v42  ;;  %v3726_v4 = vsel %vm3654_vm14, %v9444_v29, 0.0  ;;  %v3728_v6 = vsel %vm3656_vm15, %v9444_v29, 0.0  ;;  %v669_v13 = vsel %vm597_vm0, %v9414_v55, 0.0 }
 0x12c   : > { %v2958_v26 = vadd.f32 %v2894_v3, %v2750_v50  ;;  %v2960_v2 = vadd.f32 %v2896_v45, %v2752_v12  ;;  %v671_v20 = vsel %vm599_vm1, %v9414_v55, 0.0  ;;  %vm741_vm2 = vcmp.eq.s32.totalorder %v5988_v40, %v9445_v58 }
 0x12d   : > { %vm743_vm3 = vcmp.eq.s32.totalorder %v5991_v63, %v9445_v58  ;;  %v813_v42 = vsel %vm741_vm2, %v9416_v36, 0.0  ;;  %vm949_vm4 = vcmp.eq.s32.totalorder %v5988_v40, %v5389_v53  ;;  %vm951_vm5 = vcmp.eq.s32.totalorder %v5991_v63, %v5389_v53 }
 0x12e   : > { %v3166_v46 = vadd.f32 %v3102_v23, %v2958_v26  ;;  %v3168_v43 = vadd.f32 %v3104_v61, %v2960_v2  ;;  %v815_v12 = vsel %vm743_vm3, %v9416_v36, 0.0  ;;  %v877_v3 = vadd.f32 %v813_v42, %v669_v13 }
 0x12f   : > { %v879_v45 = vadd.f32 %v815_v12, %v671_v20  ;;  %v1021_v29 = vsel %vm949_vm4, %v9387_v52, 0.0  ;;  %v1023_v58 = vsel %vm951_vm5, %v9387_v52, 0.0  ;;  %vm1157_vm6 = vcmp.eq.s32.totalorder %v5988_v40, %v9388_v5 }
 0x130   : > { %v3374_v50 = vadd.f32 %v3310_v22, %v3166_v46  ;;  %v3376_v55 = vadd.f32 %v3312_v62, %v3168_v43  ;;  %v1085_v23 = vadd.f32 %v1021_v29, %v877_v3  ;;  %vm1159_vm7 = vcmp.eq.s32.totalorder %v5991_v63, %v9388_v5 }
 0x131   : > { %v1087_v2 = vadd.f32 %v1023_v58, %v879_v45  ;;  %v1229_v42 = vsel %vm1157_vm6, %v9389_v48, 0.0  ;;  %v1231_v26 = vsel %vm1159_vm7, %v9389_v48, 0.0  ;;  %vm1365_vm8 = vcmp.eq.s32.totalorder %v5988_v40, %v9390_v39 }
 0x132   : > { %v3582_v20 = vadd.f32 %v3518_v49, %v3374_v50  ;;  %v3584_v61 = vadd.f32 %v3520_v44, %v3376_v55  ;;  %v1293_v22 = vadd.f32 %v1229_v42, %v1085_v23  ;;  %vm1367_vm9 = vcmp.eq.s32.totalorder %v5991_v63, %v9390_v39 }
 0x133   : > { %v1295_v62 = vadd.f32 %v1231_v26, %v1087_v2  ;;  %v1437_v46 = vsel %vm1365_vm8, %v9391_v8, 0.0  ;;  %v1439_v29 = vsel %vm1367_vm9, %v9391_v8, 0.0  ;;  %vm1573_vm10 = vcmp.eq.s32.totalorder %v5988_v40, %v5427_v24 }
 0x134   : > { %v3790_v43 = vadd.f32 %v3726_v4, %v3582_v20  ;;  %v3792_v58 = vadd.f32 %v3728_v6, %v3584_v61  ;;  %v1501_v49 = vadd.f32 %v1437_v46, %v1293_v22  ;;  %vm1575_vm11 = vcmp.eq.s32.totalorder %v5991_v63, %v5427_v24 }
 0x135   : > { %v1503_v55 = vadd.f32 %v1439_v29, %v1295_v62  ;;  %v1645_v13 = vsel %vm1573_vm10, %v9392_v9, 0.0  ;;  %v1647_v12 = vsel %vm1575_vm11, %v9392_v9, 0.0  ;;  %vm1781_vm12 = vcmp.eq.s32.totalorder %v5988_v40, %v9393_v10 }
 0x136   : > { %v4523_v44 = vpack.c.bf16 %v3792_v58, %v3790_v43  ;;  %v1709_v4 = vadd.f32 %v1645_v13, %v1501_v49  ;;  %vm1783_vm13 = vcmp.eq.s32.totalorder %v5991_v63, %v9393_v10  ;;  %v1853_v3 = vsel %vm1781_vm12, %v9394_v30, 0.0 }
 0x137   : > { %v1711_v6 = vadd.f32 %v1647_v12, %v1503_v55  ;;  %v1855_v45 = vsel %vm1783_vm13, %v9394_v30, 0.0  ;;  %vm1989_vm14 = vcmp.eq.s32.totalorder %v5988_v40, %v9395_v0  ;;  %vm1991_vm15 = vcmp.eq.s32.totalorder %v5991_v63, %v9395_v0 }
 0x138   : > { %4524 = vmatprep.subr.bf16.mxu0 %v4523_v44  ;;  %vm2197_vm0 = vcmp.eq.s32.totalorder %v5988_v40, %v5469_v28  ;;  %v1917_v50 = vadd.f32 %v1853_v3, %v1709_v4  ;;  %v2061_v2 = vsel %vm1989_vm14, %v5465_v41, 0.0  ;;  %v2063_v20 = vsel %vm1991_vm15, %v5465_v41, 0.0  ;;  %v9446_v3 = vld [vmem:[#allocation68_spill] sm:$0xff] }
 0x139   : > { %v1919_v23 = vadd.f32 %v1855_v45, %v1711_v6  ;;  %vm2199_vm1 = vcmp.eq.s32.totalorder %v5991_v63, %v5469_v28  ;;  %v2269_v61 = vsel %vm2197_vm0, %v9396_v25, 0.0  ;;  %vm2405_vm2 = vcmp.eq.s32.totalorder %v5988_v40, %v9397_v31  ;;  %v9447_v45 = vld [vmem:[#allocation70_spill] sm:$0xff] }
 0x13a   : > { %vm2407_vm3 = vcmp.eq.s32.totalorder %v5991_v63, %v9397_v31  ;;  %v2125_v42 = vadd.f32 %v2061_v2, %v1917_v50  ;;  %v2271_v22 = vsel %vm2199_vm1, %v9396_v25, 0.0  ;;  %v2477_v62 = vsel %vm2405_vm2, %v9398_v37, 0.0  ;;  %v9448_v2 = vld [vmem:[#allocation69_spill] sm:$0xff] }
 0x13b   : > { %v2127_v26 = vadd.f32 %v2063_v20, %v1919_v23  ;;  %v2479_v43 = vsel %vm2407_vm3, %v9398_v37, 0.0  ;;  %vm2613_vm4 = vcmp.eq.s32.totalorder %v5988_v40, %v9417_v11  ;;  %vm2615_vm5 = vcmp.eq.s32.totalorder %v5991_v63, %v9417_v11 }
 0x13c   : > { %vm2821_vm6 = vcmp.eq.s32.totalorder %v5988_v40, %v9419_v15  ;;  %v2333_v58 = vadd.f32 %v2269_v61, %v2125_v42  ;;  %v2685_v29 = vsel %vm2613_vm4, %v9418_v21, 0.0  ;;  %v2687_v49 = vsel %vm2615_vm5, %v9418_v21, 0.0 }
 0x13d   : > { %v2335_v46 = vadd.f32 %v2271_v22, %v2127_v26  ;;  %vm2823_vm7 = vcmp.eq.s32.totalorder %v5991_v63, %v9419_v15  ;;  %v2893_v55 = vsel %vm2821_vm6, %v9420_v1, 0.0  ;;  %vm3029_vm8 = vcmp.eq.s32.totalorder %v5988_v40, %v9421_v7 }
 0x13e   : > { %vm3031_vm9 = vcmp.eq.s32.totalorder %v5991_v63, %v9421_v7  ;;  %v2541_v44 = vadd.f32 %v2477_v62, %v2333_v58  ;;  %v2895_v12 = vsel %vm2823_vm7, %v9420_v1, 0.0  ;;  %v3101_v4 = vsel %vm3029_vm8, %v9401_v59, 0.0 }
 0x13f   : > { %v2543_v13 = vadd.f32 %v2479_v43, %v2335_v46  ;;  %v3103_v6 = vsel %vm3031_vm9, %v9401_v59, 0.0  ;;  %vm3237_vm10 = vcmp.eq.s32.totalorder %v5988_v40, %v9446_v3  ;;  %vm3239_vm11 = vcmp.eq.s32.totalorder %v5991_v63, %v9446_v3  ;;  %v9449_v43 = vld [vmem:[#allocation73_spill] sm:$0xff] }
 0x140   : > { %vm3445_vm12 = vcmp.eq.s32.totalorder %v5988_v40, %v9447_v45  ;;  %v2749_v50 = vadd.f32 %v2685_v29, %v2541_v44  ;;  %v3309_v20 = vsel %vm3237_vm10, %v9448_v2, 0.0  ;;  %v3311_v61 = vsel %vm3239_vm11, %v9448_v2, 0.0  ;;  %v9450_v29 = vld [vmem:[#allocation18_spill] sm:$0xff]  ;;  %v9452_v44 = vld [vmem:[#allocation53_spill] sm:$0xff] }
 0x141   : > { %v2751_v23 = vadd.f32 %v2687_v49, %v2543_v13  ;;  %vm3447_vm13 = vcmp.eq.s32.totalorder %v5991_v63, %v9447_v45  ;;  %v3517_v42 = vsel %vm3445_vm12, %v5561_v47, 0.0  ;;  %vm3653_vm14 = vcmp.eq.s32.totalorder %v5988_v40, %v5579_v27  ;;  %v9451_v49 = vld [vmem:[#allocation52_spill] sm:$0xff] }
 0x142   : > { %vm3655_vm15 = vcmp.eq.s32.totalorder %v5991_v63, %v5579_v27  ;;  %v2957_v26 = vadd.f32 %v2893_v55, %v2749_v50  ;;  %v3519_v62 = vsel %vm3447_vm13, %v5561_v47, 0.0  ;;  %v3725_v58 = vsel %vm3653_vm14, %v9449_v43, 0.0  ;;  %v9453_v63 = vld [vmem:[#allocation19_spill] sm:$0xff]  ;;  %v9454_v50 = vld [vmem:[#allocation21_spill] sm:$0xff] }
 0x143   : > { %v2959_v22 = vadd.f32 %v2895_v12, %v2751_v23  ;;  %v3727_v46 = vsel %vm3655_vm15, %v9449_v43, 0.0  ;;  %vm602_vm0 = vcmp.eq.s32.totalorder %v9451_v49, %v9450_v29  ;;  %vm604_vm1 = vcmp.eq.s32.totalorder %v9452_v44, %v9450_v29 }
 0x144   : > { %vm746_vm2 = vcmp.eq.s32.totalorder %v9451_v49, %v5132_v14  ;;  %v3165_v13 = vadd.f32 %v3101_v4, %v2957_v26  ;;  %v674_v55 = vsel %vm602_vm0, %v9453_v63, 0.0  ;;  %v676_v12 = vsel %vm604_vm1, %v9453_v63, 0.0 }
 0x145   : > { %v3167_v40 = vadd.f32 %v3103_v6, %v2959_v22  ;;  %vm748_vm3 = vcmp.eq.s32.totalorder %v9452_v44, %v5132_v14  ;;  %v818_v23 = vsel %vm746_vm2, %v9454_v50, 0.0  ;;  %vm954_vm4 = vcmp.eq.s32.totalorder %v9451_v49, %v5140_v16 }
 0x146   : > { %vm956_vm5 = vcmp.eq.s32.totalorder %v9452_v44, %v5140_v16  ;;  %v3373_v29 = vadd.f32 %v3309_v20, %v3165_v13  ;;  %v820_v4 = vsel %vm748_vm3, %v9454_v50, 0.0  ;;  %v882_v6 = vadd.f32 %v818_v23, %v674_v55 }
 0x147   : > { %v3375_v43 = vadd.f32 %v3311_v61, %v3167_v40  ;;  %v884_v26 = vadd.f32 %v820_v4, %v676_v12  ;;  %v1026_v22 = vsel %vm954_vm4, %v5144_v17, 0.0  ;;  %v1028_v63 = vsel %vm956_vm5, %v5144_v17, 0.0 }
 0x148   : > { %vm1162_vm6 = vcmp.eq.s32.totalorder %v9451_v49, %v5148_v18  ;;  %v3581_v14 = vadd.f32 %v3517_v42, %v3373_v29  ;;  %v1090_v47 = vadd.f32 %v1026_v22, %v882_v6  ;;  %vm1164_vm7 = vcmp.eq.s32.totalorder %v9452_v44, %v5148_v18 }
 0x149   : > { %v3583_v27 = vadd.f32 %v3519_v62, %v3375_v43  ;;  %v1092_v16 = vadd.f32 %v1028_v63, %v884_v26  ;;  %v1234_v40 = vsel %vm1162_vm6, %v5152_v19, 0.0  ;;  %v1236_v20 = vsel %vm1164_vm7, %v5152_v19, 0.0 }
 0x14a   : > { %vm1370_vm8 = vcmp.eq.s32.totalorder %v9451_v49, %v5180_v32  ;;  %v3789_v61 = vadd.f32 %v3725_v58, %v3581_v14  ;;  %v1298_v55 = vadd.f32 %v1234_v40, %v1090_v47  ;;  %vm1372_vm9 = vcmp.eq.s32.totalorder %v9452_v44, %v5180_v32 }
 0x14b   : > { %v3791_v13 = vadd.f32 %v3727_v46, %v3583_v27  ;;  %v1300_v42 = vadd.f32 %v1236_v20, %v1092_v16  ;;  %v1442_v62 = vsel %vm1370_vm8, %v5184_v33, 0.0  ;;  %v1444_v43 = vsel %vm1372_vm9, %v5184_v33, 0.0  ;;  %v9455_v20 = vld [vmem:[#allocation30_spill] sm:$0xff] }
 0x14c   : > { %vm1578_vm10 = vcmp.eq.s32.totalorder %v9451_v49, %v5188_v34  ;;  %v1506_v29 = vadd.f32 %v1442_v62, %v1298_v55  ;;  %vm1580_vm11 = vcmp.eq.s32.totalorder %v9452_v44, %v5188_v34  ;;  %vm1786_vm12 = vcmp.eq.s32.totalorder %v9451_v49, %v5196_v38  ;;  %v9457_v62 = vld [vmem:[#allocation34_spill] sm:$0xff] }
 0x14d   : > { %v4525_v63 = vpack.c.bf16 %v3791_v13, %v3789_v61  ;;  %v1650_v14 = vsel %vm1578_vm10, %v5192_v35, 0.0  ;;  %v1508_v27 = vadd.f32 %v1444_v43, %v1300_v42  ;;  %v1652_v47 = vsel %vm1580_vm11, %v5192_v35, 0.0  ;;  %v9456_v13 = vld [vmem:[#allocation33_spill] sm:$0xff] }
 0x14e   : > { %vm1788_vm13 = vcmp.eq.s32.totalorder %v9452_v44, %v5196_v38  ;;  %v1714_v16 = vadd.f32 %v1650_v14, %v1506_v29  ;;  %v1858_v58 = vsel %vm1786_vm12, %v9404_v60, 0.0  ;;  %vm1994_vm14 = vcmp.eq.s32.totalorder %v9451_v49, %v5243_v56  ;;  %v9459_v14 = vld [vmem:[#allocation36_spill] sm:$0xff] }
 0x14f   : > { %4526 = vmatpush1.bf16.msra.mxu0 %v4525_v63  ;;  %v1860_v46 = vsel %vm1788_vm13, %v9404_v60, 0.0  ;;  %v1716_v12 = vadd.f32 %v1652_v47, %v1508_v27  ;;  %vm1996_vm15 = vcmp.eq.s32.totalorder %v9452_v44, %v5243_v56  ;;  %v2066_v23 = vsel %vm1994_vm14, %v5247_v57, 0.0  ;;  %v9458_v63 = vld [vmem:[#allocation35_spill] sm:$0xff] }
 0x150   : > { %vm2202_vm0 = vcmp.eq.s32.totalorder %v9451_v49, %v5231_v51  ;;  %v1922_v4 = vadd.f32 %v1858_v58, %v1714_v16  ;;  %v2068_v6 = vsel %vm1996_vm15, %v5247_v57, 0.0  ;;  %vm2204_vm1 = vcmp.eq.s32.totalorder %v9452_v44, %v5231_v51  ;;  %v9460_v16 = vld [vmem:[#allocation37_spill] sm:$0xff] }
 0x151   : > { %v2274_v26 = vsel %vm2202_vm0, %v5235_v54, 0.0  ;;  %v1924_v22 = vadd.f32 %v1860_v46, %v1716_v12  ;;  %v2276_v40 = vsel %vm2204_vm1, %v5235_v54, 0.0  ;;  %vm2410_vm2 = vcmp.eq.s32.totalorder %v9451_v49, %v9455_v20 }
 0x152   : > { %vm2412_vm3 = vcmp.eq.s32.totalorder %v9452_v44, %v9455_v20  ;;  %v2130_v61 = vadd.f32 %v2066_v23, %v1922_v4  ;;  %v2482_v55 = vsel %vm2410_vm2, %v9456_v13, 0.0  ;;  %vm2618_vm4 = vcmp.eq.s32.totalorder %v9451_v49, %v9457_v62  ;;  %v9461_v23 = vld [vmem:[#allocation38_spill] sm:$0xff] }
 0x153   : > { %v2484_v42 = vsel %vm2412_vm3, %v9456_v13, 0.0  ;;  %v2132_v43 = vadd.f32 %v2068_v6, %v1924_v22  ;;  %vm2620_vm5 = vcmp.eq.s32.totalorder %v9452_v44, %v9457_v62  ;;  %v2690_v29 = vsel %vm2618_vm4, %v9458_v63, 0.0  ;;  %v9462_v6 = vld [vmem:[#allocation39_spill] sm:$0xff] }
 0x154   : > { %vm2826_vm6 = vcmp.eq.s32.totalorder %v9451_v49, %v9459_v14  ;;  %v2338_v27 = vadd.f32 %v2274_v26, %v2130_v61  ;;  %v2692_v47 = vsel %vm2620_vm5, %v9458_v63, 0.0  ;;  %vm2828_vm7 = vcmp.eq.s32.totalorder %v9452_v44, %v9459_v14  ;;  %v9463_v61 = vld [vmem:[#allocation40_spill] sm:$0xff] }
 0x155   : > { %v2898_v58 = vsel %vm2826_vm6, %v9460_v16, 0.0  ;;  %v2340_v46 = vadd.f32 %v2276_v40, %v2132_v43  ;;  %v2900_v12 = vsel %vm2828_vm7, %v9460_v16, 0.0  ;;  %vm3034_vm8 = vcmp.eq.s32.totalorder %v9451_v49, %v9461_v23  ;;  %v9464_v40 = vld [vmem:[#allocation41_spill] sm:$0xff]  ;;  %v9465_v16 = vld [vmem:[#allocation42_spill] sm:$0xff] }
 0x156   : > { %vm3036_vm9 = vcmp.eq.s32.totalorder %v9452_v44, %v9461_v23  ;;  %v2546_v4 = vadd.f32 %v2482_v55, %v2338_v27  ;;  %v3106_v22 = vsel %vm3034_vm8, %v9462_v6, 0.0  ;;  %vm3242_vm10 = vcmp.eq.s32.totalorder %v9451_v49, %v9463_v61  ;;  %v9466_v55 = vld [vmem:[#allocation43_spill] sm:$0xff] }
 0x157   : > { %v3108_v26 = vsel %vm3036_vm9, %v9462_v6, 0.0  ;;  %v2548_v14 = vadd.f32 %v2484_v42, %v2340_v46  ;;  %vm3244_vm11 = vcmp.eq.s32.totalorder %v9452_v44, %v9463_v61  ;;  %v3314_v43 = vsel %vm3242_vm10, %v9464_v40, 0.0  ;;  %v9467_v42 = vld [vmem:[#allocation44_spill] sm:$0xff]  ;;  %v9468_v61 = vld [vmem:[#allocation45_spill] sm:$0xff] }
 0x158   : > { %vm3450_vm12 = vcmp.eq.s32.totalorder %v9451_v49, %v9465_v16  ;;  %v2754_v63 = vadd.f32 %v2690_v29, %v2546_v4  ;;  %v3316_v23 = vsel %vm3244_vm11, %v9464_v40, 0.0  ;;  %vm3452_vm13 = vcmp.eq.s32.totalorder %v9452_v44, %v9465_v16  ;;  %v9469_v4 = vld [vmem:[#allocation46_spill] sm:$0xff] }
 0x159   : > { %v3522_v27 = vsel %vm3450_vm12, %v9466_v55, 0.0  ;;  %v2756_v6 = vadd.f32 %v2692_v47, %v2548_v14  ;;  %v3524_v13 = vsel %vm3452_vm13, %v9466_v55, 0.0  ;;  %vm3658_vm14 = vcmp.eq.s32.totalorder %v9451_v49, %v9467_v42  ;;  %v9470_v14 = vld [vmem:[#allocation47_spill] sm:$0xff]  ;;  %v9471_v55 = vld [vmem:[#allocation48_spill] sm:$0xff] }
 0x15a   : > { %vm3660_vm15 = vcmp.eq.s32.totalorder %v9452_v44, %v9467_v42  ;;  %v2962_v46 = vadd.f32 %v2898_v58, %v2754_v63  ;;  %v3730_v62 = vsel %vm3658_vm14, %v9468_v61, 0.0  ;;  %vm601_vm0 = vcmp.eq.s32.totalorder %v9451_v49, %v9469_v4 }
 0x15b   : > { %v3732_v29 = vsel %vm3660_vm15, %v9468_v61, 0.0  ;;  %v2964_v16 = vadd.f32 %v2900_v12, %v2756_v6  ;;  %vm603_vm1 = vcmp.eq.s32.totalorder %v9452_v44, %v9469_v4  ;;  %v673_v47 = vsel %vm601_vm0, %v9470_v14, 0.0 }
 0x15c   : > { %vm745_vm2 = vcmp.eq.s32.totalorder %v9451_v49, %v9471_v55  ;;  %v3170_v40 = vadd.f32 %v3106_v22, %v2962_v46  ;;  %v675_v42 = vsel %vm603_vm1, %v9470_v14, 0.0  ;;  %vm747_vm3 = vcmp.eq.s32.totalorder %v9452_v44, %v9471_v55 }
 0x15d   : > { %v817_v63 = vsel %vm745_vm2, %v9416_v36, 0.0  ;;  %v3172_v58 = vadd.f32 %v3108_v26, %v2964_v16  ;;  %v819_v61 = vsel %vm747_vm3, %v9416_v36, 0.0  ;;  %vm953_vm4 = vcmp.eq.s32.totalorder %v9451_v49, %v5389_v53 }
 0x15e   : > { %v881_v12 = vadd.f32 %v817_v63, %v673_v47  ;;  %v3378_v6 = vadd.f32 %v3314_v43, %v3170_v40  ;;  %v883_v4 = vadd.f32 %v819_v61, %v675_v42  ;;  %vm955_vm5 = vcmp.eq.s32.totalorder %v9452_v44, %v5389_v53 }
 0x15f   : > { %v1025_v22 = vsel %vm953_vm4, %v9387_v52, 0.0  ;;  %v3380_v46 = vadd.f32 %v3316_v23, %v3172_v58  ;;  %v1027_v14 = vsel %vm955_vm5, %v9387_v52, 0.0  ;;  %vm1161_vm6 = vcmp.eq.s32.totalorder %v9451_v49, %v9388_v5 }
 0x160   : > { %v1089_v55 = vadd.f32 %v1025_v22, %v881_v12  ;;  %v3586_v16 = vadd.f32 %v3522_v27, %v3378_v6  ;;  %v1091_v26 = vadd.f32 %v1027_v14, %v883_v4  ;;  %vm1163_vm7 = vcmp.eq.s32.totalorder %v9452_v44, %v9388_v5 }
 0x161   : > { %v1233_v40 = vsel %vm1161_vm6, %v9389_v48, 0.0  ;;  %v3588_v61 = vadd.f32 %v3524_v13, %v3380_v46  ;;  %v1235_v43 = vsel %vm1163_vm7, %v9389_v48, 0.0  ;;  %vm1369_vm8 = vcmp.eq.s32.totalorder %v9451_v49, %v9390_v39 }
 0x162   : > { %v1297_v42 = vadd.f32 %v1233_v40, %v1089_v55  ;;  %v3794_v23 = vadd.f32 %v3730_v62, %v3586_v16  ;;  %v1299_v47 = vadd.f32 %v1235_v43, %v1091_v26  ;;  %vm1371_vm9 = vcmp.eq.s32.totalorder %v9452_v44, %v9390_v39 }
 0x163   : > { %v1441_v27 = vsel %vm1369_vm8, %v9391_v8, 0.0  ;;  %v3796_v4 = vadd.f32 %v3732_v29, %v3588_v61  ;;  %v1443_v14 = vsel %vm1371_vm9, %v9391_v8, 0.0  ;;  %vm1577_vm10 = vcmp.eq.s32.totalorder %v9451_v49, %v5427_v24 }
 0x164   : > { %v1505_v63 = vadd.f32 %v1441_v27, %v1297_v42  ;;  %v1507_v13 = vadd.f32 %v1443_v14, %v1299_v47  ;;  %vm1579_vm11 = vcmp.eq.s32.totalorder %v9452_v44, %v5427_v24  ;;  %v1649_v55 = vsel %vm1577_vm10, %v9392_v9, 0.0 }
 0x165   : > { %vm1785_vm12 = vcmp.eq.s32.totalorder %v9451_v49, %v9393_v10  ;;  %v4527_v62 = vpack.c.bf16 %v3796_v4, %v3794_v23  ;;  %v1651_v58 = vsel %vm1579_vm11, %v9392_v9, 0.0  ;;  %vm1787_vm13 = vcmp.eq.s32.totalorder %v9452_v44, %v9393_v10 }
 0x166   : > { %v1713_v12 = vadd.f32 %v1649_v55, %v1505_v63  ;;  %v1715_v29 = vadd.f32 %v1651_v58, %v1507_v13  ;;  %v1857_v6 = vsel %vm1785_vm12, %v9394_v30, 0.0  ;;  %v1859_v22 = vsel %vm1787_vm13, %v9394_v30, 0.0 }
 0x167   : > { %vm1993_vm14 = vcmp.eq.s32.totalorder %v9451_v49, %v9395_v0  ;;  %4528 = vmatprep.subr.bf16.mxu0 %v4527_v62  ;;  %vm1995_vm15 = vcmp.eq.s32.totalorder %v9452_v44, %v9395_v0  ;;  %vm2201_vm0 = vcmp.eq.s32.totalorder %v9451_v49, %v5469_v28  ;;  %vm2203_vm1 = vcmp.eq.s32.totalorder %v9452_v44, %v5469_v28 }
 0x168   : > { %v1921_v46 = vadd.f32 %v1857_v6, %v1713_v12  ;;  %v2065_v16 = vsel %vm1993_vm14, %v5465_v41, 0.0  ;;  %v1923_v26 = vadd.f32 %v1859_v22, %v1715_v29  ;;  %v2067_v40 = vsel %vm1995_vm15, %v5465_v41, 0.0 }
 0x169   : > { %v2273_v61 = vsel %vm2201_vm0, %v9396_v25, 0.0  ;;  %v2275_v42 = vsel %vm2203_vm1, %v9396_v25, 0.0  ;;  %vm2409_vm2 = vcmp.eq.s32.totalorder %v9451_v49, %v9397_v31  ;;  %vm2411_vm3 = vcmp.eq.s32.totalorder %v9452_v44, %v9397_v31 }
 0x16a   : > { %v2129_v43 = vadd.f32 %v2065_v16, %v1921_v46  ;;  %v2131_v23 = vadd.f32 %v2067_v40, %v1923_v26  ;;  %v2481_v47 = vsel %vm2409_vm2, %v9398_v37, 0.0  ;;  %v2483_v27 = vsel %vm2411_vm3, %v9398_v37, 0.0  ;;  %v9472_v40 = vld [vmem:[#allocation71_spill] sm:$0xff] }
 0x16b   : > { %vm2617_vm4 = vcmp.eq.s32.totalorder %v9451_v49, %v9417_v11  ;;  %vm2619_vm5 = vcmp.eq.s32.totalorder %v9452_v44, %v9417_v11  ;;  %vm2825_vm6 = vcmp.eq.s32.totalorder %v9451_v49, %v9419_v15  ;;  %vm2827_vm7 = vcmp.eq.s32.totalorder %v9452_v44, %v9419_v15 }
 0x16c   : > { %v2337_v4 = vadd.f32 %v2273_v61, %v2129_v43  ;;  %v2689_v14 = vsel %vm2617_vm4, %v9418_v21, 0.0  ;;  %v2339_v63 = vadd.f32 %v2275_v42, %v2131_v23  ;;  %v2691_v13 = vsel %vm2619_vm5, %v9418_v21, 0.0  ;;  %v9473_v23 = vld [vmem:[#allocation72_spill] sm:$0xff] }
 0x16d   : > { %v2897_v55 = vsel %vm2825_vm6, %v9420_v1, 0.0  ;;  %v2899_v58 = vsel %vm2827_vm7, %v9420_v1, 0.0  ;;  %vm3033_vm8 = vcmp.eq.s32.totalorder %v9451_v49, %v9421_v7  ;;  %vm3035_vm9 = vcmp.eq.s32.totalorder %v9452_v44, %v9421_v7 }
 0x16e   : > { %v2545_v62 = vadd.f32 %v2481_v47, %v2337_v4  ;;  %v2547_v12 = vadd.f32 %v2483_v27, %v2339_v63  ;;  %v3105_v29 = vsel %vm3033_vm8, %v9401_v59, 0.0  ;;  %v3107_v6 = vsel %vm3035_vm9, %v9401_v59, 0.0  ;;  %v9474_v27 = vld [vmem:[#allocation73_spill] sm:$0xff]  ;;  %v9475_v63 = vld [vmem:[#allocation14_spill] sm:$0xff] }
 0x16f   : > { %vm3241_vm10 = vcmp.eq.s32.totalorder %v9451_v49, %v9446_v3  ;;  %vm3243_vm11 = vcmp.eq.s32.totalorder %v9452_v44, %v9446_v3  ;;  %vm3449_vm12 = vcmp.eq.s32.totalorder %v9451_v49, %v9447_v45  ;;  %vm3451_vm13 = vcmp.eq.s32.totalorder %v9452_v44, %v9447_v45  ;;  %v9478_v45 = vld [vmem:[#allocation54_spill] sm:$0xff] }
 0x170   : > { %v2753_v22 = vadd.f32 %v2689_v14, %v2545_v62  ;;  %v3313_v46 = vsel %vm3241_vm10, %v9448_v2, 0.0  ;;  %v2755_v16 = vadd.f32 %v2691_v13, %v2547_v12  ;;  %v3315_v26 = vsel %vm3243_vm11, %v9448_v2, 0.0  ;;  %v9477_v12 = vld [vmem:[#allocation18_spill] sm:$0xff] }
 0x171   : > { %v3521_v61 = vsel %vm3449_vm12, %v9472_v40, 0.0  ;;  %v3523_v42 = vsel %vm3451_vm13, %v9472_v40, 0.0  ;;  %vm3657_vm14 = vcmp.eq.s32.totalorder %v9451_v49, %v9473_v23  ;;  %vm3659_vm15 = vcmp.eq.s32.totalorder %v9452_v44, %v9473_v23 }
 0x172   : > { %v2961_v43 = vadd.f32 %v2897_v55, %v2753_v22  ;;  %v2963_v47 = vadd.f32 %v2899_v58, %v2755_v16  ;;  %v3729_v4 = vsel %vm3657_vm14, %v9474_v27, 0.0  ;;  %v3731_v14 = vsel %vm3659_vm15, %v9474_v27, 0.0  ;;  %v9479_v55 = vld [vmem:[#allocation20_spill] sm:$0xff]  ;;  %v9480_v22 = vld [vmem:[#allocation22_spill] sm:$0xff]  ;;  %v9481_v58 = vld [vmem:[#allocation19_spill] sm:$0xff] }
 0x173   : > { %v6387_v13 = vadd.s32 88, %v9475_v63  ;;  %vm606_vm0 = vcmp.eq.s32.totalorder %v9478_v45, %v9477_v12  ;;  %vm750_vm1 = vcmp.eq.s32.totalorder %v9478_v45, %v9479_v55  ;;  %vm958_vm2 = vcmp.eq.s32.totalorder %v9478_v45, %v9480_v22 }
 0x174   : > { %v3169_v62 = vadd.f32 %v3105_v29, %v2961_v43  ;;  %v3171_v49 = vadd.f32 %v3107_v6, %v2963_v47  ;;  %v678_v16 = vsel %vm606_vm0, %v9481_v58, 0.0  ;;  %v822_v43 = vsel %vm750_vm1, %v9454_v50, 0.0 }
 0x175   : > { %9476 = vst [vmem:[#allocation55_spill] sm:$0xff] %v6387_v13  ;;  %vm608_vm3 = vcmp.eq.s32.totalorder %v6387_v13, %v9477_v12  ;;  %vm752_vm4 = vcmp.eq.s32.totalorder %v6387_v13, %v9479_v55  ;;  %v886_v23 = vadd.f32 %v822_v43, %v678_v16  ;;  %vm960_vm5 = vcmp.eq.s32.totalorder %v6387_v13, %v9480_v22 }
 0x176   : > { %v3377_v44 = vadd.f32 %v3313_v46, %v3169_v62  ;;  %v680_v29 = vsel %vm608_vm3, %v9481_v58, 0.0  ;;  %v824_v63 = vsel %vm752_vm4, %v9454_v50, 0.0  ;;  %v3379_v27 = vadd.f32 %v3315_v26, %v3171_v49 }
 0x177   : > { %v888_v40 = vadd.f32 %v824_v63, %v680_v29  ;;  %v1030_v47 = vsel %vm958_vm2, %v5144_v17, 0.0  ;;  %v1032_v12 = vsel %vm960_vm5, %v5144_v17, 0.0  ;;  %vm1166_vm6 = vcmp.eq.s32.totalorder %v9478_v45, %v5148_v18 }
 0x178   : > { %v3585_v6 = vadd.f32 %v3521_v61, %v3377_v44  ;;  %v3587_v46 = vadd.f32 %v3523_v42, %v3379_v27  ;;  %v1094_v62 = vadd.f32 %v1030_v47, %v886_v23  ;;  %vm1168_vm7 = vcmp.eq.s32.totalorder %v6387_v13, %v5148_v18 }
 0x179   : > { %v1096_v58 = vadd.f32 %v1032_v12, %v888_v40  ;;  %v1238_v26 = vsel %vm1166_vm6, %v5152_v19, 0.0  ;;  %v1240_v63 = vsel %vm1168_vm7, %v5152_v19, 0.0  ;;  %vm1374_vm8 = vcmp.eq.s32.totalorder %v9478_v45, %v5180_v32 }
 0x17a   : > { %v3793_v49 = vadd.f32 %v3729_v4, %v3585_v6  ;;  %v3795_v44 = vadd.f32 %v3731_v14, %v3587_v46  ;;  %v1302_v61 = vadd.f32 %v1238_v26, %v1094_v62  ;;  %vm1376_vm9 = vcmp.eq.s32.totalorder %v6387_v13, %v5180_v32 }
 0x17b   : > { %v1304_v16 = vadd.f32 %v1240_v63, %v1096_v58  ;;  %v1446_v42 = vsel %vm1374_vm8, %v5184_v33, 0.0  ;;  %v1448_v40 = vsel %vm1376_vm9, %v5184_v33, 0.0  ;;  %vm1582_vm10 = vcmp.eq.s32.totalorder %v9478_v45, %v5188_v34 }
 0x17c   : > { %vm1584_vm11 = vcmp.eq.s32.totalorder %v6387_v13, %v5188_v34  ;;  %v4529_v23 = vpack.c.bf16 %v3795_v44, %v3793_v49  ;;  %v1510_v27 = vadd.f32 %v1446_v42, %v1302_v61  ;;  %v1654_v14 = vsel %vm1582_vm10, %v5192_v35, 0.0  ;;  %v9482_v44 = vld [vmem:[#allocation34_spill] sm:$0xff]  ;;  %v9483_v42 = vld [vmem:[#allocation33_spill] sm:$0xff] }
 0x17d   : > { %v1512_v4 = vadd.f32 %v1448_v40, %v1304_v16  ;;  %v1656_v12 = vsel %vm1584_vm11, %v5192_v35, 0.0  ;;  %vm1790_vm12 = vcmp.eq.s32.totalorder %v9478_v45, %v5196_v38  ;;  %vm1792_vm13 = vcmp.eq.s32.totalorder %v6387_v13, %v5196_v38 }
 0x17e   : > { %vm1998_vm14 = vcmp.eq.s32.totalorder %v9478_v45, %v5243_v56  ;;  %4530 = vmatpush1.bf16.msra.mxu0 %v4529_v23  ;;  %v1718_v58 = vadd.f32 %v1654_v14, %v1510_v27  ;;  %v1862_v43 = vsel %vm1790_vm12, %v9404_v60, 0.0  ;;  %v1864_v6 = vsel %vm1792_vm13, %v9404_v60, 0.0  ;;  %v9484_v27 = vld [vmem:[#allocation35_spill] sm:$0xff]  ;;  %v9485_v14 = vld [vmem:[#allocation36_spill] sm:$0xff] }
 0x17f   : > { %v1720_v29 = vadd.f32 %v1656_v12, %v1512_v4  ;;  %vm2000_vm15 = vcmp.eq.s32.totalorder %v6387_v13, %v5243_v56  ;;  %v2070_v47 = vsel %vm1998_vm14, %v5247_v57, 0.0  ;;  %vm2206_vm0 = vcmp.eq.s32.totalorder %v9478_v45, %v5231_v51 }
 0x180   : > { %vm2208_vm1 = vcmp.eq.s32.totalorder %v6387_v13, %v5231_v51  ;;  %v1926_v46 = vadd.f32 %v1862_v43, %v1718_v58  ;;  %v2072_v49 = vsel %vm2000_vm15, %v5247_v57, 0.0  ;;  %v2278_v26 = vsel %vm2206_vm0, %v5235_v54, 0.0  ;;  %v9486_v43 = vld [vmem:[#allocation37_spill] sm:$0xff] }
 0x181   : > { %v1928_v62 = vadd.f32 %v1864_v6, %v1720_v29  ;;  %v2280_v63 = vsel %vm2208_vm1, %v5235_v54, 0.0  ;;  %vm2414_vm2 = vcmp.eq.s32.totalorder %v9478_v45, %v9455_v20  ;;  %vm2416_vm3 = vcmp.eq.s32.totalorder %v6387_v13, %v9455_v20 }
 0x182   : > { %vm2622_vm4 = vcmp.eq.s32.totalorder %v9478_v45, %v9482_v44  ;;  %v2134_v61 = vadd.f32 %v2070_v47, %v1926_v46  ;;  %v2486_v40 = vsel %vm2414_vm2, %v9483_v42, 0.0  ;;  %v2488_v23 = vsel %vm2416_vm3, %v9483_v42, 0.0  ;;  %v9487_v46 = vld [vmem:[#allocation38_spill] sm:$0xff] }
 0x183   : > { %v2136_v16 = vadd.f32 %v2072_v49, %v1928_v62  ;;  %vm2624_vm5 = vcmp.eq.s32.totalorder %v6387_v13, %v9482_v44  ;;  %v2694_v4 = vsel %vm2622_vm4, %v9484_v27, 0.0  ;;  %vm2830_vm6 = vcmp.eq.s32.totalorder %v9478_v45, %v9485_v14  ;;  %v9488_v62 = vld [vmem:[#allocation40_spill] sm:$0xff] }
 0x184   : > { %vm2832_vm7 = vcmp.eq.s32.totalorder %v6387_v13, %v9485_v14  ;;  %v2342_v12 = vadd.f32 %v2278_v26, %v2134_v61  ;;  %v2696_v29 = vsel %vm2624_vm5, %v9484_v27, 0.0  ;;  %v2902_v6 = vsel %vm2830_vm6, %v9486_v43, 0.0  ;;  %v9489_v14 = vld [vmem:[#allocation39_spill] sm:$0xff]  ;;  %v9490_v61 = vld [vmem:[#allocation41_spill] sm:$0xff] }
 0x185   : > { %v2344_v58 = vadd.f32 %v2280_v63, %v2136_v16  ;;  %v2904_v47 = vsel %vm2832_vm7, %v9486_v43, 0.0  ;;  %vm3038_vm8 = vcmp.eq.s32.totalorder %v9478_v45, %v9487_v46  ;;  %vm3040_vm9 = vcmp.eq.s32.totalorder %v6387_v13, %v9487_v46  ;;  %v9491_v43 = vld [vmem:[#allocation42_spill] sm:$0xff] }
 0x186   : > { %vm3246_vm10 = vcmp.eq.s32.totalorder %v9478_v45, %v9488_v62  ;;  %v2550_v49 = vadd.f32 %v2486_v40, %v2342_v12  ;;  %v3110_v26 = vsel %vm3038_vm8, %v9489_v14, 0.0  ;;  %v3112_v63 = vsel %vm3040_vm9, %v9489_v14, 0.0  ;;  %v9493_v14 = vld [vmem:[#allocation44_spill] sm:$0xff] }
 0x187   : > { %v2552_v42 = vadd.f32 %v2488_v23, %v2344_v58  ;;  %vm3248_vm11 = vcmp.eq.s32.totalorder %v6387_v13, %v9488_v62  ;;  %v3318_v16 = vsel %vm3246_vm10, %v9490_v61, 0.0  ;;  %vm3454_vm12 = vcmp.eq.s32.totalorder %v9478_v45, %v9491_v43  ;;  %v9492_v23 = vld [vmem:[#allocation43_spill] sm:$0xff]  ;;  %v9494_v62 = vld [vmem:[#allocation46_spill] sm:$0xff] }
 0x188   : > { %vm3456_vm13 = vcmp.eq.s32.totalorder %v6387_v13, %v9491_v43  ;;  %v2758_v46 = vadd.f32 %v2694_v4, %v2550_v49  ;;  %v3320_v40 = vsel %vm3248_vm11, %v9490_v61, 0.0  ;;  %v3526_v12 = vsel %vm3454_vm12, %v9492_v23, 0.0  ;;  %v9495_v43 = vld [vmem:[#allocation45_spill] sm:$0xff] }
 0x189   : > { %v2760_v27 = vadd.f32 %v2696_v29, %v2552_v42  ;;  %v3528_v58 = vsel %vm3456_vm13, %v9492_v23, 0.0  ;;  %vm3662_vm14 = vcmp.eq.s32.totalorder %v9478_v45, %v9493_v14  ;;  %vm3664_vm15 = vcmp.eq.s32.totalorder %v6387_v13, %v9493_v14  ;;  %v9496_v29 = vld [vmem:[#allocation47_spill] sm:$0xff]  ;;  %v9497_v23 = vld [vmem:[#allocation48_spill] sm:$0xff] }
 0x18a   : > { %vm605_vm0 = vcmp.eq.s32.totalorder %v9478_v45, %v9494_v62  ;;  %v2966_v44 = vadd.f32 %v2902_v6, %v2758_v46  ;;  %v3734_v4 = vsel %vm3662_vm14, %v9495_v43, 0.0  ;;  %v3736_v42 = vsel %vm3664_vm15, %v9495_v43, 0.0 }
 0x18b   : > { %v2968_v20 = vadd.f32 %v2904_v47, %v2760_v27  ;;  %vm607_vm1 = vcmp.eq.s32.totalorder %v6387_v13, %v9494_v62  ;;  %v677_v49 = vsel %vm605_vm0, %v9496_v29, 0.0  ;;  %vm749_vm2 = vcmp.eq.s32.totalorder %v9478_v45, %v9497_v23 }
 0x18c   : > { %vm751_vm3 = vcmp.eq.s32.totalorder %v6387_v13, %v9497_v23  ;;  %v3174_v14 = vadd.f32 %v3110_v26, %v2966_v44  ;;  %v679_v6 = vsel %vm607_vm1, %v9496_v29, 0.0  ;;  %v821_v27 = vsel %vm749_vm2, %v9416_v36, 0.0 }
 0x18d   : > { %v3176_v61 = vadd.f32 %v3112_v63, %v2968_v20  ;;  %v823_v47 = vsel %vm751_vm3, %v9416_v36, 0.0  ;;  %v885_v46 = vadd.f32 %v821_v27, %v677_v49  ;;  %vm957_vm4 = vcmp.eq.s32.totalorder %v9478_v45, %v5389_v53 }
 0x18e   : > { %vm959_vm5 = vcmp.eq.s32.totalorder %v6387_v13, %v5389_v53  ;;  %v3382_v43 = vadd.f32 %v3318_v16, %v3174_v14  ;;  %v887_v54 = vadd.f32 %v823_v47, %v679_v6  ;;  %v1029_v23 = vsel %vm957_vm4, %v9387_v52, 0.0 }
 0x18f   : > { %v3384_v62 = vadd.f32 %v3320_v40, %v3176_v61  ;;  %v1031_v20 = vsel %vm959_vm5, %v9387_v52, 0.0  ;;  %v1093_v44 = vadd.f32 %v1029_v23, %v885_v46  ;;  %vm1165_vm6 = vcmp.eq.s32.totalorder %v9478_v45, %v9388_v5 }
 0x190   : > { %vm1167_vm7 = vcmp.eq.s32.totalorder %v6387_v13, %v9388_v5  ;;  %v3590_v26 = vadd.f32 %v3526_v12, %v3382_v43  ;;  %v1095_v49 = vadd.f32 %v1031_v20, %v887_v54  ;;  %v1237_v27 = vsel %vm1165_vm6, %v9389_v48, 0.0 }
 0x191   : > { %v3592_v63 = vadd.f32 %v3528_v58, %v3384_v62  ;;  %v1239_v14 = vsel %vm1167_vm7, %v9389_v48, 0.0  ;;  %v1301_v61 = vadd.f32 %v1237_v27, %v1093_v44  ;;  %vm1373_vm8 = vcmp.eq.s32.totalorder %v9478_v45, %v9390_v39 }
 0x192   : > { %vm1375_vm9 = vcmp.eq.s32.totalorder %v6387_v13, %v9390_v39  ;;  %v3798_v16 = vadd.f32 %v3734_v4, %v3590_v26  ;;  %v1303_v23 = vadd.f32 %v1239_v14, %v1095_v49  ;;  %v1445_v6 = vsel %vm1373_vm8, %v9391_v8, 0.0 }
 0x193   : > { %v3800_v40 = vadd.f32 %v3736_v42, %v3592_v63  ;;  %v1447_v43 = vsel %vm1375_vm9, %v9391_v8, 0.0  ;;  %v1509_v62 = vadd.f32 %v1445_v6, %v1301_v61  ;;  %vm1581_vm10 = vcmp.eq.s32.totalorder %v9478_v45, %v5427_v24 }
 0x194   : > { %vm1583_vm11 = vcmp.eq.s32.totalorder %v6387_v13, %v5427_v24  ;;  %v1511_v12 = vadd.f32 %v1447_v43, %v1303_v23  ;;  %v1653_v58 = vsel %vm1581_vm10, %v9392_v9, 0.0  ;;  %vm1789_vm12 = vcmp.eq.s32.totalorder %v9478_v45, %v9393_v10 }
 0x195   : > { %v4531_v54 = vpack.c.bf16 %v3800_v40, %v3798_v16  ;;  %v1655_v47 = vsel %vm1583_vm11, %v9392_v9, 0.0  ;;  %v1717_v4 = vadd.f32 %v1653_v58, %v1509_v62  ;;  %vm1791_vm13 = vcmp.eq.s32.totalorder %v6387_v13, %v9393_v10 }
 0x196   : > { %vm1997_vm14 = vcmp.eq.s32.totalorder %v9478_v45, %v9395_v0  ;;  %v1719_v42 = vadd.f32 %v1655_v47, %v1511_v12  ;;  %v1861_v46 = vsel %vm1789_vm12, %v9394_v30, 0.0  ;;  %v1863_v20 = vsel %vm1791_vm13, %v9394_v30, 0.0 }
 0x197   : > { %4532 = vmatprep.subr.bf16.mxu0 %v4531_v54  ;;  %vm1999_vm15 = vcmp.eq.s32.totalorder %v6387_v13, %v9395_v0  ;;  %v1925_v44 = vadd.f32 %v1861_v46, %v1717_v4  ;;  %v2069_v26 = vsel %vm1997_vm14, %v5465_v41, 0.0  ;;  %vm2205_vm0 = vcmp.eq.s32.totalorder %v9478_v45, %v5469_v28 }
 0x198   : > { %v2071_v63 = vsel %vm1999_vm15, %v5465_v41, 0.0  ;;  %v1927_v49 = vadd.f32 %v1863_v20, %v1719_v42  ;;  %vm2207_vm1 = vcmp.eq.s32.totalorder %v6387_v13, %v5469_v28  ;;  %v2277_v27 = vsel %vm2205_vm0, %v9396_v25, 0.0 }
 0x199   : > { %vm2413_vm2 = vcmp.eq.s32.totalorder %v9478_v45, %v9397_v31  ;;  %v2133_v14 = vadd.f32 %v2069_v26, %v1925_v44  ;;  %v2279_v61 = vsel %vm2207_vm1, %v9396_v25, 0.0  ;;  %vm2415_vm3 = vcmp.eq.s32.totalorder %v6387_v13, %v9397_v31 }
 0x19a   : > { %v2485_v16 = vsel %vm2413_vm2, %v9398_v37, 0.0  ;;  %v2135_v40 = vadd.f32 %v2071_v63, %v1927_v49  ;;  %v2487_v23 = vsel %vm2415_vm3, %v9398_v37, 0.0  ;;  %vm2621_vm4 = vcmp.eq.s32.totalorder %v9478_v45, %v9417_v11  ;;  %v9498_v63 = vld [vmem:[#allocation70_spill] sm:$0xff] }
 0x19b   : > { %vm2623_vm5 = vcmp.eq.s32.totalorder %v6387_v13, %v9417_v11  ;;  %v2341_v6 = vadd.f32 %v2277_v27, %v2133_v14  ;;  %v2693_v43 = vsel %vm2621_vm4, %v9418_v21, 0.0  ;;  %vm2829_vm6 = vcmp.eq.s32.totalorder %v9478_v45, %v9419_v15  ;;  %v9499_v27 = vld [vmem:[#allocation71_spill] sm:$0xff] }
 0x19c   : > { %v2695_v62 = vsel %vm2623_vm5, %v9418_v21, 0.0  ;;  %v2343_v54 = vadd.f32 %v2279_v61, %v2135_v40  ;;  %vm2831_vm7 = vcmp.eq.s32.totalorder %v6387_v13, %v9419_v15  ;;  %v2901_v12 = vsel %vm2829_vm6, %v9420_v1, 0.0  ;;  %v9500_v61 = vld [vmem:[#allocation72_spill] sm:$0xff] }
 0x19d   : > { %vm3037_vm8 = vcmp.eq.s32.totalorder %v9478_v45, %v9421_v7  ;;  %v2549_v58 = vadd.f32 %v2485_v16, %v2341_v6  ;;  %v2903_v47 = vsel %vm2831_vm7, %v9420_v1, 0.0  ;;  %vm3039_vm9 = vcmp.eq.s32.totalorder %v6387_v13, %v9421_v7 }
 0x19e   : > { %v3109_v4 = vsel %vm3037_vm8, %v9401_v59, 0.0  ;;  %v2551_v42 = vadd.f32 %v2487_v23, %v2343_v54  ;;  %v3111_v46 = vsel %vm3039_vm9, %v9401_v59, 0.0  ;;  %vm3245_vm10 = vcmp.eq.s32.totalorder %v9478_v45, %v9446_v3  ;;  %v9501_v23 = vld [vmem:[#allocation73_spill] sm:$0xff] }
 0x19f   : > { %vm3247_vm11 = vcmp.eq.s32.totalorder %v6387_v13, %v9446_v3  ;;  %v2757_v20 = vadd.f32 %v2693_v43, %v2549_v58  ;;  %v3317_v44 = vsel %vm3245_vm10, %v9448_v2, 0.0  ;;  %vm3453_vm12 = vcmp.eq.s32.totalorder %v9478_v45, %v9498_v63 }
 0x1a0   : > { %v3319_v26 = vsel %vm3247_vm11, %v9448_v2, 0.0  ;;  %v2759_v49 = vadd.f32 %v2695_v62, %v2551_v42  ;;  %vm3455_vm13 = vcmp.eq.s32.totalorder %v6387_v13, %v9498_v63  ;;  %v3525_v14 = vsel %vm3453_vm12, %v9499_v27, 0.0  ;;  %v9502_v62 = vld [vmem:[#allocation14_spill] sm:$0xff] }
 0x1a1   : > { %vm3661_vm14 = vcmp.eq.s32.totalorder %v9478_v45, %v9500_v61  ;;  %v2965_v16 = vadd.f32 %v2901_v12, %v2757_v20  ;;  %v3527_v40 = vsel %vm3455_vm13, %v9499_v27, 0.0  ;;  %vm3663_vm15 = vcmp.eq.s32.totalorder %v6387_v13, %v9500_v61 }
 0x1a2   : > { %v3733_v6 = vsel %vm3661_vm14, %v9501_v23, 0.0  ;;  %v2967_v43 = vadd.f32 %v2903_v47, %v2759_v49  ;;  %v3735_v54 = vsel %vm3663_vm15, %v9501_v23, 0.0  ;;  %v6582_v58 = vadd.s32 96, %v9502_v62  ;;  %v9508_v47 = vld [vmem:[#allocation18_spill] sm:$0xff]  ;;  %v9509_v49 = vld [vmem:[#allocation19_spill] sm:$0xff] }
 0x1a3   : > { %v6585_v42 = vadd.s32 104, %v9502_v62  ;;  %v3173_v2 = vadd.f32 %v3109_v4, %v2965_v16  ;;  %v6588_v45 = vadd.s32 112, %v9502_v62  ;;  %v6591_v12 = vadd.s32 120, %v9502_v62 }
 0x1a4   : > { %9503 = vst [vmem:[#allocation56_spill] sm:$0xff] %v6582_v58  ;;  %v6594_v20 = vadd.s32 128, %v9502_v62  ;;  %v3175_v13 = vadd.f32 %v3111_v46, %v2967_v43  ;;  %vm610_vm0 = vcmp.eq.s32.totalorder %v6582_v58, %v9508_v47  ;;  %vm754_vm2 = vcmp.eq.s32.totalorder %v6582_v58, %v9479_v55 }
 0x1a5   : > { %9504 = vst [vmem:[#allocation57_spill] sm:$0xff] %v6585_v42  ;;  %9505 = vst [vmem:[#allocation58_spill] sm:$0xff] %v6588_v45  ;;  %vm612_vm1 = vcmp.eq.s32.totalorder %v6585_v42, %v9508_v47  ;;  %v3381_v4 = vadd.f32 %v3317_v44, %v3173_v2  ;;  %v682_v16 = vsel %vm610_vm0, %v9509_v49, 0.0  ;;  %vm756_vm3 = vcmp.eq.s32.totalorder %v6585_v42, %v9479_v55 }
 0x1a6   : > { %9506 = vst [vmem:[#allocation59_spill] sm:$0xff] %v6591_v12  ;;  %9507 = vst [vmem:[#allocation60_spill] sm:$0xff] %v6594_v20  ;;  %v684_v45 = vsel %vm612_vm1, %v9509_v49, 0.0  ;;  %v3383_v62 = vadd.f32 %v3319_v26, %v3175_v13  ;;  %v826_v46 = vsel %vm754_vm2, %v9454_v50, 0.0  ;;  %v828_v43 = vsel %vm756_vm3, %v9454_v50, 0.0 }
 0x1a7   : > { %vm962_vm4 = vcmp.eq.s32.totalorder %v6582_v58, %v9480_v22  ;;  %v3589_v20 = vadd.f32 %v3525_v14, %v3381_v4  ;;  %v890_v12 = vadd.f32 %v826_v46, %v682_v16  ;;  %v892_v47 = vadd.f32 %v828_v43, %v684_v45 }
 0x1a8   : > { %vm964_vm5 = vcmp.eq.s32.totalorder %v6585_v42, %v9480_v22  ;;  %v3591_v2 = vadd.f32 %v3527_v40, %v3383_v62  ;;  %v1034_v44 = vsel %vm962_vm4, %v5144_v17, 0.0  ;;  %vm1170_vm6 = vcmp.eq.s32.totalorder %v6582_v58, %v5148_v18 }
 0x1a9   : > { %v1036_v49 = vsel %vm964_vm5, %v5144_v17, 0.0  ;;  %v3797_v13 = vadd.f32 %v3733_v6, %v3589_v20  ;;  %v1098_v26 = vadd.f32 %v1034_v44, %v890_v12  ;;  %vm1172_vm7 = vcmp.eq.s32.totalorder %v6585_v42, %v5148_v18 }
 0x1aa   : > { %v1100_v50 = vadd.f32 %v1036_v49, %v892_v47  ;;  %v3799_v14 = vadd.f32 %v3735_v54, %v3591_v2  ;;  %v1242_v45 = vsel %vm1170_vm6, %v5152_v19, 0.0  ;;  %v1244_v4 = vsel %vm1172_vm7, %v5152_v19, 0.0 }
 0x1ab   : > { %vm1378_vm8 = vcmp.eq.s32.totalorder %v6582_v58, %v5180_v32  ;;  %v1306_v40 = vadd.f32 %v1242_v45, %v1098_v26  ;;  %vm1380_vm9 = vcmp.eq.s32.totalorder %v6585_v42, %v5180_v32  ;;  %vm1586_vm10 = vcmp.eq.s32.totalorder %v6582_v58, %v5188_v34  ;;  %v9510_v45 = vld [vmem:[#allocation29_spill] sm:$0xff] }
 0x1ac   : > { %v1308_v62 = vadd.f32 %v1244_v4, %v1100_v50  ;;  %v1450_v6 = vsel %vm1378_vm8, %v5184_v33, 0.0  ;;  %v4533_v12 = vpack.c.bf16 %v3799_v14, %v3797_v13  ;;  %v1452_v20 = vsel %vm1380_vm9, %v5184_v33, 0.0 }
 0x1ad   : > { %vm1588_vm11 = vcmp.eq.s32.totalorder %v6585_v42, %v5188_v34  ;;  %v1514_v54 = vadd.f32 %v1450_v6, %v1306_v40  ;;  %v1658_v49 = vsel %vm1586_vm10, %v5192_v35, 0.0  ;;  %vm1794_vm12 = vcmp.eq.s32.totalorder %v6582_v58, %v5196_v38  ;;  %v9512_v6 = vld [vmem:[#allocation34_spill] sm:$0xff] }
 0x1ae   : > { %v1516_v47 = vadd.f32 %v1452_v20, %v1308_v62  ;;  %v1660_v50 = vsel %vm1588_vm11, %v5192_v35, 0.0  ;;  %4534 = vmatpush1.bf16.msra.mxu0 %v4533_v12  ;;  %vm1796_vm13 = vcmp.eq.s32.totalorder %v6585_v42, %v5196_v38  ;;  %vm2002_vm14 = vcmp.eq.s32.totalorder %v6582_v58, %v5243_v56  ;;  %v9511_v62 = vld [vmem:[#allocation30_spill] sm:$0xff] }
 0x1af   : > { %vm2004_vm15 = vcmp.eq.s32.totalorder %v6585_v42, %v5243_v56  ;;  %v1722_v16 = vadd.f32 %v1658_v49, %v1514_v54  ;;  %v1866_v43 = vsel %vm1794_vm12, %v9404_v60, 0.0  ;;  %v1868_v2 = vsel %vm1796_vm13, %v9404_v60, 0.0  ;;  %v9513_v54 = vld [vmem:[#allocation33_spill] sm:$0xff] }
 0x1b0   : > { %v1724_v46 = vadd.f32 %v1660_v50, %v1516_v47  ;;  %v2074_v44 = vsel %vm2002_vm14, %v5247_v57, 0.0  ;;  %v2076_v13 = vsel %vm2004_vm15, %v5247_v57, 0.0  ;;  %vm2210_vm0 = vcmp.eq.s32.totalorder %v6582_v58, %v5231_v51  ;;  %v9514_v50 = vld [vmem:[#allocation35_spill] sm:$0xff] }
 0x1b1   : > { %vm2212_vm1 = vcmp.eq.s32.totalorder %v6585_v42, %v5231_v51  ;;  %v1930_v26 = vadd.f32 %v1866_v43, %v1722_v16  ;;  %v2282_v4 = vsel %vm2210_vm0, %v9510_v45, 0.0  ;;  %vm2418_vm2 = vcmp.eq.s32.totalorder %v6582_v58, %v9511_v62  ;;  %v9515_v43 = vld [vmem:[#allocation36_spill] sm:$0xff]  ;;  %v9522_v57 = vld [vmem:[#allocation43_spill] sm:$0xff] }
 0x1b2   : > { %v1932_v14 = vadd.f32 %v1868_v2, %v1724_v46  ;;  %v2284_v40 = vsel %vm2212_vm1, %v9510_v45, 0.0  ;;  %vm2420_vm3 = vcmp.eq.s32.totalorder %v6585_v42, %v9511_v62  ;;  %vm2626_vm4 = vcmp.eq.s32.totalorder %v6582_v58, %v9512_v6  ;;  %v9516_v45 = vld [vmem:[#allocation37_spill] sm:$0xff] }
 0x1b3   : > { %vm2628_vm5 = vcmp.eq.s32.totalorder %v6585_v42, %v9512_v6  ;;  %v2138_v12 = vadd.f32 %v2074_v44, %v1930_v26  ;;  %v2490_v47 = vsel %vm2418_vm2, %v9513_v54, 0.0  ;;  %v2492_v49 = vsel %vm2420_vm3, %v9513_v54, 0.0  ;;  %v9518_v26 = vld [vmem:[#allocation40_spill] sm:$0xff]  ;;  %v9521_v54 = vld [vmem:[#allocation42_spill] sm:$0xff] }
 0x1b4   : > { %v2140_v20 = vadd.f32 %v2076_v13, %v1932_v14  ;;  %v2698_v16 = vsel %vm2626_vm4, %v9514_v50, 0.0  ;;  %v2700_v46 = vsel %vm2628_vm5, %v9514_v50, 0.0  ;;  %vm2834_vm6 = vcmp.eq.s32.totalorder %v6582_v58, %v9515_v43  ;;  %v9517_v13 = vld [vmem:[#allocation38_spill] sm:$0xff] }
 0x1b5   : > { %vm2836_vm7 = vcmp.eq.s32.totalorder %v6585_v42, %v9515_v43  ;;  %v2346_v2 = vadd.f32 %v2282_v4, %v2138_v12  ;;  %v2906_v6 = vsel %vm2834_vm6, %v9516_v45, 0.0  ;;  %vm3042_vm8 = vcmp.eq.s32.totalorder %v6582_v58, %v9517_v13  ;;  %v9519_v4 = vld [vmem:[#allocation39_spill] sm:$0xff] }
 0x1b6   : > { %v2348_v62 = vadd.f32 %v2284_v40, %v2140_v20  ;;  %v2908_v44 = vsel %vm2836_vm7, %v9516_v45, 0.0  ;;  %vm3044_vm9 = vcmp.eq.s32.totalorder %v6585_v42, %v9517_v13  ;;  %vm3250_vm10 = vcmp.eq.s32.totalorder %v6582_v58, %v9518_v26  ;;  %v9520_v20 = vld [vmem:[#allocation41_spill] sm:$0xff] }
 0x1b7   : > { %vm3252_vm11 = vcmp.eq.s32.totalorder %v6585_v42, %v9518_v26  ;;  %v2554_v14 = vadd.f32 %v2490_v47, %v2346_v2  ;;  %v3114_v40 = vsel %vm3042_vm8, %v9519_v4, 0.0  ;;  %v3116_v12 = vsel %vm3044_vm9, %v9519_v4, 0.0  ;;  %v9523_v47 = vld [vmem:[#allocation44_spill] sm:$0xff] }
 0x1b8   : > { %v2556_v43 = vadd.f32 %v2492_v49, %v2348_v62  ;;  %v3322_v45 = vsel %vm3250_vm10, %v9520_v20, 0.0  ;;  %v3324_v50 = vsel %vm3252_vm11, %v9520_v20, 0.0  ;;  %vm3458_vm12 = vcmp.eq.s32.totalorder %v6582_v58, %v9521_v54  ;;  %v9524_v49 = vld [vmem:[#allocation46_spill] sm:$0xff]  ;;  %v9526_v20 = vld [vmem:[#allocation48_spill] sm:$0xff] }
 0x1b9   : > { %vm3460_vm13 = vcmp.eq.s32.totalorder %v6585_v42, %v9521_v54  ;;  %v2762_v13 = vadd.f32 %v2698_v16, %v2554_v14  ;;  %v3530_v26 = vsel %vm3458_vm12, %v9522_v57, 0.0  ;;  %vm3666_vm14 = vcmp.eq.s32.totalorder %v6582_v58, %v9523_v47  ;;  %v9525_v16 = vld [vmem:[#allocation45_spill] sm:$0xff] }
 0x1ba   : > { %v2764_v51 = vadd.f32 %v2700_v46, %v2556_v43  ;;  %v3532_v62 = vsel %vm3460_vm13, %v9522_v57, 0.0  ;;  %vm3668_vm15 = vcmp.eq.s32.totalorder %v6585_v42, %v9523_v47  ;;  %vm609_vm0 = vcmp.eq.s32.totalorder %v6582_v58, %v9524_v49 }
 0x1bb   : > { %vm611_vm1 = vcmp.eq.s32.totalorder %v6585_v42, %v9524_v49  ;;  %v2970_v2 = vadd.f32 %v2906_v6, %v2762_v13  ;;  %v3738_v46 = vsel %vm3666_vm14, %v9525_v16, 0.0  ;;  %v3740_v43 = vsel %vm3668_vm15, %v9525_v16, 0.0 }
 0x1bc   : > { %v2972_v54 = vadd.f32 %v2908_v44, %v2764_v51  ;;  %v681_v14 = vsel %vm609_vm0, %v9496_v29, 0.0  ;;  %v683_v57 = vsel %vm611_vm1, %v9496_v29, 0.0  ;;  %vm753_vm2 = vcmp.eq.s32.totalorder %v6582_v58, %v9526_v20 }
 0x1bd   : > { %vm755_vm3 = vcmp.eq.s32.totalorder %v6585_v42, %v9526_v20  ;;  %v3178_v47 = vadd.f32 %v3114_v40, %v2970_v2  ;;  %v825_v49 = vsel %vm753_vm2, %v9416_v36, 0.0  ;;  %vm961_vm4 = vcmp.eq.s32.totalorder %v6582_v58, %v5389_v53 }
 0x1be   : > { %v3180_v4 = vadd.f32 %v3116_v12, %v2972_v54  ;;  %v827_v51 = vsel %vm755_vm3, %v9416_v36, 0.0  ;;  %v889_v6 = vadd.f32 %v825_v49, %v681_v14  ;;  %vm963_vm5 = vcmp.eq.s32.totalorder %v6585_v42, %v5389_v53 }
 0x1bf   : > { %v891_v44 = vadd.f32 %v827_v51, %v683_v57  ;;  %v3386_v13 = vadd.f32 %v3322_v45, %v3178_v47  ;;  %v1033_v16 = vsel %vm961_vm4, %v9387_v52, 0.0  ;;  %v1035_v20 = vsel %vm963_vm5, %v9387_v52, 0.0 }
 0x1c0   : > { %v3388_v29 = vadd.f32 %v3324_v50, %v3180_v4  ;;  %v1097_v40 = vadd.f32 %v1033_v16, %v889_v6  ;;  %vm1169_vm6 = vcmp.eq.s32.totalorder %v6582_v58, %v9388_v5  ;;  %vm1171_vm7 = vcmp.eq.s32.totalorder %v6585_v42, %v9388_v5 }
 0x1c1   : > { %v1099_v54 = vadd.f32 %v1035_v20, %v891_v44  ;;  %v3594_v57 = vadd.f32 %v3530_v26, %v3386_v13  ;;  %v1241_v49 = vsel %vm1169_vm6, %v9389_v48, 0.0  ;;  %v1243_v2 = vsel %vm1171_vm7, %v9389_v48, 0.0 }
 0x1c2   : > { %v3596_v12 = vadd.f32 %v3532_v62, %v3388_v29  ;;  %v1305_v45 = vadd.f32 %v1241_v49, %v1097_v40  ;;  %vm1377_vm8 = vcmp.eq.s32.totalorder %v6582_v58, %v9390_v39  ;;  %vm1379_vm9 = vcmp.eq.s32.totalorder %v6585_v42, %v9390_v39 }
 0x1c3   : > { %v1307_v50 = vadd.f32 %v1243_v2, %v1099_v54  ;;  %v3802_v4 = vadd.f32 %v3738_v46, %v3594_v57  ;;  %v1449_v47 = vsel %vm1377_vm8, %v9391_v8, 0.0  ;;  %v1451_v16 = vsel %vm1379_vm9, %v9391_v8, 0.0 }
 0x1c4   : > { %v3804_v20 = vadd.f32 %v3740_v43, %v3596_v12  ;;  %v1513_v26 = vadd.f32 %v1449_v47, %v1305_v45  ;;  %vm1585_vm10 = vcmp.eq.s32.totalorder %v6582_v58, %v5427_v24  ;;  %vm1587_vm11 = vcmp.eq.s32.totalorder %v6585_v42, %v5427_v24 }
 0x1c5   : > { %v1515_v29 = vadd.f32 %v1451_v16, %v1307_v50  ;;  %v1657_v14 = vsel %vm1585_vm10, %v9392_v9, 0.0  ;;  %v1659_v51 = vsel %vm1587_vm11, %v9392_v9, 0.0  ;;  %vm1793_vm12 = vcmp.eq.s32.totalorder %v6582_v58, %v9393_v10 }
 0x1c6   : > { %v4535_v62 = vpack.c.bf16 %v3804_v20, %v3802_v4  ;;  %v1721_v46 = vadd.f32 %v1657_v14, %v1513_v26  ;;  %vm1795_vm13 = vcmp.eq.s32.totalorder %v6585_v42, %v9393_v10  ;;  %v1865_v6 = vsel %vm1793_vm12, %v9394_v30, 0.0 }
 0x1c7   : > { %v1723_v43 = vadd.f32 %v1659_v51, %v1515_v29  ;;  %v1867_v44 = vsel %vm1795_vm13, %v9394_v30, 0.0  ;;  %vm2001_vm14 = vcmp.eq.s32.totalorder %v6582_v58, %v9395_v0  ;;  %vm2003_vm15 = vcmp.eq.s32.totalorder %v6585_v42, %v9395_v0 }
 0x1c8   : > { %4536 = vmatprep.subr.bf16.mxu0 %v4535_v62  ;;  %vm2209_vm0 = vcmp.eq.s32.totalorder %v6582_v58, %v5469_v28  ;;  %v1929_v13 = vadd.f32 %v1865_v6, %v1721_v46  ;;  %v2073_v54 = vsel %vm2001_vm14, %v5465_v41, 0.0  ;;  %v2075_v57 = vsel %vm2003_vm15, %v5465_v41, 0.0 }
 0x1c9   : > { %v1931_v40 = vadd.f32 %v1867_v44, %v1723_v43  ;;  %vm2211_vm1 = vcmp.eq.s32.totalorder %v6585_v42, %v5469_v28  ;;  %v2281_v12 = vsel %vm2209_vm0, %v9396_v25, 0.0  ;;  %vm2417_vm2 = vcmp.eq.s32.totalorder %v6582_v58, %v9397_v31 }
 0x1ca   : > { %vm2419_vm3 = vcmp.eq.s32.totalorder %v6585_v42, %v9397_v31  ;;  %v2137_v49 = vadd.f32 %v2073_v54, %v1929_v13  ;;  %v2283_v45 = vsel %vm2211_vm1, %v9396_v25, 0.0  ;;  %v2489_v50 = vsel %vm2417_vm2, %v9398_v37, 0.0  ;;  %v9527_v13 = vld [vmem:[#allocation69_spill] sm:$0xff] }
 0x1cb   : > { %v2139_v2 = vadd.f32 %v2075_v57, %v1931_v40  ;;  %v2491_v4 = vsel %vm2419_vm3, %v9398_v37, 0.0  ;;  %vm2625_vm4 = vcmp.eq.s32.totalorder %v6582_v58, %v9417_v11  ;;  %vm2627_vm5 = vcmp.eq.s32.totalorder %v6585_v42, %v9417_v11 }
 0x1cc   : > { %vm2833_vm6 = vcmp.eq.s32.totalorder %v6582_v58, %v9419_v15  ;;  %v2345_v20 = vadd.f32 %v2281_v12, %v2137_v49  ;;  %v2697_v16 = vsel %vm2625_vm4, %v9418_v21, 0.0  ;;  %v2699_v26 = vsel %vm2627_vm5, %v9418_v21, 0.0 }
 0x1cd   : > { %v2347_v47 = vadd.f32 %v2283_v45, %v2139_v2  ;;  %vm2835_vm7 = vcmp.eq.s32.totalorder %v6585_v42, %v9419_v15  ;;  %v2905_v29 = vsel %vm2833_vm6, %v9420_v1, 0.0  ;;  %vm3041_vm8 = vcmp.eq.s32.totalorder %v6582_v58, %v9421_v7 }
 0x1ce   : > { %vm3043_vm9 = vcmp.eq.s32.totalorder %v6585_v42, %v9421_v7  ;;  %v2553_v62 = vadd.f32 %v2489_v50, %v2345_v20  ;;  %v2907_v51 = vsel %vm2835_vm7, %v9420_v1, 0.0  ;;  %v3113_v46 = vsel %vm3041_vm8, %v9401_v59, 0.0  ;;  %v9529_v20 = vld [vmem:[#allocation58_spill] sm:$0xff] }
 0x1cf   : > { %v2555_v14 = vadd.f32 %v2491_v4, %v2347_v47  ;;  %v3115_v43 = vsel %vm3043_vm9, %v9401_v59, 0.0  ;;  %vm3249_vm10 = vcmp.eq.s32.totalorder %v6582_v58, %v9446_v3  ;;  %vm3251_vm11 = vcmp.eq.s32.totalorder %v6585_v42, %v9446_v3  ;;  %v9528_v4 = vld [vmem:[#allocation18_spill] sm:$0xff]  ;;  %v9530_v47 = vld [vmem:[#allocation59_spill] sm:$0xff] }
 0x1d0   : > { %vm3457_vm12 = vcmp.eq.s32.totalorder %v6582_v58, %v9498_v63  ;;  %v2761_v6 = vadd.f32 %v2697_v16, %v2553_v62  ;;  %v3321_v40 = vsel %vm3249_vm10, %v9527_v13, 0.0  ;;  %v3323_v54 = vsel %vm3251_vm11, %v9527_v13, 0.0  ;;  %v9531_v62 = vld [vmem:[#allocation19_spill] sm:$0xff] }
 0x1d1   : > { %v2763_v44 = vadd.f32 %v2699_v26, %v2555_v14  ;;  %vm3459_vm13 = vcmp.eq.s32.totalorder %v6585_v42, %v9498_v63  ;;  %v3529_v57 = vsel %vm3457_vm12, %v9499_v27, 0.0  ;;  %vm3665_vm14 = vcmp.eq.s32.totalorder %v6582_v58, %v9500_v61 }
 0x1d2   : > { %vm3667_vm15 = vcmp.eq.s32.totalorder %v6585_v42, %v9500_v61  ;;  %v2969_v12 = vadd.f32 %v2905_v29, %v2761_v6  ;;  %v3531_v2 = vsel %vm3459_vm13, %v9499_v27, 0.0  ;;  %v3737_v45 = vsel %vm3665_vm14, %v9501_v23, 0.0 }
 0x1d3   : > { %v2971_v49 = vadd.f32 %v2907_v51, %v2763_v44  ;;  %v3739_v50 = vsel %vm3667_vm15, %v9501_v23, 0.0  ;;  %vm614_vm0 = vcmp.eq.s32.totalorder %v9529_v20, %v9528_v4  ;;  %vm616_vm1 = vcmp.eq.s32.totalorder %v9530_v47, %v9528_v4  ;;  %v9532_v51 = vld [vmem:[#allocation21_spill] sm:$0xff] }
 0x1d4   : > { %vm758_vm2 = vcmp.eq.s32.totalorder %v9529_v20, %v9479_v55  ;;  %v3177_v16 = vadd.f32 %v3113_v46, %v2969_v12  ;;  %v686_v29 = vsel %vm614_vm0, %v9531_v62, 0.0  ;;  %v688_v14 = vsel %vm616_vm1, %v9531_v62, 0.0 }
 0x1d5   : > { %v3179_v26 = vadd.f32 %v3115_v43, %v2971_v49  ;;  %vm760_vm3 = vcmp.eq.s32.totalorder %v9530_v47, %v9479_v55  ;;  %v830_v6 = vsel %vm758_vm2, %v9532_v51, 0.0  ;;  %vm966_vm4 = vcmp.eq.s32.totalorder %v9529_v20, %v9480_v22 }
 0x1d6   : > { %vm968_vm5 = vcmp.eq.s32.totalorder %v9530_v47, %v9480_v22  ;;  %v3385_v44 = vadd.f32 %v3321_v40, %v3177_v16  ;;  %v832_v46 = vsel %vm760_vm3, %v9532_v51, 0.0  ;;  %v894_v43 = vadd.f32 %v830_v6, %v686_v29 }
 0x1d7   : > { %v3387_v42 = vadd.f32 %v3323_v54, %v3179_v26  ;;  %v896_v12 = vadd.f32 %v832_v46, %v688_v14  ;;  %v1038_v49 = vsel %vm966_vm4, %v5144_v17, 0.0  ;;  %v1040_v58 = vsel %vm968_vm5, %v5144_v17, 0.0 }
 0x1d8   : > { %vm1174_vm6 = vcmp.eq.s32.totalorder %v9529_v20, %v5148_v18  ;;  %v3593_v62 = vadd.f32 %v3529_v57, %v3385_v44  ;;  %v1102_v4 = vadd.f32 %v1038_v49, %v894_v43  ;;  %vm1176_vm7 = vcmp.eq.s32.totalorder %v9530_v47, %v5148_v18  ;;  %v9533_v44 = vld [vmem:[#allocation32_spill] sm:$0xff] }
 0x1d9   : > { %v3595_v55 = vadd.f32 %v3531_v2, %v3387_v42  ;;  %v1104_v22 = vadd.f32 %v1040_v58, %v896_v12  ;;  %v1246_v40 = vsel %vm1174_vm6, %v5152_v19, 0.0  ;;  %v1248_v54 = vsel %vm1176_vm7, %v5152_v19, 0.0  ;;  %v9534_v43 = vld [vmem:[#allocation28_spill] sm:$0xff] }
 0x1da   : > { %vm1382_vm8 = vcmp.eq.s32.totalorder %v9529_v20, %v5180_v32  ;;  %v3801_v16 = vadd.f32 %v3737_v45, %v3593_v62  ;;  %v1310_v29 = vadd.f32 %v1246_v40, %v1102_v4  ;;  %vm1384_vm9 = vcmp.eq.s32.totalorder %v9530_v47, %v5180_v32  ;;  %v9535_v40 = vld [vmem:[#allocation29_spill] sm:$0xff] }
 0x1db   : > { %v3803_v26 = vadd.f32 %v3739_v50, %v3595_v55  ;;  %v1312_v57 = vadd.f32 %v1248_v54, %v1104_v22  ;;  %v1454_v42 = vsel %vm1382_vm8, %v5184_v33, 0.0  ;;  %v1456_v2 = vsel %vm1384_vm9, %v5184_v33, 0.0 }
 0x1dc   : > { %vm1590_vm10 = vcmp.eq.s32.totalorder %v9529_v20, %v5188_v34  ;;  %v1518_v14 = vadd.f32 %v1454_v42, %v1310_v29  ;;  %vm1592_vm11 = vcmp.eq.s32.totalorder %v9530_v47, %v5188_v34  ;;  %vm1798_vm12 = vcmp.eq.s32.totalorder %v9529_v20, %v5196_v38  ;;  %v9536_v29 = vld [vmem:[#allocation30_spill] sm:$0xff]  ;;  %v9537_v42 = vld [vmem:[#allocation33_spill] sm:$0xff] }
 0x1dd   : > { %v4537_v58 = vpack.c.bf16 %v3803_v26, %v3801_v16  ;;  %v1662_v45 = vsel %vm1590_vm10, %v5192_v35, 0.0  ;;  %v1520_v55 = vadd.f32 %v1456_v2, %v1312_v57  ;;  %v1664_v50 = vsel %vm1592_vm11, %v5192_v35, 0.0 }
 0x1de   : > { %vm1800_vm13 = vcmp.eq.s32.totalorder %v9530_v47, %v5196_v38  ;;  %v1726_v22 = vadd.f32 %v1662_v45, %v1518_v14  ;;  %v1870_v4 = vsel %vm1798_vm12, %v9404_v60, 0.0  ;;  %vm2006_vm14 = vcmp.eq.s32.totalorder %v9529_v20, %v5243_v56  ;;  %v9538_v14 = vld [vmem:[#allocation34_spill] sm:$0xff] }
 0x1df   : > { %4538 = vmatpush1.bf16.msra.mxu0 %v4537_v58  ;;  %v1872_v62 = vsel %vm1800_vm13, %v9404_v60, 0.0  ;;  %v1728_v6 = vadd.f32 %v1664_v50, %v1520_v55  ;;  %vm2008_vm15 = vcmp.eq.s32.totalorder %v9530_v47, %v5243_v56  ;;  %v2078_v46 = vsel %vm2006_vm14, %v9533_v44, 0.0  ;;  %v9539_v55 = vld [vmem:[#allocation35_spill] sm:$0xff] }
 0x1e0   : > { %vm2214_vm0 = vcmp.eq.s32.totalorder %v9529_v20, %v9534_v43  ;;  %v1934_v12 = vadd.f32 %v1870_v4, %v1726_v22  ;;  %v2080_v49 = vsel %vm2008_vm15, %v9533_v44, 0.0  ;;  %vm2216_vm1 = vcmp.eq.s32.totalorder %v9530_v47, %v9534_v43  ;;  %v9540_v22 = vld [vmem:[#allocation36_spill] sm:$0xff] }
 0x1e1   : > { %v2286_v54 = vsel %vm2214_vm0, %v9535_v40, 0.0  ;;  %v1936_v16 = vadd.f32 %v1872_v62, %v1728_v6  ;;  %v2288_v26 = vsel %vm2216_vm1, %v9535_v40, 0.0  ;;  %vm2422_vm2 = vcmp.eq.s32.totalorder %v9529_v20, %v9536_v29  ;;  %v9541_v6 = vld [vmem:[#allocation37_spill] sm:$0xff] }
 0x1e2   : > { %vm2424_vm3 = vcmp.eq.s32.totalorder %v9530_v47, %v9536_v29  ;;  %v2142_v57 = vadd.f32 %v2078_v46, %v1934_v12  ;;  %v2494_v2 = vsel %vm2422_vm2, %v9537_v42, 0.0  ;;  %vm2630_vm4 = vcmp.eq.s32.totalorder %v9529_v20, %v9538_v14 }
 0x1e3   : > { %v2496_v58 = vsel %vm2424_vm3, %v9537_v42, 0.0  ;;  %v2144_v45 = vadd.f32 %v2080_v49, %v1936_v16  ;;  %vm2632_vm5 = vcmp.eq.s32.totalorder %v9530_v47, %v9538_v14  ;;  %v2702_v50 = vsel %vm2630_vm4, %v9539_v55, 0.0  ;;  %v9542_v49 = vld [vmem:[#allocation38_spill] sm:$0xff]  ;;  %v9543_v14 = vld [vmem:[#allocation39_spill] sm:$0xff] }
 0x1e4   : > { %vm2838_vm6 = vcmp.eq.s32.totalorder %v9529_v20, %v9540_v22  ;;  %v2350_v4 = vadd.f32 %v2286_v54, %v2142_v57  ;;  %v2704_v62 = vsel %vm2632_vm5, %v9539_v55, 0.0  ;;  %vm2840_vm7 = vcmp.eq.s32.totalorder %v9530_v47, %v9540_v22  ;;  %v9544_v57 = vld [vmem:[#allocation40_spill] sm:$0xff] }
 0x1e5   : > { %v2910_v46 = vsel %vm2838_vm6, %v9541_v6, 0.0  ;;  %v2352_v12 = vadd.f32 %v2288_v26, %v2144_v45  ;;  %v2912_v42 = vsel %vm2840_vm7, %v9541_v6, 0.0  ;;  %vm3046_vm8 = vcmp.eq.s32.totalorder %v9529_v20, %v9542_v49  ;;  %v9545_v26 = vld [vmem:[#allocation41_spill] sm:$0xff]  ;;  %v9546_v6 = vld [vmem:[#allocation42_spill] sm:$0xff] }
 0x1e6   : > { %vm3048_vm9 = vcmp.eq.s32.totalorder %v9530_v47, %v9542_v49  ;;  %v2558_v16 = vadd.f32 %v2494_v2, %v2350_v4  ;;  %v3118_v29 = vsel %vm3046_vm8, %v9543_v14, 0.0  ;;  %vm3254_vm10 = vcmp.eq.s32.totalorder %v9529_v20, %v9544_v57  ;;  %v9547_v2 = vld [vmem:[#allocation43_spill] sm:$0xff] }
 0x1e7   : > { %v3120_v54 = vsel %vm3048_vm9, %v9543_v14, 0.0  ;;  %v2560_v22 = vadd.f32 %v2496_v58, %v2352_v12  ;;  %vm3256_vm11 = vcmp.eq.s32.totalorder %v9530_v47, %v9544_v57  ;;  %v3326_v45 = vsel %vm3254_vm10, %v9545_v26, 0.0  ;;  %v9548_v58 = vld [vmem:[#allocation44_spill] sm:$0xff]  ;;  %v9549_v57 = vld [vmem:[#allocation45_spill] sm:$0xff] }
 0x1e8   : > { %vm3462_vm12 = vcmp.eq.s32.totalorder %v9529_v20, %v9546_v6  ;;  %v2766_v55 = vadd.f32 %v2702_v50, %v2558_v16  ;;  %v3328_v49 = vsel %vm3256_vm11, %v9545_v26, 0.0  ;;  %vm3464_vm13 = vcmp.eq.s32.totalorder %v9530_v47, %v9546_v6  ;;  %v9550_v16 = vld [vmem:[#allocation46_spill] sm:$0xff] }
 0x1e9   : > { %v3534_v4 = vsel %vm3462_vm12, %v9547_v2, 0.0  ;;  %v2768_v14 = vadd.f32 %v2704_v62, %v2560_v22  ;;  %v3536_v40 = vsel %vm3464_vm13, %v9547_v2, 0.0  ;;  %vm3670_vm14 = vcmp.eq.s32.totalorder %v9529_v20, %v9548_v58  ;;  %v9551_v22 = vld [vmem:[#allocation47_spill] sm:$0xff]  ;;  %v9552_v2 = vld [vmem:[#allocation48_spill] sm:$0xff] }
 0x1ea   : > { %vm3672_vm15 = vcmp.eq.s32.totalorder %v9530_v47, %v9548_v58  ;;  %v2974_v12 = vadd.f32 %v2910_v46, %v2766_v55  ;;  %v3742_v43 = vsel %vm3670_vm14, %v9549_v57, 0.0  ;;  %vm613_vm0 = vcmp.eq.s32.totalorder %v9529_v20, %v9550_v16 }
 0x1eb   : > { %v3744_v50 = vsel %vm3672_vm15, %v9549_v57, 0.0  ;;  %v2976_v6 = vadd.f32 %v2912_v42, %v2768_v14  ;;  %vm615_vm1 = vcmp.eq.s32.totalorder %v9530_v47, %v9550_v16  ;;  %v685_v62 = vsel %vm613_vm0, %v9551_v22, 0.0 }
 0x1ec   : > { %vm757_vm2 = vcmp.eq.s32.totalorder %v9529_v20, %v9552_v2  ;;  %v3182_v26 = vadd.f32 %v3118_v29, %v2974_v12  ;;  %v687_v58 = vsel %vm615_vm1, %v9551_v22, 0.0  ;;  %vm759_vm3 = vcmp.eq.s32.totalorder %v9530_v47, %v9552_v2 }
 0x1ed   : > { %v829_v55 = vsel %vm757_vm2, %v9416_v36, 0.0  ;;  %v3184_v46 = vadd.f32 %v3120_v54, %v2976_v6  ;;  %v831_v57 = vsel %vm759_vm3, %v9416_v36, 0.0  ;;  %vm965_vm4 = vcmp.eq.s32.totalorder %v9529_v20, %v5389_v53 }
 0x1ee   : > { %v893_v42 = vadd.f32 %v829_v55, %v685_v62  ;;  %v3390_v14 = vadd.f32 %v3326_v45, %v3182_v26  ;;  %v895_v16 = vadd.f32 %v831_v57, %v687_v58  ;;  %vm967_vm5 = vcmp.eq.s32.totalorder %v9530_v47, %v5389_v53 }
 0x1ef   : > { %v1037_v29 = vsel %vm965_vm4, %v9387_v52, 0.0  ;;  %v3392_v12 = vadd.f32 %v3328_v49, %v3184_v46  ;;  %v1039_v22 = vsel %vm967_vm5, %v9387_v52, 0.0  ;;  %vm1173_vm6 = vcmp.eq.s32.totalorder %v9529_v20, %v9388_v5 }
 0x1f0   : > { %v1101_v2 = vadd.f32 %v1037_v29, %v893_v42  ;;  %v3598_v6 = vadd.f32 %v3534_v4, %v3390_v14  ;;  %v1103_v54 = vadd.f32 %v1039_v22, %v895_v16  ;;  %vm1175_vm7 = vcmp.eq.s32.totalorder %v9530_v47, %v9388_v5 }
 0x1f1   : > { %v1245_v26 = vsel %vm1173_vm6, %v9389_v48, 0.0  ;;  %v3600_v57 = vadd.f32 %v3536_v40, %v3392_v12  ;;  %v1247_v45 = vsel %vm1175_vm7, %v9389_v48, 0.0  ;;  %vm1381_vm8 = vcmp.eq.s32.totalorder %v9529_v20, %v9390_v39 }
 0x1f2   : > { %v1309_v58 = vadd.f32 %v1245_v26, %v1101_v2  ;;  %v3806_v49 = vadd.f32 %v3742_v43, %v3598_v6  ;;  %v1311_v62 = vadd.f32 %v1247_v45, %v1103_v54  ;;  %vm1383_vm9 = vcmp.eq.s32.totalorder %v9530_v47, %v9390_v39 }
 0x1f3   : > { %v1453_v4 = vsel %vm1381_vm8, %v9391_v8, 0.0  ;;  %v3808_v16 = vadd.f32 %v3744_v50, %v3600_v57  ;;  %v1455_v22 = vsel %vm1383_vm9, %v9391_v8, 0.0  ;;  %vm1589_vm10 = vcmp.eq.s32.totalorder %v9529_v20, %v5427_v24 }
 0x1f4   : > { %v1517_v55 = vadd.f32 %v1453_v4, %v1309_v58  ;;  %v1519_v40 = vadd.f32 %v1455_v22, %v1311_v62  ;;  %vm1591_vm11 = vcmp.eq.s32.totalorder %v9530_v47, %v5427_v24  ;;  %v1661_v2 = vsel %vm1589_vm10, %v9392_v9, 0.0 }
 0x1f5   : > { %vm1797_vm12 = vcmp.eq.s32.totalorder %v9529_v20, %v9393_v10  ;;  %v4539_v43 = vpack.c.bf16 %v3808_v16, %v3806_v49  ;;  %v1663_v46 = vsel %vm1591_vm11, %v9392_v9, 0.0  ;;  %vm1799_vm13 = vcmp.eq.s32.totalorder %v9530_v47, %v9393_v10 }
 0x1f6   : > { %v1725_v42 = vadd.f32 %v1661_v2, %v1517_v55  ;;  %v1727_v50 = vadd.f32 %v1663_v46, %v1519_v40  ;;  %v1869_v14 = vsel %vm1797_vm12, %v9394_v30, 0.0  ;;  %v1871_v29 = vsel %vm1799_vm13, %v9394_v30, 0.0 }
 0x1f7   : > { %vm2005_vm14 = vcmp.eq.s32.totalorder %v9529_v20, %v9395_v0  ;;  %4540 = vmatprep.subr.bf16.mxu0 %v4539_v43  ;;  %vm2007_vm15 = vcmp.eq.s32.totalorder %v9530_v47, %v9395_v0  ;;  %vm2213_vm0 = vcmp.eq.s32.totalorder %v9529_v20, %v5469_v28  ;;  %vm2215_vm1 = vcmp.eq.s32.totalorder %v9530_v47, %v5469_v28 }
 0x1f8   : > { %v1933_v12 = vadd.f32 %v1869_v14, %v1725_v42  ;;  %v2077_v6 = vsel %vm2005_vm14, %v5465_v41, 0.0  ;;  %v1935_v54 = vadd.f32 %v1871_v29, %v1727_v50  ;;  %v2079_v26 = vsel %vm2007_vm15, %v5465_v41, 0.0 }
 0x1f9   : > { %v2285_v57 = vsel %vm2213_vm0, %v9396_v25, 0.0  ;;  %v2287_v58 = vsel %vm2215_vm1, %v9396_v25, 0.0  ;;  %vm2421_vm2 = vcmp.eq.s32.totalorder %v9529_v20, %v9397_v31  ;;  %vm2423_vm3 = vcmp.eq.s32.totalorder %v9530_v47, %v9397_v31 }
 0x1fa   : > { %v2141_v45 = vadd.f32 %v2077_v6, %v1933_v12  ;;  %v2143_v49 = vadd.f32 %v2079_v26, %v1935_v54  ;;  %v2493_v62 = vsel %vm2421_vm2, %v9398_v37, 0.0  ;;  %v2495_v4 = vsel %vm2423_vm3, %v9398_v37, 0.0 }
 0x1fb   : > { %vm2629_vm4 = vcmp.eq.s32.totalorder %v9529_v20, %v9417_v11  ;;  %vm2631_vm5 = vcmp.eq.s32.totalorder %v9530_v47, %v9417_v11  ;;  %vm2837_vm6 = vcmp.eq.s32.totalorder %v9529_v20, %v9419_v15  ;;  %vm2839_vm7 = vcmp.eq.s32.totalorder %v9530_v47, %v9419_v15 }
 0x1fc   : > { %v2349_v16 = vadd.f32 %v2285_v57, %v2141_v45  ;;  %v2701_v22 = vsel %vm2629_vm4, %v9418_v21, 0.0  ;;  %v2351_v55 = vadd.f32 %v2287_v58, %v2143_v49  ;;  %v2703_v40 = vsel %vm2631_vm5, %v9418_v21, 0.0 }
 0x1fd   : > { %v2909_v2 = vsel %vm2837_vm6, %v9420_v1, 0.0  ;;  %v2911_v46 = vsel %vm2839_vm7, %v9420_v1, 0.0  ;;  %vm3045_vm8 = vcmp.eq.s32.totalorder %v9529_v20, %v9421_v7  ;;  %vm3047_vm9 = vcmp.eq.s32.totalorder %v9530_v47, %v9421_v7 }
 0x1fe   : > { %v2557_v43 = vadd.f32 %v2493_v62, %v2349_v16  ;;  %v2559_v42 = vadd.f32 %v2495_v4, %v2351_v55  ;;  %v3117_v50 = vsel %vm3045_vm8, %v9401_v59, 0.0  ;;  %v3119_v14 = vsel %vm3047_vm9, %v9401_v59, 0.0  ;;  %v9553_v4 = vld [vmem:[#allocation14_spill] sm:$0xff] }
 0x1ff   : > { %vm3253_vm10 = vcmp.eq.s32.totalorder %v9529_v20, %v9446_v3  ;;  %vm3255_vm11 = vcmp.eq.s32.totalorder %v9530_v47, %v9446_v3  ;;  %vm3461_vm12 = vcmp.eq.s32.totalorder %v9529_v20, %v9498_v63  ;;  %vm3463_vm13 = vcmp.eq.s32.totalorder %v9530_v47, %v9498_v63  ;;  %v9555_v55 = vld [vmem:[#allocation18_spill] sm:$0xff] }
 0x200   : > { %v2765_v29 = vadd.f32 %v2701_v22, %v2557_v43  ;;  %v3325_v12 = vsel %vm3253_vm10, %v9527_v13, 0.0  ;;  %v2767_v6 = vadd.f32 %v2703_v40, %v2559_v42  ;;  %v3327_v54 = vsel %vm3255_vm11, %v9527_v13, 0.0  ;;  %v9556_v40 = vld [vmem:[#allocation60_spill] sm:$0xff]  ;;  %v9558_v43 = vld [vmem:[#allocation22_spill] sm:$0xff] }
 0x201   : > { %v3533_v26 = vsel %vm3461_vm12, %v9499_v27, 0.0  ;;  %v3535_v45 = vsel %vm3463_vm13, %v9499_v27, 0.0  ;;  %vm3669_vm14 = vcmp.eq.s32.totalorder %v9529_v20, %v9500_v61  ;;  %vm3671_vm15 = vcmp.eq.s32.totalorder %v9530_v47, %v9500_v61 }
 0x202   : > { %v2973_v57 = vadd.f32 %v2909_v2, %v2765_v29  ;;  %v2975_v58 = vadd.f32 %v2911_v46, %v2767_v6  ;;  %v3741_v49 = vsel %vm3669_vm14, %v9501_v23, 0.0  ;;  %v3743_v62 = vsel %vm3671_vm15, %v9501_v23, 0.0  ;;  %v9557_v2 = vld [vmem:[#allocation20_spill] sm:$0xff]  ;;  %v9559_v46 = vld [vmem:[#allocation19_spill] sm:$0xff] }
 0x203   : > { %v6981_v16 = vadd.s32 136, %v9553_v4  ;;  %vm618_vm0 = vcmp.eq.s32.totalorder %v9556_v40, %v9555_v55  ;;  %vm762_vm1 = vcmp.eq.s32.totalorder %v9556_v40, %v9557_v2  ;;  %vm970_vm2 = vcmp.eq.s32.totalorder %v9556_v40, %v9558_v43 }
 0x204   : > { %v3181_v22 = vadd.f32 %v3117_v50, %v2973_v57  ;;  %v3183_v42 = vadd.f32 %v3119_v14, %v2975_v58  ;;  %v690_v29 = vsel %vm618_vm0, %v9559_v46, 0.0  ;;  %v834_v57 = vsel %vm762_vm1, %v9532_v51, 0.0 }
 0x205   : > { %9554 = vst [vmem:[#allocation61_spill] sm:$0xff] %v6981_v16  ;;  %vm620_vm3 = vcmp.eq.s32.totalorder %v6981_v16, %v9555_v55  ;;  %vm764_vm4 = vcmp.eq.s32.totalorder %v6981_v16, %v9557_v2  ;;  %v898_v4 = vadd.f32 %v834_v57, %v690_v29  ;;  %vm972_vm5 = vcmp.eq.s32.totalorder %v6981_v16, %v9558_v43 }
 0x206   : > { %v3389_v6 = vadd.f32 %v3325_v12, %v3181_v22  ;;  %v692_v50 = vsel %vm620_vm3, %v9559_v46, 0.0  ;;  %v836_v47 = vsel %vm764_vm4, %v9532_v51, 0.0  ;;  %v3391_v20 = vadd.f32 %v3327_v54, %v3183_v42 }
 0x207   : > { %v900_v23 = vadd.f32 %v836_v47, %v692_v50  ;;  %v1042_v58 = vsel %vm970_vm2, %v5144_v17, 0.0  ;;  %v1044_v55 = vsel %vm972_vm5, %v5144_v17, 0.0  ;;  %vm1178_vm6 = vcmp.eq.s32.totalorder %v9556_v40, %v5148_v18 }
 0x208   : > { %v3597_v14 = vadd.f32 %v3533_v26, %v3389_v6  ;;  %v3599_v12 = vadd.f32 %v3535_v45, %v3391_v20  ;;  %v1106_v22 = vadd.f32 %v1042_v58, %v898_v4  ;;  %vm1180_vm7 = vcmp.eq.s32.totalorder %v6981_v16, %v5148_v18 }
 0x209   : > { %v1108_v46 = vadd.f32 %v1044_v55, %v900_v23  ;;  %v1250_v47 = vsel %vm1178_vm6, %v5152_v19, 0.0  ;;  %v1252_v42 = vsel %vm1180_vm7, %v5152_v19, 0.0  ;;  %vm1386_vm8 = vcmp.eq.s32.totalorder %v9556_v40, %v5180_v32 }
 0x20a   : > { %v3805_v54 = vadd.f32 %v3741_v49, %v3597_v14  ;;  %v3807_v26 = vadd.f32 %v3743_v62, %v3599_v12  ;;  %v1314_v29 = vadd.f32 %v1250_v47, %v1106_v22  ;;  %vm1388_vm9 = vcmp.eq.s32.totalorder %v6981_v16, %v5180_v32  ;;  %v9560_v12 = vld [vmem:[#allocation28_spill] sm:$0xff] }
 0x20b   : > { %v1316_v6 = vadd.f32 %v1252_v42, %v1108_v46  ;;  %v1458_v20 = vsel %vm1386_vm8, %v5184_v33, 0.0  ;;  %v1460_v23 = vsel %vm1388_vm9, %v5184_v33, 0.0  ;;  %vm1594_vm10 = vcmp.eq.s32.totalorder %v9556_v40, %v5188_v34  ;;  %v9561_v42 = vld [vmem:[#allocation29_spill] sm:$0xff] }
 0x20c   : > { %vm1596_vm11 = vcmp.eq.s32.totalorder %v6981_v16, %v5188_v34  ;;  %v4541_v45 = vpack.c.bf16 %v3807_v26, %v3805_v54  ;;  %v1522_v49 = vadd.f32 %v1458_v20, %v1314_v29  ;;  %v1666_v62 = vsel %vm1594_vm10, %v5192_v35, 0.0  ;;  %v9563_v20 = vld [vmem:[#allocation34_spill] sm:$0xff] }
 0x20d   : > { %v1524_v4 = vadd.f32 %v1460_v23, %v1316_v6  ;;  %v1668_v55 = vsel %vm1596_vm11, %v5192_v35, 0.0  ;;  %vm1802_vm12 = vcmp.eq.s32.totalorder %v9556_v40, %v5196_v38  ;;  %vm1804_vm13 = vcmp.eq.s32.totalorder %v6981_v16, %v5196_v38  ;;  %v9562_v6 = vld [vmem:[#allocation30_spill] sm:$0xff] }
 0x20e   : > { %vm2010_vm14 = vcmp.eq.s32.totalorder %v9556_v40, %v5243_v56  ;;  %4542 = vmatpush1.bf16.msra.mxu0 %v4541_v45  ;;  %v1730_v46 = vadd.f32 %v1666_v62, %v1522_v49  ;;  %v1874_v57 = vsel %vm1802_vm12, %v9404_v60, 0.0  ;;  %v1876_v14 = vsel %vm1804_vm13, %v9404_v60, 0.0  ;;  %v9564_v49 = vld [vmem:[#allocation33_spill] sm:$0xff] }
 0x20f   : > { %v1732_v50 = vadd.f32 %v1668_v55, %v1524_v4  ;;  %vm2012_vm15 = vcmp.eq.s32.totalorder %v6981_v16, %v5243_v56  ;;  %v2082_v58 = vsel %vm2010_vm14, %v9533_v44, 0.0  ;;  %vm2218_vm0 = vcmp.eq.s32.totalorder %v9556_v40, %v9560_v12  ;;  %v9565_v55 = vld [vmem:[#allocation35_spill] sm:$0xff] }
 0x210   : > { %vm2220_vm1 = vcmp.eq.s32.totalorder %v6981_v16, %v9560_v12  ;;  %v1938_v22 = vadd.f32 %v1874_v57, %v1730_v46  ;;  %v2084_v47 = vsel %vm2012_vm15, %v9533_v44, 0.0  ;;  %v2290_v26 = vsel %vm2218_vm0, %v9561_v42, 0.0 }
 0x211   : > { %v1940_v54 = vadd.f32 %v1876_v14, %v1732_v50  ;;  %v2292_v29 = vsel %vm2220_vm1, %v9561_v42, 0.0  ;;  %vm2426_vm2 = vcmp.eq.s32.totalorder %v9556_v40, %v9562_v6  ;;  %vm2428_vm3 = vcmp.eq.s32.totalorder %v6981_v16, %v9562_v6  ;;  %v9566_v50 = vld [vmem:[#allocation36_spill] sm:$0xff] }
 0x212   : > { %vm2634_vm4 = vcmp.eq.s32.totalorder %v9556_v40, %v9563_v20  ;;  %v2146_v23 = vadd.f32 %v2082_v58, %v1938_v22  ;;  %v2498_v4 = vsel %vm2426_vm2, %v9564_v49, 0.0  ;;  %v2500_v62 = vsel %vm2428_vm3, %v9564_v49, 0.0  ;;  %v9567_v22 = vld [vmem:[#allocation37_spill] sm:$0xff]  ;;  %v9568_v49 = vld [vmem:[#allocation38_spill] sm:$0xff] }
 0x213   : > { %v2148_v45 = vadd.f32 %v2084_v47, %v1940_v54  ;;  %vm2636_vm5 = vcmp.eq.s32.totalorder %v6981_v16, %v9563_v20  ;;  %v2706_v46 = vsel %vm2634_vm4, %v9565_v55, 0.0  ;;  %vm2842_vm6 = vcmp.eq.s32.totalorder %v9556_v40, %v9566_v50  ;;  %v9569_v20 = vld [vmem:[#allocation40_spill] sm:$0xff] }
 0x214   : > { %vm2844_vm7 = vcmp.eq.s32.totalorder %v6981_v16, %v9566_v50  ;;  %v2354_v57 = vadd.f32 %v2290_v26, %v2146_v23  ;;  %v2708_v58 = vsel %vm2636_vm5, %v9565_v55, 0.0  ;;  %v2914_v54 = vsel %vm2842_vm6, %v9567_v22, 0.0  ;;  %v9570_v50 = vld [vmem:[#allocation39_spill] sm:$0xff]  ;;  %v9571_v23 = vld [vmem:[#allocation41_spill] sm:$0xff] }
 0x215   : > { %v2356_v14 = vadd.f32 %v2292_v29, %v2148_v45  ;;  %v2916_v47 = vsel %vm2844_vm7, %v9567_v22, 0.0  ;;  %vm3050_vm8 = vcmp.eq.s32.totalorder %v9556_v40, %v9568_v49  ;;  %vm3052_vm9 = vcmp.eq.s32.totalorder %v6981_v16, %v9568_v49  ;;  %v9572_v22 = vld [vmem:[#allocation42_spill] sm:$0xff] }
 0x216   : > { %vm3258_vm10 = vcmp.eq.s32.totalorder %v9556_v40, %v9569_v20  ;;  %v2562_v6 = vadd.f32 %v2498_v4, %v2354_v57  ;;  %v3122_v26 = vsel %vm3050_vm8, %v9570_v50, 0.0  ;;  %v3124_v29 = vsel %vm3052_vm9, %v9570_v50, 0.0  ;;  %v9574_v50 = vld [vmem:[#allocation44_spill] sm:$0xff] }
 0x217   : > { %v2564_v42 = vadd.f32 %v2500_v62, %v2356_v14  ;;  %vm3260_vm11 = vcmp.eq.s32.totalorder %v6981_v16, %v9569_v20  ;;  %v3330_v45 = vsel %vm3258_vm10, %v9571_v23, 0.0  ;;  %vm3466_vm12 = vcmp.eq.s32.totalorder %v9556_v40, %v9572_v22  ;;  %v9573_v62 = vld [vmem:[#allocation43_spill] sm:$0xff]  ;;  %v9575_v20 = vld [vmem:[#allocation46_spill] sm:$0xff] }
 0x218   : > { %vm3468_vm13 = vcmp.eq.s32.totalorder %v6981_v16, %v9572_v22  ;;  %v2770_v49 = vadd.f32 %v2706_v46, %v2562_v6  ;;  %v3332_v4 = vsel %vm3260_vm11, %v9571_v23, 0.0  ;;  %v3538_v57 = vsel %vm3466_vm12, %v9573_v62, 0.0  ;;  %v9576_v22 = vld [vmem:[#allocation45_spill] sm:$0xff]  ;;  %v9577_v46 = vld [vmem:[#allocation47_spill] sm:$0xff] }
 0x219   : > { %v2772_v55 = vadd.f32 %v2708_v58, %v2564_v42  ;;  %v3540_v14 = vsel %vm3468_vm13, %v9573_v62, 0.0  ;;  %vm3674_vm14 = vcmp.eq.s32.totalorder %v9556_v40, %v9574_v50  ;;  %vm3676_vm15 = vcmp.eq.s32.totalorder %v6981_v16, %v9574_v50  ;;  %v9578_v62 = vld [vmem:[#allocation48_spill] sm:$0xff] }
 0x21a   : > { %vm617_vm0 = vcmp.eq.s32.totalorder %v9556_v40, %v9575_v20  ;;  %v2978_v12 = vadd.f32 %v2914_v54, %v2770_v49  ;;  %v3746_v6 = vsel %vm3674_vm14, %v9576_v22, 0.0  ;;  %v3748_v42 = vsel %vm3676_vm15, %v9576_v22, 0.0 }
 0x21b   : > { %v2980_v44 = vadd.f32 %v2916_v47, %v2772_v55  ;;  %vm619_vm1 = vcmp.eq.s32.totalorder %v6981_v16, %v9575_v20  ;;  %v689_v58 = vsel %vm617_vm0, %v9577_v46, 0.0  ;;  %vm761_vm2 = vcmp.eq.s32.totalorder %v9556_v40, %v9578_v62 }
 0x21c   : > { %vm763_vm3 = vcmp.eq.s32.totalorder %v6981_v16, %v9578_v62  ;;  %v3186_v50 = vadd.f32 %v3122_v26, %v2978_v12  ;;  %v691_v49 = vsel %vm619_vm1, %v9577_v46, 0.0  ;;  %v833_v55 = vsel %vm761_vm2, %v9416_v36, 0.0 }
 0x21d   : > { %v3188_v23 = vadd.f32 %v3124_v29, %v2980_v44  ;;  %v835_v54 = vsel %vm763_vm3, %v9416_v36, 0.0  ;;  %v897_v47 = vadd.f32 %v833_v55, %v689_v58  ;;  %vm969_vm4 = vcmp.eq.s32.totalorder %v9556_v40, %v5389_v53 }
 0x21e   : > { %vm971_vm5 = vcmp.eq.s32.totalorder %v6981_v16, %v5389_v53  ;;  %v3394_v22 = vadd.f32 %v3330_v45, %v3186_v50  ;;  %v899_v60 = vadd.f32 %v835_v54, %v691_v49  ;;  %v1041_v62 = vsel %vm969_vm4, %v9387_v52, 0.0 }
 0x21f   : > { %v3396_v20 = vadd.f32 %v3332_v4, %v3188_v23  ;;  %v1043_v44 = vsel %vm971_vm5, %v9387_v52, 0.0  ;;  %v1105_v12 = vadd.f32 %v1041_v62, %v897_v47  ;;  %vm1177_vm6 = vcmp.eq.s32.totalorder %v9556_v40, %v9388_v5 }
 0x220   : > { %vm1179_vm7 = vcmp.eq.s32.totalorder %v6981_v16, %v9388_v5  ;;  %v3602_v26 = vadd.f32 %v3538_v57, %v3394_v22  ;;  %v1107_v58 = vadd.f32 %v1043_v44, %v899_v60  ;;  %v1249_v55 = vsel %vm1177_vm6, %v9389_v48, 0.0 }
 0x221   : > { %v3604_v29 = vadd.f32 %v3540_v14, %v3396_v20  ;;  %v1251_v50 = vsel %vm1179_vm7, %v9389_v48, 0.0  ;;  %v1313_v23 = vadd.f32 %v1249_v55, %v1105_v12  ;;  %vm1385_vm8 = vcmp.eq.s32.totalorder %v9556_v40, %v9390_v39 }
 0x222   : > { %vm1387_vm9 = vcmp.eq.s32.totalorder %v6981_v16, %v9390_v39  ;;  %v3810_v45 = vadd.f32 %v3746_v6, %v3602_v26  ;;  %v1315_v62 = vadd.f32 %v1251_v50, %v1107_v58  ;;  %v1457_v49 = vsel %vm1385_vm8, %v9391_v8, 0.0 }
 0x223   : > { %v3812_v4 = vadd.f32 %v3748_v42, %v3604_v29  ;;  %v1459_v22 = vsel %vm1387_vm9, %v9391_v8, 0.0  ;;  %v1521_v20 = vadd.f32 %v1457_v49, %v1313_v23  ;;  %vm1593_vm10 = vcmp.eq.s32.totalorder %v9556_v40, %v5427_v24 }
 0x224   : > { %vm1595_vm11 = vcmp.eq.s32.totalorder %v6981_v16, %v5427_v24  ;;  %v1523_v57 = vadd.f32 %v1459_v22, %v1315_v62  ;;  %v1665_v14 = vsel %vm1593_vm10, %v9392_v9, 0.0  ;;  %vm1801_vm12 = vcmp.eq.s32.totalorder %v9556_v40, %v9393_v10 }
 0x225   : > { %v4543_v60 = vpack.c.bf16 %v3812_v4, %v3810_v45  ;;  %v1667_v54 = vsel %vm1595_vm11, %v9392_v9, 0.0  ;;  %v1729_v6 = vadd.f32 %v1665_v14, %v1521_v20  ;;  %vm1803_vm13 = vcmp.eq.s32.totalorder %v6981_v16, %v9393_v10 }
 0x226   : > { %vm2009_vm14 = vcmp.eq.s32.totalorder %v9556_v40, %v9395_v0  ;;  %v1731_v42 = vadd.f32 %v1667_v54, %v1523_v57  ;;  %v1873_v47 = vsel %vm1801_vm12, %v9394_v30, 0.0  ;;  %v1875_v44 = vsel %vm1803_vm13, %v9394_v30, 0.0 }
 0x227   : > { %4544 = vmatprep.subr.bf16.mxu0 %v4543_v60  ;;  %vm2011_vm15 = vcmp.eq.s32.totalorder %v6981_v16, %v9395_v0  ;;  %v1937_v12 = vadd.f32 %v1873_v47, %v1729_v6  ;;  %v2081_v26 = vsel %vm2009_vm14, %v5465_v41, 0.0  ;;  %vm2217_vm0 = vcmp.eq.s32.totalorder %v9556_v40, %v5469_v28 }
 0x228   : > { %v2083_v29 = vsel %vm2011_vm15, %v5465_v41, 0.0  ;;  %v1939_v58 = vadd.f32 %v1875_v44, %v1731_v42  ;;  %vm2219_vm1 = vcmp.eq.s32.totalorder %v6981_v16, %v5469_v28  ;;  %v2289_v55 = vsel %vm2217_vm0, %v9396_v25, 0.0 }
 0x229   : > { %vm2425_vm2 = vcmp.eq.s32.totalorder %v9556_v40, %v9397_v31  ;;  %v2145_v50 = vadd.f32 %v2081_v26, %v1937_v12  ;;  %v2291_v23 = vsel %vm2219_vm1, %v9396_v25, 0.0  ;;  %vm2427_vm3 = vcmp.eq.s32.totalorder %v6981_v16, %v9397_v31 }
 0x22a   : > { %v2497_v45 = vsel %vm2425_vm2, %v9398_v37, 0.0  ;;  %v2147_v4 = vadd.f32 %v2083_v29, %v1939_v58  ;;  %v2499_v62 = vsel %vm2427_vm3, %v9398_v37, 0.0  ;;  %vm2633_vm4 = vcmp.eq.s32.totalorder %v9556_v40, %v9417_v11 }
 0x22b   : > { %vm2635_vm5 = vcmp.eq.s32.totalorder %v6981_v16, %v9417_v11  ;;  %v2353_v49 = vadd.f32 %v2289_v55, %v2145_v50  ;;  %v2705_v22 = vsel %vm2633_vm4, %v9418_v21, 0.0  ;;  %vm2841_vm6 = vcmp.eq.s32.totalorder %v9556_v40, %v9419_v15 }
 0x22c   : > { %v2707_v20 = vsel %vm2635_vm5, %v9418_v21, 0.0  ;;  %v2355_v60 = vadd.f32 %v2291_v23, %v2147_v4  ;;  %vm2843_vm7 = vcmp.eq.s32.totalorder %v6981_v16, %v9419_v15  ;;  %v2913_v57 = vsel %vm2841_vm6, %v9420_v1, 0.0  ;;  %v9579_v23 = vld [vmem:[#allocation73_spill] sm:$0xff] }
 0x22d   : > { %vm3049_vm8 = vcmp.eq.s32.totalorder %v9556_v40, %v9421_v7  ;;  %v2561_v14 = vadd.f32 %v2497_v45, %v2353_v49  ;;  %v2915_v54 = vsel %vm2843_vm7, %v9420_v1, 0.0  ;;  %vm3051_vm9 = vcmp.eq.s32.totalorder %v6981_v16, %v9421_v7  ;;  %v9580_v49 = vld [vmem:[#allocation14_spill] sm:$0xff] }
 0x22e   : > { %v3121_v6 = vsel %vm3049_vm8, %v9401_v59, 0.0  ;;  %v2563_v42 = vadd.f32 %v2499_v62, %v2355_v60  ;;  %v3123_v47 = vsel %vm3051_vm9, %v9401_v59, 0.0  ;;  %vm3257_vm10 = vcmp.eq.s32.totalorder %v9556_v40, %v9446_v3 }
 0x22f   : > { %vm3259_vm11 = vcmp.eq.s32.totalorder %v6981_v16, %v9446_v3  ;;  %v2769_v44 = vadd.f32 %v2705_v22, %v2561_v14  ;;  %v3329_v12 = vsel %vm3257_vm10, %v9527_v13, 0.0  ;;  %vm3465_vm12 = vcmp.eq.s32.totalorder %v9556_v40, %v9498_v63 }
 0x230   : > { %v3331_v26 = vsel %vm3259_vm11, %v9527_v13, 0.0  ;;  %v2771_v29 = vadd.f32 %v2707_v20, %v2563_v42  ;;  %vm3467_vm13 = vcmp.eq.s32.totalorder %v6981_v16, %v9498_v63  ;;  %v3537_v58 = vsel %vm3465_vm12, %v9499_v27, 0.0 }
 0x231   : > { %vm3673_vm14 = vcmp.eq.s32.totalorder %v9556_v40, %v9500_v61  ;;  %v2977_v55 = vadd.f32 %v2913_v57, %v2769_v44  ;;  %v3539_v50 = vsel %vm3467_vm13, %v9499_v27, 0.0  ;;  %vm3675_vm15 = vcmp.eq.s32.totalorder %v6981_v16, %v9500_v61 }
 0x232   : > { %v3745_v45 = vsel %vm3673_vm14, %v9579_v23, 0.0  ;;  %v2979_v4 = vadd.f32 %v2915_v54, %v2771_v29  ;;  %v3747_v62 = vsel %vm3675_vm15, %v9579_v23, 0.0  ;;  %v7176_v22 = vadd.s32 144, %v9580_v49  ;;  %v9586_v54 = vld [vmem:[#allocation18_spill] sm:$0xff]  ;;  %v9587_v29 = vld [vmem:[#allocation19_spill] sm:$0xff] }
 0x233   : > { %v7179_v20 = vadd.s32 152, %v9580_v49  ;;  %v3185_v60 = vadd.f32 %v3121_v6, %v2977_v55  ;;  %v7182_v14 = vadd.s32 160, %v9580_v49  ;;  %v7185_v57 = vadd.s32 168, %v9580_v49 }
 0x234   : > { %9581 = vst [vmem:[#allocation67_spill] sm:$0xff] %v7176_v22  ;;  %v7188_v42 = vadd.s32 176, %v9580_v49  ;;  %v3187_v44 = vadd.f32 %v3123_v47, %v2979_v4  ;;  %vm622_vm0 = vcmp.eq.s32.totalorder %v7176_v22, %v9586_v54  ;;  %vm766_vm2 = vcmp.eq.s32.totalorder %v7176_v22, %v9557_v2 }
 0x235   : > { %9582 = vst [vmem:[#allocation49_spill] sm:$0xff] %v7179_v20  ;;  %9583 = vst [vmem:[#allocation62_spill] sm:$0xff] %v7182_v14  ;;  %vm624_vm1 = vcmp.eq.s32.totalorder %v7179_v20, %v9586_v54  ;;  %v3393_v6 = vadd.f32 %v3329_v12, %v3185_v60  ;;  %v694_v55 = vsel %vm622_vm0, %v9587_v29, 0.0  ;;  %vm768_vm3 = vcmp.eq.s32.totalorder %v7179_v20, %v9557_v2 }
 0x236   : > { %9584 = vst [vmem:[#allocation63_spill] sm:$0xff] %v7185_v57  ;;  %9585 = vst [vmem:[#allocation64_spill] sm:$0xff] %v7188_v42  ;;  %v696_v16 = vsel %vm624_vm1, %v9587_v29, 0.0  ;;  %v3395_v40 = vadd.f32 %v3331_v26, %v3187_v44  ;;  %v838_v47 = vsel %vm766_vm2, %v9532_v51, 0.0  ;;  %v840_v4 = vsel %vm768_vm3, %v9532_v51, 0.0 }
 0x237   : > { %vm974_vm4 = vcmp.eq.s32.totalorder %v7176_v22, %v9558_v43  ;;  %v3601_v42 = vadd.f32 %v3537_v58, %v3393_v6  ;;  %v902_v49 = vadd.f32 %v838_v47, %v694_v55  ;;  %v904_v57 = vadd.f32 %v840_v4, %v696_v16  ;;  %v9588_v4 = vld [vmem:[#allocation27_spill] sm:$0xff] }
 0x238   : > { %vm976_vm5 = vcmp.eq.s32.totalorder %v7179_v20, %v9558_v43  ;;  %v3603_v12 = vadd.f32 %v3539_v50, %v3395_v40  ;;  %v1046_v60 = vsel %vm974_vm4, %v5144_v17, 0.0  ;;  %vm1182_vm6 = vcmp.eq.s32.totalorder %v7176_v22, %v5148_v18 }
 0x239   : > { %v1048_v29 = vsel %vm976_vm5, %v5144_v17, 0.0  ;;  %v3809_v26 = vadd.f32 %v3745_v45, %v3601_v42  ;;  %v1110_v44 = vadd.f32 %v1046_v60, %v902_v49  ;;  %vm1184_vm7 = vcmp.eq.s32.totalorder %v7179_v20, %v5148_v18 }
 0x23a   : > { %v1112_v51 = vadd.f32 %v1048_v29, %v904_v57  ;;  %v3811_v58 = vadd.f32 %v3747_v62, %v3603_v12  ;;  %v1254_v16 = vsel %vm1182_vm6, %v5152_v19, 0.0  ;;  %v1256_v6 = vsel %vm1184_vm7, %v5152_v19, 0.0 }
 0x23b   : > { %vm1390_vm8 = vcmp.eq.s32.totalorder %v7176_v22, %v5180_v32  ;;  %v1318_v40 = vadd.f32 %v1254_v16, %v1110_v44  ;;  %vm1392_vm9 = vcmp.eq.s32.totalorder %v7179_v20, %v5180_v32  ;;  %vm1598_vm10 = vcmp.eq.s32.totalorder %v7176_v22, %v5188_v34  ;;  %v9590_v16 = vld [vmem:[#allocation28_spill] sm:$0xff] }
 0x23c   : > { %v1320_v50 = vadd.f32 %v1256_v6, %v1112_v51  ;;  %v1462_v45 = vsel %vm1390_vm8, %v5184_v33, 0.0  ;;  %v4545_v49 = vpack.c.bf16 %v3811_v58, %v3809_v26  ;;  %v1464_v57 = vsel %vm1392_vm9, %v5184_v33, 0.0  ;;  %v9589_v26 = vld [vmem:[#allocation32_spill] sm:$0xff] }
 0x23d   : > { %vm1600_vm11 = vcmp.eq.s32.totalorder %v7179_v20, %v5188_v34  ;;  %v1526_v62 = vadd.f32 %v1462_v45, %v1318_v40  ;;  %v1670_v29 = vsel %vm1598_vm10, %v5192_v35, 0.0  ;;  %vm1806_vm12 = vcmp.eq.s32.totalorder %v7176_v22, %v5196_v38 }
 0x23e   : > { %v1528_v42 = vadd.f32 %v1464_v57, %v1320_v50  ;;  %v1672_v51 = vsel %vm1600_vm11, %v5192_v35, 0.0  ;;  %4546 = vmatpush1.bf16.msra.mxu0 %v4545_v49  ;;  %vm1808_vm13 = vcmp.eq.s32.totalorder %v7179_v20, %v5196_v38  ;;  %vm2014_vm14 = vcmp.eq.s32.totalorder %v7176_v22, %v5243_v56  ;;  %v9591_v50 = vld [vmem:[#allocation29_spill] sm:$0xff]  ;;  %v9592_v57 = vld [vmem:[#allocation30_spill] sm:$0xff]  ;;  %v9603_v38 = vld [vmem:[#allocation43_spill] sm:$0xff] }
 0x23f   : > { %vm2016_vm15 = vcmp.eq.s32.totalorder %v7179_v20, %v5243_v56  ;;  %v1734_v55 = vadd.f32 %v1670_v29, %v1526_v62  ;;  %v1878_v12 = vsel %vm1806_vm12, %v9588_v4, 0.0  ;;  %v1880_v60 = vsel %vm1808_vm13, %v9588_v4, 0.0  ;;  %v9593_v62 = vld [vmem:[#allocation34_spill] sm:$0xff]  ;;  %v9597_v56 = vld [vmem:[#allocation37_spill] sm:$0xff] }
 0x240   : > { %v1736_v47 = vadd.f32 %v1672_v51, %v1528_v42  ;;  %v2086_v44 = vsel %vm2014_vm14, %v9589_v26, 0.0  ;;  %v2088_v58 = vsel %vm2016_vm15, %v9589_v26, 0.0  ;;  %vm2222_vm0 = vcmp.eq.s32.totalorder %v7176_v22, %v9590_v16  ;;  %v9594_v51 = vld [vmem:[#allocation33_spill] sm:$0xff] }
 0x241   : > { %vm2224_vm1 = vcmp.eq.s32.totalorder %v7179_v20, %v9590_v16  ;;  %v1942_v6 = vadd.f32 %v1878_v12, %v1734_v55  ;;  %v2294_v45 = vsel %vm2222_vm0, %v9591_v50, 0.0  ;;  %vm2430_vm2 = vcmp.eq.s32.totalorder %v7176_v22, %v9592_v57  ;;  %v9595_v12 = vld [vmem:[#allocation35_spill] sm:$0xff]  ;;  %v9596_v16 = vld [vmem:[#allocation36_spill] sm:$0xff] }
 0x242   : > { %v1944_v40 = vadd.f32 %v1880_v60, %v1736_v47  ;;  %v2296_v49 = vsel %vm2224_vm1, %v9591_v50, 0.0  ;;  %vm2432_vm3 = vcmp.eq.s32.totalorder %v7179_v20, %v9592_v57  ;;  %vm2638_vm4 = vcmp.eq.s32.totalorder %v7176_v22, %v9593_v62 }
 0x243   : > { %vm2640_vm5 = vcmp.eq.s32.totalorder %v7179_v20, %v9593_v62  ;;  %v2150_v42 = vadd.f32 %v2086_v44, %v1942_v6  ;;  %v2502_v55 = vsel %vm2430_vm2, %v9594_v51, 0.0  ;;  %v2504_v47 = vsel %vm2432_vm3, %v9594_v51, 0.0  ;;  %v9599_v6 = vld [vmem:[#allocation40_spill] sm:$0xff]  ;;  %v9602_v51 = vld [vmem:[#allocation42_spill] sm:$0xff] }
 0x244   : > { %v2152_v29 = vadd.f32 %v2088_v58, %v1944_v40  ;;  %v2710_v60 = vsel %vm2638_vm4, %v9595_v12, 0.0  ;;  %v2712_v50 = vsel %vm2640_vm5, %v9595_v12, 0.0  ;;  %vm2846_vm6 = vcmp.eq.s32.totalorder %v7176_v22, %v9596_v16  ;;  %v9598_v58 = vld [vmem:[#allocation38_spill] sm:$0xff] }
 0x245   : > { %vm2848_vm7 = vcmp.eq.s32.totalorder %v7179_v20, %v9596_v16  ;;  %v2358_v57 = vadd.f32 %v2294_v45, %v2150_v42  ;;  %v2918_v62 = vsel %vm2846_vm6, %v9597_v56, 0.0  ;;  %vm3054_vm8 = vcmp.eq.s32.totalorder %v7176_v22, %v9598_v58  ;;  %v9600_v45 = vld [vmem:[#allocation39_spill] sm:$0xff] }
 0x246   : > { %v2360_v26 = vadd.f32 %v2296_v49, %v2152_v29  ;;  %v2920_v44 = vsel %vm2848_vm7, %v9597_v56, 0.0  ;;  %vm3056_vm9 = vcmp.eq.s32.totalorder %v7179_v20, %v9598_v58  ;;  %vm3262_vm10 = vcmp.eq.s32.totalorder %v7176_v22, %v9599_v6  ;;  %v9601_v29 = vld [vmem:[#allocation41_spill] sm:$0xff] }
 0x247   : > { %vm3264_vm11 = vcmp.eq.s32.totalorder %v7179_v20, %v9599_v6  ;;  %v2566_v40 = vadd.f32 %v2502_v55, %v2358_v57  ;;  %v3126_v49 = vsel %vm3054_vm8, %v9600_v45, 0.0  ;;  %v3128_v42 = vsel %vm3056_vm9, %v9600_v45, 0.0  ;;  %v9604_v57 = vld [vmem:[#allocation44_spill] sm:$0xff]  ;;  %v9605_v55 = vld [vmem:[#allocation46_spill] sm:$0xff] }
 0x248   : > { %v2568_v16 = vadd.f32 %v2504_v47, %v2360_v26  ;;  %v3334_v56 = vsel %vm3262_vm10, %v9601_v29, 0.0  ;;  %v3336_v12 = vsel %vm3264_vm11, %v9601_v29, 0.0  ;;  %vm3470_vm12 = vcmp.eq.s32.totalorder %v7176_v22, %v9602_v51  ;;  %v9607_v29 = vld [vmem:[#allocation48_spill] sm:$0xff] }
 0x249   : > { %vm3472_vm13 = vcmp.eq.s32.totalorder %v7179_v20, %v9602_v51  ;;  %v2774_v58 = vadd.f32 %v2710_v60, %v2566_v40  ;;  %v3542_v6 = vsel %vm3470_vm12, %v9603_v38, 0.0  ;;  %vm3678_vm14 = vcmp.eq.s32.totalorder %v7176_v22, %v9604_v57  ;;  %v9606_v60 = vld [vmem:[#allocation45_spill] sm:$0xff] }
 0x24a   : > { %v2776_v4 = vadd.f32 %v2712_v50, %v2568_v16  ;;  %v3544_v26 = vsel %vm3472_vm13, %v9603_v38, 0.0  ;;  %vm3680_vm15 = vcmp.eq.s32.totalorder %v7179_v20, %v9604_v57  ;;  %vm621_vm0 = vcmp.eq.s32.totalorder %v7176_v22, %v9605_v55 }
 0x24b   : > { %vm623_vm1 = vcmp.eq.s32.totalorder %v7179_v20, %v9605_v55  ;;  %v2982_v47 = vadd.f32 %v2918_v62, %v2774_v58  ;;  %v3750_v16 = vsel %vm3678_vm14, %v9606_v60, 0.0  ;;  %v3752_v50 = vsel %vm3680_vm15, %v9606_v60, 0.0 }
 0x24c   : > { %v2984_v51 = vadd.f32 %v2920_v44, %v2776_v4  ;;  %v693_v40 = vsel %vm621_vm0, %v9577_v46, 0.0  ;;  %v695_v38 = vsel %vm623_vm1, %v9577_v46, 0.0  ;;  %vm765_vm2 = vcmp.eq.s32.totalorder %v7176_v22, %v9607_v29 }
 0x24d   : > { %vm767_vm3 = vcmp.eq.s32.totalorder %v7179_v20, %v9607_v29  ;;  %v3190_v57 = vadd.f32 %v3126_v49, %v2982_v47  ;;  %v837_v55 = vsel %vm765_vm2, %v9416_v36, 0.0  ;;  %vm973_vm4 = vcmp.eq.s32.totalorder %v7176_v22, %v5389_v53 }
 0x24e   : > { %v3192_v45 = vadd.f32 %v3128_v42, %v2984_v51  ;;  %v839_v4 = vsel %vm767_vm3, %v9416_v36, 0.0  ;;  %v901_v62 = vadd.f32 %v837_v55, %v693_v40  ;;  %vm975_vm5 = vcmp.eq.s32.totalorder %v7179_v20, %v5389_v53 }
 0x24f   : > { %v903_v44 = vadd.f32 %v839_v4, %v695_v38  ;;  %v3398_v58 = vadd.f32 %v3334_v56, %v3190_v57  ;;  %v1045_v60 = vsel %vm973_vm4, %v9387_v52, 0.0  ;;  %v1047_v29 = vsel %vm975_vm5, %v9387_v52, 0.0 }
 0x250   : > { %v3400_v46 = vadd.f32 %v3336_v12, %v3192_v45  ;;  %v1109_v49 = vadd.f32 %v1045_v60, %v901_v62  ;;  %vm1181_vm6 = vcmp.eq.s32.totalorder %v7176_v22, %v9388_v5  ;;  %vm1183_vm7 = vcmp.eq.s32.totalorder %v7179_v20, %v9388_v5 }
 0x251   : > { %v1111_v51 = vadd.f32 %v1047_v29, %v903_v44  ;;  %v3606_v38 = vadd.f32 %v3542_v6, %v3398_v58  ;;  %v1253_v55 = vsel %vm1181_vm6, %v9389_v48, 0.0  ;;  %v1255_v47 = vsel %vm1183_vm7, %v9389_v48, 0.0 }
 0x252   : > { %v3608_v42 = vadd.f32 %v3544_v26, %v3400_v46  ;;  %v1317_v56 = vadd.f32 %v1253_v55, %v1109_v49  ;;  %vm1389_vm8 = vcmp.eq.s32.totalorder %v7176_v22, %v9390_v39  ;;  %vm1391_vm9 = vcmp.eq.s32.totalorder %v7179_v20, %v9390_v39 }
 0x253   : > { %v1319_v12 = vadd.f32 %v1255_v47, %v1111_v51  ;;  %v3814_v45 = vadd.f32 %v3750_v16, %v3606_v38  ;;  %v1461_v57 = vsel %vm1389_vm8, %v9391_v8, 0.0  ;;  %v1463_v60 = vsel %vm1391_vm9, %v9391_v8, 0.0 }
 0x254   : > { %v3816_v29 = vadd.f32 %v3752_v50, %v3608_v42  ;;  %v1525_v6 = vadd.f32 %v1461_v57, %v1317_v56  ;;  %vm1597_vm10 = vcmp.eq.s32.totalorder %v7176_v22, %v5427_v24  ;;  %vm1599_vm11 = vcmp.eq.s32.totalorder %v7179_v20, %v5427_v24 }
 0x255   : > { %v1527_v46 = vadd.f32 %v1463_v60, %v1319_v12  ;;  %v1669_v40 = vsel %vm1597_vm10, %v9392_v9, 0.0  ;;  %v1671_v4 = vsel %vm1599_vm11, %v9392_v9, 0.0  ;;  %vm1805_vm12 = vcmp.eq.s32.totalorder %v7176_v22, %v9393_v10 }
 0x256   : > { %v4547_v26 = vpack.c.bf16 %v3816_v29, %v3814_v45  ;;  %v1733_v16 = vadd.f32 %v1669_v40, %v1525_v6  ;;  %vm1807_vm13 = vcmp.eq.s32.totalorder %v7179_v20, %v9393_v10  ;;  %v1877_v62 = vsel %vm1805_vm12, %v9394_v30, 0.0 }
 0x257   : > { %v1735_v50 = vadd.f32 %v1671_v4, %v1527_v46  ;;  %v1879_v44 = vsel %vm1807_vm13, %v9394_v30, 0.0  ;;  %vm2013_vm14 = vcmp.eq.s32.totalorder %v7176_v22, %v9395_v0  ;;  %vm2015_vm15 = vcmp.eq.s32.totalorder %v7179_v20, %v9395_v0 }
 0x258   : > { %4548 = vmatprep.subr.bf16.mxu0 %v4547_v26  ;;  %vm2221_vm0 = vcmp.eq.s32.totalorder %v7176_v22, %v5469_v28  ;;  %v1941_v58 = vadd.f32 %v1877_v62, %v1733_v16  ;;  %v2085_v51 = vsel %vm2013_vm14, %v5465_v41, 0.0  ;;  %v2087_v38 = vsel %vm2015_vm15, %v5465_v41, 0.0 }
 0x259   : > { %v1943_v49 = vadd.f32 %v1879_v44, %v1735_v50  ;;  %vm2223_vm1 = vcmp.eq.s32.totalorder %v7179_v20, %v5469_v28  ;;  %v2293_v42 = vsel %vm2221_vm0, %v9396_v25, 0.0  ;;  %vm2429_vm2 = vcmp.eq.s32.totalorder %v7176_v22, %v9397_v31 }
 0x25a   : > { %vm2431_vm3 = vcmp.eq.s32.totalorder %v7179_v20, %v9397_v31  ;;  %v2149_v55 = vadd.f32 %v2085_v51, %v1941_v58  ;;  %v2295_v56 = vsel %vm2223_vm1, %v9396_v25, 0.0  ;;  %v2501_v12 = vsel %vm2429_vm2, %v9398_v37, 0.0 }
 0x25b   : > { %v2151_v47 = vadd.f32 %v2087_v38, %v1943_v49  ;;  %v2503_v45 = vsel %vm2431_vm3, %v9398_v37, 0.0  ;;  %vm2637_vm4 = vcmp.eq.s32.totalorder %v7176_v22, %v9417_v11  ;;  %vm2639_vm5 = vcmp.eq.s32.totalorder %v7179_v20, %v9417_v11 }
 0x25c   : > { %vm2845_vm6 = vcmp.eq.s32.totalorder %v7176_v22, %v9419_v15  ;;  %v2357_v29 = vadd.f32 %v2293_v42, %v2149_v55  ;;  %v2709_v60 = vsel %vm2637_vm4, %v9418_v21, 0.0  ;;  %v2711_v6 = vsel %vm2639_vm5, %v9418_v21, 0.0 }
 0x25d   : > { %v2359_v57 = vadd.f32 %v2295_v56, %v2151_v47  ;;  %vm2847_vm7 = vcmp.eq.s32.totalorder %v7179_v20, %v9419_v15  ;;  %v2917_v46 = vsel %vm2845_vm6, %v9420_v1, 0.0  ;;  %vm3053_vm8 = vcmp.eq.s32.totalorder %v7176_v22, %v9421_v7 }
 0x25e   : > { %vm3055_vm9 = vcmp.eq.s32.totalorder %v7179_v20, %v9421_v7  ;;  %v2565_v26 = vadd.f32 %v2501_v12, %v2357_v29  ;;  %v2919_v4 = vsel %vm2847_vm7, %v9420_v1, 0.0  ;;  %v3125_v16 = vsel %vm3053_vm8, %v9401_v59, 0.0  ;;  %v9608_v12 = vld [vmem:[#allocation63_spill] sm:$0xff] }
 0x25f   : > { %v2567_v40 = vadd.f32 %v2503_v45, %v2359_v57  ;;  %v3127_v50 = vsel %vm3055_vm9, %v9401_v59, 0.0  ;;  %vm3261_vm10 = vcmp.eq.s32.totalorder %v7176_v22, %v9446_v3  ;;  %vm3263_vm11 = vcmp.eq.s32.totalorder %v7179_v20, %v9446_v3  ;;  %v9609_v57 = vld [vmem:[#allocation19_spill] sm:$0xff] }
 0x260   : > { %vm3469_vm12 = vcmp.eq.s32.totalorder %v7176_v22, %v9498_v63  ;;  %v2773_v62 = vadd.f32 %v2709_v60, %v2565_v26  ;;  %v3333_v58 = vsel %vm3261_vm10, %v9527_v13, 0.0  ;;  %v3335_v49 = vsel %vm3263_vm11, %v9527_v13, 0.0 }
 0x261   : > { %v2775_v44 = vadd.f32 %v2711_v6, %v2567_v40  ;;  %vm3471_vm13 = vcmp.eq.s32.totalorder %v7179_v20, %v9498_v63  ;;  %v3541_v51 = vsel %vm3469_vm12, %v9499_v27, 0.0  ;;  %vm3677_vm14 = vcmp.eq.s32.totalorder %v7176_v22, %v9500_v61 }
 0x262   : > { %vm3679_vm15 = vcmp.eq.s32.totalorder %v7179_v20, %v9500_v61  ;;  %v2981_v38 = vadd.f32 %v2917_v46, %v2773_v62  ;;  %v3543_v55 = vsel %vm3471_vm13, %v9499_v27, 0.0  ;;  %v3749_v47 = vsel %vm3677_vm14, %v9579_v23, 0.0  ;;  %v9610_v46 = vld [vmem:[#allocation21_spill] sm:$0xff] }
 0x263   : > { %v2983_v42 = vadd.f32 %v2919_v4, %v2775_v44  ;;  %v3751_v56 = vsel %vm3679_vm15, %v9579_v23, 0.0  ;;  %vm626_vm0 = vcmp.eq.s32.totalorder %v7182_v14, %v9586_v54  ;;  %vm628_vm1 = vcmp.eq.s32.totalorder %v9608_v12, %v9586_v54 }
 0x264   : > { %vm770_vm2 = vcmp.eq.s32.totalorder %v7182_v14, %v9557_v2  ;;  %v3189_v45 = vadd.f32 %v3125_v16, %v2981_v38  ;;  %v698_v60 = vsel %vm626_vm0, %v9609_v57, 0.0  ;;  %v700_v6 = vsel %vm628_vm1, %v9609_v57, 0.0 }
 0x265   : > { %v3191_v29 = vadd.f32 %v3127_v50, %v2983_v42  ;;  %vm772_vm3 = vcmp.eq.s32.totalorder %v9608_v12, %v9557_v2  ;;  %v842_v26 = vsel %vm770_vm2, %v9610_v46, 0.0  ;;  %vm978_vm4 = vcmp.eq.s32.totalorder %v7182_v14, %v9558_v43 }
 0x266   : > { %vm980_vm5 = vcmp.eq.s32.totalorder %v9608_v12, %v9558_v43  ;;  %v3397_v40 = vadd.f32 %v3333_v58, %v3189_v45  ;;  %v844_v16 = vsel %vm772_vm3, %v9610_v46, 0.0  ;;  %v906_v50 = vadd.f32 %v842_v26, %v698_v60 }
 0x267   : > { %v3399_v4 = vadd.f32 %v3335_v49, %v3191_v29  ;;  %v908_v62 = vadd.f32 %v844_v16, %v700_v6  ;;  %v1050_v44 = vsel %vm978_vm4, %v5144_v17, 0.0  ;;  %v1052_v38 = vsel %vm980_vm5, %v5144_v17, 0.0 }
 0x268   : > { %vm1186_vm6 = vcmp.eq.s32.totalorder %v7182_v14, %v5148_v18  ;;  %v3605_v42 = vadd.f32 %v3541_v51, %v3397_v40  ;;  %v1114_v22 = vadd.f32 %v1050_v44, %v906_v50  ;;  %vm1188_vm7 = vcmp.eq.s32.totalorder %v9608_v12, %v5148_v18 }
 0x269   : > { %v3607_v20 = vadd.f32 %v3543_v55, %v3399_v4  ;;  %v1116_v57 = vadd.f32 %v1052_v38, %v908_v62  ;;  %v1258_v58 = vsel %vm1186_vm6, %v5152_v19, 0.0  ;;  %v1260_v49 = vsel %vm1188_vm7, %v5152_v19, 0.0  ;;  %v9612_v4 = vld [vmem:[#allocation27_spill] sm:$0xff]  ;;  %v9614_v38 = vld [vmem:[#allocation32_spill] sm:$0xff] }
 0x26a   : > { %vm1394_vm8 = vcmp.eq.s32.totalorder %v7182_v14, %v5180_v32  ;;  %v3813_v45 = vadd.f32 %v3749_v47, %v3605_v42  ;;  %v1322_v60 = vadd.f32 %v1258_v58, %v1114_v22  ;;  %vm1396_vm9 = vcmp.eq.s32.totalorder %v9608_v12, %v5180_v32  ;;  %v9613_v62 = vld [vmem:[#allocation31_spill] sm:$0xff]  ;;  %v9615_v58 = vld [vmem:[#allocation28_spill] sm:$0xff] }
 0x26b   : > { %v3815_v29 = vadd.f32 %v3751_v56, %v3607_v20  ;;  %v1324_v51 = vadd.f32 %v1260_v49, %v1116_v57  ;;  %v1466_v55 = vsel %vm1394_vm8, %v5184_v33, 0.0  ;;  %v1468_v6 = vsel %vm1396_vm9, %v5184_v33, 0.0  ;;  %v9611_v56 = vld [vmem:[#allocation26_spill] sm:$0xff] }
 0x26c   : > { %vm1602_vm10 = vcmp.eq.s32.totalorder %v7182_v14, %v5188_v34  ;;  %v1530_v40 = vadd.f32 %v1466_v55, %v1322_v60  ;;  %vm1604_vm11 = vcmp.eq.s32.totalorder %v9608_v12, %v5188_v34  ;;  %vm1810_vm12 = vcmp.eq.s32.totalorder %v7182_v14, %v9611_v56 }
 0x26d   : > { %v4549_v26 = vpack.c.bf16 %v3815_v29, %v3813_v45  ;;  %v1674_v47 = vsel %vm1602_vm10, %v5192_v35, 0.0  ;;  %v1532_v20 = vadd.f32 %v1468_v6, %v1324_v51  ;;  %v1676_v22 = vsel %vm1604_vm11, %v5192_v35, 0.0  ;;  %v9616_v29 = vld [vmem:[#allocation29_spill] sm:$0xff]  ;;  %v9617_v6 = vld [vmem:[#allocation30_spill] sm:$0xff] }
 0x26e   : > { %vm1812_vm13 = vcmp.eq.s32.totalorder %v9608_v12, %v9611_v56  ;;  %v1738_v57 = vadd.f32 %v1674_v47, %v1530_v40  ;;  %v1882_v16 = vsel %vm1810_vm12, %v9612_v4, 0.0  ;;  %vm2018_vm14 = vcmp.eq.s32.totalorder %v7182_v14, %v9613_v62  ;;  %v9618_v40 = vld [vmem:[#allocation33_spill] sm:$0xff] }
 0x26f   : > { %4550 = vmatpush1.bf16.msra.mxu0 %v4549_v26  ;;  %v1884_v50 = vsel %vm1812_vm13, %v9612_v4, 0.0  ;;  %v1740_v44 = vadd.f32 %v1676_v22, %v1532_v20  ;;  %vm2020_vm15 = vcmp.eq.s32.totalorder %v9608_v12, %v9613_v62  ;;  %v2090_v42 = vsel %vm2018_vm14, %v9614_v38, 0.0  ;;  %v9619_v22 = vld [vmem:[#allocation34_spill] sm:$0xff] }
 0x270   : > { %vm2226_vm0 = vcmp.eq.s32.totalorder %v7182_v14, %v9615_v58  ;;  %v1946_v49 = vadd.f32 %v1882_v16, %v1738_v57  ;;  %v2092_v45 = vsel %vm2020_vm15, %v9614_v38, 0.0  ;;  %vm2228_vm1 = vcmp.eq.s32.totalorder %v9608_v12, %v9615_v58  ;;  %v9620_v16 = vld [vmem:[#allocation35_spill] sm:$0xff] }
 0x271   : > { %v2298_v60 = vsel %vm2226_vm0, %v9616_v29, 0.0  ;;  %v1948_v51 = vadd.f32 %v1884_v50, %v1740_v44  ;;  %v2300_v55 = vsel %vm2228_vm1, %v9616_v29, 0.0  ;;  %vm2434_vm2 = vcmp.eq.s32.totalorder %v7182_v14, %v9617_v6  ;;  %v9621_v44 = vld [vmem:[#allocation36_spill] sm:$0xff] }
 0x272   : > { %vm2436_vm3 = vcmp.eq.s32.totalorder %v9608_v12, %v9617_v6  ;;  %v2154_v26 = vadd.f32 %v2090_v42, %v1946_v49  ;;  %v2506_v47 = vsel %vm2434_vm2, %v9618_v40, 0.0  ;;  %vm2642_vm4 = vcmp.eq.s32.totalorder %v7182_v14, %v9619_v22  ;;  %v9622_v42 = vld [vmem:[#allocation37_spill] sm:$0xff] }
 0x273   : > { %v2508_v20 = vsel %vm2436_vm3, %v9618_v40, 0.0  ;;  %v2156_v57 = vadd.f32 %v2092_v45, %v1948_v51  ;;  %vm2644_vm5 = vcmp.eq.s32.totalorder %v9608_v12, %v9619_v22  ;;  %v2714_v50 = vsel %vm2642_vm4, %v9620_v16, 0.0  ;;  %v9623_v45 = vld [vmem:[#allocation38_spill] sm:$0xff]  ;;  %v9624_v22 = vld [vmem:[#allocation39_spill] sm:$0xff] }
 0x274   : > { %vm2850_vm6 = vcmp.eq.s32.totalorder %v7182_v14, %v9621_v44  ;;  %v2362_v29 = vadd.f32 %v2298_v60, %v2154_v26  ;;  %v2716_v6 = vsel %vm2644_vm5, %v9620_v16, 0.0  ;;  %vm2852_vm7 = vcmp.eq.s32.totalorder %v9608_v12, %v9621_v44  ;;  %v9625_v26 = vld [vmem:[#allocation40_spill] sm:$0xff] }
 0x275   : > { %v2922_v49 = vsel %vm2850_vm6, %v9622_v42, 0.0  ;;  %v2364_v40 = vadd.f32 %v2300_v55, %v2156_v57  ;;  %v2924_v58 = vsel %vm2852_vm7, %v9622_v42, 0.0  ;;  %vm3058_vm8 = vcmp.eq.s32.totalorder %v7182_v14, %v9623_v45  ;;  %v9626_v55 = vld [vmem:[#allocation41_spill] sm:$0xff]  ;;  %v9627_v42 = vld [vmem:[#allocation42_spill] sm:$0xff] }
 0x276   : > { %vm3060_vm9 = vcmp.eq.s32.totalorder %v9608_v12, %v9623_v45  ;;  %v2570_v51 = vadd.f32 %v2506_v47, %v2362_v29  ;;  %v3130_v38 = vsel %vm3058_vm8, %v9624_v22, 0.0  ;;  %vm3266_vm10 = vcmp.eq.s32.totalorder %v7182_v14, %v9625_v26  ;;  %v9628_v29 = vld [vmem:[#allocation43_spill] sm:$0xff] }
 0x277   : > { %v3132_v60 = vsel %vm3060_vm9, %v9624_v22, 0.0  ;;  %v2572_v44 = vadd.f32 %v2508_v20, %v2364_v40  ;;  %vm3268_vm11 = vcmp.eq.s32.totalorder %v9608_v12, %v9625_v26  ;;  %v3338_v57 = vsel %vm3266_vm10, %v9626_v55, 0.0  ;;  %v9629_v40 = vld [vmem:[#allocation44_spill] sm:$0xff]  ;;  %v9630_v26 = vld [vmem:[#allocation45_spill] sm:$0xff] }
 0x278   : > { %vm3474_vm12 = vcmp.eq.s32.totalorder %v7182_v14, %v9627_v42  ;;  %v2778_v16 = vadd.f32 %v2714_v50, %v2570_v51  ;;  %v3340_v45 = vsel %vm3268_vm11, %v9626_v55, 0.0  ;;  %vm3476_vm13 = vcmp.eq.s32.totalorder %v9608_v12, %v9627_v42  ;;  %v9631_v51 = vld [vmem:[#allocation46_spill] sm:$0xff] }
 0x279   : > { %v3546_v47 = vsel %vm3474_vm12, %v9628_v29, 0.0  ;;  %v2780_v22 = vadd.f32 %v2716_v6, %v2572_v44  ;;  %v3548_v4 = vsel %vm3476_vm13, %v9628_v29, 0.0  ;;  %vm3682_vm14 = vcmp.eq.s32.totalorder %v7182_v14, %v9629_v40  ;;  %v9632_v6 = vld [vmem:[#allocation47_spill] sm:$0xff]  ;;  %v9633_v29 = vld [vmem:[#allocation48_spill] sm:$0xff] }
 0x27a   : > { %vm3684_vm15 = vcmp.eq.s32.totalorder %v9608_v12, %v9629_v40  ;;  %v2986_v20 = vadd.f32 %v2922_v49, %v2778_v16  ;;  %v3754_v62 = vsel %vm3682_vm14, %v9630_v26, 0.0  ;;  %vm625_vm0 = vcmp.eq.s32.totalorder %v7182_v14, %v9631_v51 }
 0x27b   : > { %v3756_v50 = vsel %vm3684_vm15, %v9630_v26, 0.0  ;;  %v2988_v42 = vadd.f32 %v2924_v58, %v2780_v22  ;;  %vm627_vm1 = vcmp.eq.s32.totalorder %v9608_v12, %v9631_v51  ;;  %v697_v44 = vsel %vm625_vm0, %v9632_v6, 0.0 }
 0x27c   : > { %vm769_vm2 = vcmp.eq.s32.totalorder %v7182_v14, %v9633_v29  ;;  %v3194_v55 = vadd.f32 %v3130_v38, %v2986_v20  ;;  %v699_v40 = vsel %vm627_vm1, %v9632_v6, 0.0  ;;  %vm771_vm3 = vcmp.eq.s32.totalorder %v9608_v12, %v9633_v29 }
 0x27d   : > { %v841_v16 = vsel %vm769_vm2, %v9416_v36, 0.0  ;;  %v3196_v49 = vadd.f32 %v3132_v60, %v2988_v42  ;;  %v843_v26 = vsel %vm771_vm3, %v9416_v36, 0.0  ;;  %vm977_vm4 = vcmp.eq.s32.totalorder %v7182_v14, %v5389_v53 }
 0x27e   : > { %v905_v58 = vadd.f32 %v841_v16, %v697_v44  ;;  %v3402_v22 = vadd.f32 %v3338_v57, %v3194_v55  ;;  %v907_v51 = vadd.f32 %v843_v26, %v699_v40  ;;  %vm979_vm5 = vcmp.eq.s32.totalorder %v9608_v12, %v5389_v53 }
 0x27f   : > { %v1049_v38 = vsel %vm977_vm4, %v9387_v52, 0.0  ;;  %v3404_v20 = vadd.f32 %v3340_v45, %v3196_v49  ;;  %v1051_v6 = vsel %vm979_vm5, %v9387_v52, 0.0  ;;  %vm1185_vm6 = vcmp.eq.s32.totalorder %v7182_v14, %v9388_v5 }
 0x280   : > { %v1113_v29 = vadd.f32 %v1049_v38, %v905_v58  ;;  %v3610_v42 = vadd.f32 %v3546_v47, %v3402_v22  ;;  %v1115_v60 = vadd.f32 %v1051_v6, %v907_v51  ;;  %vm1187_vm7 = vcmp.eq.s32.totalorder %v9608_v12, %v9388_v5 }
 0x281   : > { %v1257_v55 = vsel %vm1185_vm6, %v9389_v48, 0.0  ;;  %v3612_v26 = vadd.f32 %v3548_v4, %v3404_v20  ;;  %v1259_v57 = vsel %vm1187_vm7, %v9389_v48, 0.0  ;;  %vm1393_vm8 = vcmp.eq.s32.totalorder %v7182_v14, %v9390_v39 }
 0x282   : > { %v1321_v40 = vadd.f32 %v1257_v55, %v1113_v29  ;;  %v3818_v45 = vadd.f32 %v3754_v62, %v3610_v42  ;;  %v1323_v44 = vadd.f32 %v1259_v57, %v1115_v60  ;;  %vm1395_vm9 = vcmp.eq.s32.totalorder %v9608_v12, %v9390_v39 }
 0x283   : > { %v1465_v47 = vsel %vm1393_vm8, %v9391_v8, 0.0  ;;  %v3820_v51 = vadd.f32 %v3756_v50, %v3612_v26  ;;  %v1467_v6 = vsel %vm1395_vm9, %v9391_v8, 0.0  ;;  %vm1601_vm10 = vcmp.eq.s32.totalorder %v7182_v14, %v5427_v24 }
 0x284   : > { %v1529_v16 = vadd.f32 %v1465_v47, %v1321_v40  ;;  %v1531_v4 = vadd.f32 %v1467_v6, %v1323_v44  ;;  %vm1603_vm11 = vcmp.eq.s32.totalorder %v9608_v12, %v5427_v24  ;;  %v1673_v29 = vsel %vm1601_vm10, %v9392_v9, 0.0 }
 0x285   : > { %vm1809_vm12 = vcmp.eq.s32.totalorder %v7182_v14, %v9393_v10  ;;  %v4551_v62 = vpack.c.bf16 %v3820_v51, %v3818_v45  ;;  %v1675_v49 = vsel %vm1603_vm11, %v9392_v9, 0.0  ;;  %vm1811_vm13 = vcmp.eq.s32.totalorder %v9608_v12, %v9393_v10 }
 0x286   : > { %v1737_v58 = vadd.f32 %v1673_v29, %v1529_v16  ;;  %v1739_v50 = vadd.f32 %v1675_v49, %v1531_v4  ;;  %v1881_v22 = vsel %vm1809_vm12, %v9394_v30, 0.0  ;;  %v1883_v38 = vsel %vm1811_vm13, %v9394_v30, 0.0 }
 0x287   : > { %vm2017_vm14 = vcmp.eq.s32.totalorder %v7182_v14, %v9395_v0  ;;  %4552 = vmatprep.subr.bf16.mxu0 %v4551_v62  ;;  %vm2019_vm15 = vcmp.eq.s32.totalorder %v9608_v12, %v9395_v0  ;;  %vm2225_vm0 = vcmp.eq.s32.totalorder %v7182_v14, %v5469_v28  ;;  %vm2227_vm1 = vcmp.eq.s32.totalorder %v9608_v12, %v5469_v28 }
 0x288   : > { %v1945_v20 = vadd.f32 %v1881_v22, %v1737_v58  ;;  %v2089_v42 = vsel %vm2017_vm14, %v5465_v41, 0.0  ;;  %v1947_v60 = vadd.f32 %v1883_v38, %v1739_v50  ;;  %v2091_v55 = vsel %vm2019_vm15, %v5465_v41, 0.0 }
 0x289   : > { %v2297_v26 = vsel %vm2225_vm0, %v9396_v25, 0.0  ;;  %v2299_v40 = vsel %vm2227_vm1, %v9396_v25, 0.0  ;;  %vm2433_vm2 = vcmp.eq.s32.totalorder %v7182_v14, %v9397_v31  ;;  %vm2435_vm3 = vcmp.eq.s32.totalorder %v9608_v12, %v9397_v31 }
 0x28a   : > { %v2153_v57 = vadd.f32 %v2089_v42, %v1945_v20  ;;  %v2155_v45 = vadd.f32 %v2091_v55, %v1947_v60  ;;  %v2505_v44 = vsel %vm2433_vm2, %v9398_v37, 0.0  ;;  %v2507_v47 = vsel %vm2435_vm3, %v9398_v37, 0.0 }
 0x28b   : > { %vm2641_vm4 = vcmp.eq.s32.totalorder %v7182_v14, %v9417_v11  ;;  %vm2643_vm5 = vcmp.eq.s32.totalorder %v9608_v12, %v9417_v11  ;;  %vm2849_vm6 = vcmp.eq.s32.totalorder %v7182_v14, %v9419_v15  ;;  %vm2851_vm7 = vcmp.eq.s32.totalorder %v9608_v12, %v9419_v15 }
 0x28c   : > { %v2361_v51 = vadd.f32 %v2297_v26, %v2153_v57  ;;  %v2713_v6 = vsel %vm2641_vm4, %v9418_v21, 0.0  ;;  %v2363_v16 = vadd.f32 %v2299_v40, %v2155_v45  ;;  %v2715_v4 = vsel %vm2643_vm5, %v9418_v21, 0.0 }
 0x28d   : > { %v2921_v29 = vsel %vm2849_vm6, %v9420_v1, 0.0  ;;  %v2923_v49 = vsel %vm2851_vm7, %v9420_v1, 0.0  ;;  %vm3057_vm8 = vcmp.eq.s32.totalorder %v7182_v14, %v9421_v7  ;;  %vm3059_vm9 = vcmp.eq.s32.totalorder %v9608_v12, %v9421_v7 }
 0x28e   : > { %v2569_v62 = vadd.f32 %v2505_v44, %v2361_v51  ;;  %v2571_v58 = vadd.f32 %v2507_v47, %v2363_v16  ;;  %v3129_v50 = vsel %vm3057_vm8, %v9401_v59, 0.0  ;;  %v3131_v22 = vsel %vm3059_vm9, %v9401_v59, 0.0  ;;  %v9634_v47 = vld [vmem:[#allocation14_spill] sm:$0xff]  ;;  %v9636_v16 = vld [vmem:[#allocation64_spill] sm:$0xff] }
 0x28f   : > { %vm3265_vm10 = vcmp.eq.s32.totalorder %v7182_v14, %v9446_v3  ;;  %vm3267_vm11 = vcmp.eq.s32.totalorder %v9608_v12, %v9446_v3  ;;  %vm3473_vm12 = vcmp.eq.s32.totalorder %v7182_v14, %v9498_v63  ;;  %vm3475_vm13 = vcmp.eq.s32.totalorder %v9608_v12, %v9498_v63 }
 0x290   : > { %v2777_v38 = vadd.f32 %v2713_v6, %v2569_v62  ;;  %v3337_v20 = vsel %vm3265_vm10, %v9527_v13, 0.0  ;;  %v2779_v42 = vadd.f32 %v2715_v4, %v2571_v58  ;;  %v3339_v60 = vsel %vm3267_vm11, %v9527_v13, 0.0 }
 0x291   : > { %v3545_v55 = vsel %vm3473_vm12, %v9499_v27, 0.0  ;;  %v3547_v57 = vsel %vm3475_vm13, %v9499_v27, 0.0  ;;  %vm3681_vm14 = vcmp.eq.s32.totalorder %v7182_v14, %v9500_v61  ;;  %vm3683_vm15 = vcmp.eq.s32.totalorder %v9608_v12, %v9500_v61 }
 0x292   : > { %v2985_v26 = vadd.f32 %v2921_v29, %v2777_v38  ;;  %v2987_v40 = vadd.f32 %v2923_v49, %v2779_v42  ;;  %v3753_v45 = vsel %vm3681_vm14, %v9579_v23, 0.0  ;;  %v3755_v44 = vsel %vm3683_vm15, %v9579_v23, 0.0  ;;  %v9637_v29 = vld [vmem:[#allocation19_spill] sm:$0xff] }
 0x293   : > { %v7575_v51 = vadd.s32 184, %v9634_v47  ;;  %vm630_vm0 = vcmp.eq.s32.totalorder %v9636_v16, %v9586_v54  ;;  %vm774_vm1 = vcmp.eq.s32.totalorder %v9636_v16, %v9557_v2  ;;  %vm982_vm2 = vcmp.eq.s32.totalorder %v9636_v16, %v9558_v43 }
 0x294   : > { %v3193_v6 = vadd.f32 %v3129_v50, %v2985_v26  ;;  %v3195_v4 = vadd.f32 %v3131_v22, %v2987_v40  ;;  %v702_v62 = vsel %vm630_vm0, %v9637_v29, 0.0  ;;  %v846_v50 = vsel %vm774_vm1, %v9610_v46, 0.0 }
 0x295   : > { %9635 = vst [vmem:[#allocation65_spill] sm:$0xff] %v7575_v51  ;;  %vm632_vm3 = vcmp.eq.s32.totalorder %v7575_v51, %v9586_v54  ;;  %vm776_vm4 = vcmp.eq.s32.totalorder %v7575_v51, %v9557_v2  ;;  %v910_v26 = vadd.f32 %v846_v50, %v702_v62  ;;  %vm984_vm5 = vcmp.eq.s32.totalorder %v7575_v51, %v9558_v43 }
 0x296   : > { %v3401_v49 = vadd.f32 %v3337_v20, %v3193_v6  ;;  %v704_v58 = vsel %vm632_vm3, %v9637_v29, 0.0  ;;  %v848_v38 = vsel %vm776_vm4, %v9610_v46, 0.0  ;;  %v3403_v42 = vadd.f32 %v3339_v60, %v3195_v4 }
 0x297   : > { %v912_v12 = vadd.f32 %v848_v38, %v704_v58  ;;  %v1054_v40 = vsel %vm982_vm2, %v5144_v17, 0.0  ;;  %v1056_v14 = vsel %vm984_vm5, %v5144_v17, 0.0  ;;  %vm1190_vm6 = vcmp.eq.s32.totalorder %v9636_v16, %v5148_v18  ;;  %v9638_v38 = vld [vmem:[#allocation31_spill] sm:$0xff] }
 0x298   : > { %v3609_v22 = vadd.f32 %v3545_v55, %v3401_v49  ;;  %v3611_v20 = vadd.f32 %v3547_v57, %v3403_v42  ;;  %v1118_v6 = vadd.f32 %v1054_v40, %v910_v26  ;;  %vm1192_vm7 = vcmp.eq.s32.totalorder %v7575_v51, %v5148_v18 }
 0x299   : > { %v1120_v29 = vadd.f32 %v1056_v14, %v912_v12  ;;  %v1262_v4 = vsel %vm1190_vm6, %v5152_v19, 0.0  ;;  %v1264_v62 = vsel %vm1192_vm7, %v5152_v19, 0.0  ;;  %vm1398_vm8 = vcmp.eq.s32.totalorder %v9636_v16, %v5180_v32 }
 0x29a   : > { %v3817_v60 = vadd.f32 %v3753_v45, %v3609_v22  ;;  %v3819_v55 = vadd.f32 %v3755_v44, %v3611_v20  ;;  %v1326_v49 = vadd.f32 %v1262_v4, %v1118_v6  ;;  %vm1400_vm9 = vcmp.eq.s32.totalorder %v7575_v51, %v5180_v32  ;;  %v9639_v22 = vld [vmem:[#allocation27_spill] sm:$0xff]  ;;  %v9640_v6 = vld [vmem:[#allocation32_spill] sm:$0xff] }
 0x29b   : > { %v1328_v58 = vadd.f32 %v1264_v62, %v1120_v29  ;;  %v1470_v57 = vsel %vm1398_vm8, %v5184_v33, 0.0  ;;  %v1472_v14 = vsel %vm1400_vm9, %v5184_v33, 0.0  ;;  %vm1606_vm10 = vcmp.eq.s32.totalorder %v9636_v16, %v5188_v34  ;;  %v9641_v4 = vld [vmem:[#allocation28_spill] sm:$0xff] }
 0x29c   : > { %vm1608_vm11 = vcmp.eq.s32.totalorder %v7575_v51, %v5188_v34  ;;  %v4553_v12 = vpack.c.bf16 %v3819_v55, %v3817_v60  ;;  %v1534_v45 = vadd.f32 %v1470_v57, %v1326_v49  ;;  %v1678_v44 = vsel %vm1606_vm10, %v5192_v35, 0.0 }
 0x29d   : > { %v1536_v50 = vadd.f32 %v1472_v14, %v1328_v58  ;;  %v1680_v29 = vsel %vm1608_vm11, %v5192_v35, 0.0  ;;  %vm1814_vm12 = vcmp.eq.s32.totalorder %v9636_v16, %v9611_v56  ;;  %vm1816_vm13 = vcmp.eq.s32.totalorder %v7575_v51, %v9611_v56  ;;  %v9642_v58 = vld [vmem:[#allocation29_spill] sm:$0xff] }
 0x29e   : > { %vm2022_vm14 = vcmp.eq.s32.totalorder %v9636_v16, %v9638_v38  ;;  %4554 = vmatpush1.bf16.msra.mxu0 %v4553_v12  ;;  %v1742_v42 = vadd.f32 %v1678_v44, %v1534_v45  ;;  %v1886_v40 = vsel %vm1814_vm12, %v9639_v22, 0.0  ;;  %v1888_v20 = vsel %vm1816_vm13, %v9639_v22, 0.0  ;;  %v9643_v12 = vld [vmem:[#allocation30_spill] sm:$0xff] }
 0x29f   : > { %v1744_v26 = vadd.f32 %v1680_v29, %v1536_v50  ;;  %vm2024_vm15 = vcmp.eq.s32.totalorder %v7575_v51, %v9638_v38  ;;  %v2094_v60 = vsel %vm2022_vm14, %v9640_v6, 0.0  ;;  %vm2230_vm0 = vcmp.eq.s32.totalorder %v9636_v16, %v9641_v4  ;;  %v9644_v45 = vld [vmem:[#allocation34_spill] sm:$0xff]  ;;  %v9645_v29 = vld [vmem:[#allocation33_spill] sm:$0xff] }
 0x2a0   : > { %vm2232_vm1 = vcmp.eq.s32.totalorder %v7575_v51, %v9641_v4  ;;  %v1950_v62 = vadd.f32 %v1886_v40, %v1742_v42  ;;  %v2096_v49 = vsel %vm2024_vm15, %v9640_v6, 0.0  ;;  %v2302_v57 = vsel %vm2230_vm0, %v9642_v58, 0.0  ;;  %v9646_v40 = vld [vmem:[#allocation35_spill] sm:$0xff] }
 0x2a1   : > { %v1952_v55 = vadd.f32 %v1888_v20, %v1744_v26  ;;  %v2304_v14 = vsel %vm2232_vm1, %v9642_v58, 0.0  ;;  %vm2438_vm2 = vcmp.eq.s32.totalorder %v9636_v16, %v9643_v12  ;;  %vm2440_vm3 = vcmp.eq.s32.totalorder %v7575_v51, %v9643_v12  ;;  %v9647_v58 = vld [vmem:[#allocation36_spill] sm:$0xff] }
 0x2a2   : > { %vm2646_vm4 = vcmp.eq.s32.totalorder %v9636_v16, %v9644_v45  ;;  %v2158_v50 = vadd.f32 %v2094_v60, %v1950_v62  ;;  %v2510_v42 = vsel %vm2438_vm2, %v9645_v29, 0.0  ;;  %v2512_v26 = vsel %vm2440_vm3, %v9645_v29, 0.0  ;;  %v9648_v62 = vld [vmem:[#allocation37_spill] sm:$0xff]  ;;  %v9649_v29 = vld [vmem:[#allocation38_spill] sm:$0xff] }
 0x2a3   : > { %v2160_v44 = vadd.f32 %v2096_v49, %v1952_v55  ;;  %vm2648_vm5 = vcmp.eq.s32.totalorder %v7575_v51, %v9644_v45  ;;  %v2718_v20 = vsel %vm2646_vm4, %v9646_v40, 0.0  ;;  %vm2854_vm6 = vcmp.eq.s32.totalorder %v9636_v16, %v9647_v58  ;;  %v9650_v45 = vld [vmem:[#allocation40_spill] sm:$0xff] }
 0x2a4   : > { %vm2856_vm7 = vcmp.eq.s32.totalorder %v7575_v51, %v9647_v58  ;;  %v2366_v12 = vadd.f32 %v2302_v57, %v2158_v50  ;;  %v2720_v60 = vsel %vm2648_vm5, %v9646_v40, 0.0  ;;  %v2926_v55 = vsel %vm2854_vm6, %v9648_v62, 0.0  ;;  %v9651_v58 = vld [vmem:[#allocation39_spill] sm:$0xff]  ;;  %v9652_v50 = vld [vmem:[#allocation41_spill] sm:$0xff] }
 0x2a5   : > { %v2368_v4 = vadd.f32 %v2304_v14, %v2160_v44  ;;  %v2928_v49 = vsel %vm2856_vm7, %v9648_v62, 0.0  ;;  %vm3062_vm8 = vcmp.eq.s32.totalorder %v9636_v16, %v9649_v29  ;;  %vm3064_vm9 = vcmp.eq.s32.totalorder %v7575_v51, %v9649_v29  ;;  %v9653_v62 = vld [vmem:[#allocation42_spill] sm:$0xff] }
 0x2a6   : > { %vm3270_vm10 = vcmp.eq.s32.totalorder %v9636_v16, %v9650_v45  ;;  %v2574_v6 = vadd.f32 %v2510_v42, %v2366_v12  ;;  %v3134_v57 = vsel %vm3062_vm8, %v9651_v58, 0.0  ;;  %v3136_v14 = vsel %vm3064_vm9, %v9651_v58, 0.0  ;;  %v9655_v58 = vld [vmem:[#allocation44_spill] sm:$0xff] }
 0x2a7   : > { %v2576_v22 = vadd.f32 %v2512_v26, %v2368_v4  ;;  %vm3272_vm11 = vcmp.eq.s32.totalorder %v7575_v51, %v9650_v45  ;;  %v3342_v44 = vsel %vm3270_vm10, %v9652_v50, 0.0  ;;  %vm3478_vm12 = vcmp.eq.s32.totalorder %v9636_v16, %v9653_v62  ;;  %v9654_v4 = vld [vmem:[#allocation43_spill] sm:$0xff]  ;;  %v9656_v45 = vld [vmem:[#allocation46_spill] sm:$0xff] }
 0x2a8   : > { %vm3480_vm13 = vcmp.eq.s32.totalorder %v7575_v51, %v9653_v62  ;;  %v2782_v29 = vadd.f32 %v2718_v20, %v2574_v6  ;;  %v3344_v12 = vsel %vm3272_vm11, %v9652_v50, 0.0  ;;  %v3550_v42 = vsel %vm3478_vm12, %v9654_v4, 0.0  ;;  %v9657_v62 = vld [vmem:[#allocation45_spill] sm:$0xff]  ;;  %v9658_v20 = vld [vmem:[#allocation47_spill] sm:$0xff] }
 0x2a9   : > { %v2784_v40 = vadd.f32 %v2720_v60, %v2576_v22  ;;  %v3552_v26 = vsel %vm3480_vm13, %v9654_v4, 0.0  ;;  %vm3686_vm14 = vcmp.eq.s32.totalorder %v9636_v16, %v9655_v58  ;;  %vm3688_vm15 = vcmp.eq.s32.totalorder %v7575_v51, %v9655_v58  ;;  %v9659_v4 = vld [vmem:[#allocation48_spill] sm:$0xff] }
 0x2aa   : > { %vm629_vm0 = vcmp.eq.s32.totalorder %v9636_v16, %v9656_v45  ;;  %v2990_v38 = vadd.f32 %v2926_v55, %v2782_v29  ;;  %v3758_v6 = vsel %vm3686_vm14, %v9657_v62, 0.0  ;;  %v3760_v22 = vsel %vm3688_vm15, %v9657_v62, 0.0 }
 0x2ab   : > { %v2992_v56 = vadd.f32 %v2928_v49, %v2784_v40  ;;  %vm631_vm1 = vcmp.eq.s32.totalorder %v7575_v51, %v9656_v45  ;;  %v701_v60 = vsel %vm629_vm0, %v9658_v20, 0.0  ;;  %vm773_vm2 = vcmp.eq.s32.totalorder %v9636_v16, %v9659_v4 }
 0x2ac   : > { %vm775_vm3 = vcmp.eq.s32.totalorder %v7575_v51, %v9659_v4  ;;  %v3198_v58 = vadd.f32 %v3134_v57, %v2990_v38  ;;  %v703_v29 = vsel %vm631_vm1, %v9658_v20, 0.0  ;;  %v845_v40 = vsel %vm773_vm2, %v9416_v36, 0.0 }
 0x2ad   : > { %v3200_v50 = vadd.f32 %v3136_v14, %v2992_v56  ;;  %v847_v55 = vsel %vm775_vm3, %v9416_v36, 0.0  ;;  %v909_v49 = vadd.f32 %v845_v40, %v701_v60  ;;  %vm981_vm4 = vcmp.eq.s32.totalorder %v9636_v16, %v5389_v53 }
 0x2ae   : > { %vm983_vm5 = vcmp.eq.s32.totalorder %v7575_v51, %v5389_v53  ;;  %v3406_v62 = vadd.f32 %v3342_v44, %v3198_v58  ;;  %v911_v35 = vadd.f32 %v847_v55, %v703_v29  ;;  %v1053_v4 = vsel %vm981_vm4, %v9387_v52, 0.0 }
 0x2af   : > { %v3408_v45 = vadd.f32 %v3344_v12, %v3200_v50  ;;  %v1055_v56 = vsel %vm983_vm5, %v9387_v52, 0.0  ;;  %v1117_v38 = vadd.f32 %v1053_v4, %v909_v49  ;;  %vm1189_vm6 = vcmp.eq.s32.totalorder %v9636_v16, %v9388_v5 }
 0x2b0   : > { %vm1191_vm7 = vcmp.eq.s32.totalorder %v7575_v51, %v9388_v5  ;;  %v3614_v57 = vadd.f32 %v3550_v42, %v3406_v62  ;;  %v1119_v60 = vadd.f32 %v1055_v56, %v911_v35  ;;  %v1261_v40 = vsel %vm1189_vm6, %v9389_v48, 0.0 }
 0x2b1   : > { %v3616_v14 = vadd.f32 %v3552_v26, %v3408_v45  ;;  %v1263_v58 = vsel %vm1191_vm7, %v9389_v48, 0.0  ;;  %v1325_v50 = vadd.f32 %v1261_v40, %v1117_v38  ;;  %vm1397_vm8 = vcmp.eq.s32.totalorder %v9636_v16, %v9390_v39 }
 0x2b2   : > { %vm1399_vm9 = vcmp.eq.s32.totalorder %v7575_v51, %v9390_v39  ;;  %v3822_v44 = vadd.f32 %v3758_v6, %v3614_v57  ;;  %v1327_v4 = vadd.f32 %v1263_v58, %v1119_v60  ;;  %v1469_v29 = vsel %vm1397_vm8, %v9391_v8, 0.0 }
 0x2b3   : > { %v3824_v12 = vadd.f32 %v3760_v22, %v3616_v14  ;;  %v1471_v62 = vsel %vm1399_vm9, %v9391_v8, 0.0  ;;  %v1533_v45 = vadd.f32 %v1469_v29, %v1325_v50  ;;  %vm1605_vm10 = vcmp.eq.s32.totalorder %v9636_v16, %v5427_v24 }
 0x2b4   : > { %vm1607_vm11 = vcmp.eq.s32.totalorder %v7575_v51, %v5427_v24  ;;  %v1535_v42 = vadd.f32 %v1471_v62, %v1327_v4  ;;  %v1677_v26 = vsel %vm1605_vm10, %v9392_v9, 0.0  ;;  %vm1813_vm12 = vcmp.eq.s32.totalorder %v9636_v16, %v9393_v10 }
 0x2b5   : > { %v4555_v35 = vpack.c.bf16 %v3824_v12, %v3822_v44  ;;  %v1679_v55 = vsel %vm1607_vm11, %v9392_v9, 0.0  ;;  %v1741_v6 = vadd.f32 %v1677_v26, %v1533_v45  ;;  %vm1815_vm13 = vcmp.eq.s32.totalorder %v7575_v51, %v9393_v10 }
 0x2b6   : > { %vm2021_vm14 = vcmp.eq.s32.totalorder %v9636_v16, %v9395_v0  ;;  %v1743_v22 = vadd.f32 %v1679_v55, %v1535_v42  ;;  %v1885_v49 = vsel %vm1813_vm12, %v9394_v30, 0.0  ;;  %v1887_v56 = vsel %vm1815_vm13, %v9394_v30, 0.0 }
 0x2b7   : > { %4556 = vmatprep.subr.bf16.mxu0 %v4555_v35  ;;  %vm2023_vm15 = vcmp.eq.s32.totalorder %v7575_v51, %v9395_v0  ;;  %v1949_v38 = vadd.f32 %v1885_v49, %v1741_v6  ;;  %v2093_v57 = vsel %vm2021_vm14, %v5465_v41, 0.0  ;;  %vm2229_vm0 = vcmp.eq.s32.totalorder %v9636_v16, %v5469_v28 }
 0x2b8   : > { %v2095_v14 = vsel %vm2023_vm15, %v5465_v41, 0.0  ;;  %v1951_v60 = vadd.f32 %v1887_v56, %v1743_v22  ;;  %vm2231_vm1 = vcmp.eq.s32.totalorder %v7575_v51, %v5469_v28  ;;  %v2301_v40 = vsel %vm2229_vm0, %v9396_v25, 0.0 }
 0x2b9   : > { %vm2437_vm2 = vcmp.eq.s32.totalorder %v9636_v16, %v9397_v31  ;;  %v2157_v58 = vadd.f32 %v2093_v57, %v1949_v38  ;;  %v2303_v50 = vsel %vm2231_vm1, %v9396_v25, 0.0  ;;  %vm2439_vm3 = vcmp.eq.s32.totalorder %v7575_v51, %v9397_v31 }
 0x2ba   : > { %v2509_v44 = vsel %vm2437_vm2, %v9398_v37, 0.0  ;;  %v2159_v12 = vadd.f32 %v2095_v14, %v1951_v60  ;;  %v2511_v4 = vsel %vm2439_vm3, %v9398_v37, 0.0  ;;  %vm2645_vm4 = vcmp.eq.s32.totalorder %v9636_v16, %v9417_v11 }
 0x2bb   : > { %vm2647_vm5 = vcmp.eq.s32.totalorder %v7575_v51, %v9417_v11  ;;  %v2365_v29 = vadd.f32 %v2301_v40, %v2157_v58  ;;  %v2717_v62 = vsel %vm2645_vm4, %v9418_v21, 0.0  ;;  %vm2853_vm6 = vcmp.eq.s32.totalorder %v9636_v16, %v9419_v15 }
 0x2bc   : > { %v2719_v45 = vsel %vm2647_vm5, %v9418_v21, 0.0  ;;  %v2367_v35 = vadd.f32 %v2303_v50, %v2159_v12  ;;  %vm2855_vm7 = vcmp.eq.s32.totalorder %v7575_v51, %v9419_v15  ;;  %v2925_v42 = vsel %vm2853_vm6, %v9420_v1, 0.0 }
 0x2bd   : > { %vm3061_vm8 = vcmp.eq.s32.totalorder %v9636_v16, %v9421_v7  ;;  %v2573_v26 = vadd.f32 %v2509_v44, %v2365_v29  ;;  %v2927_v55 = vsel %vm2855_vm7, %v9420_v1, 0.0  ;;  %vm3063_vm9 = vcmp.eq.s32.totalorder %v7575_v51, %v9421_v7 }
 0x2be   : > { %v3133_v6 = vsel %vm3061_vm8, %v9401_v59, 0.0  ;;  %v2575_v22 = vadd.f32 %v2511_v4, %v2367_v35  ;;  %v3135_v49 = vsel %vm3063_vm9, %v9401_v59, 0.0  ;;  %vm3269_vm10 = vcmp.eq.s32.totalorder %v9636_v16, %v9446_v3 }
 0x2bf   : > { %vm3271_vm11 = vcmp.eq.s32.totalorder %v7575_v51, %v9446_v3  ;;  %v2781_v56 = vadd.f32 %v2717_v62, %v2573_v26  ;;  %v3341_v38 = vsel %vm3269_vm10, %v9527_v13, 0.0  ;;  %vm3477_vm12 = vcmp.eq.s32.totalorder %v9636_v16, %v9498_v63 }
 0x2c0   : > { %v3343_v57 = vsel %vm3271_vm11, %v9527_v13, 0.0  ;;  %v2783_v14 = vadd.f32 %v2719_v45, %v2575_v22  ;;  %vm3479_vm13 = vcmp.eq.s32.totalorder %v7575_v51, %v9498_v63  ;;  %v3549_v60 = vsel %vm3477_vm12, %v9499_v27, 0.0 }
 0x2c1   : > { %vm3685_vm14 = vcmp.eq.s32.totalorder %v9636_v16, %v9500_v61  ;;  %v2989_v40 = vadd.f32 %v2925_v42, %v2781_v56  ;;  %v3551_v58 = vsel %vm3479_vm13, %v9499_v27, 0.0  ;;  %vm3687_vm15 = vcmp.eq.s32.totalorder %v7575_v51, %v9500_v61 }
 0x2c2   : > { %v3757_v50 = vsel %vm3685_vm14, %v9579_v23, 0.0  ;;  %v2991_v44 = vadd.f32 %v2927_v55, %v2783_v14  ;;  %v3759_v12 = vsel %vm3687_vm15, %v9579_v23, 0.0  ;;  %v7770_v4 = vadd.s32 192, %v9634_v47 }
 0x2c3   : > { %v7773_v29 = vadd.s32 200, %v9634_v47  ;;  %v3197_v62 = vadd.f32 %v3133_v6, %v2989_v40  ;;  %v7776_v45 = vadd.s32 208, %v9634_v47  ;;  %v7779_v35 = vadd.s32 216, %v9634_v47  ;;  %v9665_v6 = vld [vmem:[#allocation19_spill] sm:$0xff] }
 0x2c4   : > { %9660 = vst [vmem:[#allocation66_spill] sm:$0xff] %v7770_v4  ;;  %v7782_v42 = vadd.s32 224, %v9634_v47  ;;  %v3199_v26 = vadd.f32 %v3135_v49, %v2991_v44  ;;  %vm634_vm0 = vcmp.eq.s32.totalorder %v7770_v4, %v9586_v54  ;;  %vm778_vm2 = vcmp.eq.s32.totalorder %v7770_v4, %v9557_v2 }
 0x2c5   : > { %9661 = vst [vmem:[#allocation68_spill] sm:$0xff] %v7773_v29  ;;  %9662 = vst [vmem:[#allocation70_spill] sm:$0xff] %v7776_v45  ;;  %vm636_vm1 = vcmp.eq.s32.totalorder %v7773_v29, %v9586_v54  ;;  %v3405_v55 = vadd.f32 %v3341_v38, %v3197_v62  ;;  %v706_v22 = vsel %vm634_vm0, %v9665_v6, 0.0  ;;  %vm780_vm3 = vcmp.eq.s32.totalorder %v7773_v29, %v9557_v2 }
 0x2c6   : > { %9663 = vst [vmem:[#allocation71_spill] sm:$0xff] %v7779_v35  ;;  %9664 = vst [vmem:[#allocation72_spill] sm:$0xff] %v7782_v42  ;;  %v708_v56 = vsel %vm636_vm1, %v9665_v6, 0.0  ;;  %v3407_v14 = vadd.f32 %v3343_v57, %v3199_v26  ;;  %v850_v49 = vsel %vm778_vm2, %v9610_v46, 0.0  ;;  %v852_v40 = vsel %vm780_vm3, %v9610_v46, 0.0 }
 0x2c7   : > { %vm986_vm4 = vcmp.eq.s32.totalorder %v7770_v4, %v9558_v43  ;;  %v3613_v44 = vadd.f32 %v3549_v60, %v3405_v55  ;;  %v914_v51 = vadd.f32 %v850_v49, %v706_v22  ;;  %v916_v16 = vadd.f32 %v852_v40, %v708_v56  ;;  %v9667_v40 = vld [vmem:[#allocation26_spill] sm:$0xff] }
 0x2c8   : > { %vm988_vm5 = vcmp.eq.s32.totalorder %v7773_v29, %v9558_v43  ;;  %v3615_v38 = vadd.f32 %v3551_v58, %v3407_v14  ;;  %v1058_v62 = vsel %vm986_vm4, %v5144_v17, 0.0  ;;  %vm1194_vm6 = vcmp.eq.s32.totalorder %v7770_v4, %v5148_v18  ;;  %v9666_v14 = vld [vmem:[#allocation25_spill] sm:$0xff] }
 0x2c9   : > { %v1060_v42 = vsel %vm988_vm5, %v5144_v17, 0.0  ;;  %v3821_v57 = vadd.f32 %v3757_v50, %v3613_v44  ;;  %v1122_v26 = vadd.f32 %v1058_v62, %v914_v51  ;;  %vm1196_vm7 = vcmp.eq.s32.totalorder %v7773_v29, %v5148_v18  ;;  %v9668_v44 = vld [vmem:[#allocation31_spill] sm:$0xff] }
 0x2ca   : > { %v1124_v47 = vadd.f32 %v1060_v42, %v916_v16  ;;  %v3823_v60 = vadd.f32 %v3759_v12, %v3615_v38  ;;  %v1266_v55 = vsel %vm1194_vm6, %v5152_v19, 0.0  ;;  %v1268_v22 = vsel %vm1196_vm7, %v5152_v19, 0.0 }
 0x2cb   : > { %vm1402_vm8 = vcmp.eq.s32.totalorder %v7770_v4, %v5180_v32  ;;  %v1330_v58 = vadd.f32 %v1266_v55, %v1122_v26  ;;  %vm1404_vm9 = vcmp.eq.s32.totalorder %v7773_v29, %v5180_v32  ;;  %vm1610_vm10 = vcmp.eq.s32.totalorder %v7770_v4, %v5188_v34  ;;  %v9670_v55 = vld [vmem:[#allocation32_spill] sm:$0xff] }
 0x2cc   : > { %v1332_v56 = vadd.f32 %v1268_v22, %v1124_v47  ;;  %v1474_v50 = vsel %vm1402_vm8, %v5184_v33, 0.0  ;;  %v4557_v51 = vpack.c.bf16 %v3823_v60, %v3821_v57  ;;  %v1476_v16 = vsel %vm1404_vm9, %v5184_v33, 0.0  ;;  %v9669_v57 = vld [vmem:[#allocation27_spill] sm:$0xff] }
 0x2cd   : > { %vm1612_vm11 = vcmp.eq.s32.totalorder %v7773_v29, %v5188_v34  ;;  %v1538_v12 = vadd.f32 %v1474_v50, %v1330_v58  ;;  %v1682_v49 = vsel %vm1610_vm10, %v9666_v14, 0.0  ;;  %vm1818_vm12 = vcmp.eq.s32.totalorder %v7770_v4, %v9667_v40  ;;  %v9684_v33 = vld [vmem:[#allocation43_spill] sm:$0xff] }
 0x2ce   : > { %v1540_v42 = vadd.f32 %v1476_v16, %v1332_v56  ;;  %v1684_v47 = vsel %vm1612_vm11, %v9666_v14, 0.0  ;;  %4558 = vmatpush1.bf16.msra.mxu0 %v4557_v51  ;;  %vm1820_vm13 = vcmp.eq.s32.totalorder %v7773_v29, %v9667_v40  ;;  %vm2026_vm14 = vcmp.eq.s32.totalorder %v7770_v4, %v9668_v44  ;;  %v9671_v56 = vld [vmem:[#allocation28_spill] sm:$0xff]  ;;  %v9672_v16 = vld [vmem:[#allocation29_spill] sm:$0xff] }
 0x2cf   : > { %vm2028_vm15 = vcmp.eq.s32.totalorder %v7773_v29, %v9668_v44  ;;  %v1746_v38 = vadd.f32 %v1682_v49, %v1538_v12  ;;  %v1890_v26 = vsel %vm1818_vm12, %v9669_v57, 0.0  ;;  %v1892_v60 = vsel %vm1820_vm13, %v9669_v57, 0.0  ;;  %v9674_v49 = vld [vmem:[#allocation34_spill] sm:$0xff]  ;;  %v9677_v57 = vld [vmem:[#allocation36_spill] sm:$0xff]  ;;  %v9678_v14 = vld [vmem:[#allocation37_spill] sm:$0xff] }
 0x2d0   : > { %v1748_v62 = vadd.f32 %v1684_v47, %v1540_v42  ;;  %v2098_v22 = vsel %vm2026_vm14, %v9670_v55, 0.0  ;;  %v2100_v58 = vsel %vm2028_vm15, %v9670_v55, 0.0  ;;  %vm2234_vm0 = vcmp.eq.s32.totalorder %v7770_v4, %v9671_v56  ;;  %v9673_v42 = vld [vmem:[#allocation30_spill] sm:$0xff] }
 0x2d1   : > { %vm2236_vm1 = vcmp.eq.s32.totalorder %v7773_v29, %v9671_v56  ;;  %v1954_v50 = vadd.f32 %v1890_v26, %v1746_v38  ;;  %v2306_v44 = vsel %vm2234_vm0, %v9672_v16, 0.0  ;;  %vm2442_vm2 = vcmp.eq.s32.totalorder %v7770_v4, %v9673_v42  ;;  %v9675_v38 = vld [vmem:[#allocation33_spill] sm:$0xff] }
 0x2d2   : > { %v1956_v51 = vadd.f32 %v1892_v60, %v1748_v62  ;;  %v2308_v12 = vsel %vm2236_vm1, %v9672_v16, 0.0  ;;  %vm2444_vm3 = vcmp.eq.s32.totalorder %v7773_v29, %v9673_v42  ;;  %vm2650_vm4 = vcmp.eq.s32.totalorder %v7770_v4, %v9674_v49  ;;  %v9676_v60 = vld [vmem:[#allocation35_spill] sm:$0xff] }
 0x2d3   : > { %vm2652_vm5 = vcmp.eq.s32.totalorder %v7773_v29, %v9674_v49  ;;  %v2162_v47 = vadd.f32 %v2098_v22, %v1954_v50  ;;  %v2514_v62 = vsel %vm2442_vm2, %v9675_v38, 0.0  ;;  %v2516_v26 = vsel %vm2444_vm3, %v9675_v38, 0.0  ;;  %v9680_v50 = vld [vmem:[#allocation40_spill] sm:$0xff]  ;;  %v9683_v38 = vld [vmem:[#allocation42_spill] sm:$0xff] }
 0x2d4   : > { %v2164_v56 = vadd.f32 %v2100_v58, %v1956_v51  ;;  %v2722_v16 = vsel %vm2650_vm4, %v9676_v60, 0.0  ;;  %v2724_v55 = vsel %vm2652_vm5, %v9676_v60, 0.0  ;;  %vm2858_vm6 = vcmp.eq.s32.totalorder %v7770_v4, %v9677_v57  ;;  %v9679_v58 = vld [vmem:[#allocation38_spill] sm:$0xff] }
 0x2d5   : > { %vm2860_vm7 = vcmp.eq.s32.totalorder %v7773_v29, %v9677_v57  ;;  %v2370_v42 = vadd.f32 %v2306_v44, %v2162_v47  ;;  %v2930_v49 = vsel %vm2858_vm6, %v9678_v14, 0.0  ;;  %vm3066_vm8 = vcmp.eq.s32.totalorder %v7770_v4, %v9679_v58  ;;  %v9681_v44 = vld [vmem:[#allocation39_spill] sm:$0xff]  ;;  %v9682_v47 = vld [vmem:[#allocation41_spill] sm:$0xff] }
 0x2d6   : > { %v2372_v40 = vadd.f32 %v2308_v12, %v2164_v56  ;;  %v2932_v22 = vsel %vm2860_vm7, %v9678_v14, 0.0  ;;  %vm3068_vm9 = vcmp.eq.s32.totalorder %v7773_v29, %v9679_v58  ;;  %vm3274_vm10 = vcmp.eq.s32.totalorder %v7770_v4, %v9680_v50 }
 0x2d7   : > { %vm3276_vm11 = vcmp.eq.s32.totalorder %v7773_v29, %v9680_v50  ;;  %v2578_v51 = vadd.f32 %v2514_v62, %v2370_v42  ;;  %v3138_v56 = vsel %vm3066_vm8, %v9681_v44, 0.0  ;;  %v3140_v12 = vsel %vm3068_vm9, %v9681_v44, 0.0  ;;  %v9685_v42 = vld [vmem:[#allocation44_spill] sm:$0xff]  ;;  %v9686_v62 = vld [vmem:[#allocation46_spill] sm:$0xff] }
 0x2d8   : > { %v2580_v57 = vadd.f32 %v2516_v26, %v2372_v40  ;;  %v3346_v14 = vsel %vm3274_vm10, %v9682_v47, 0.0  ;;  %v3348_v60 = vsel %vm3276_vm11, %v9682_v47, 0.0  ;;  %vm3482_vm12 = vcmp.eq.s32.totalorder %v7770_v4, %v9683_v38  ;;  %v9688_v47 = vld [vmem:[#allocation48_spill] sm:$0xff] }
 0x2d9   : > { %vm3484_vm13 = vcmp.eq.s32.totalorder %v7773_v29, %v9683_v38  ;;  %v2786_v58 = vadd.f32 %v2722_v16, %v2578_v51  ;;  %v3554_v50 = vsel %vm3482_vm12, %v9684_v33, 0.0  ;;  %vm3690_vm14 = vcmp.eq.s32.totalorder %v7770_v4, %v9685_v42  ;;  %v9687_v16 = vld [vmem:[#allocation45_spill] sm:$0xff] }
 0x2da   : > { %v2788_v34 = vadd.f32 %v2724_v55, %v2580_v57  ;;  %v3556_v40 = vsel %vm3484_vm13, %v9684_v33, 0.0  ;;  %vm3692_vm15 = vcmp.eq.s32.totalorder %v7773_v29, %v9685_v42  ;;  %vm633_vm0 = vcmp.eq.s32.totalorder %v7770_v4, %v9686_v62 }
 0x2db   : > { %vm635_vm1 = vcmp.eq.s32.totalorder %v7773_v29, %v9686_v62  ;;  %v2994_v26 = vadd.f32 %v2930_v49, %v2786_v58  ;;  %v3762_v57 = vsel %vm3690_vm14, %v9687_v16, 0.0  ;;  %v3764_v55 = vsel %vm3692_vm15, %v9687_v16, 0.0 }
 0x2dc   : > { %v2996_v38 = vadd.f32 %v2932_v22, %v2788_v34  ;;  %v705_v51 = vsel %vm633_vm0, %v9658_v20, 0.0  ;;  %v707_v33 = vsel %vm635_vm1, %v9658_v20, 0.0  ;;  %vm777_vm2 = vcmp.eq.s32.totalorder %v7770_v4, %v9688_v47 }
 0x2dd   : > { %vm779_vm3 = vcmp.eq.s32.totalorder %v7773_v29, %v9688_v47  ;;  %v3202_v42 = vadd.f32 %v3138_v56, %v2994_v26  ;;  %v849_v62 = vsel %vm777_vm2, %v9416_v36, 0.0  ;;  %vm985_vm4 = vcmp.eq.s32.totalorder %v7770_v4, %v5389_v53 }
 0x2de   : > { %v3204_v44 = vadd.f32 %v3140_v12, %v2996_v38  ;;  %v851_v34 = vsel %vm779_vm3, %v9416_v36, 0.0  ;;  %v913_v49 = vadd.f32 %v849_v62, %v705_v51  ;;  %vm987_vm5 = vcmp.eq.s32.totalorder %v7773_v29, %v5389_v53 }
 0x2df   : > { %v915_v22 = vadd.f32 %v851_v34, %v707_v33  ;;  %v3410_v58 = vadd.f32 %v3346_v14, %v3202_v42  ;;  %v1057_v16 = vsel %vm985_vm4, %v9387_v52, 0.0  ;;  %v1059_v47 = vsel %vm987_vm5, %v9387_v52, 0.0 }
 0x2e0   : > { %v3412_v20 = vadd.f32 %v3348_v60, %v3204_v44  ;;  %v1121_v56 = vadd.f32 %v1057_v16, %v913_v49  ;;  %vm1193_vm6 = vcmp.eq.s32.totalorder %v7770_v4, %v9388_v5  ;;  %vm1195_vm7 = vcmp.eq.s32.totalorder %v7773_v29, %v9388_v5 }
 0x2e1   : > { %v1123_v38 = vadd.f32 %v1059_v47, %v915_v22  ;;  %v3618_v33 = vadd.f32 %v3554_v50, %v3410_v58  ;;  %v1265_v62 = vsel %vm1193_vm6, %v9389_v48, 0.0  ;;  %v1267_v26 = vsel %vm1195_vm7, %v9389_v48, 0.0 }
 0x2e2   : > { %v3620_v12 = vadd.f32 %v3556_v40, %v3412_v20  ;;  %v1329_v14 = vadd.f32 %v1265_v62, %v1121_v56  ;;  %vm1401_vm8 = vcmp.eq.s32.totalorder %v7770_v4, %v9390_v39  ;;  %vm1403_vm9 = vcmp.eq.s32.totalorder %v7773_v29, %v9390_v39 }
 0x2e3   : > { %v1331_v60 = vadd.f32 %v1267_v26, %v1123_v38  ;;  %v3826_v44 = vadd.f32 %v3762_v57, %v3618_v33  ;;  %v1473_v42 = vsel %vm1401_vm8, %v9391_v8, 0.0  ;;  %v1475_v16 = vsel %vm1403_vm9, %v9391_v8, 0.0 }
 0x2e4   : > { %v3828_v47 = vadd.f32 %v3764_v55, %v3620_v12  ;;  %v1537_v50 = vadd.f32 %v1473_v42, %v1329_v14  ;;  %vm1609_vm10 = vcmp.eq.s32.totalorder %v7770_v4, %v5427_v24  ;;  %vm1611_vm11 = vcmp.eq.s32.totalorder %v7773_v29, %v5427_v24 }
 0x2e5   : > { %v1539_v20 = vadd.f32 %v1475_v16, %v1331_v60  ;;  %v1681_v51 = vsel %vm1609_vm10, %v9392_v9, 0.0  ;;  %v1683_v34 = vsel %vm1611_vm11, %v9392_v9, 0.0  ;;  %vm1817_vm12 = vcmp.eq.s32.totalorder %v7770_v4, %v9393_v10 }
 0x2e6   : > { %v4559_v40 = vpack.c.bf16 %v3828_v47, %v3826_v44  ;;  %v1745_v57 = vadd.f32 %v1681_v51, %v1537_v50  ;;  %vm1819_vm13 = vcmp.eq.s32.totalorder %v7773_v29, %v9393_v10  ;;  %v1889_v49 = vsel %vm1817_vm12, %v9394_v30, 0.0 }
 0x2e7   : > { %v1747_v55 = vadd.f32 %v1683_v34, %v1539_v20  ;;  %v1891_v22 = vsel %vm1819_vm13, %v9394_v30, 0.0  ;;  %vm2025_vm14 = vcmp.eq.s32.totalorder %v7770_v4, %v9395_v0  ;;  %vm2027_vm15 = vcmp.eq.s32.totalorder %v7773_v29, %v9395_v0 }
 0x2e8   : > { %4560 = vmatprep.subr.bf16.mxu0 %v4559_v40  ;;  %vm2233_vm0 = vcmp.eq.s32.totalorder %v7770_v4, %v5469_v28  ;;  %v1953_v58 = vadd.f32 %v1889_v49, %v1745_v57  ;;  %v2097_v38 = vsel %vm2025_vm14, %v5465_v41, 0.0  ;;  %v2099_v33 = vsel %vm2027_vm15, %v5465_v41, 0.0 }
 0x2e9   : > { %v1955_v56 = vadd.f32 %v1891_v22, %v1747_v55  ;;  %vm2235_vm1 = vcmp.eq.s32.totalorder %v7773_v29, %v5469_v28  ;;  %v2305_v12 = vsel %vm2233_vm0, %v9396_v25, 0.0  ;;  %vm2441_vm2 = vcmp.eq.s32.totalorder %v7770_v4, %v9397_v31 }
 0x2ea   : > { %vm2443_vm3 = vcmp.eq.s32.totalorder %v7773_v29, %v9397_v31  ;;  %v2161_v62 = vadd.f32 %v2097_v38, %v1953_v58  ;;  %v2307_v14 = vsel %vm2235_vm1, %v9396_v25, 0.0  ;;  %v2513_v60 = vsel %vm2441_vm2, %v9398_v37, 0.0 }
 0x2eb   : > { %v2163_v26 = vadd.f32 %v2099_v33, %v1955_v56  ;;  %v2515_v44 = vsel %vm2443_vm3, %v9398_v37, 0.0  ;;  %vm2649_vm4 = vcmp.eq.s32.totalorder %v7770_v4, %v9417_v11  ;;  %vm2651_vm5 = vcmp.eq.s32.totalorder %v7773_v29, %v9417_v11 }
 0x2ec   : > { %vm2857_vm6 = vcmp.eq.s32.totalorder %v7770_v4, %v9419_v15  ;;  %v2369_v47 = vadd.f32 %v2305_v12, %v2161_v62  ;;  %v2721_v16 = vsel %vm2649_vm4, %v9418_v21, 0.0  ;;  %v2723_v50 = vsel %vm2651_vm5, %v9418_v21, 0.0 }
 0x2ed   : > { %v2371_v42 = vadd.f32 %v2307_v14, %v2163_v26  ;;  %vm2859_vm7 = vcmp.eq.s32.totalorder %v7773_v29, %v9419_v15  ;;  %v2929_v20 = vsel %vm2857_vm6, %v9420_v1, 0.0  ;;  %vm3065_vm8 = vcmp.eq.s32.totalorder %v7770_v4, %v9421_v7 }
 0x2ee   : > { %vm3067_vm9 = vcmp.eq.s32.totalorder %v7773_v29, %v9421_v7  ;;  %v2577_v40 = vadd.f32 %v2513_v60, %v2369_v47  ;;  %v2931_v34 = vsel %vm2859_vm7, %v9420_v1, 0.0  ;;  %v3137_v57 = vsel %vm3065_vm8, %v9401_v59, 0.0 }
 0x2ef   : > { %v2579_v51 = vadd.f32 %v2515_v44, %v2371_v42  ;;  %v3139_v55 = vsel %vm3067_vm9, %v9401_v59, 0.0  ;;  %vm3273_vm10 = vcmp.eq.s32.totalorder %v7770_v4, %v9446_v3  ;;  %vm3275_vm11 = vcmp.eq.s32.totalorder %v7773_v29, %v9446_v3 }
 0x2f0   : > { %vm3481_vm12 = vcmp.eq.s32.totalorder %v7770_v4, %v9498_v63  ;;  %v2785_v49 = vadd.f32 %v2721_v16, %v2577_v40  ;;  %v3345_v58 = vsel %vm3273_vm10, %v9527_v13, 0.0  ;;  %v3347_v56 = vsel %vm3275_vm11, %v9527_v13, 0.0 }
 0x2f1   : > { %v2787_v22 = vadd.f32 %v2723_v50, %v2579_v51  ;;  %vm3483_vm13 = vcmp.eq.s32.totalorder %v7773_v29, %v9498_v63  ;;  %v3553_v38 = vsel %vm3481_vm12, %v9499_v27, 0.0  ;;  %vm3689_vm14 = vcmp.eq.s32.totalorder %v7770_v4, %v9500_v61 }
 0x2f2   : > { %vm3691_vm15 = vcmp.eq.s32.totalorder %v7773_v29, %v9500_v61  ;;  %v2993_v33 = vadd.f32 %v2929_v20, %v2785_v49  ;;  %v3555_v62 = vsel %vm3483_vm13, %v9499_v27, 0.0  ;;  %v3761_v26 = vsel %vm3689_vm14, %v9579_v23, 0.0 }
 0x2f3   : > { %v2995_v12 = vadd.f32 %v2931_v34, %v2787_v22  ;;  %v3763_v14 = vsel %vm3691_vm15, %v9579_v23, 0.0  ;;  %vm638_vm0 = vcmp.eq.s32.totalorder %v7776_v45, %v9586_v54  ;;  %vm640_vm1 = vcmp.eq.s32.totalorder %v7779_v35, %v9586_v54 }
 0x2f4   : > { %vm782_vm2 = vcmp.eq.s32.totalorder %v7776_v45, %v9557_v2  ;;  %v3201_v60 = vadd.f32 %v3137_v57, %v2993_v33  ;;  %v710_v47 = vsel %vm638_vm0, %v9665_v6, 0.0  ;;  %v712_v42 = vsel %vm640_vm1, %v9665_v6, 0.0 }
 0x2f5   : > { %v3203_v44 = vadd.f32 %v3139_v55, %v2995_v12  ;;  %vm784_vm3 = vcmp.eq.s32.totalorder %v7779_v35, %v9557_v2  ;;  %v854_v16 = vsel %vm782_vm2, %v9610_v46, 0.0  ;;  %vm990_vm4 = vcmp.eq.s32.totalorder %v7776_v45, %v9558_v43 }
 0x2f6   : > { %vm992_vm5 = vcmp.eq.s32.totalorder %v7779_v35, %v9558_v43  ;;  %v3409_v50 = vadd.f32 %v3345_v58, %v3201_v60  ;;  %v856_v40 = vsel %vm784_vm3, %v9610_v46, 0.0  ;;  %v918_v51 = vadd.f32 %v854_v16, %v710_v47 }
 0x2f7   : > { %v3411_v20 = vadd.f32 %v3347_v56, %v3203_v44  ;;  %v920_v34 = vadd.f32 %v856_v40, %v712_v42  ;;  %v1062_v57 = vsel %vm990_vm4, %v5144_v17, 0.0  ;;  %v1064_v55 = vsel %vm992_vm5, %v5144_v17, 0.0 }
 0x2f8   : > { %vm1198_vm6 = vcmp.eq.s32.totalorder %v7776_v45, %v5148_v18  ;;  %v3617_v49 = vadd.f32 %v3553_v38, %v3409_v50  ;;  %v1126_v33 = vadd.f32 %v1062_v57, %v918_v51  ;;  %vm1200_vm7 = vcmp.eq.s32.totalorder %v7779_v35, %v5148_v18  ;;  %v9690_v50 = vld [vmem:[#allocation24_spill] sm:$0xff]  ;;  %v9691_v51 = vld [vmem:[#allocation25_spill] sm:$0xff]  ;;  %v9692_v57 = vld [vmem:[#allocation26_spill] sm:$0xff] }
 0x2f9   : > { %v3619_v22 = vadd.f32 %v3555_v62, %v3411_v20  ;;  %v1128_v12 = vadd.f32 %v1064_v55, %v920_v34  ;;  %v1270_v58 = vsel %vm1198_vm6, %v5152_v19, 0.0  ;;  %v1272_v56 = vsel %vm1200_vm7, %v5152_v19, 0.0  ;;  %v9689_v62 = vld [vmem:[#allocation23_spill] sm:$0xff] }
 0x2fa   : > { %vm1406_vm8 = vcmp.eq.s32.totalorder %v7776_v45, %v5180_v32  ;;  %v3825_v60 = vadd.f32 %v3761_v26, %v3617_v49  ;;  %v1334_v47 = vadd.f32 %v1270_v58, %v1126_v33  ;;  %vm1408_vm9 = vcmp.eq.s32.totalorder %v7779_v35, %v5180_v32  ;;  %v9693_v49 = vld [vmem:[#allocation27_spill] sm:$0xff] }
 0x2fb   : > { %v3827_v44 = vadd.f32 %v3763_v14, %v3619_v22  ;;  %v1336_v38 = vadd.f32 %v1272_v56, %v1128_v12  ;;  %v1478_v42 = vsel %vm1406_vm8, %v9689_v62, 0.0  ;;  %v1480_v16 = vsel %vm1408_vm9, %v9689_v62, 0.0  ;;  %v9694_v12 = vld [vmem:[#allocation31_spill] sm:$0xff]  ;;  %v9695_v56 = vld [vmem:[#allocation32_spill] sm:$0xff] }
 0x2fc   : > { %vm1614_vm10 = vcmp.eq.s32.totalorder %v7776_v45, %v9690_v50  ;;  %v1542_v40 = vadd.f32 %v1478_v42, %v1334_v47  ;;  %vm1616_vm11 = vcmp.eq.s32.totalorder %v7779_v35, %v9690_v50  ;;  %vm1822_vm12 = vcmp.eq.s32.totalorder %v7776_v45, %v9692_v57  ;;  %v9697_v42 = vld [vmem:[#allocation29_spill] sm:$0xff] }
 0x2fd   : > { %v4561_v20 = vpack.c.bf16 %v3827_v44, %v3825_v60  ;;  %v1686_v26 = vsel %vm1614_vm10, %v9691_v51, 0.0  ;;  %v1544_v14 = vadd.f32 %v1480_v16, %v1336_v38  ;;  %v1688_v34 = vsel %vm1616_vm11, %v9691_v51, 0.0  ;;  %v9696_v44 = vld [vmem:[#allocation28_spill] sm:$0xff] }
 0x2fe   : > { %vm1824_vm13 = vcmp.eq.s32.totalorder %v7779_v35, %v9692_v57  ;;  %v1750_v55 = vadd.f32 %v1686_v26, %v1542_v40  ;;  %v1894_v22 = vsel %vm1822_vm12, %v9693_v49, 0.0  ;;  %vm2030_vm14 = vcmp.eq.s32.totalorder %v7776_v45, %v9694_v12  ;;  %v9698_v26 = vld [vmem:[#allocation30_spill] sm:$0xff] }
 0x2ff   : > { %4562 = vmatpush1.bf16.msra.mxu0 %v4561_v20  ;;  %v1896_v33 = vsel %vm1824_vm13, %v9693_v49, 0.0  ;;  %v1752_v58 = vadd.f32 %v1688_v34, %v1544_v14  ;;  %vm2032_vm15 = vcmp.eq.s32.totalorder %v7779_v35, %v9694_v12  ;;  %v2102_v60 = vsel %vm2030_vm14, %v9695_v56, 0.0  ;;  %v9699_v34 = vld [vmem:[#allocation33_spill] sm:$0xff] }
 0x300   : > { %vm2238_vm0 = vcmp.eq.s32.totalorder %v7776_v45, %v9696_v44  ;;  %v1958_v47 = vadd.f32 %v1894_v22, %v1750_v55  ;;  %v2104_v38 = vsel %vm2032_vm15, %v9695_v56, 0.0  ;;  %vm2240_vm1 = vcmp.eq.s32.totalorder %v7779_v35, %v9696_v44  ;;  %v9700_v22 = vld [vmem:[#allocation34_spill] sm:$0xff] }
 0x301   : > { %v2310_v16 = vsel %vm2238_vm0, %v9697_v42, 0.0  ;;  %v1960_v20 = vadd.f32 %v1896_v33, %v1752_v58  ;;  %v2312_v40 = vsel %vm2240_vm1, %v9697_v42, 0.0  ;;  %vm2446_vm2 = vcmp.eq.s32.totalorder %v7776_v45, %v9698_v26  ;;  %v9701_v33 = vld [vmem:[#allocation35_spill] sm:$0xff]  ;;  %v9702_v42 = vld [vmem:[#allocation36_spill] sm:$0xff] }
 0x302   : > { %vm2448_vm3 = vcmp.eq.s32.totalorder %v7779_v35, %v9698_v26  ;;  %v2166_v14 = vadd.f32 %v2102_v60, %v1958_v47  ;;  %v2518_v29 = vsel %vm2446_vm2, %v9699_v34, 0.0  ;;  %vm2654_vm4 = vcmp.eq.s32.totalorder %v7776_v45, %v9700_v22  ;;  %v9703_v60 = vld [vmem:[#allocation37_spill] sm:$0xff] }
 0x303   : > { %v2520_v55 = vsel %vm2448_vm3, %v9699_v34, 0.0  ;;  %v2168_v4 = vadd.f32 %v2104_v38, %v1960_v20  ;;  %vm2656_vm5 = vcmp.eq.s32.totalorder %v7779_v35, %v9700_v22  ;;  %v2726_v58 = vsel %vm2654_vm4, %v9701_v33, 0.0  ;;  %v9704_v38 = vld [vmem:[#allocation38_spill] sm:$0xff]  ;;  %v9705_v22 = vld [vmem:[#allocation39_spill] sm:$0xff] }
 0x304   : > { %vm2862_vm6 = vcmp.eq.s32.totalorder %v7776_v45, %v9702_v42  ;;  %v2374_v44 = vadd.f32 %v2310_v16, %v2166_v14  ;;  %v2728_v26 = vsel %vm2656_vm5, %v9701_v33, 0.0  ;;  %vm2864_vm7 = vcmp.eq.s32.totalorder %v7779_v35, %v9702_v42  ;;  %v9706_v14 = vld [vmem:[#allocation40_spill] sm:$0xff] }
 0x305   : > { %v2934_v47 = vsel %vm2862_vm6, %v9703_v60, 0.0  ;;  %v2376_v34 = vadd.f32 %v2312_v40, %v2168_v4  ;;  %v2936_v56 = vsel %vm2864_vm7, %v9703_v60, 0.0  ;;  %vm3070_vm8 = vcmp.eq.s32.totalorder %v7776_v45, %v9704_v38  ;;  %v9707_v4 = vld [vmem:[#allocation41_spill] sm:$0xff]  ;;  %v9708_v60 = vld [vmem:[#allocation42_spill] sm:$0xff] }
 0x306   : > { %vm3072_vm9 = vcmp.eq.s32.totalorder %v7779_v35, %v9704_v38  ;;  %v2582_v20 = vadd.f32 %v2518_v29, %v2374_v44  ;;  %v3142_v49 = vsel %vm3070_vm8, %v9705_v22, 0.0  ;;  %vm3278_vm10 = vcmp.eq.s32.totalorder %v7776_v45, %v9706_v14  ;;  %v9709_v29 = vld [vmem:[#allocation43_spill] sm:$0xff] }
 0x307   : > { %v3144_v16 = vsel %vm3072_vm9, %v9705_v22, 0.0  ;;  %v2584_v42 = vadd.f32 %v2520_v55, %v2376_v34  ;;  %vm3280_vm11 = vcmp.eq.s32.totalorder %v7779_v35, %v9706_v14  ;;  %v3350_v40 = vsel %vm3278_vm10, %v9707_v4, 0.0  ;;  %v9710_v34 = vld [vmem:[#allocation44_spill] sm:$0xff]  ;;  %v9711_v14 = vld [vmem:[#allocation45_spill] sm:$0xff] }
 0x308   : > { %vm3486_vm12 = vcmp.eq.s32.totalorder %v7776_v45, %v9708_v60  ;;  %v2790_v33 = vadd.f32 %v2726_v58, %v2582_v20  ;;  %v3352_v38 = vsel %vm3280_vm11, %v9707_v4, 0.0  ;;  %vm3488_vm13 = vcmp.eq.s32.totalorder %v7779_v35, %v9708_v60  ;;  %v9712_v20 = vld [vmem:[#allocation46_spill] sm:$0xff] }
 0x309   : > { %v3558_v44 = vsel %vm3486_vm12, %v9709_v29, 0.0  ;;  %v2792_v22 = vadd.f32 %v2728_v26, %v2584_v42  ;;  %v3560_v12 = vsel %vm3488_vm13, %v9709_v29, 0.0  ;;  %vm3694_vm14 = vcmp.eq.s32.totalorder %v7776_v45, %v9710_v34  ;;  %v9713_v42 = vld [vmem:[#allocation47_spill] sm:$0xff]  ;;  %v9714_v29 = vld [vmem:[#allocation48_spill] sm:$0xff] }
 0x30a   : > { %vm3696_vm15 = vcmp.eq.s32.totalorder %v7779_v35, %v9710_v34  ;;  %v2998_v55 = vadd.f32 %v2934_v47, %v2790_v33  ;;  %v3766_v57 = vsel %vm3694_vm14, %v9711_v14, 0.0  ;;  %vm637_vm0 = vcmp.eq.s32.totalorder %v7776_v45, %v9712_v20 }
 0x30b   : > { %v3768_v58 = vsel %vm3696_vm15, %v9711_v14, 0.0  ;;  %v3000_v60 = vadd.f32 %v2936_v56, %v2792_v22  ;;  %vm639_vm1 = vcmp.eq.s32.totalorder %v7779_v35, %v9712_v20  ;;  %v709_v26 = vsel %vm637_vm0, %v9713_v42, 0.0 }
 0x30c   : > { %vm781_vm2 = vcmp.eq.s32.totalorder %v7776_v45, %v9714_v29  ;;  %v3206_v4 = vadd.f32 %v3142_v49, %v2998_v55  ;;  %v711_v34 = vsel %vm639_vm1, %v9713_v42, 0.0  ;;  %vm783_vm3 = vcmp.eq.s32.totalorder %v7779_v35, %v9714_v29 }
 0x30d   : > { %v853_v33 = vsel %vm781_vm2, %v9416_v36, 0.0  ;;  %v3208_v47 = vadd.f32 %v3144_v16, %v3000_v60  ;;  %v855_v14 = vsel %vm783_vm3, %v9416_v36, 0.0  ;;  %vm989_vm4 = vcmp.eq.s32.totalorder %v7776_v45, %v5389_v53 }
 0x30e   : > { %v917_v56 = vadd.f32 %v853_v33, %v709_v26  ;;  %v3414_v22 = vadd.f32 %v3350_v40, %v3206_v4  ;;  %v919_v20 = vadd.f32 %v855_v14, %v711_v34  ;;  %vm991_vm5 = vcmp.eq.s32.totalorder %v7779_v35, %v5389_v53 }
 0x30f   : > { %v1061_v49 = vsel %vm989_vm4, %v9387_v52, 0.0  ;;  %v3416_v55 = vadd.f32 %v3352_v38, %v3208_v47  ;;  %v1063_v42 = vsel %vm991_vm5, %v9387_v52, 0.0  ;;  %vm1197_vm6 = vcmp.eq.s32.totalorder %v7776_v45, %v9388_v5 }
 0x310   : > { %v1125_v29 = vadd.f32 %v1061_v49, %v917_v56  ;;  %v3622_v60 = vadd.f32 %v3558_v44, %v3414_v22  ;;  %v1127_v16 = vadd.f32 %v1063_v42, %v919_v20  ;;  %vm1199_vm7 = vcmp.eq.s32.totalorder %v7779_v35, %v9388_v5 }
 0x311   : > { %v1269_v4 = vsel %vm1197_vm6, %v9389_v48, 0.0  ;;  %v3624_v14 = vadd.f32 %v3560_v12, %v3416_v55  ;;  %v1271_v40 = vsel %vm1199_vm7, %v9389_v48, 0.0  ;;  %vm1405_vm8 = vcmp.eq.s32.totalorder %v7776_v45, %v9390_v39 }
 0x312   : > { %v1333_v34 = vadd.f32 %v1269_v4, %v1125_v29  ;;  %v3830_v38 = vadd.f32 %v3766_v57, %v3622_v60  ;;  %v1335_v26 = vadd.f32 %v1271_v40, %v1127_v16  ;;  %vm1407_vm9 = vcmp.eq.s32.totalorder %v7779_v35, %v9390_v39 }
 0x313   : > { %v1477_v44 = vsel %vm1405_vm8, %v9391_v8, 0.0  ;;  %v3832_v20 = vadd.f32 %v3768_v58, %v3624_v14  ;;  %v1479_v42 = vsel %vm1407_vm9, %v9391_v8, 0.0  ;;  %vm1613_vm10 = vcmp.eq.s32.totalorder %v7776_v45, %v5427_v24 }
 0x314   : > { %v1541_v33 = vadd.f32 %v1477_v44, %v1333_v34  ;;  %v1543_v12 = vadd.f32 %v1479_v42, %v1335_v26  ;;  %vm1615_vm11 = vcmp.eq.s32.totalorder %v7779_v35, %v5427_v24  ;;  %v1685_v29 = vsel %vm1613_vm10, %v9392_v9, 0.0 }
 0x315   : > { %vm1821_vm12 = vcmp.eq.s32.totalorder %v7776_v45, %v9393_v10  ;;  %v4563_v57 = vpack.c.bf16 %v3832_v20, %v3830_v38  ;;  %v1687_v47 = vsel %vm1615_vm11, %v9392_v9, 0.0  ;;  %vm1823_vm13 = vcmp.eq.s32.totalorder %v7779_v35, %v9393_v10 }
 0x316   : > { %v1749_v56 = vadd.f32 %v1685_v29, %v1541_v33  ;;  %v1751_v58 = vadd.f32 %v1687_v47, %v1543_v12  ;;  %v1893_v22 = vsel %vm1821_vm12, %v9394_v30, 0.0  ;;  %v1895_v49 = vsel %vm1823_vm13, %v9394_v30, 0.0 }
 0x317   : > { %vm2029_vm14 = vcmp.eq.s32.totalorder %v7776_v45, %v9395_v0  ;;  %4564 = vmatprep.subr.bf16.mxu0 %v4563_v57  ;;  %vm2031_vm15 = vcmp.eq.s32.totalorder %v7779_v35, %v9395_v0  ;;  %vm2237_vm0 = vcmp.eq.s32.totalorder %v7776_v45, %v5469_v28  ;;  %vm2239_vm1 = vcmp.eq.s32.totalorder %v7779_v35, %v5469_v28 }
 0x318   : > { %v1957_v55 = vadd.f32 %v1893_v22, %v1749_v56  ;;  %v2101_v60 = vsel %vm2029_vm14, %v5465_v41, 0.0  ;;  %v1959_v16 = vadd.f32 %v1895_v49, %v1751_v58  ;;  %v2103_v4 = vsel %vm2031_vm15, %v5465_v41, 0.0 }
 0x319   : > { %v2309_v14 = vsel %vm2237_vm0, %v9396_v25, 0.0  ;;  %v2311_v34 = vsel %vm2239_vm1, %v9396_v25, 0.0  ;;  %vm2445_vm2 = vcmp.eq.s32.totalorder %v7776_v45, %v9397_v31  ;;  %vm2447_vm3 = vcmp.eq.s32.totalorder %v7779_v35, %v9397_v31 }
 0x31a   : > { %v2165_v40 = vadd.f32 %v2101_v60, %v1957_v55  ;;  %v2167_v38 = vadd.f32 %v2103_v4, %v1959_v16  ;;  %v2517_v26 = vsel %vm2445_vm2, %v9398_v37, 0.0  ;;  %v2519_v44 = vsel %vm2447_vm3, %v9398_v37, 0.0 }
 0x31b   : > { %vm2653_vm4 = vcmp.eq.s32.totalorder %v7776_v45, %v9417_v11  ;;  %vm2655_vm5 = vcmp.eq.s32.totalorder %v7779_v35, %v9417_v11  ;;  %vm2861_vm6 = vcmp.eq.s32.totalorder %v7776_v45, %v9419_v15  ;;  %vm2863_vm7 = vcmp.eq.s32.totalorder %v7779_v35, %v9419_v15 }
 0x31c   : > { %v2373_v20 = vadd.f32 %v2309_v14, %v2165_v40  ;;  %v2725_v42 = vsel %vm2653_vm4, %v9418_v21, 0.0  ;;  %v2375_v33 = vadd.f32 %v2311_v34, %v2167_v38  ;;  %v2727_v12 = vsel %vm2655_vm5, %v9418_v21, 0.0 }
 0x31d   : > { %v2933_v29 = vsel %vm2861_vm6, %v9420_v1, 0.0  ;;  %v2935_v47 = vsel %vm2863_vm7, %v9420_v1, 0.0  ;;  %vm3069_vm8 = vcmp.eq.s32.totalorder %v7776_v45, %v9421_v7  ;;  %vm3071_vm9 = vcmp.eq.s32.totalorder %v7779_v35, %v9421_v7 }
 0x31e   : > { %v2581_v57 = vadd.f32 %v2517_v26, %v2373_v20  ;;  %v2583_v56 = vadd.f32 %v2519_v44, %v2375_v33  ;;  %v3141_v58 = vsel %vm3069_vm8, %v9401_v59, 0.0  ;;  %v3143_v22 = vsel %vm3071_vm9, %v9401_v59, 0.0  ;;  %v9715_v44 = vld [vmem:[#allocation14_spill] sm:$0xff]  ;;  %v9716_v33 = vld [vmem:[#allocation72_spill] sm:$0xff] }
 0x31f   : > { %vm3277_vm10 = vcmp.eq.s32.totalorder %v7776_v45, %v9446_v3  ;;  %vm3279_vm11 = vcmp.eq.s32.totalorder %v7779_v35, %v9446_v3  ;;  %vm3485_vm12 = vcmp.eq.s32.totalorder %v7776_v45, %v9498_v63  ;;  %vm3487_vm13 = vcmp.eq.s32.totalorder %v7779_v35, %v9498_v63 }
 0x320   : > { %v2789_v49 = vadd.f32 %v2725_v42, %v2581_v57  ;;  %v3349_v55 = vsel %vm3277_vm10, %v9527_v13, 0.0  ;;  %v2791_v60 = vadd.f32 %v2727_v12, %v2583_v56  ;;  %v3351_v16 = vsel %vm3279_vm11, %v9527_v13, 0.0 }
 0x321   : > { %v3557_v4 = vsel %vm3485_vm12, %v9499_v27, 0.0  ;;  %v3559_v40 = vsel %vm3487_vm13, %v9499_v27, 0.0  ;;  %vm3693_vm14 = vcmp.eq.s32.totalorder %v7776_v45, %v9500_v61  ;;  %vm3695_vm15 = vcmp.eq.s32.totalorder %v7779_v35, %v9500_v61 }
 0x322   : > { %v2997_v14 = vadd.f32 %v2933_v29, %v2789_v49  ;;  %v2999_v34 = vadd.f32 %v2935_v47, %v2791_v60  ;;  %v3765_v38 = vsel %vm3693_vm14, %v9579_v23, 0.0  ;;  %v3767_v26 = vsel %vm3695_vm15, %v9579_v23, 0.0 }
 0x323   : > { %v8169_v20 = vadd.s32 232, %v9715_v44  ;;  %vm642_vm0 = vcmp.eq.s32.totalorder %v9716_v33, %v9586_v54  ;;  %vm786_vm1 = vcmp.eq.s32.totalorder %v9716_v33, %v9557_v2  ;;  %vm994_vm2 = vcmp.eq.s32.totalorder %v9716_v33, %v9558_v43 }
 0x324   : > { %v3205_v42 = vadd.f32 %v3141_v58, %v2997_v14  ;;  %v3207_v12 = vadd.f32 %v3143_v22, %v2999_v34  ;;  %v714_v29 = vsel %vm642_vm0, %v9665_v6, 0.0  ;;  %v858_v56 = vsel %vm786_vm1, %v9610_v46, 0.0 }
 0x325   : > { %vm644_vm3 = vcmp.eq.s32.totalorder %v8169_v20, %v9586_v54  ;;  %vm788_vm4 = vcmp.eq.s32.totalorder %v8169_v20, %v9557_v2  ;;  %v922_v60 = vadd.f32 %v858_v56, %v714_v29  ;;  %vm996_vm5 = vcmp.eq.s32.totalorder %v8169_v20, %v9558_v43 }
 0x326   : > { %v3413_v57 = vadd.f32 %v3349_v55, %v3205_v42  ;;  %v716_v47 = vsel %vm644_vm3, %v9665_v6, 0.0  ;;  %v860_v58 = vsel %vm788_vm4, %v9610_v46, 0.0  ;;  %v3415_v49 = vadd.f32 %v3351_v16, %v3207_v12 }
 0x327   : > { %v924_v14 = vadd.f32 %v860_v58, %v716_v47  ;;  %v1066_v34 = vsel %vm994_vm2, %v5144_v17, 0.0  ;;  %v1068_v35 = vsel %vm996_vm5, %v5144_v17, 0.0  ;;  %vm1202_vm6 = vcmp.eq.s32.totalorder %v9716_v33, %v5148_v18 }
 0x328   : > { %v3621_v22 = vadd.f32 %v3557_v4, %v3413_v57  ;;  %v3623_v55 = vadd.f32 %v3559_v40, %v3415_v49  ;;  %v1130_v42 = vadd.f32 %v1066_v34, %v922_v60  ;;  %vm1204_vm7 = vcmp.eq.s32.totalorder %v8169_v20, %v5148_v18  ;;  %v9717_v49 = vld [vmem:[#allocation26_spill] sm:$0xff]  ;;  %v9718_v60 = vld [vmem:[#allocation31_spill] sm:$0xff] }
 0x329   : > { %v1132_v45 = vadd.f32 %v1068_v35, %v924_v14  ;;  %v1274_v12 = vsel %vm1202_vm6, %v5152_v19, 0.0  ;;  %v1276_v29 = vsel %vm1204_vm7, %v5152_v19, 0.0  ;;  %vm1410_vm8 = vcmp.eq.s32.totalorder %v9716_v33, %v5180_v32  ;;  %v9719_v34 = vld [vmem:[#allocation27_spill] sm:$0xff] }
 0x32a   : > { %v3829_v16 = vadd.f32 %v3765_v38, %v3621_v22  ;;  %v3831_v4 = vadd.f32 %v3767_v26, %v3623_v55  ;;  %v1338_v57 = vadd.f32 %v1274_v12, %v1130_v42  ;;  %vm1412_vm9 = vcmp.eq.s32.totalorder %v8169_v20, %v5180_v32 }
 0x32b   : > { %v1340_v47 = vadd.f32 %v1276_v29, %v1132_v45  ;;  %v1482_v40 = vsel %vm1410_vm8, %v9689_v62, 0.0  ;;  %v1484_v35 = vsel %vm1412_vm9, %v9689_v62, 0.0  ;;  %vm1618_vm10 = vcmp.eq.s32.totalorder %v9716_v33, %v9690_v50  ;;  %v9721_v29 = vld [vmem:[#allocation28_spill] sm:$0xff] }
 0x32c   : > { %vm1620_vm11 = vcmp.eq.s32.totalorder %v8169_v20, %v9690_v50  ;;  %v4565_v38 = vpack.c.bf16 %v3831_v4, %v3829_v16  ;;  %v1546_v56 = vadd.f32 %v1482_v40, %v1338_v57  ;;  %v1690_v26 = vsel %vm1618_vm10, %v9691_v51, 0.0  ;;  %v9720_v16 = vld [vmem:[#allocation32_spill] sm:$0xff]  ;;  %v9722_v40 = vld [vmem:[#allocation29_spill] sm:$0xff] }
 0x32d   : > { %v1548_v58 = vadd.f32 %v1484_v35, %v1340_v47  ;;  %v1692_v45 = vsel %vm1620_vm11, %v9691_v51, 0.0  ;;  %vm1826_vm12 = vcmp.eq.s32.totalorder %v9716_v33, %v9717_v49  ;;  %vm1828_vm13 = vcmp.eq.s32.totalorder %v8169_v20, %v9717_v49 }
 0x32e   : > { %vm2034_vm14 = vcmp.eq.s32.totalorder %v9716_v33, %v9718_v60  ;;  %4566 = vmatpush1.bf16.msra.mxu0 %v4565_v38  ;;  %v1754_v14 = vadd.f32 %v1690_v26, %v1546_v56  ;;  %v1898_v55 = vsel %vm1826_vm12, %v9719_v34, 0.0  ;;  %v1900_v42 = vsel %vm1828_vm13, %v9719_v34, 0.0  ;;  %v9723_v56 = vld [vmem:[#allocation30_spill] sm:$0xff] }
 0x32f   : > { %v1756_v22 = vadd.f32 %v1692_v45, %v1548_v58  ;;  %vm2036_vm15 = vcmp.eq.s32.totalorder %v8169_v20, %v9718_v60  ;;  %v2106_v12 = vsel %vm2034_vm14, %v9720_v16, 0.0  ;;  %vm2242_vm0 = vcmp.eq.s32.totalorder %v9716_v33, %v9721_v29  ;;  %v9724_v58 = vld [vmem:[#allocation34_spill] sm:$0xff] }
 0x330   : > { %vm2244_vm1 = vcmp.eq.s32.totalorder %v8169_v20, %v9721_v29  ;;  %v1962_v4 = vadd.f32 %v1898_v55, %v1754_v14  ;;  %v2108_v47 = vsel %vm2036_vm15, %v9720_v16, 0.0  ;;  %v2314_v35 = vsel %vm2242_vm0, %v9722_v40, 0.0  ;;  %v9725_v29 = vld [vmem:[#allocation33_spill] sm:$0xff]  ;;  %v9726_v55 = vld [vmem:[#allocation35_spill] sm:$0xff] }
 0x331   : > { %v1964_v57 = vadd.f32 %v1900_v42, %v1756_v22  ;;  %v2316_v38 = vsel %vm2244_vm1, %v9722_v40, 0.0  ;;  %vm2450_vm2 = vcmp.eq.s32.totalorder %v9716_v33, %v9723_v56  ;;  %vm2452_vm3 = vcmp.eq.s32.totalorder %v8169_v20, %v9723_v56  ;;  %v9727_v40 = vld [vmem:[#allocation36_spill] sm:$0xff] }
 0x332   : > { %vm2658_vm4 = vcmp.eq.s32.totalorder %v9716_v33, %v9724_v58  ;;  %v2170_v26 = vadd.f32 %v2106_v12, %v1962_v4  ;;  %v2522_v14 = vsel %vm2450_vm2, %v9725_v29, 0.0  ;;  %v2524_v22 = vsel %vm2452_vm3, %v9725_v29, 0.0  ;;  %v9728_v4 = vld [vmem:[#allocation37_spill] sm:$0xff]  ;;  %v9729_v29 = vld [vmem:[#allocation38_spill] sm:$0xff] }
 0x333   : > { %v2172_v45 = vadd.f32 %v2108_v47, %v1964_v57  ;;  %vm2660_vm5 = vcmp.eq.s32.totalorder %v8169_v20, %v9724_v58  ;;  %v2730_v42 = vsel %vm2658_vm4, %v9726_v55, 0.0  ;;  %vm2866_vm6 = vcmp.eq.s32.totalorder %v9716_v33, %v9727_v40  ;;  %v9730_v58 = vld [vmem:[#allocation40_spill] sm:$0xff] }
 0x334   : > { %vm2868_vm7 = vcmp.eq.s32.totalorder %v8169_v20, %v9727_v40  ;;  %v2378_v56 = vadd.f32 %v2314_v35, %v2170_v26  ;;  %v2732_v12 = vsel %vm2660_vm5, %v9726_v55, 0.0  ;;  %v2938_v57 = vsel %vm2866_vm6, %v9728_v4, 0.0  ;;  %v9731_v40 = vld [vmem:[#allocation39_spill] sm:$0xff]  ;;  %v9732_v26 = vld [vmem:[#allocation41_spill] sm:$0xff] }
 0x335   : > { %v2380_v16 = vadd.f32 %v2316_v38, %v2172_v45  ;;  %v2940_v47 = vsel %vm2868_vm7, %v9728_v4, 0.0  ;;  %vm3074_vm8 = vcmp.eq.s32.totalorder %v9716_v33, %v9729_v29  ;;  %vm3076_vm9 = vcmp.eq.s32.totalorder %v8169_v20, %v9729_v29  ;;  %v9733_v4 = vld [vmem:[#allocation42_spill] sm:$0xff] }
 0x336   : > { %vm3282_vm10 = vcmp.eq.s32.totalorder %v9716_v33, %v9730_v58  ;;  %v2586_v34 = vadd.f32 %v2522_v14, %v2378_v56  ;;  %v3146_v35 = vsel %vm3074_vm8, %v9731_v40, 0.0  ;;  %v3148_v38 = vsel %vm3076_vm9, %v9731_v40, 0.0  ;;  %v9735_v40 = vld [vmem:[#allocation44_spill] sm:$0xff] }
 0x337   : > { %v2588_v60 = vadd.f32 %v2524_v22, %v2380_v16  ;;  %vm3284_vm11 = vcmp.eq.s32.totalorder %v8169_v20, %v9730_v58  ;;  %v3354_v45 = vsel %vm3282_vm10, %v9732_v26, 0.0  ;;  %vm3490_vm12 = vcmp.eq.s32.totalorder %v9716_v33, %v9733_v4  ;;  %v9734_v16 = vld [vmem:[#allocation43_spill] sm:$0xff]  ;;  %v9736_v58 = vld [vmem:[#allocation46_spill] sm:$0xff] }
 0x338   : > { %vm3492_vm13 = vcmp.eq.s32.totalorder %v8169_v20, %v9733_v4  ;;  %v2794_v29 = vadd.f32 %v2730_v42, %v2586_v34  ;;  %v3356_v56 = vsel %vm3284_vm11, %v9732_v26, 0.0  ;;  %v3562_v14 = vsel %vm3490_vm12, %v9734_v16, 0.0  ;;  %v9737_v4 = vld [vmem:[#allocation45_spill] sm:$0xff]  ;;  %v9738_v42 = vld [vmem:[#allocation47_spill] sm:$0xff] }
 0x339   : > { %v2796_v55 = vadd.f32 %v2732_v12, %v2588_v60  ;;  %v3564_v22 = vsel %vm3492_vm13, %v9734_v16, 0.0  ;;  %vm3698_vm14 = vcmp.eq.s32.totalorder %v9716_v33, %v9735_v40  ;;  %vm3700_vm15 = vcmp.eq.s32.totalorder %v8169_v20, %v9735_v40  ;;  %v9739_v16 = vld [vmem:[#allocation48_spill] sm:$0xff] }
 0x33a   : > { %vm641_vm0 = vcmp.eq.s32.totalorder %v9716_v33, %v9736_v58  ;;  %v3002_v49 = vadd.f32 %v2938_v57, %v2794_v29  ;;  %v3770_v34 = vsel %vm3698_vm14, %v9737_v4, 0.0  ;;  %v3772_v60 = vsel %vm3700_vm15, %v9737_v4, 0.0 }
 0x33b   : > { %v3004_v51 = vadd.f32 %v2940_v47, %v2796_v55  ;;  %vm643_vm1 = vcmp.eq.s32.totalorder %v8169_v20, %v9736_v58  ;;  %v713_v12 = vsel %vm641_vm0, %v9738_v42, 0.0  ;;  %vm785_vm2 = vcmp.eq.s32.totalorder %v9716_v33, %v9739_v16 }
 0x33c   : > { %vm787_vm3 = vcmp.eq.s32.totalorder %v8169_v20, %v9739_v16  ;;  %v3210_v40 = vadd.f32 %v3146_v35, %v3002_v49  ;;  %v715_v29 = vsel %vm643_vm1, %v9738_v42, 0.0  ;;  %v857_v55 = vsel %vm785_vm2, %v9416_v36, 0.0 }
 0x33d   : > { %v3212_v26 = vadd.f32 %v3148_v38, %v3004_v51  ;;  %v859_v57 = vsel %vm787_vm3, %v9416_v36, 0.0  ;;  %v921_v47 = vadd.f32 %v857_v55, %v713_v12  ;;  %vm993_vm4 = vcmp.eq.s32.totalorder %v9716_v33, %v5389_v53 }
 0x33e   : > { %vm995_vm5 = vcmp.eq.s32.totalorder %v8169_v20, %v5389_v53  ;;  %v3418_v4 = vadd.f32 %v3354_v45, %v3210_v40  ;;  %v923_v50 = vadd.f32 %v859_v57, %v715_v29  ;;  %v1065_v16 = vsel %vm993_vm4, %v9387_v52, 0.0 }
 0x33f   : > { %v3420_v58 = vadd.f32 %v3356_v56, %v3212_v26  ;;  %v1067_v51 = vsel %vm995_vm5, %v9387_v52, 0.0  ;;  %v1129_v49 = vadd.f32 %v1065_v16, %v921_v47  ;;  %vm1201_vm6 = vcmp.eq.s32.totalorder %v9716_v33, %v9388_v5 }
 0x340   : > { %vm1203_vm7 = vcmp.eq.s32.totalorder %v8169_v20, %v9388_v5  ;;  %v3626_v35 = vadd.f32 %v3562_v14, %v3418_v4  ;;  %v1131_v12 = vadd.f32 %v1067_v51, %v923_v50  ;;  %v1273_v55 = vsel %vm1201_vm6, %v9389_v48, 0.0 }
 0x341   : > { %v3628_v38 = vadd.f32 %v3564_v22, %v3420_v58  ;;  %v1275_v40 = vsel %vm1203_vm7, %v9389_v48, 0.0  ;;  %v1337_v26 = vadd.f32 %v1273_v55, %v1129_v49  ;;  %vm1409_vm8 = vcmp.eq.s32.totalorder %v9716_v33, %v9390_v39 }
 0x342   : > { %vm1411_vm9 = vcmp.eq.s32.totalorder %v8169_v20, %v9390_v39  ;;  %v3834_v45 = vadd.f32 %v3770_v34, %v3626_v35  ;;  %v1339_v16 = vadd.f32 %v1275_v40, %v1131_v12  ;;  %v1481_v29 = vsel %vm1409_vm8, %v9391_v8, 0.0 }
 0x343   : > { %v3836_v56 = vadd.f32 %v3772_v60, %v3628_v38  ;;  %v1483_v58 = vsel %vm1411_vm9, %v9391_v8, 0.0  ;;  %v1545_v50 = vadd.f32 %v1481_v29, %v1337_v26  ;;  %vm1617_vm10 = vcmp.eq.s32.totalorder %v9716_v33, %v5427_v24 }
 0x344   : > { %vm1619_vm11 = vcmp.eq.s32.totalorder %v8169_v20, %v5427_v24  ;;  %v1547_v14 = vadd.f32 %v1483_v58, %v1339_v16  ;;  %v1689_v22 = vsel %vm1617_vm10, %v9392_v9, 0.0  ;;  %vm1825_vm12 = vcmp.eq.s32.totalorder %v9716_v33, %v9393_v10 }
 0x345   : > { %v4567_v4 = vpack.c.bf16 %v3836_v56, %v3834_v45  ;;  %v1691_v34 = vsel %vm1619_vm11, %v9392_v9, 0.0  ;;  %v1753_v60 = vadd.f32 %v1689_v22, %v1545_v50  ;;  %vm1827_vm13 = vcmp.eq.s32.totalorder %v8169_v20, %v9393_v10 }
 0x346   : > { %vm2033_vm14 = vcmp.eq.s32.totalorder %v9716_v33, %v9395_v0  ;;  %v1755_v57 = vadd.f32 %v1691_v34, %v1547_v14  ;;  %v1897_v47 = vsel %vm1825_vm12, %v9394_v30, 0.0  ;;  %v1899_v51 = vsel %vm1827_vm13, %v9394_v30, 0.0 }
 0x347   : > { %4568 = vmatprep.subr.bf16.mxu0 %v4567_v4  ;;  %vm2035_vm15 = vcmp.eq.s32.totalorder %v8169_v20, %v9395_v0  ;;  %v1961_v49 = vadd.f32 %v1897_v47, %v1753_v60  ;;  %v2105_v35 = vsel %vm2033_vm14, %v5465_v41, 0.0  ;;  %vm2241_vm0 = vcmp.eq.s32.totalorder %v9716_v33, %v5469_v28 }
 0x348   : > { %v2107_v38 = vsel %vm2035_vm15, %v5465_v41, 0.0  ;;  %v1963_v12 = vadd.f32 %v1899_v51, %v1755_v57  ;;  %vm2243_vm1 = vcmp.eq.s32.totalorder %v8169_v20, %v5469_v28  ;;  %v2313_v55 = vsel %vm2241_vm0, %v9396_v25, 0.0 }
 0x349   : > { %vm2449_vm2 = vcmp.eq.s32.totalorder %v9716_v33, %v9397_v31  ;;  %v2169_v40 = vadd.f32 %v2105_v35, %v1961_v49  ;;  %v2315_v26 = vsel %vm2243_vm1, %v9396_v25, 0.0  ;;  %vm2451_vm3 = vcmp.eq.s32.totalorder %v8169_v20, %v9397_v31 }
 0x34a   : > { %v2171_v45 = vadd.f32 %v2107_v38, %v1963_v12  ;;  %v2521_v56 = vsel %vm2449_vm2, %v9398_v37, 0.0  ;;  %vm2657_vm4 = vcmp.eq.s32.totalorder %v9716_v33, %v9417_v11  ;;  %vm2659_vm5 = vcmp.eq.s32.totalorder %v8169_v20, %v9417_v11  ;;  %v8366_v38 = vld [vmem:[%s514_s24] sm:$0xff]  ;;  %s518_s24 = scalar_lea.vmem %s8834_s2, %s8510_s17  ;;  %s8782_s17 = sshll.u32 %s4936_s21, 7 }
 0x34b   : > { %v2377_v16 = vadd.f32 %v2313_v55, %v2169_v40  ;;  %v2523_v29 = vsel %vm2451_vm3, %v9398_v37, 0.0  ;;  %vm2865_vm6 = vcmp.eq.s32.totalorder %v9716_v33, %v9419_v15  ;;  %v2729_v50 = vsel %vm2657_vm4, %v9418_v21, 0.0  ;;  %s4149_s29 = sld [smem:[#allocation2 + %s8782_s17]]  ;;  %s4150_s16 = sadd.s32 1, %s8782_s17 }
 0x34c   : > { %v2379_v58 = vadd.f32 %v2315_v26, %v2171_v45  ;;  %vm2867_vm7 = vcmp.eq.s32.totalorder %v8169_v20, %v9419_v15  ;;  %vm3073_vm8 = vcmp.eq.s32.totalorder %v9716_v33, %v9421_v7  ;;  %v2731_v14 = vsel %vm2659_vm5, %v9418_v21, 0.0  ;;  %s4152_s15 = sadd.s32 2, %s8782_s17 }
 0x34d   : > { %v2585_v4 = vadd.f32 %v2521_v56, %v2377_v16  ;;  %v2937_v22 = vsel %vm2865_vm6, %v9420_v1, 0.0  ;;  %vm3075_vm9 = vcmp.eq.s32.totalorder %v8169_v20, %v9421_v7  ;;  %v2939_v60 = vsel %vm2867_vm7, %v9420_v1, 0.0  ;;  %s8803_s13 = sld [smem:[#allocation2 + %s4152_s15]] }
 0x34e   : > { %v2587_v34 = vadd.f32 %v2523_v29, %v2379_v58  ;;  %vm3281_vm10 = vcmp.eq.s32.totalorder %v9716_v33, %v9446_v3  ;;  %vm3283_vm11 = vcmp.eq.s32.totalorder %v8169_v20, %v9446_v3  ;;  %v3145_v47 = vsel %vm3073_vm8, %v9401_v59, 0.0 }
 0x34f   : > { %v2793_v57 = vadd.f32 %v2729_v50, %v2585_v4  ;;  %v3147_v51 = vsel %vm3075_vm9, %v9401_v59, 0.0  ;;  %vm3489_vm12 = vcmp.eq.s32.totalorder %v9716_v33, %v9498_v63  ;;  %v3353_v35 = vsel %vm3281_vm10, %v9527_v13, 0.0 }
 0x350   : > { %v2795_v49 = vadd.f32 %v2731_v14, %v2587_v34  ;;  %vm3491_vm13 = vcmp.eq.s32.totalorder %v8169_v20, %v9498_v63  ;;  %vm3697_vm14 = vcmp.eq.s32.totalorder %v9716_v33, %v9500_v61  ;;  %v3355_v55 = vsel %vm3283_vm11, %v9527_v13, 0.0 }
 0x351   : > { %v3001_v12 = vadd.f32 %v2937_v22, %v2793_v57  ;;  %v3561_v40 = vsel %vm3489_vm12, %v9499_v27, 0.0  ;;  %vm3699_vm15 = vcmp.eq.s32.totalorder %v8169_v20, %v9500_v61  ;;  %v3563_v45 = vsel %vm3491_vm13, %v9499_v27, 0.0 }
 0x352   : > { %v3003_v26 = vadd.f32 %v2939_v60, %v2795_v49  ;;  %v8374_v56 = vadd.s32 240, %v9715_v44  ;;  %v8377_v16 = vadd.s32 248, %v9715_v44  ;;  %v3769_v58 = vsel %vm3697_vm14, %v9579_v23, 0.0 }
 0x353   : > { %v3209_v29 = vadd.f32 %v3145_v47, %v3001_v12  ;;  %v3771_v50 = vsel %vm3699_vm15, %v9579_v23, 0.0  ;;  %v3842_v4 = vcombine.high %v8366_v38, %v8366_v38 }
 0x354   : > { %v3211_v14 = vadd.f32 %v3147_v51, %v3003_v26  ;;  %vm646_vm0 = vcmp.eq.s32.totalorder %v8374_v56, %v9586_v54  ;;  %vm648_vm1 = vcmp.eq.s32.totalorder %v8377_v16, %v9586_v54  ;;  %vm790_vm2 = vcmp.eq.s32.totalorder %v8374_v56, %v9557_v2 }
 0x355   : > { %v3417_v22 = vadd.f32 %v3353_v35, %v3209_v29  ;;  %v718_v34 = vsel %vm646_vm0, %v9665_v6, 0.0  ;;  %v720_v60 = vsel %vm648_vm1, %v9665_v6, 0.0  ;;  %vm792_vm3 = vcmp.eq.s32.totalorder %v8377_v16, %v9557_v2  ;;  %3908 = vmatprep.mubr.f32.mxu0 %v3842_v4 }
 0x356   : > { %v3419_v57 = vadd.f32 %v3355_v55, %v3211_v14  ;;  %v862_v47 = vsel %vm790_vm2, %v9610_v46, 0.0  ;;  %v864_v51 = vsel %vm792_vm3, %v9610_v46, 0.0  ;;  %vm998_vm4 = vcmp.eq.s32.totalorder %v8374_v56, %v9558_v43 }
 0x357   : > { %v3625_v54 = vadd.f32 %v3561_v40, %v3417_v22  ;;  %v926_v49 = vadd.f32 %v862_v47, %v718_v34  ;;  %v928_v12 = vadd.f32 %v864_v51, %v720_v60  ;;  %vm1000_vm5 = vcmp.eq.s32.totalorder %v8377_v16, %v9558_v43  ;;  %v9740_v22 = vld [vmem:[#allocation24_spill] sm:$0xff]  ;;  %v9744_v51 = vld [vmem:[#allocation27_spill] sm:$0xff] }
 0x358   : > { %v3627_v35 = vadd.f32 %v3563_v45, %v3419_v57  ;;  %v1070_v6 = vsel %vm998_vm4, %v5144_v17, 0.0  ;;  %v1072_v2 = vsel %vm1000_vm5, %v5144_v17, 0.0  ;;  %vm1206_vm6 = vcmp.eq.s32.totalorder %v8374_v56, %v5148_v18  ;;  %v9742_v57 = vld [vmem:[#allocation26_spill] sm:$0xff] }
 0x359   : > { %v3833_v55 = vadd.f32 %v3769_v58, %v3625_v54  ;;  %v1134_v26 = vadd.f32 %v1070_v6, %v926_v49  ;;  %v1136_v46 = vadd.f32 %v1072_v2, %v928_v12  ;;  %vm1208_vm7 = vcmp.eq.s32.totalorder %v8377_v16, %v5148_v18  ;;  %v9745_v12 = vld [vmem:[#allocation32_spill] sm:$0xff] }
 0x35a   : > { %v3835_v40 = vadd.f32 %v3771_v50, %v3627_v35  ;;  %v1278_v29 = vsel %vm1206_vm6, %v5152_v19, 0.0  ;;  %v1280_v4 = vsel %vm1208_vm7, %v5152_v19, 0.0  ;;  %vm1414_vm8 = vcmp.eq.s32.totalorder %v8374_v56, %v5180_v32  ;;  %v9741_v50 = vld [vmem:[#allocation25_spill] sm:$0xff]  ;;  %v9746_v2 = vld [vmem:[#allocation28_spill] sm:$0xff] }
 0x35b   : > { %v1342_v43 = vadd.f32 %v1278_v29, %v1134_v26  ;;  %v1344_v45 = vadd.f32 %v1280_v4, %v1136_v46  ;;  %vm1416_vm9 = vcmp.eq.s32.totalorder %v8377_v16, %v5180_v32  ;;  %v1486_v17 = vsel %vm1414_vm8, %v9689_v62, 0.0  ;;  %v9743_v32 = vld [vmem:[#allocation31_spill] sm:$0xff]  ;;  %v9747_v46 = vld [vmem:[#allocation29_spill] sm:$0xff]  ;;  %v9748_v4 = vld [vmem:[#allocation30_spill] sm:$0xff] }
 0x35c   : > { %v4569_v58 = vpack.c.bf16 %v3835_v40, %v3833_v55  ;;  %v1488_v14 = vsel %vm1416_vm9, %v9689_v62, 0.0  ;;  %vm1622_vm10 = vcmp.eq.s32.totalorder %v8374_v56, %v9740_v22  ;;  %vm1624_vm11 = vcmp.eq.s32.totalorder %v8377_v16, %v9740_v22 }
 0x35d   : > { %v1550_v18 = vadd.f32 %v1486_v17, %v1342_v43  ;;  %v1552_v19 = vadd.f32 %v1488_v14, %v1344_v45  ;;  %v1694_v34 = vsel %vm1622_vm10, %v9741_v50, 0.0  ;;  %v1696_v60 = vsel %vm1624_vm11, %v9741_v50, 0.0  ;;  %v9749_v43 = vld [vmem:[#allocation34_spill] sm:$0xff] }
 0x35e   : > { %4570 = vmatpush1.bf16.msra.mxu0 %v4569_v58  ;;  %vm1830_vm12 = vcmp.eq.s32.totalorder %v8374_v56, %v9742_v57  ;;  %vm1832_vm13 = vcmp.eq.s32.totalorder %v8377_v16, %v9742_v57  ;;  %vm2038_vm14 = vcmp.eq.s32.totalorder %v8374_v56, %v9743_v32  ;;  %vm2040_vm15 = vcmp.eq.s32.totalorder %v8377_v16, %v9743_v32  ;;  %v9750_v58 = vld [vmem:[#allocation33_spill] sm:$0xff] }
 0x35f   : > { %v1758_v62 = vadd.f32 %v1694_v34, %v1550_v18  ;;  %v1760_v47 = vadd.f32 %v1696_v60, %v1552_v19  ;;  %v1902_v54 = vsel %vm1830_vm12, %v9744_v51, 0.0  ;;  %v1904_v49 = vsel %vm1832_vm13, %v9744_v51, 0.0  ;;  %v9751_v18 = vld [vmem:[#allocation35_spill] sm:$0xff]  ;;  %v9752_v34 = vld [vmem:[#allocation36_spill] sm:$0xff]  ;;  %v9753_v32 = vld [vmem:[#allocation37_spill] sm:$0xff] }
 0x360   : > { %v2110_v35 = vsel %vm2038_vm14, %v9745_v12, 0.0  ;;  %v2112_v6 = vsel %vm2040_vm15, %v9745_v12, 0.0  ;;  %vm2246_vm0 = vcmp.eq.s32.totalorder %v8374_v56, %v9746_v2  ;;  %vm2248_vm1 = vcmp.eq.s32.totalorder %v8377_v16, %v9746_v2  ;;  %v9754_v51 = vld [vmem:[#allocation38_spill] sm:$0xff] }
 0x361   : > { %v1966_v55 = vadd.f32 %v1902_v54, %v1758_v62  ;;  %v1968_v26 = vadd.f32 %v1904_v49, %v1760_v47  ;;  %v2318_v40 = vsel %vm2246_vm0, %v9747_v46, 0.0  ;;  %v2320_v29 = vsel %vm2248_vm1, %v9747_v46, 0.0  ;;  %v9755_v54 = vld [vmem:[#allocation40_spill] sm:$0xff] }
 0x362   : > { %vm2454_vm2 = vcmp.eq.s32.totalorder %v8374_v56, %v9748_v4  ;;  %vm2456_vm3 = vcmp.eq.s32.totalorder %v8377_v16, %v9748_v4  ;;  %vm2662_vm4 = vcmp.eq.s32.totalorder %v8374_v56, %v9749_v43  ;;  %vm2664_vm5 = vcmp.eq.s32.totalorder %v8377_v16, %v9749_v43  ;;  %v9759_v43 = vld [vmem:[#allocation43_spill] sm:$0xff] }
 0x363   : > { %v2174_v45 = vadd.f32 %v2110_v35, %v1966_v55  ;;  %v2176_v17 = vadd.f32 %v2112_v6, %v1968_v26  ;;  %v2526_v14 = vsel %vm2454_vm2, %v9750_v58, 0.0  ;;  %v2528_v22 = vsel %vm2456_vm3, %v9750_v58, 0.0  ;;  %v9756_v35 = vld [vmem:[#allocation39_spill] sm:$0xff]  ;;  %v9757_v55 = vld [vmem:[#allocation41_spill] sm:$0xff]  ;;  %v9760_v58 = vld [vmem:[#allocation44_spill] sm:$0xff] }
 0x364   : > { %v2734_v19 = vsel %vm2662_vm4, %v9751_v18, 0.0  ;;  %v2736_v50 = vsel %vm2664_vm5, %v9751_v18, 0.0  ;;  %vm2870_vm6 = vcmp.eq.s32.totalorder %v8374_v56, %v9752_v34  ;;  %vm2872_vm7 = vcmp.eq.s32.totalorder %v8377_v16, %v9752_v34 }
 0x365   : > { %v2382_v60 = vadd.f32 %v2318_v40, %v2174_v45  ;;  %v2384_v57 = vadd.f32 %v2320_v29, %v2176_v17  ;;  %v2942_v62 = vsel %vm2870_vm6, %v9753_v32, 0.0  ;;  %v2944_v47 = vsel %vm2872_vm7, %v9753_v32, 0.0  ;;  %v9758_v40 = vld [vmem:[#allocation42_spill] sm:$0xff]  ;;  %v9763_v32 = vld [vmem:[#allocation48_spill] sm:$0xff] }
 0x366   : > { %vm3078_vm8 = vcmp.eq.s32.totalorder %v8374_v56, %v9754_v51  ;;  %vm3080_vm9 = vcmp.eq.s32.totalorder %v8377_v16, %v9754_v51  ;;  %vm3286_vm10 = vcmp.eq.s32.totalorder %v8374_v56, %v9755_v54  ;;  %vm3288_vm11 = vcmp.eq.s32.totalorder %v8377_v16, %v9755_v54 }
 0x367   : > { %v2590_v49 = vadd.f32 %v2526_v14, %v2382_v60  ;;  %v2592_v12 = vadd.f32 %v2528_v22, %v2384_v57  ;;  %v3150_v6 = vsel %vm3078_vm8, %v9756_v35, 0.0  ;;  %v3152_v2 = vsel %vm3080_vm9, %v9756_v35, 0.0  ;;  %v9761_v14 = vld [vmem:[#allocation46_spill] sm:$0xff] }
 0x368   : > { %v3358_v26 = vsel %vm3286_vm10, %v9757_v55, 0.0  ;;  %v3360_v46 = vsel %vm3288_vm11, %v9757_v55, 0.0  ;;  %vm3494_vm12 = vcmp.eq.s32.totalorder %v8374_v56, %v9758_v40  ;;  %vm3496_vm13 = vcmp.eq.s32.totalorder %v8377_v16, %v9758_v40 }
 0x369   : > { %v2798_v29 = vadd.f32 %v2734_v19, %v2590_v49  ;;  %v2800_v4 = vadd.f32 %v2736_v50, %v2592_v12  ;;  %v3566_v45 = vsel %vm3494_vm12, %v9759_v43, 0.0  ;;  %v3568_v17 = vsel %vm3496_vm13, %v9759_v43, 0.0  ;;  %v9762_v19 = vld [vmem:[#allocation45_spill] sm:$0xff] }
 0x36a   : > { %vm3702_vm14 = vcmp.eq.s32.totalorder %v8374_v56, %v9760_v58  ;;  %vm3704_vm15 = vcmp.eq.s32.totalorder %v8377_v16, %v9760_v58  ;;  %vm645_vm0 = vcmp.eq.s32.totalorder %v8374_v56, %v9761_v14  ;;  %vm647_vm1 = vcmp.eq.s32.totalorder %v8377_v16, %v9761_v14 }
 0x36b   : > { %v3006_v22 = vadd.f32 %v2942_v62, %v2798_v29  ;;  %v3008_v18 = vadd.f32 %v2944_v47, %v2800_v4  ;;  %v3774_v50 = vsel %vm3702_vm14, %v9762_v19, 0.0  ;;  %v3776_v34 = vsel %vm3704_vm15, %v9762_v19, 0.0 }
 0x36c   : > { %v717_v60 = vsel %vm645_vm0, %v9738_v42, 0.0  ;;  %v719_v57 = vsel %vm647_vm1, %v9738_v42, 0.0  ;;  %vm789_vm2 = vcmp.eq.s32.totalorder %v8374_v56, %v9763_v32  ;;  %vm791_vm3 = vcmp.eq.s32.totalorder %v8377_v16, %v9763_v32 }
 0x36d   : > { %v3214_v51 = vadd.f32 %v3150_v6, %v3006_v22  ;;  %v3216_v54 = vadd.f32 %v3152_v2, %v3008_v18  ;;  %v861_v49 = vsel %vm789_vm2, %v9416_v36, 0.0  ;;  %v863_v62 = vsel %vm791_vm3, %v9416_v36, 0.0 }
 0x36e   : > { %v925_v47 = vadd.f32 %v861_v49, %v717_v60  ;;  %v927_v12 = vadd.f32 %v863_v62, %v719_v57  ;;  %vm997_vm4 = vcmp.eq.s32.totalorder %v8374_v56, %v5389_v53  ;;  %vm999_vm5 = vcmp.eq.s32.totalorder %v8377_v16, %v5389_v53 }
 0x36f   : > { %v3422_v42 = vadd.f32 %v3358_v26, %v3214_v51  ;;  %v3424_v35 = vadd.f32 %v3360_v46, %v3216_v54  ;;  %v1069_v55 = vsel %vm997_vm4, %v9387_v52, 0.0  ;;  %v1071_v40 = vsel %vm999_vm5, %v9387_v52, 0.0  ;;  %v9764_v54 = vld [vmem:[#allocation16_spill] sm:$0xff] }
 0x370   : > { %v1133_v6 = vadd.f32 %v1069_v55, %v925_v47  ;;  %v1135_v2 = vadd.f32 %v1071_v40, %v927_v12  ;;  %vm1205_vm6 = vcmp.eq.s32.totalorder %v8374_v56, %v9388_v5  ;;  %vm1207_vm7 = vcmp.eq.s32.totalorder %v8377_v16, %v9388_v5  ;;  %v9765_v47 = vld [vmem:[#allocation17_spill] sm:$0xff]  ;;  %v543_v55 = vld [vmem:[%s526_s30] sm:$0x3]  ;;  %s4235_s30 = ssub.f32 1.0, %s8803_s13 }
 0x371   : > { %v3630_v36 = vadd.f32 %v3566_v45, %v3422_v42  ;;  %v3632_v29 = vadd.f32 %v3568_v17, %v3424_v35  ;;  %v1277_v4 = vsel %vm1205_vm6, %v9389_v48, 0.0  ;;  %v1279_v53 = vsel %vm1207_vm7, %v9389_v48, 0.0 }
 0x372   : > { %v1341_v26 = vadd.f32 %v1277_v4, %v1133_v6  ;;  %v1343_v46 = vadd.f32 %v1279_v53, %v1135_v2  ;;  %vm1413_vm8 = vcmp.eq.s32.totalorder %v8374_v56, %v9390_v39  ;;  %vm1415_vm9 = vcmp.eq.s32.totalorder %v8377_v16, %v9390_v39 }
 0x373   : > { %v3838_v52 = vadd.f32 %v3774_v50, %v3630_v36  ;;  %v3840_v43 = vadd.f32 %v3776_v34, %v3632_v29  ;;  %v1485_v58 = vsel %vm1413_vm8, %v9391_v8, 0.0  ;;  %v1487_v5 = vsel %vm1415_vm9, %v9391_v8, 0.0 }
 0x374   : > { %v1549_v45 = vadd.f32 %v1485_v58, %v1341_v26  ;;  %v1551_v17 = vadd.f32 %v1487_v5, %v1343_v46  ;;  %vm1621_vm10 = vcmp.eq.s32.totalorder %v8374_v56, %v5427_v24  ;;  %vm1623_vm11 = vcmp.eq.s32.totalorder %v8377_v16, %v5427_v24 }
 0x375   : > { %v4571_v48 = vpack.c.bf16 %v3840_v43, %v3838_v52  ;;  %v1693_v39 = vsel %vm1621_vm10, %v9392_v9, 0.0  ;;  %v1695_v14 = vsel %vm1623_vm11, %v9392_v9, 0.0  ;;  %vm1829_vm12 = vcmp.eq.s32.totalorder %v8374_v56, %v9393_v10 }
 0x376   : > { %v1757_v8 = vadd.f32 %v1693_v39, %v1549_v45  ;;  %v1759_v22 = vadd.f32 %v1695_v14, %v1551_v17  ;;  %vm1831_vm13 = vcmp.eq.s32.totalorder %v8377_v16, %v9393_v10  ;;  %v1901_v18 = vsel %vm1829_vm12, %v9394_v30, 0.0  ;;  %v4144_v45 = vld [vmem:[%s8839_s7] sm:$0xf]  ;;  %v9768_v17 = vld [vmem:[#allocation75_spill] sm:$0xff]  ;;  %v9769_v39 = vld [vmem:[#allocation76_spill] sm:$0xff] }
 0x377   : > { %4572 = vmatprep.subr.bf16.mxu0 %v4571_v48  ;;  %v1903_v24 = vsel %vm1831_vm13, %v9394_v30, 0.0  ;;  %vm2037_vm14 = vcmp.eq.s32.totalorder %v8374_v56, %v9395_v0  ;;  %vm2039_vm15 = vcmp.eq.s32.totalorder %v8377_v16, %v9395_v0  ;;  %vm2245_vm0 = vcmp.eq.s32.totalorder %v8374_v56, %v5469_v28  ;;  %v542_v0 = vld [vmem:[%s522_s28] sm:$0x3]  ;;  %v9770_v14 = vld [vmem:[#allocation77_spill] sm:$0xff]  ;;  %s8794_s28 = sld [smem:[#allocation2 + %s4150_s16]] }
 0x378   : > { %v1965_v9 = vadd.f32 %v1901_v18, %v1757_v8  ;;  %v1967_v10 = vadd.f32 %v1903_v24, %v1759_v22  ;;  %v2109_v19 = vsel %vm2037_vm14, %v5465_v41, 0.0  ;;  %v2111_v50 = vsel %vm2039_vm15, %v5465_v41, 0.0  ;;  %v4146_v18 = vld [vmem:[%s8841_s9] sm:$0xf] }
 0x379   : > { %vm2247_vm1 = vcmp.eq.s32.totalorder %v8377_v16, %v5469_v28  ;;  %v2317_v30 = vsel %vm2245_vm0, %v9396_v25, 0.0  ;;  %vm2453_vm2 = vcmp.eq.s32.totalorder %v8374_v56, %v9397_v31  ;;  %vm2455_vm3 = vcmp.eq.s32.totalorder %v8377_v16, %v9397_v31  ;;  %v9771_v24 = vld [vmem:[#allocation50_spill] sm:$0xff] }
 0x37a   : > { %v2173_v34 = vadd.f32 %v2109_v19, %v1965_v9  ;;  %v2175_v60 = vadd.f32 %v2111_v50, %v1967_v10  ;;  %v2319_v57 = vsel %vm2247_vm1, %v9396_v25, 0.0  ;;  %v2525_v32 = vsel %vm2453_vm2, %v9398_v37, 0.0  ;;  %v9772_v9 = vld [vmem:[#allocation51_spill] sm:$0xff]  ;;  %v9773_v19 = vld [vmem:[#allocation52_spill] sm:$0xff]  ;;  %v9774_v50 = vld [vmem:[#allocation53_spill] sm:$0xff] }
 0x37b   : > { %v2527_v41 = vsel %vm2455_vm3, %v9398_v37, 0.0  ;;  %vm2661_vm4 = vcmp.eq.s32.totalorder %v8374_v56, %v9417_v11  ;;  %vm2663_vm5 = vcmp.eq.s32.totalorder %v8377_v16, %v9417_v11  ;;  %vm2869_vm6 = vcmp.eq.s32.totalorder %v8374_v56, %v9419_v15 }
 0x37c   : > { %v2381_v28 = vadd.f32 %v2317_v30, %v2173_v34  ;;  %v2383_v31 = vadd.f32 %v2319_v57, %v2175_v60  ;;  %v2733_v51 = vsel %vm2661_vm4, %v9418_v21, 0.0  ;;  %v8554_v49 = vrot.slane %v542_v0, %v9764_v54  ;;  %v9775_v30 = vld [vmem:[#allocation54_spill] sm:$0xff]  ;;  %v9777_v34 = vld [vmem:[#allocation56_spill] sm:$0xff]  ;;  %v9778_v60 = vld [vmem:[#allocation57_spill] sm:$0xff] }
 0x37d   : > { %v2735_v25 = vsel %vm2663_vm5, %v9418_v21, 0.0  ;;  %vm2871_vm7 = vcmp.eq.s32.totalorder %v8377_v16, %v9419_v15  ;;  %vm3077_vm8 = vcmp.eq.s32.totalorder %v8374_v56, %v9421_v7  ;;  %vm3079_vm9 = vcmp.eq.s32.totalorder %v8377_v16, %v9421_v7  ;;  %s4207_s21 = ssub.f32 1.0, %s8794_s28 }
 0x37e   : > { %v2589_v37 = vadd.f32 %v2525_v32, %v2381_v28  ;;  %v2591_v11 = vadd.f32 %v2527_v41, %v2383_v31  ;;  %v2941_v62 = vsel %vm2869_vm6, %v9420_v1, 0.0  ;;  %v8569_v12 = vrot.slane %v542_v0, %v9765_v47  ;;  %v9776_v0 = vld [vmem:[#allocation55_spill] sm:$0xff]  ;;  %v9779_v32 = vld [vmem:[#allocation58_spill] sm:$0xff]  ;;  %v9781_v28 = vld [vmem:[#allocation60_spill] sm:$0xff] }
 0x37f   : > { %v2943_v21 = vsel %vm2871_vm7, %v9420_v1, 0.0  ;;  %vm3285_vm10 = vcmp.eq.s32.totalorder %v8374_v56, %v9446_v3  ;;  %vm3287_vm11 = vcmp.eq.s32.totalorder %v8377_v16, %v9446_v3  ;;  %vm3493_vm12 = vcmp.eq.s32.totalorder %v8374_v56, %v9498_v63  ;;  %v9780_v41 = vld [vmem:[#allocation59_spill] sm:$0xff]  ;;  %v9782_v31 = vld [vmem:[#allocation61_spill] sm:$0xff] }
 0x380   : > { %v2797_v15 = vadd.f32 %v2733_v51, %v2589_v37  ;;  %v2799_v7 = vadd.f32 %v2735_v25, %v2591_v11  ;;  %v3149_v42 = vsel %vm3077_vm8, %v9401_v59, 0.0  ;;  %v3151_v35 = vsel %vm3079_vm9, %v9401_v59, 0.0  ;;  %v4145_v59 = vld [vmem:[%s8840_s8] sm:$0xf]  ;;  %v9783_v51 = vld [vmem:[#allocation67_spill] sm:$0xff]  ;;  %v9784_v25 = vld [vmem:[#allocation49_spill] sm:$0xff] }
 0x381   : > { %v3357_v40 = vsel %vm3285_vm10, %v9527_v13, 0.0  ;;  %v3359_v1 = vsel %vm3287_vm11, %v9527_v13, 0.0  ;;  %vm3495_vm13 = vcmp.eq.s32.totalorder %v8377_v16, %v9498_v63  ;;  %vm3701_vm14 = vcmp.eq.s32.totalorder %v8374_v56, %v9500_v61  ;;  %v4147_v13 = vld [vmem:[%s8842_s10] sm:$0xf]  ;;  %v9786_v11 = vld [vmem:[#allocation63_spill] sm:$0xff] }
 0x382   : > { %v3005_v3 = vadd.f32 %v2941_v62, %v2797_v15  ;;  %v3007_v6 = vadd.f32 %v2943_v21, %v2799_v7  ;;  %v3565_v2 = vsel %vm3493_vm12, %v9499_v27, 0.0  ;;  %vm3703_vm15 = vcmp.eq.s32.totalorder %v8377_v16, %v9500_v61  ;;  %v9785_v37 = vld [vmem:[#allocation62_spill] sm:$0xff]  ;;  %v9787_v62 = vld [vmem:[#allocation64_spill] sm:$0xff] }
 0x383   : > { %v3567_v63 = vsel %vm3495_vm13, %v9499_v27, 0.0  ;;  %v3991_v36 = vrot.slane %v543_v55, %v9764_v54  ;;  %v3995_v29 = vrot.slane %v543_v55, %v9765_v47  ;;  %v3773_v26 = vsel %vm3701_vm14, %v9579_v23, 0.0  ;;  %v9766_v27 = vld [vmem:[#allocation15_spill] sm:$0xff]  ;;  %v9789_v21 = vld [vmem:[#allocation66_spill] sm:$0xff]  ;;  %v9790_v15 = vld [vmem:[#allocation68_spill] sm:$0xff] }
 0x384   : > { %v3213_v4 = vadd.f32 %v3149_v42, %v3005_v3  ;;  %v3215_v53 = vadd.f32 %v3151_v35, %v3007_v6  ;;  %v4856_v46 = vmov 0   ;;  %vm3924_vm0 = vcmp.eq.s32.totalorder %v9715_v44, %v8569_v12  ;;  %v9791_v7 = vld [vmem:[#allocation70_spill] sm:$0xff]  ;;  %v9792_v42 = vld [vmem:[#allocation71_spill] sm:$0xff] }
 0x385   : > { %4729 = vset.pattern.permute.xlu0 %v4856_v46  ;;  %4730 = vset.pattern.permute.xlu1 %v4856_v46  ;;  %v3775_v61 = vsel %vm3703_vm15, %v9579_v23, 0.0  ;;  %v8602_v52 = vpack.c.bf16 %v3995_v29, %v3995_v29  ;;  %v8604_v43 = vpack.c.bf16 %v3991_v36, %v3991_v36  ;;  %vm3926_vm1 = vcmp.eq.s32.totalorder %v9766_v27, %v8569_v12  ;;  %v9767_v23 = vld [vmem:[#allocation74_spill] sm:$0xff] }
 0x386   : > { %4156 = vperm.xlu0 %4729, %v4145_v59   ;;  %4179 = vperm.xlu1 %4730, %v4147_v13   ;;  %v3421_v58 = vadd.f32 %v3357_v40, %v3213_v4  ;;  %v3423_v5 = vadd.f32 %v3359_v1, %v3215_v53  ;;  %vm4576_vm2 = vmpackc.low %vm3926_vm1, %vm3924_vm0  ;;  %vm3923_vm3 = vcmp.eq.s32.totalorder %v9715_v44, %v8554_v49  ;;  %v4170_v40 = vstv %s4149_s29 }
 0x387   : > { %vm3925_vm4 = vcmp.eq.s32.totalorder %v9766_v27, %v8554_v49  ;;  %4577 = vmatprep.subr.msk.bf16.mxu1 %vm4576_vm2, %v8602_v52  ;;  %vm3928_vm6 = vcmp.eq.s32.totalorder %v9767_v23, %v8569_v12  ;;  %vm3930_vm7 = vcmp.eq.s32.totalorder %v9768_v17, %v8569_v12  ;;  %vm3927_vm8 = vcmp.eq.s32.totalorder %v9767_v23, %v8554_v49 }
 0x388   : > { %vm4579_vm5 = vmpackc.low %vm3925_vm4, %vm3923_vm3  ;;  %vm3929_vm9 = vcmp.eq.s32.totalorder %v9768_v17, %v8554_v49  ;;  %v3629_v48 = vadd.f32 %v3565_v2, %v3421_v58  ;;  %v3631_v44 = vadd.f32 %v3567_v63, %v3423_v5  ;;  %vm3932_vm11 = vcmp.eq.s32.totalorder %v9769_v39, %v8569_v12 }
 0x389   : > { %4580 = vmatpush1.bf16.msk.msra.mxu1 %vm4579_vm5, %v8604_v43  ;;  %vm4582_vm10 = vmpackc.low %vm3930_vm7, %vm3928_vm6  ;;  %vm3934_vm12 = vcmp.eq.s32.totalorder %v9770_v14, %v8569_v12  ;;  %vm3931_vm15 = vcmp.eq.s32.totalorder %v9769_v39, %v8554_v49  ;;  %vm3933_vm0 = vcmp.eq.s32.totalorder %v9770_v14, %v8554_v49  ;;  %vm3936_vm1 = vcmp.eq.s32.totalorder %v9771_v24, %v8569_v12 }
 0x38a   : > { %4163 = vperm.xlu0 %4729, %v4144_v45   ;;  %4583 = vmatprep.subr.msk.bf16.mxu1 %vm4582_vm10, %v8602_v52  ;;  %vm4585_vm13 = vmpackc.low %vm3929_vm9, %vm3927_vm8  ;;  %v3837_v8 = vadd.f32 %v3773_v26, %v3629_v48  ;;  %v3839_v22 = vadd.f32 %v3775_v61, %v3631_v44  ;;  %vm3938_vm2 = vcmp.eq.s32.totalorder %v9772_v9, %v8569_v12  ;;  %v4204_v36 = vstv %s8794_s28 }
 0x38b   : > { %vm4588_vm14 = vmpackc.low %vm3934_vm12, %vm3932_vm11  ;;  %vm3935_vm5 = vcmp.eq.s32.totalorder %v9771_v24, %v8554_v49  ;;  %vm3937_vm6 = vcmp.eq.s32.totalorder %v9772_v9, %v8554_v49  ;;  %vm3940_vm7 = vcmp.eq.s32.totalorder %v9773_v19, %v8569_v12  ;;  %vm3942_vm8 = vcmp.eq.s32.totalorder %v9774_v50, %v8569_v12 }
 0x38c   : > { %v4573_v10 = vpack.c.bf16 %v3839_v22, %v3837_v8  ;;  %vm4591_vm3 = vmpackc.low %vm3933_vm0, %vm3931_vm15  ;;  %vm3939_vm11 = vcmp.eq.s32.totalorder %v9773_v19, %v8554_v49  ;;  %vm3941_vm12 = vcmp.eq.s32.totalorder %v9774_v50, %v8554_v49 }
 0x38d   : > { %4586 = vmatpush1.bf16.msk.msra.mxu1 %vm4585_vm13, %v8604_v43  ;;  %vm4594_vm4 = vmpackc.low %vm3938_vm2, %vm3936_vm1  ;;  %vm3944_vm13 = vcmp.eq.s32.totalorder %v9775_v30, %v8569_v12  ;;  %vm3943_vm1 = vcmp.eq.s32.totalorder %v9775_v30, %v8554_v49  ;;  %vm3945_vm2 = vcmp.eq.s32.totalorder %v9776_v0, %v8554_v49 }
 0x38e   : > { %4251 = vperm.xlu0 %4729, %v4146_v18   ;;  %4589 = vmatprep.subr.msk.bf16.mxu1 %vm4588_vm14, %v8602_v52  ;;  %vm4597_vm9 = vmpackc.low %vm3937_vm6, %vm3935_vm5  ;;  %vm3946_vm14 = vcmp.eq.s32.totalorder %v9776_v0, %v8569_v12 }
 0x38f   : > { %4574 = vmatpush1.bf16.msra.mxu0 %v4573_v10  ;;  %vm4600_vm10 = vmpackc.low %vm3942_vm8, %vm3940_vm7  ;;  %vm3947_vm7 = vcmp.eq.s32.totalorder %v9777_v34, %v8554_v49  ;;  %vm3949_vm8 = vcmp.eq.s32.totalorder %v9778_v60, %v8554_v49  ;;  %v4208_v10 = vstv %s4207_s21 }
 0x390   : > { %vm4603_vm15 = vmpackc.low %vm3941_vm12, %vm3939_vm11 }
 0x391   : > { %4592 = vmatpush1.bf16.msk.msra.mxu1 %vm4591_vm3, %v8604_v43  ;;  %vm4606_vm0 = vmpackc.low %vm3946_vm14, %vm3944_vm13  ;;  %vm3948_vm3 = vcmp.eq.s32.totalorder %v9777_v34, %v8569_v12  ;;  %vm3951_vm13 = vcmp.eq.s32.totalorder %v9779_v32, %v8554_v49  ;;  %vm3953_vm14 = vcmp.eq.s32.totalorder %v9780_v41, %v8554_v49 }
 0x392   : > { %3909 = vmatmul.mubr.f32.vlgmr.msra.gmra.mrb[0].mxu0 %v8366_v38  ;;  %4595 = vmatprep.subr.msk.bf16.mxu1 %vm4594_vm4, %v8602_v52  ;;  %v8668_v38 = vld [vmem:[%s518_s24] sm:$0x3]  ;;  %vm3950_vm4 = vcmp.eq.s32.totalorder %v9778_v60, %v8569_v12  ;;  %vm4609_vm5 = vmpackc.low %vm3945_vm2, %vm3943_vm1 }
 0x393   : > { %v4070_v57 = vrot.slane %v8668_v38, %v9765_v47  ;;  %vm4612_vm6 = vmpackc.low %vm3950_vm4, %vm3948_vm3  ;;  %vm3955_vm3 = vcmp.eq.s32.totalorder %v9781_v28, %v8554_v49  ;;  %vm3957_vm4 = vcmp.eq.s32.totalorder %v9782_v31, %v8554_v49  ;;  %v9788_v47 = vld [vmem:[#allocation65_spill] sm:$0xff] }
 0x394   : > { %vm4615_vm11 = vmpackc.low %vm3949_vm8, %vm3947_vm7 }
 0x395   : > { %4598 = vmatpush1.bf16.msk.msra.mxu1 %vm4597_vm9, %v8604_v43  ;;  %4137 = vmatprep.mubr.f32.mxu1 %v4070_v57  ;;  %vm3952_vm9 = vcmp.eq.s32.totalorder %v9779_v32, %v8569_v12  ;;  %vm4621_vm1 = vmpackc.low %vm3953_vm14, %vm3951_vm13  ;;  %v4232_v57 = vstv %s8803_s13 }
 0x396   : > { %4601 = vmatprep.subr.msk.bf16.mxu1 %vm4600_vm10, %v8602_v52  ;;  %vm3954_vm10 = vcmp.eq.s32.totalorder %v9780_v41, %v8569_v12  ;;  %vm4627_vm7 = vmpackc.low %vm3957_vm4, %vm3955_vm3 }
 0x397   : > { %vm4618_vm12 = vmpackc.low %vm3954_vm10, %vm3952_vm9  ;;  %vm3959_vm9 = vcmp.eq.s32.totalorder %v9783_v51, %v8554_v49  ;;  %vm3961_vm10 = vcmp.eq.s32.totalorder %v9784_v25, %v8554_v49 }
 0x398   : > { %vm4633_vm13 = vmpackc.low %vm3961_vm10, %vm3959_vm9 }
 0x399   : > { %4604 = vmatpush1.bf16.msk.msra.mxu1 %vm4603_vm15, %v8604_v43  ;;  %vm3956_vm15 = vcmp.eq.s32.totalorder %v9781_v28, %v8569_v12 }
 0x39a   : > { %4607 = vmatprep.subr.msk.bf16.mxu1 %vm4606_vm0, %v8602_v52  ;;  %vm3958_vm0 = vcmp.eq.s32.totalorder %v9782_v31, %v8569_v12 }
 0x39b   : > { %vm4624_vm2 = vmpackc.low %vm3958_vm0, %vm3956_vm15  ;;  %vm3963_vm15 = vcmp.eq.s32.totalorder %v9785_v37, %v8554_v49  ;;  %vm3965_vm0 = vcmp.eq.s32.totalorder %v9786_v11, %v8554_v49 }
 0x39c   : > { %vm4639_vm3 = vmpackc.low %vm3965_vm0, %vm3963_vm15 }
 0x39d   : > { %4610 = vmatpush1.bf16.msk.msra.mxu1 %vm4609_vm5, %v8604_v43  ;;  %vm3960_vm5 = vcmp.eq.s32.totalorder %v9783_v51, %v8569_v12 }
 0x39e   : > { %4613 = vmatprep.subr.msk.bf16.mxu1 %vm4612_vm6, %v8602_v52  ;;  %vm3962_vm6 = vcmp.eq.s32.totalorder %v9784_v25, %v8569_v12 }
 0x39f   : > { %vm4630_vm8 = vmpackc.low %vm3962_vm6, %vm3960_vm5  ;;  %vm3967_vm5 = vcmp.eq.s32.totalorder %v9787_v62, %v8554_v49  ;;  %vm3969_vm6 = vcmp.eq.s32.totalorder %v9788_v47, %v8554_v49 }
 0x3a0   : > { %vm4645_vm9 = vmpackc.low %vm3969_vm6, %vm3967_vm5 }
 0x3a1   : > { %4616 = vmatpush1.bf16.msk.msra.mxu1 %vm4615_vm11, %v8604_v43  ;;  %vm3964_vm11 = vcmp.eq.s32.totalorder %v9785_v37, %v8569_v12 }
 0x3a2   : > { %4619 = vmatprep.subr.msk.bf16.mxu1 %vm4618_vm12, %v8602_v52  ;;  %vm3966_vm12 = vcmp.eq.s32.totalorder %v9786_v11, %v8569_v12 }
 0x3a3   : > { %vm4636_vm14 = vmpackc.low %vm3966_vm12, %vm3964_vm11  ;;  %vm3971_vm11 = vcmp.eq.s32.totalorder %v9789_v21, %v8554_v49  ;;  %vm3973_vm12 = vcmp.eq.s32.totalorder %v9790_v15, %v8554_v49 }
 0x3a4   : > { %vm4651_vm15 = vmpackc.low %vm3973_vm12, %vm3971_vm11 }
 0x3a5   : > { %4622 = vmatpush1.bf16.msk.msra.mxu1 %vm4621_vm1, %v8604_v43  ;;  %vm3968_vm1 = vcmp.eq.s32.totalorder %v9787_v62, %v8569_v12 }
 0x3a6   : > { %4625 = vmatprep.subr.msk.bf16.mxu1 %vm4624_vm2, %v8602_v52  ;;  %vm3970_vm2 = vcmp.eq.s32.totalorder %v9788_v47, %v8569_v12 }
 0x3a7   : > { %vm4642_vm4 = vmpackc.low %vm3970_vm2, %vm3968_vm1  ;;  %vm3975_vm1 = vcmp.eq.s32.totalorder %v9791_v7, %v8554_v49  ;;  %vm3977_vm2 = vcmp.eq.s32.totalorder %v9792_v42, %v8554_v49 }
 0x3a8   : > { %vm4657_vm5 = vmpackc.low %vm3977_vm2, %vm3975_vm1  ;;  %vm4264_vm1 = vcmask 1043456  }
 0x3a9   : > { %4628 = vmatpush1.bf16.msk.msra.mxu1 %vm4627_vm7, %v8604_v43  ;;  %vm3972_vm7 = vcmp.eq.s32.totalorder %v9789_v21, %v8569_v12 }
 0x3aa   : > { %4631 = vmatprep.subr.msk.bf16.mxu1 %vm4630_vm8, %v8602_v52  ;;  %vm3974_vm8 = vcmp.eq.s32.totalorder %v9790_v15, %v8569_v12 }
 0x3ab   : > { %vm4648_vm10 = vmpackc.low %vm3974_vm8, %vm3972_vm7  ;;  %vm3979_vm7 = vcmp.eq.s32.totalorder %v9716_v33, %v8554_v49  ;;  %vm3981_vm8 = vcmp.eq.s32.totalorder %v8169_v20, %v8554_v49 }
 0x3ac   : > { %vm4663_vm11 = vmpackc.low %vm3981_vm8, %vm3979_vm7 }
 0x3ad   : > { %4634 = vmatpush1.bf16.msk.msra.mxu1 %vm4633_vm13, %v8604_v43  ;;  %vm3976_vm13 = vcmp.eq.s32.totalorder %v9791_v7, %v8569_v12 }
 0x3ae   : > { %4637 = vmatprep.subr.msk.bf16.mxu1 %vm4636_vm14, %v8602_v52  ;;  %vm3978_vm14 = vcmp.eq.s32.totalorder %v9792_v42, %v8569_v12 }
 0x3af   : > { %vm4654_vm0 = vmpackc.low %vm3978_vm14, %vm3976_vm13  ;;  %vm3983_vm13 = vcmp.eq.s32.totalorder %v8374_v56, %v8554_v49  ;;  %vm3985_vm14 = vcmp.eq.s32.totalorder %v8377_v16, %v8554_v49 }
 0x3b1   : > { %4640 = vmatpush1.bf16.msk.msra.mxu1 %vm4639_vm3, %v8604_v43  ;;  %vm3980_vm3 = vcmp.eq.s32.totalorder %v9716_v33, %v8569_v12 }
 0x3b2   : > { %4643 = vmatprep.subr.msk.bf16.mxu1 %vm4642_vm4, %v8602_v52  ;;  %vm3982_vm4 = vcmp.eq.s32.totalorder %v8169_v20, %v8569_v12  ;;  %v4066_v20 = vrot.slane %v8668_v38, %v9764_v54 }
 0x3b3   : > { %vm4660_vm6 = vmpackc.low %vm3982_vm4, %vm3980_vm3 }
 0x3b5   : > { %4646 = vmatpush1.bf16.msk.msra.mxu1 %vm4645_vm9, %v8604_v43  ;;  %vm3984_vm9 = vcmp.eq.s32.totalorder %v8374_v56, %v8569_v12 }
 0x3b6   : > { %4649 = vmatprep.subr.msk.bf16.mxu1 %vm4648_vm10, %v8602_v52  ;;  %vm3986_vm10 = vcmp.eq.s32.totalorder %v8377_v16, %v8569_v12 }
 0x3b7   : > { %vm4666_vm12 = vmpackc.low %vm3986_vm10, %vm3984_vm9 }
 0x3b9   : > { %4652 = vmatpush1.bf16.msk.msra.mxu1 %vm4651_vm15, %v8604_v43  ;;  %vm4669_vm15 = vmpackc.low %vm3985_vm14, %vm3983_vm13 }
 0x3ba   : > { %4655 = vmatprep.subr.msk.bf16.mxu1 %vm4654_vm0, %v8602_v52  ;;  %vm4184_vm0 = vcmask 1042432  }
 0x3bd   : > { %4658 = vmatpush1.bf16.msk.msra.mxu1 %vm4657_vm5, %v8604_v43 }
 0x3be   : > { %4661 = vmatprep.subr.msk.bf16.mxu1 %vm4660_vm6, %v8602_v52 }
 0x3c1   : > { %4664 = vmatpush1.bf16.msk.msra.mxu1 %vm4663_vm11, %v8604_v43 }
 0x3c2   : > { %4667 = vmatprep.subr.msk.bf16.mxu1 %vm4666_vm12, %v8602_v52 }
 0x3c5   : > { %4670 = vmatpush1.bf16.msk.msra.mxu1 %vm4669_vm15, %v8604_v43 }
 0x3c8   : > { %4138 = vmatmul.mubr.f32.vlgmr.msra.gmra.mrb[0].mxu1 %v4066_v20 }
 0x405   : > { %v4157_v33 = vpop.permute.xlu0 %4156  ;;  %v4180_v63 = vpop.permute.xlu1 %4179 }
 0x409   : > { %v8791_v12 = vpop.permute.xlu0 %4163 }
 0x465   : > { %v8786_v56 = vpop.f32.mrb[0].mxu0 }
 0x466   : > { %v4159_v16 = vmul.f32 %v4157_v33, %v8786_v56  ;;  %v8789_v49 = vpop.f32.mrb[1].mxu0 }
 0x467   : > { %v4160_v54 = vmul.f32 %v4157_v33, %v8789_v49 }
 0x468   : > { %v4166_v35 = vadd.f32 %v8791_v12, %v4159_v16 }
 0x469   : > { %v4167_v55 = vadd.f32 %v8791_v12, %v4160_v54 }
 0x46a   : > { %v4168_v1 = vmul.f32 0.003921569, %v4166_v35  ;;  %v4236_v35 = vstv %s4235_s30 }
 0x46b   : > { %v4169_v3 = vmul.f32 0.003921569, %v4167_v55 }
 0x46c   : > { %v4171_v6 = vmul.f32 %v4170_v40, %v4168_v1 }
 0x46d   : > { %v4172_v2 = vmul.f32 %v4170_v40, %v4169_v3 }
 0x46e   : > { %v4173_v59 = vmax.f32 %v4171_v6, 0.0 }
 0x46f   : > { %v4174_v13 = vmax.f32 %v4172_v2, 0.0 }
 0x470   : > { %v4175_v29 = vmin.f32 %v4173_v59, 1.0 }
 0x471   : > { %v4176_v4 = vmin.f32 %v4174_v13, 1.0 }
 0x472   : > { %v4182_v53 = vmul.f32 %v4180_v63, %v4175_v29  ;;  %v4205_v26 = vmul.f32 %v4204_v36, %v4175_v29 }
 0x473   : > { %v4183_v46 = vmul.f32 %v4180_v63, %v4176_v4  ;;  %v4206_v61 = vmul.f32 %v4204_v36, %v4176_v4 }
 0x474   : > { %v4185_v52 = vsel %vm4184_vm0, %v4182_v53, 0.0 }
 0x475   : > { %v4186_v43 = vrot.slane %v4185_v52, 4  ;;  %v4192_v27 = vsel %vm4184_vm0, %v4183_v46, 0.0  ;;  %v4252_v46 = vpop.permute.xlu0 %4251 }
 0x476   : > { %v4193_v58 = vrot.slane %v4192_v27, 4 }
 0x477   : > { %v4187_v5 = vadd.f32 %v4186_v43, %v4185_v52 }
 0x478   : > { %v4194_v45 = vadd.f32 %v4193_v58, %v4192_v27 }
 0x479   : > { %v4188_v23 = vrot.slane %v4187_v5, 2 }
 0x47a   : > { %v4195_v17 = vrot.slane %v4194_v45, 2 }
 0x47b   : > { %v4189_v48 = vadd.f32 %v4188_v23, %v4187_v5 }
 0x47c   : > { %v4196_v44 = vadd.f32 %v4195_v17, %v4194_v45 }
 0x47d   : > { %v4190_v39 = vrot.slane %v4189_v48, 1 }
 0x47e   : > { %v4197_v14 = vrot.slane %v4196_v44, 1 }
 0x47f   : > { %v4191_v8 = vadd.f32 %v4190_v39, %v4189_v48 }
 0x480   : > { %v4198_v22 = vadd.f32 %v4197_v14, %v4196_v44 }
 0x482   : > { %v4199_v18 = vadd.f32 %v4198_v22, %v4191_v8 }
 0x484   : > { %4200 = vadd.xlane.f32.xlu1 %v4199_v18 }
 0x49b   : > { %v4139_v24 = vpop.f32.mrb[0].mxu1 }
 0x49c   : > { %v4141_v9 = vpop.f32.mrb[1].mxu1 }
 0x49d   : > { %v4259_v52 = vrot.slane %v4141_v9, 4 }
 0x511   : > { %v4201_v19 = vpop.xlane.xlu1 %4200 }
 0x512   : > { %v4203_v50 = vmul.f32 0.00390625, %v4201_v19 }
 0x514   : > { %v4209_v30 = vmul.f32 %v4208_v10, %v4203_v50 }
 0x516   : > { %v4210_v0 = vadd.f32 %v4209_v30, %v4205_v26  ;;  %v4211_v38 = vadd.f32 %v4209_v30, %v4206_v61  ;;  %v4258_v61 = vrot.slane %v4139_v24, 4 }
 0x518   : > { %v4212_v34 = vmax.f32 %v4210_v0, 0.0  ;;  %v4213_v60 = vmax.f32 %v4211_v38, 0.0 }
 0x51a   : > { %v4214_v32 = vmin.f32 %v4212_v34, 1.0  ;;  %v4215_v41 = vmin.f32 %v4213_v60, 1.0 }
 0x51c   : > { %v4216_v28 = vmul.f32 %v4214_v32, %v4180_v63  ;;  %v4217_v31 = vmul.f32 %v4215_v41, %v4180_v63  ;;  %v4233_v51 = vmul.f32 %v4232_v57, %v4214_v32  ;;  %v4234_v25 = vmul.f32 %v4232_v57, %v4215_v41 }
 0x51e   : > { %v4218_v37 = vsel %vm4184_vm0, %v4216_v28, 0.0  ;;  %v4225_v11 = vsel %vm4184_vm0, %v4217_v31, 0.0 }
 0x51f   : > { %v4219_v62 = vrot.slane %v4218_v37, 4  ;;  %v4226_v47 = vrot.slane %v4225_v11, 4 }
 0x521   : > { %v4220_v21 = vadd.f32 %v4219_v62, %v4218_v37  ;;  %v4227_v15 = vadd.f32 %v4226_v47, %v4225_v11 }
 0x523   : > { %v4221_v7 = vrot.slane %v4220_v21, 2  ;;  %v4228_v42 = vrot.slane %v4227_v15, 2 }
 0x525   : > { %v4222_v20 = vadd.f32 %v4221_v7, %v4220_v21  ;;  %v4229_v33 = vadd.f32 %v4228_v42, %v4227_v15 }
 0x527   : > { %v4223_v16 = vrot.slane %v4222_v20, 1  ;;  %v4230_v54 = vrot.slane %v4229_v33, 1 }
 0x529   : > { %v4224_v55 = vadd.f32 %v4223_v16, %v4222_v20  ;;  %v4231_v40 = vadd.f32 %v4230_v54, %v4229_v33 }
 0x52b   : > { %v4237_v1 = vmul.f32 %v4236_v35, %v4224_v55  ;;  %v4238_v3 = vmul.f32 %v4236_v35, %v4231_v40 }
 0x52d   : > { %v4239_v6 = vadd.f32 %v4237_v1, %v4233_v51  ;;  %v4240_v2 = vadd.f32 %v4238_v3, %v4234_v25 }
 0x52f   : > { %v4241_v59 = vmax.f32 %v4239_v6, 0.0  ;;  %v4242_v13 = vmax.f32 %v4240_v2, 0.0 }
 0x531   : > { %v4243_v63 = vmin.f32 %v4241_v59, 1.0  ;;  %v4244_v36 = vmin.f32 %v4242_v13, 1.0 }
 0x533   : > { %v4245_v29 = vmul.f32 255.0, %v4243_v63  ;;  %v4246_v4 = vmul.f32 255.0, %v4244_v36 }
 0x535   : > { %v4247_v53 = vsub.f32 %v4245_v29, %v8791_v12  ;;  %v4248_v26 = vsub.f32 %v4246_v4, %v8791_v12 }
 0x537   : > { %v4254_v43 = vmul.f32 %v4252_v46, %v4247_v53  ;;  %v4255_v27 = vmul.f32 %v4252_v46, %v4248_v26 }
 0x539   : > { %v4262_v58 = vsel %vm4184_vm0, %v4254_v43, %v8786_v56  ;;  %v4263_v5 = vsel %vm4184_vm0, %v4255_v27, %v8789_v49 }
 0x53a   : > { %v4265_v45 = vsel %vm4264_vm1, %v4262_v58, %v4258_v61  ;;  %v4266_v23 = vsel %vm4264_vm1, %v4263_v5, %v4259_v52 }
 0x53b   : > { %4267 = vst [vmem:[%s531_s0] sm:$0x1f] %v4265_v45  ;;  %4268 = vst [vmem:[%s531_s0 + $0x8] sm:$0x1f] %v4266_v23 }
 0x53c PF: > { %s9793_s20 = sld [smem:[#allocation12_spill]]  ;;  %s9794_s26 = sld [smem:[#allocation11_spill]] }
 0x53d   : > { %s9795_s19 = sld [smem:[#allocation13_spill]]  ;;  %s9796_s17 = smov %s4841_s18 }
 0x542   : > { %p25_p13 = scmp.ge.s32.totalorder %s9793_s20, 4   ;;  %s9797_s18 = smov %s9794_s26 }
 0x544   :  { %27 = sbr.rel (!%p25_p13) target bundleno = 9 (0x9), region = 134 }
 0x54b   :  { %4290 = vsyncpa [#allocation3], 1 }
 0x54c   :  { %4292 = vsyncpa [#allocation3 + $0x1], 1 }
 0x54d   :  { %4293 = vsyncpa [#allocation7], 1 }
 0x54e   :  { %4295 = vsyncpa [#allocation7 + $0x1], 1 }
 0x54f   :  { %4296 = vsyncpa [#allocation4], 1 }
 0x550   :  { %4298 = vsyncpa [#allocation4 + $0x1], 1 }

</bundles_post_ra>
